<compile_context>
chip_gen: v7x
topology: tpu7x:2x2x1
jax: 0.10.0
libtpu: 0.0.40
codegen_flags: <defaults>
</compile_context>

<pallas_src>
import jax
import jax.numpy as jnp
from jax import lax
from jax.experimental import pallas as pl
from jax.experimental.pallas import tpu as pltpu

HIDDEN = 128
LSTM_IN = 162          # z feature width (unpadded; full-extent lane block)
X_DIM = 484            # Farmer feature vector (unpadded)
DENSE = 512
OUT_PAD = 128          # lane-dense output slab; column 0 holds the value


def _round_up(n, m):
    return ((n + m - 1) // m) * m


def _resident_spec(shape):
    """Grid-invariant operand (constant index_map): fetched once, so request a
    single pipeline buffer to halve its VMEM footprint."""
    try:
        return pl.BlockSpec(shape, lambda b: (0, 0),
                            pipeline_mode=pl.Buffered(1))
    except (TypeError, AttributeError):   # older JAX without pipeline_mode
        return pl.BlockSpec(shape, lambda b: (0, 0))


def _farmer_kernel(z_ref, x_ref,
                   wih_ref, whh_ref, blstm_ref,
                   w1h_ref, w1x_ref, b1_ref,
                   w2_ref, b2_ref,
                   w3_ref, b3_ref,
                   w4_ref, b4_ref,
                   w5_ref, b5_ref,
                   w6_ref, b6_ref,
                   out_ref, zw_ref):
    T, TB, _ = z_ref.shape

    # ---- hoisted input projection: T independent MXU matmuls (off the serial
    # path), stored to a bf16 scratch.  Bias is NOT folded in here (it is added
    # in f32 inside the recurrence) so the bf16 store stays well conditioned.
    for t in range(T):
        zw_ref[t] = jnp.dot(z_ref[t], wih_ref[...],
                            preferred_element_type=jnp.float32
                            ).astype(jnp.bfloat16)

    # ---- recurrence: only h @ W_hh (K=128) + gate math per step ------------
    def lstm_step(t, carry):
        h, c = carry                                              # f32 (TB, H)
        gates = (zw_ref[t]                                        # bf16 -> f32
                 + jnp.dot(h.astype(jnp.bfloat16), whh_ref[...],
                           preferred_element_type=jnp.float32)
                 + blstm_ref[...])                                # f32 bias add
        # i|f sigmoids fused into a single 256-lane EUP call.
        if_g = jax.nn.sigmoid(gates[:, :2 * HIDDEN])
        i_g = if_g[:, :HIDDEN]
        f_g = if_g[:, HIDDEN:]
        g_g = jnp.tanh(gates[:, 2 * HIDDEN:3 * HIDDEN])
        o_g = jax.nn.sigmoid(gates[:, 3 * HIDDEN:])
        c_new = f_g * c + i_g * g_g                               # f32 cell
        h_new = o_g * jnp.tanh(c_new)
        return h_new, c_new

    h0 = jnp.zeros((TB, HIDDEN), jnp.float32)
    c0 = jnp.zeros((TB, HIDDEN), jnp.float32)
    h_last, _ = lax.fori_loop(0, T, lstm_step, (h0, c0), unroll=True)

    # ---- dense1 on [lstm_out ; x] without an explicit concat ---------------
    a = (jnp.dot(h_last.astype(jnp.bfloat16), w1h_ref[...],
                 preferred_element_type=jnp.float32)
         + jnp.dot(x_ref[...], w1x_ref[...],
                   preferred_element_type=jnp.float32)
         + b1_ref[...])
    a = jnp.maximum(a, 0.0)

    for w_ref, b_ref in ((w2_ref, b2_ref), (w3_ref, b3_ref),
                         (w4_ref, b4_ref), (w5_ref, b5_ref)):
        a = jnp.maximum(
            jnp.dot(a.astype(jnp.bfloat16), w_ref[...],
                    preferred_element_type=jnp.float32) + b_ref[...], 0.0)

    # dense6 into a lane-dense (TB, 128) slab; column 0 is the value.
    out_ref[...] = (jnp.dot(a.astype(jnp.bfloat16), w6_ref[...],
                            preferred_element_type=jnp.float32) + b6_ref[...])


def init_params(key):
    """Deterministic PyTorch-style uniform(-1/sqrt(fan), 1/sqrt(fan)) init."""
    ks = jax.random.split(key, 16)

    def uni(k, shape, fan):
        bound = 1.0 / jnp.sqrt(jnp.float32(fan))
        return jax.random.uniform(k, shape, jnp.float32, -bound, bound)

    p = {}
    # LSTM: W_ih (4H, 162), W_hh (4H, H), b_ih (4H,), b_hh (4H,)
    p["w_ih"] = uni(ks[0], (4 * HIDDEN, LSTM_IN), HIDDEN)
    p["w_hh"] = uni(ks[1], (4 * HIDDEN, HIDDEN), HIDDEN)
    p["b_ih"] = uni(ks[2], (4 * HIDDEN,), HIDDEN)
    p["b_hh"] = uni(ks[3], (4 * HIDDEN,), HIDDEN)
    # dense1 .. dense6 (torch Linear: weight (out, in), bias (out,))
    dims = [(DENSE, HIDDEN + X_DIM), (DENSE, DENSE), (DENSE, DENSE),
            (DENSE, DENSE), (DENSE, DENSE), (1, DENSE)]
    for idx, (o, i) in enumerate(dims, start=1):
        p[f"w{idx}"] = uni(ks[2 * idx + 2], (o, i), i)
        p[f"b{idx}"] = uni(ks[2 * idx + 3], (o,), i)
    return p


def prepare_params(params):
    """One-time re-layout: transpose to (in, out), cast weights to bf16
    (biases stay f32).  Contraction dims are left unpadded (full-extent
    blocks); only the tiny output head is lane-padded."""
    bf16 = jnp.bfloat16
    p = {}
    p["wih"] = params["w_ih"].T.astype(bf16)                 # (162, 512)
    p["whh"] = params["w_hh"].T.astype(bf16)                 # (128, 512)
    p["blstm"] = (params["b_ih"] + params["b_hh"]).reshape(1, -1).astype(jnp.float32)

    w1 = params["w1"].T                                      # (612, 512)
    p["w1h"] = w1[:HIDDEN, :].astype(bf16)                   # (128, 512)
    p["w1x"] = w1[HIDDEN:, :].astype(bf16)                   # (484, 512)
    p["b1"] = params["b1"].reshape(1, -1).astype(jnp.float32)

    # TODO(synk): on v5e/v6e an int8 variant of w1x/w2..w5 (native int8 MXU)
    # would halve resident-weight DMA for the latency-bound acting path; it
    # does not carry to v7x (fp8-only MXU), so it is omitted here.
    for k in (2, 3, 4, 5):
        p[f"w{k}"] = params[f"w{k}"].T.astype(bf16)
        p[f"b{k}"] = params[f"b{k}"].reshape(1, -1).astype(jnp.float32)

    p["w6"] = jnp.pad(params["w6"].T, ((0, 0), (0, OUT_PAD - 1))).astype(bf16)
    p["b6"] = jnp.pad(params["b6"].reshape(1, 1),
                      ((0, 0), (0, OUT_PAD - 1))).astype(jnp.float32)
    return p


_WEIGHT_KEYS = ["wih", "whh", "blstm", "w1h", "w1x", "b1",
                "w2", "b2", "w3", "b3", "w4", "b4", "w5", "b5", "w6", "b6"]


@jax.jit
def farmer_forward_values(z, x, prep):
    """Returns the `values` tensor of shape (B, 1), equivalent to
    FarmerLstmModel.forward(z, x, return_value=True)['values']."""
    B, T, _ = z.shape

    # Batch tiling: grid >= 2 whenever possible so v7x's two TensorCores both
    # get work on the "parallel" batch axis; TB capped at 128 for big batches.
    if B <= 8:
        TB = 8
    elif B <= 256:
        TB = _round_up(pl.cdiv(B, 2), 8)
    else:
        TB = 128
    Bp = _round_up(B, TB)

    # Time-major bf16, batch zero-padded; feature lanes left at 162 / 484.
    # TODO(synk): for learner-sized B*T keep z time-major upstream (or feed z
    # via memory_space=pl.ANY and DMA per-timestep slices in-kernel) to skip
    # this full extra HBM pass over z.
    z_tm = jnp.transpose(z, (1, 0, 2)).astype(jnp.bfloat16)      # (T, B, 162)
    z_tm = jnp.pad(z_tm, ((0, 0), (0, Bp - B), (0, 0)))
    x_p = jnp.pad(x.astype(jnp.bfloat16), ((0, Bp - B), (0, 0)))

    weights = [prep[k] for k in _WEIGHT_KEYS]
    w_specs = [_resident_spec(w.shape) for w in weights]

    # Explicit VMEM budget from the working set (zw scratch and the z block
    # scale linearly with T; default scoped VMEM is 16 MiB on v5e).
    est = (2 * T * TB * LSTM_IN * 2          # z block, double-buffered, bf16
           + T * TB * 4 * HIDDEN * 2         # zw scratch, bf16
           + 2 * TB * X_DIM * 2              # x block
           + 2 * TB * OUT_PAD * 4            # out block
           + 2 * sum(w.size * w.dtype.itemsize for w in weights))
    vmem_limit = int(min(64 * 1024 * 1024, max(24 * 1024 * 1024, 2 * est)))

    out = pl.pallas_call(
        _farmer_kernel,
        out_shape=jax.ShapeDtypeStruct((Bp, OUT_PAD), jnp.float32),
        grid=(Bp // TB,),
        in_specs=[pl.BlockSpec((T, TB, LSTM_IN), lambda b: (0, b, 0)),
                  pl.BlockSpec((TB, X_DIM), lambda b: (b, 0))] + w_specs,
        out_specs=pl.BlockSpec((TB, OUT_PAD), lambda b: (b, 0)),
        scratch_shapes=[pltpu.VMEM((T, TB, 4 * HIDDEN), jnp.bfloat16)],
        compiler_params=pltpu.CompilerParams(
            dimension_semantics=("parallel",),
            vmem_limit_bytes=vmem_limit),
    )(z_tm, x_p, *weights)

    return out[:B, :1]


def farmer_forward(z, x, prep, return_value=False):
    values = farmer_forward_values(z, x, prep)
    if return_value:
        return dict(values=values)
    # TODO(synk): epsilon-greedy random-action branch (np.random / flags) is
    # host-side control flow and is intentionally left out of the kernel.
    action = jnp.argmax(values, axis=0)[0]
    return dict(action=action)


def _reference_values(z, x, params):
    """Pure-JAX f32 reference replicating torch semantics (sanity check)."""
    B, T, _ = z.shape
    h = jnp.zeros((B, HIDDEN), jnp.float32)
    c = jnp.zeros((B, HIDDEN), jnp.float32)
    for t in range(T):
        gates = (z[:, t, :] @ params["w_ih"].T + params["b_ih"]
                 + h @ params["w_hh"].T + params["b_hh"])
        i_g = jax.nn.sigmoid(gates[:, 0 * HIDDEN:1 * HIDDEN])
        f_g = jax.nn.sigmoid(gates[:, 1 * HIDDEN:2 * HIDDEN])
        g_g = jnp.tanh(gates[:, 2 * HIDDEN:3 * HIDDEN])
        o_g = jax.nn.sigmoid(gates[:, 3 * HIDDEN:4 * HIDDEN])
        c = f_g * c + i_g * g_g
        h = o_g * jnp.tanh(c)
    a = jnp.concatenate([h, x], axis=-1)
    for k in range(1, 6):
        a = jnp.maximum(a @ params[f"w{k}"].T + params[f"b{k}"], 0.0)
    return a @ params["w6"].T + params["b6"]


if __name__ == "__main__":
    key = jax.random.PRNGKey(0)
    kp, kz, kx = jax.random.split(key, 3)

    B, T = 4, 8
    z = jax.random.normal(kz, (B, T, LSTM_IN), jnp.float32)
    x = jax.random.normal(kx, (B, X_DIM), jnp.float32)
    params = init_params(kp)
    prep = prepare_params(params)

    out = farmer_forward(z, x, prep, return_value=True)
    values = jax.block_until_ready(out["values"])
    assert values.shape == (B, 1)

    ref = _reference_values(z, x, params)
    err = jnp.max(jnp.abs(values - ref))
    tol = 5e-2 * (1.0 + jnp.max(jnp.abs(ref)))   # bf16 matmuls, f32 accumulate
    assert err < tol, f"mismatch: max abs err {err} (tol {tol})"

    act = jax.block_until_ready(farmer_forward(z, x, prep)["action"])
    assert act.shape == ()

    print("KERNEL_OK")
</pallas_src>

<mosaic_0001>
module attributes {stable_mosaic.version = 11 : i64} {
  func.func @_farmer_kernel(%arg0: i32, %arg1: memref<8x8x162xbf16, #tpu.memory_space<vmem>>, %arg2: memref<8x484xbf16, #tpu.memory_space<vmem>>, %arg3: memref<162x512xbf16, #tpu.memory_space<vmem>>, %arg4: memref<128x512xbf16, #tpu.memory_space<vmem>>, %arg5: memref<1x512xf32, #tpu.memory_space<vmem>>, %arg6: memref<128x512xbf16, #tpu.memory_space<vmem>>, %arg7: memref<484x512xbf16, #tpu.memory_space<vmem>>, %arg8: memref<1x512xf32, #tpu.memory_space<vmem>>, %arg9: memref<512x512xbf16, #tpu.memory_space<vmem>>, %arg10: memref<1x512xf32, #tpu.memory_space<vmem>>, %arg11: memref<512x512xbf16, #tpu.memory_space<vmem>>, %arg12: memref<1x512xf32, #tpu.memory_space<vmem>>, %arg13: memref<512x512xbf16, #tpu.memory_space<vmem>>, %arg14: memref<1x512xf32, #tpu.memory_space<vmem>>, %arg15: memref<512x512xbf16, #tpu.memory_space<vmem>>, %arg16: memref<1x512xf32, #tpu.memory_space<vmem>>, %arg17: memref<512x128xbf16, #tpu.memory_space<vmem>>, %arg18: memref<1x128xf32, #tpu.memory_space<vmem>>, %arg19: memref<8x128xf32, #tpu.memory_space<vmem>>, %arg20: memref<8x8x512xbf16, #tpu.memory_space<vmem>>) attributes {dimension_semantics = [#tpu.dimension_semantics<parallel>], iteration_bounds = array<i64: 1>, scalar_prefetch = 0 : i64, scratch_operands = 1 : i64, tpu.core_type = #tpu.core_type<tc>, window_params = [{transform_indices = @transform_0, window_bounds = array<i64: 8, 8, 162>}, {transform_indices = @transform_1, window_bounds = array<i64: 8, 484>}, {pipeline_mode = #tpu.pipeline_mode<synchronous>, transform_indices = @transform_2, window_bounds = array<i64: 162, 512>}, {pipeline_mode = #tpu.pipeline_mode<synchronous>, transform_indices = @transform_3, window_bounds = array<i64: 128, 512>}, {pipeline_mode = #tpu.pipeline_mode<synchronous>, transform_indices = @transform_4, window_bounds = array<i64: 1, 512>}, {pipeline_mode = #tpu.pipeline_mode<synchronous>, transform_indices = @transform_5, window_bounds = array<i64: 128, 512>}, {pipeline_mode = #tpu.pipeline_mode<synchronous>, transform_indices = @transform_6, window_bounds = array<i64: 484, 512>}, {pipeline_mode = #tpu.pipeline_mode<synchronous>, transform_indices = @transform_7, window_bounds = array<i64: 1, 512>}, {pipeline_mode = #tpu.pipeline_mode<synchronous>, transform_indices = @transform_8, window_bounds = array<i64: 512, 512>}, {pipeline_mode = #tpu.pipeline_mode<synchronous>, transform_indices = @transform_9, window_bounds = array<i64: 1, 512>}, {pipeline_mode = #tpu.pipeline_mode<synchronous>, transform_indices = @transform_10, window_bounds = array<i64: 512, 512>}, {pipeline_mode = #tpu.pipeline_mode<synchronous>, transform_indices = @transform_11, window_bounds = array<i64: 1, 512>}, {pipeline_mode = #tpu.pipeline_mode<synchronous>, transform_indices = @transform_12, window_bounds = array<i64: 512, 512>}, {pipeline_mode = #tpu.pipeline_mode<synchronous>, transform_indices = @transform_13, window_bounds = array<i64: 1, 512>}, {pipeline_mode = #tpu.pipeline_mode<synchronous>, transform_indices = @transform_14, window_bounds = array<i64: 512, 512>}, {pipeline_mode = #tpu.pipeline_mode<synchronous>, transform_indices = @transform_15, window_bounds = array<i64: 1, 512>}, {pipeline_mode = #tpu.pipeline_mode<synchronous>, transform_indices = @transform_16, window_bounds = array<i64: 512, 128>}, {pipeline_mode = #tpu.pipeline_mode<synchronous>, transform_indices = @transform_17, window_bounds = array<i64: 1, 128>}, {transform_indices = @transform_18, window_bounds = array<i64: 8, 128>}]} {
    %c0 = arith.constant 0 : index
    %c0_0 = arith.constant 0 : index
    %c0_1 = arith.constant 0 : index
    %0 = vector.load %arg1[%c0, %c0_0, %c0_1] : memref<8x8x162xbf16, #tpu.memory_space<vmem>>, vector<1x8x162xbf16>
    %1 = vector.shape_cast %0 : vector<1x8x162xbf16> to vector<8x162xbf16>
    %c0_2 = arith.constant 0 : index
    %c0_3 = arith.constant 0 : index
    %2 = vector.load %arg3[%c0_2, %c0_3] : memref<162x512xbf16, #tpu.memory_space<vmem>>, vector<162x512xbf16>
    %cst = arith.constant dense<0.000000e+00> : vector<8x512xf32>
    %3 = tpu.matmul %1, %2, %cst {dimension_numbers = #tpu.dot_dimension_numbers<[1], [0], [0], [1], [0, 0, 1, 1], [], []>} : vector<8x162xbf16>, vector<162x512xbf16>, vector<8x512xf32> -> vector<8x512xf32>
    %4 = arith.truncf %3 : vector<8x512xf32> to vector<8x512xbf16>
    %c0_4 = arith.constant 0 : index
    %c0_5 = arith.constant 0 : index
    %c0_6 = arith.constant 0 : index
    %5 = vector.load %arg20[%c0_4, %c0_5, %c0_6] : memref<8x8x512xbf16, #tpu.memory_space<vmem>>, vector<1x8x512xbf16>
    %6 = vector.shape_cast %5 : vector<1x8x512xbf16> to vector<8x512xbf16>
    %7 = vector.shape_cast %4 : vector<8x512xbf16> to vector<1x8x512xbf16>
    tpu.vector_store %arg20[%c0_4, %c0_5, %c0_6], %7 {strides = array<i32>} : memref<8x8x512xbf16, #tpu.memory_space<vmem>>, vector<1x8x512xbf16>,
    %c1 = arith.constant 1 : index
    %c0_7 = arith.constant 0 : index
    %c0_8 = arith.constant 0 : index
    %8 = vector.load %arg1[%c1, %c0_7, %c0_8] : memref<8x8x162xbf16, #tpu.memory_space<vmem>>, vector<1x8x162xbf16>
    %9 = vector.shape_cast %8 : vector<1x8x162xbf16> to vector<8x162xbf16>
    %c0_9 = arith.constant 0 : index
    %c0_10 = arith.constant 0 : index
    %10 = vector.load %arg3[%c0_9, %c0_10] : memref<162x512xbf16, #tpu.memory_space<vmem>>, vector<162x512xbf16>
    %cst_11 = arith.constant dense<0.000000e+00> : vector<8x512xf32>
    %11 = tpu.matmul %9, %10, %cst_11 {dimension_numbers = #tpu.dot_dimension_numbers<[1], [0], [0], [1], [0, 0, 1, 1], [], []>} : vector<8x162xbf16>, vector<162x512xbf16>, vector<8x512xf32> -> vector<8x512xf32>
    %12 = arith.truncf %11 : vector<8x512xf32> to vector<8x512xbf16>
    %c1_12 = arith.constant 1 : index
    %c0_13 = arith.constant 0 : index
    %c0_14 = arith.constant 0 : index
    %13 = vector.load %arg20[%c1_12, %c0_13, %c0_14] : memref<8x8x512xbf16, #tpu.memory_space<vmem>>, vector<1x8x512xbf16>
    %14 = vector.shape_cast %13 : vector<1x8x512xbf16> to vector<8x512xbf16>
    %15 = vector.shape_cast %12 : vector<8x512xbf16> to vector<1x8x512xbf16>
    tpu.vector_store %arg20[%c1_12, %c0_13, %c0_14], %15 {strides = array<i32>} : memref<8x8x512xbf16, #tpu.memory_space<vmem>>, vector<1x8x512xbf16>,
    %c2 = arith.constant 2 : index
    %c0_15 = arith.constant 0 : index
    %c0_16 = arith.constant 0 : index
    %16 = vector.load %arg1[%c2, %c0_15, %c0_16] : memref<8x8x162xbf16, #tpu.memory_space<vmem>>, vector<1x8x162xbf16>
    %17 = vector.shape_cast %16 : vector<1x8x162xbf16> to vector<8x162xbf16>
    %c0_17 = arith.constant 0 : index
    %c0_18 = arith.constant 0 : index
    %18 = vector.load %arg3[%c0_17, %c0_18] : memref<162x512xbf16, #tpu.memory_space<vmem>>, vector<162x512xbf16>
    %cst_19 = arith.constant dense<0.000000e+00> : vector<8x512xf32>
    %19 = tpu.matmul %17, %18, %cst_19 {dimension_numbers = #tpu.dot_dimension_numbers<[1], [0], [0], [1], [0, 0, 1, 1], [], []>} : vector<8x162xbf16>, vector<162x512xbf16>, vector<8x512xf32> -> vector<8x512xf32>
    %20 = arith.truncf %19 : vector<8x512xf32> to vector<8x512xbf16>
    %c2_20 = arith.constant 2 : index
    %c0_21 = arith.constant 0 : index
    %c0_22 = arith.constant 0 : index
    %21 = vector.load %arg20[%c2_20, %c0_21, %c0_22] : memref<8x8x512xbf16, #tpu.memory_space<vmem>>, vector<1x8x512xbf16>
    %22 = vector.shape_cast %21 : vector<1x8x512xbf16> to vector<8x512xbf16>
    %23 = vector.shape_cast %20 : vector<8x512xbf16> to vector<1x8x512xbf16>
    tpu.vector_store %arg20[%c2_20, %c0_21, %c0_22], %23 {strides = array<i32>} : memref<8x8x512xbf16, #tpu.memory_space<vmem>>, vector<1x8x512xbf16>,
    %c3 = arith.constant 3 : index
    %c0_23 = arith.constant 0 : index
    %c0_24 = arith.constant 0 : index
    %24 = vector.load %arg1[%c3, %c0_23, %c0_24] : memref<8x8x162xbf16, #tpu.memory_space<vmem>>, vector<1x8x162xbf16>
    %25 = vector.shape_cast %24 : vector<1x8x162xbf16> to vector<8x162xbf16>
    %c0_25 = arith.constant 0 : index
    %c0_26 = arith.constant 0 : index
    %26 = vector.load %arg3[%c0_25, %c0_26] : memref<162x512xbf16, #tpu.memory_space<vmem>>, vector<162x512xbf16>
    %cst_27 = arith.constant dense<0.000000e+00> : vector<8x512xf32>
    %27 = tpu.matmul %25, %26, %cst_27 {dimension_numbers = #tpu.dot_dimension_numbers<[1], [0], [0], [1], [0, 0, 1, 1], [], []>} : vector<8x162xbf16>, vector<162x512xbf16>, vector<8x512xf32> -> vector<8x512xf32>
    %28 = arith.truncf %27 : vector<8x512xf32> to vector<8x512xbf16>
    %c3_28 = arith.constant 3 : index
    %c0_29 = arith.constant 0 : index
    %c0_30 = arith.constant 0 : index
    %29 = vector.load %arg20[%c3_28, %c0_29, %c0_30] : memref<8x8x512xbf16, #tpu.memory_space<vmem>>, vector<1x8x512xbf16>
    %30 = vector.shape_cast %29 : vector<1x8x512xbf16> to vector<8x512xbf16>
    %31 = vector.shape_cast %28 : vector<8x512xbf16> to vector<1x8x512xbf16>
    tpu.vector_store %arg20[%c3_28, %c0_29, %c0_30], %31 {strides = array<i32>} : memref<8x8x512xbf16, #tpu.memory_space<vmem>>, vector<1x8x512xbf16>,
    %c4 = arith.constant 4 : index
    %c0_31 = arith.constant 0 : index
    %c0_32 = arith.constant 0 : index
    %32 = vector.load %arg1[%c4, %c0_31, %c0_32] : memref<8x8x162xbf16, #tpu.memory_space<vmem>>, vector<1x8x162xbf16>
    %33 = vector.shape_cast %32 : vector<1x8x162xbf16> to vector<8x162xbf16>
    %c0_33 = arith.constant 0 : index
    %c0_34 = arith.constant 0 : index
    %34 = vector.load %arg3[%c0_33, %c0_34] : memref<162x512xbf16, #tpu.memory_space<vmem>>, vector<162x512xbf16>
    %cst_35 = arith.constant dense<0.000000e+00> : vector<8x512xf32>
    %35 = tpu.matmul %33, %34, %cst_35 {dimension_numbers = #tpu.dot_dimension_numbers<[1], [0], [0], [1], [0, 0, 1, 1], [], []>} : vector<8x162xbf16>, vector<162x512xbf16>, vector<8x512xf32> -> vector<8x512xf32>
    %36 = arith.truncf %35 : vector<8x512xf32> to vector<8x512xbf16>
    %c4_36 = arith.constant 4 : index
    %c0_37 = arith.constant 0 : index
    %c0_38 = arith.constant 0 : index
    %37 = vector.load %arg20[%c4_36, %c0_37, %c0_38] : memref<8x8x512xbf16, #tpu.memory_space<vmem>>, vector<1x8x512xbf16>
    %38 = vector.shape_cast %37 : vector<1x8x512xbf16> to vector<8x512xbf16>
    %39 = vector.shape_cast %36 : vector<8x512xbf16> to vector<1x8x512xbf16>
    tpu.vector_store %arg20[%c4_36, %c0_37, %c0_38], %39 {strides = array<i32>} : memref<8x8x512xbf16, #tpu.memory_space<vmem>>, vector<1x8x512xbf16>,
    %c5 = arith.constant 5 : index
    %c0_39 = arith.constant 0 : index
    %c0_40 = arith.constant 0 : index
    %40 = vector.load %arg1[%c5, %c0_39, %c0_40] : memref<8x8x162xbf16, #tpu.memory_space<vmem>>, vector<1x8x162xbf16>
    %41 = vector.shape_cast %40 : vector<1x8x162xbf16> to vector<8x162xbf16>
    %c0_41 = arith.constant 0 : index
    %c0_42 = arith.constant 0 : index
    %42 = vector.load %arg3[%c0_41, %c0_42] : memref<162x512xbf16, #tpu.memory_space<vmem>>, vector<162x512xbf16>
    %cst_43 = arith.constant dense<0.000000e+00> : vector<8x512xf32>
    %43 = tpu.matmul %41, %42, %cst_43 {dimension_numbers = #tpu.dot_dimension_numbers<[1], [0], [0], [1], [0, 0, 1, 1], [], []>} : vector<8x162xbf16>, vector<162x512xbf16>, vector<8x512xf32> -> vector<8x512xf32>
    %44 = arith.truncf %43 : vector<8x512xf32> to vector<8x512xbf16>
    %c5_44 = arith.constant 5 : index
    %c0_45 = arith.constant 0 : index
    %c0_46 = arith.constant 0 : index
    %45 = vector.load %arg20[%c5_44, %c0_45, %c0_46] : memref<8x8x512xbf16, #tpu.memory_space<vmem>>, vector<1x8x512xbf16>
    %46 = vector.shape_cast %45 : vector<1x8x512xbf16> to vector<8x512xbf16>
    %47 = vector.shape_cast %44 : vector<8x512xbf16> to vector<1x8x512xbf16>
    tpu.vector_store %arg20[%c5_44, %c0_45, %c0_46], %47 {strides = array<i32>} : memref<8x8x512xbf16, #tpu.memory_space<vmem>>, vector<1x8x512xbf16>,
    %c6 = arith.constant 6 : index
    %c0_47 = arith.constant 0 : index
    %c0_48 = arith.constant 0 : index
    %48 = vector.load %arg1[%c6, %c0_47, %c0_48] : memref<8x8x162xbf16, #tpu.memory_space<vmem>>, vector<1x8x162xbf16>
    %49 = vector.shape_cast %48 : vector<1x8x162xbf16> to vector<8x162xbf16>
    %c0_49 = arith.constant 0 : index
    %c0_50 = arith.constant 0 : index
    %50 = vector.load %arg3[%c0_49, %c0_50] : memref<162x512xbf16, #tpu.memory_space<vmem>>, vector<162x512xbf16>
    %cst_51 = arith.constant dense<0.000000e+00> : vector<8x512xf32>
    %51 = tpu.matmul %49, %50, %cst_51 {dimension_numbers = #tpu.dot_dimension_numbers<[1], [0], [0], [1], [0, 0, 1, 1], [], []>} : vector<8x162xbf16>, vector<162x512xbf16>, vector<8x512xf32> -> vector<8x512xf32>
    %52 = arith.truncf %51 : vector<8x512xf32> to vector<8x512xbf16>
    %c6_52 = arith.constant 6 : index
    %c0_53 = arith.constant 0 : index
    %c0_54 = arith.constant 0 : index
    %53 = vector.load %arg20[%c6_52, %c0_53, %c0_54] : memref<8x8x512xbf16, #tpu.memory_space<vmem>>, vector<1x8x512xbf16>
    %54 = vector.shape_cast %53 : vector<1x8x512xbf16> to vector<8x512xbf16>
    %55 = vector.shape_cast %52 : vector<8x512xbf16> to vector<1x8x512xbf16>
    tpu.vector_store %arg20[%c6_52, %c0_53, %c0_54], %55 {strides = array<i32>} : memref<8x8x512xbf16, #tpu.memory_space<vmem>>, vector<1x8x512xbf16>,
    %c7 = arith.constant 7 : index
    %c0_55 = arith.constant 0 : index
    %c0_56 = arith.constant 0 : index
    %56 = vector.load %arg1[%c7, %c0_55, %c0_56] : memref<8x8x162xbf16, #tpu.memory_space<vmem>>, vector<1x8x162xbf16>
    %57 = vector.shape_cast %56 : vector<1x8x162xbf16> to vector<8x162xbf16>
    %c0_57 = arith.constant 0 : index
    %c0_58 = arith.constant 0 : index
    %58 = vector.load %arg3[%c0_57, %c0_58] : memref<162x512xbf16, #tpu.memory_space<vmem>>, vector<162x512xbf16>
    %cst_59 = arith.constant dense<0.000000e+00> : vector<8x512xf32>
    %59 = tpu.matmul %57, %58, %cst_59 {dimension_numbers = #tpu.dot_dimension_numbers<[1], [0], [0], [1], [0, 0, 1, 1], [], []>} : vector<8x162xbf16>, vector<162x512xbf16>, vector<8x512xf32> -> vector<8x512xf32>
    %60 = arith.truncf %59 : vector<8x512xf32> to vector<8x512xbf16>
    %c7_60 = arith.constant 7 : index
    %c0_61 = arith.constant 0 : index
    %c0_62 = arith.constant 0 : index
    %61 = vector.load %arg20[%c7_60, %c0_61, %c0_62] : memref<8x8x512xbf16, #tpu.memory_space<vmem>>, vector<1x8x512xbf16>
    %62 = vector.shape_cast %61 : vector<1x8x512xbf16> to vector<8x512xbf16>
    %63 = vector.shape_cast %60 : vector<8x512xbf16> to vector<1x8x512xbf16>
    tpu.vector_store %arg20[%c7_60, %c0_61, %c0_62], %63 {strides = array<i32>} : memref<8x8x512xbf16, #tpu.memory_space<vmem>>, vector<1x8x512xbf16>,
    %cst_63 = arith.constant 0.000000e+00 : f32
    %64 = vector.broadcast %cst_63 : f32 to vector<8x128xf32>
    %cst_64 = arith.constant 0.000000e+00 : f32
    %65 = vector.broadcast %cst_64 : f32 to vector<8x128xf32>
    %c0_i32 = arith.constant 0 : i32
    %66 = arith.index_cast %c0_i32 : i32 to index
    %c0_65 = arith.constant 0 : index
    %c0_66 = arith.constant 0 : index
    %67 = vector.load %arg20[%66, %c0_65, %c0_66] : memref<8x8x512xbf16, #tpu.memory_space<vmem>>, vector<1x8x512xbf16>
    %68 = vector.shape_cast %67 : vector<1x8x512xbf16> to vector<8x512xbf16>
    %69 = arith.truncf %64 : vector<8x128xf32> to vector<8x128xbf16>
    %c0_67 = arith.constant 0 : index
    %c0_68 = arith.constant 0 : index
    %70 = vector.load %arg4[%c0_67, %c0_68] : memref<128x512xbf16, #tpu.memory_space<vmem>>, vector<128x512xbf16>
    %cst_69 = arith.constant dense<0.000000e+00> : vector<8x512xf32>
    %71 = tpu.matmul %69, %70, %cst_69 {dimension_numbers = #tpu.dot_dimension_numbers<[1], [0], [0], [1], [0, 0, 1, 1], [], []>} : vector<8x128xbf16>, vector<128x512xbf16>, vector<8x512xf32> -> vector<8x512xf32>
    %72 = arith.extf %68 : vector<8x512xbf16> to vector<8x512xf32>
    %73 = arith.addf %72, %71 : vector<8x512xf32>
    %c0_70 = arith.constant 0 : index
    %c0_71 = arith.constant 0 : index
    %74 = vector.load %arg5[%c0_70, %c0_71] : memref<1x512xf32, #tpu.memory_space<vmem>>, vector<1x512xf32>
    %75 = vector.broadcast %74 : vector<1x512xf32> to vector<8x512xf32>
    %76 = arith.addf %73, %75 : vector<8x512xf32>
    %77 = vector.extract_strided_slice %76 {offsets = [0, 0], sizes = [8, 256], strides = [1, 1]} : vector<8x512xf32> to vector<8x256xf32>
    %78 = arith.negf %77 : vector<8x256xf32>
    %79 = math.exp %78 : vector<8x256xf32>
    %cst_72 = arith.constant 1.000000e+00 : f32
    %80 = vector.broadcast %cst_72 : f32 to vector<8x256xf32>
    %81 = arith.addf %80, %79 : vector<8x256xf32>
    %82 = arith.divf %80, %81 : vector<8x256xf32>
    %83 = vector.extract_strided_slice %82 {offsets = [0, 0], sizes = [8, 128], strides = [1, 1]} : vector<8x256xf32> to vector<8x128xf32>
    %84 = vector.extract_strided_slice %82 {offsets = [0, 128], sizes = [8, 128], strides = [1, 1]} : vector<8x256xf32> to vector<8x128xf32>
    %85 = vector.extract_strided_slice %76 {offsets = [0, 256], sizes = [8, 128], strides = [1, 1]} : vector<8x512xf32> to vector<8x128xf32>
    %86 = math.tanh %85 : vector<8x128xf32>
    %87 = vector.extract_strided_slice %76 {offsets = [0, 384], sizes = [8, 128], strides = [1, 1]} : vector<8x512xf32> to vector<8x128xf32>
    %88 = arith.negf %87 : vector<8x128xf32>
    %89 = math.exp %88 : vector<8x128xf32>
    %cst_73 = arith.constant 1.000000e+00 : f32
    %90 = vector.broadcast %cst_73 : f32 to vector<8x128xf32>
    %91 = arith.addf %90, %89 : vector<8x128xf32>
    %92 = arith.divf %90, %91 : vector<8x128xf32>
    %93 = arith.mulf %84, %65 : vector<8x128xf32>
    %94 = arith.mulf %83, %86 : vector<8x128xf32>
    %95 = arith.addf %93, %94 : vector<8x128xf32>
    %96 = math.tanh %95 : vector<8x128xf32>
    %97 = arith.mulf %92, %96 : vector<8x128xf32>
    %c1_i32 = arith.constant 1 : i32
    %98 = arith.index_cast %c1_i32 : i32 to index
    %c0_74 = arith.constant 0 : index
    %c0_75 = arith.constant 0 : index
    %99 = vector.load %arg20[%98, %c0_74, %c0_75] : memref<8x8x512xbf16, #tpu.memory_space<vmem>>, vector<1x8x512xbf16>
    %100 = vector.shape_cast %99 : vector<1x8x512xbf16> to vector<8x512xbf16>
    %101 = arith.truncf %97 : vector<8x128xf32> to vector<8x128xbf16>
    %c0_76 = arith.constant 0 : index
    %c0_77 = arith.constant 0 : index
    %102 = vector.load %arg4[%c0_76, %c0_77] : memref<128x512xbf16, #tpu.memory_space<vmem>>, vector<128x512xbf16>
    %cst_78 = arith.constant dense<0.000000e+00> : vector<8x512xf32>
    %103 = tpu.matmul %101, %102, %cst_78 {dimension_numbers = #tpu.dot_dimension_numbers<[1], [0], [0], [1], [0, 0, 1, 1], [], []>} : vector<8x128xbf16>, vector<128x512xbf16>, vector<8x512xf32> -> vector<8x512xf32>
    %104 = arith.extf %100 : vector<8x512xbf16> to vector<8x512xf32>
    %105 = arith.addf %104, %103 : vector<8x512xf32>
    %c0_79 = arith.constant 0 : index
    %c0_80 = arith.constant 0 : index
    %106 = vector.load %arg5[%c0_79, %c0_80] : memref<1x512xf32, #tpu.memory_space<vmem>>, vector<1x512xf32>
    %107 = vector.broadcast %106 : vector<1x512xf32> to vector<8x512xf32>
    %108 = arith.addf %105, %107 : vector<8x512xf32>
    %109 = vector.extract_strided_slice %108 {offsets = [0, 0], sizes = [8, 256], strides = [1, 1]} : vector<8x512xf32> to vector<8x256xf32>
    %110 = arith.negf %109 : vector<8x256xf32>
    %111 = math.exp %110 : vector<8x256xf32>
    %cst_81 = arith.constant 1.000000e+00 : f32
    %112 = vector.broadcast %cst_81 : f32 to vector<8x256xf32>
    %113 = arith.addf %112, %111 : vector<8x256xf32>
    %114 = arith.divf %112, %113 : vector<8x256xf32>
    %115 = vector.extract_strided_slice %114 {offsets = [0, 0], sizes = [8, 128], strides = [1, 1]} : vector<8x256xf32> to vector<8x128xf32>
    %116 = vector.extract_strided_slice %114 {offsets = [0, 128], sizes = [8, 128], strides = [1, 1]} : vector<8x256xf32> to vector<8x128xf32>
    %117 = vector.extract_strided_slice %108 {offsets = [0, 256], sizes = [8, 128], strides = [1, 1]} : vector<8x512xf32> to vector<8x128xf32>
    %118 = math.tanh %117 : vector<8x128xf32>
    %119 = vector.extract_strided_slice %108 {offsets = [0, 384], sizes = [8, 128], strides = [1, 1]} : vector<8x512xf32> to vector<8x128xf32>
    %120 = arith.negf %119 : vector<8x128xf32>
    %121 = math.exp %120 : vector<8x128xf32>
    %cst_82 = arith.constant 1.000000e+00 : f32
    %122 = vector.broadcast %cst_82 : f32 to vector<8x128xf32>
    %123 = arith.addf %122, %121 : vector<8x128xf32>
    %124 = arith.divf %122, %123 : vector<8x128xf32>
    %125 = arith.mulf %116, %95 : vector<8x128xf32>
    %126 = arith.mulf %115, %118 : vector<8x128xf32>
    %127 = arith.addf %125, %126 : vector<8x128xf32>
    %128 = math.tanh %127 : vector<8x128xf32>
    %129 = arith.mulf %124, %128 : vector<8x128xf32>
    %c2_i32 = arith.constant 2 : i32
    %130 = arith.index_cast %c2_i32 : i32 to index
    %c0_83 = arith.constant 0 : index
    %c0_84 = arith.constant 0 : index
    %131 = vector.load %arg20[%130, %c0_83, %c0_84] : memref<8x8x512xbf16, #tpu.memory_space<vmem>>, vector<1x8x512xbf16>
    %132 = vector.shape_cast %131 : vector<1x8x512xbf16> to vector<8x512xbf16>
    %133 = arith.truncf %129 : vector<8x128xf32> to vector<8x128xbf16>
    %c0_85 = arith.constant 0 : index
    %c0_86 = arith.constant 0 : index
    %134 = vector.load %arg4[%c0_85, %c0_86] : memref<128x512xbf16, #tpu.memory_space<vmem>>, vector<128x512xbf16>
    %cst_87 = arith.constant dense<0.000000e+00> : vector<8x512xf32>
    %135 = tpu.matmul %133, %134, %cst_87 {dimension_numbers = #tpu.dot_dimension_numbers<[1], [0], [0], [1], [0, 0, 1, 1], [], []>} : vector<8x128xbf16>, vector<128x512xbf16>, vector<8x512xf32> -> vector<8x512xf32>
    %136 = arith.extf %132 : vector<8x512xbf16> to vector<8x512xf32>
    %137 = arith.addf %136, %135 : vector<8x512xf32>
    %c0_88 = arith.constant 0 : index
    %c0_89 = arith.constant 0 : index
    %138 = vector.load %arg5[%c0_88, %c0_89] : memref<1x512xf32, #tpu.memory_space<vmem>>, vector<1x512xf32>
    %139 = vector.broadcast %138 : vector<1x512xf32> to vector<8x512xf32>
    %140 = arith.addf %137, %139 : vector<8x512xf32>
    %141 = vector.extract_strided_slice %140 {offsets = [0, 0], sizes = [8, 256], strides = [1, 1]} : vector<8x512xf32> to vector<8x256xf32>
    %142 = arith.negf %141 : vector<8x256xf32>
    %143 = math.exp %142 : vector<8x256xf32>
    %cst_90 = arith.constant 1.000000e+00 : f32
    %144 = vector.broadcast %cst_90 : f32 to vector<8x256xf32>
    %145 = arith.addf %144, %143 : vector<8x256xf32>
    %146 = arith.divf %144, %145 : vector<8x256xf32>
    %147 = vector.extract_strided_slice %146 {offsets = [0, 0], sizes = [8, 128], strides = [1, 1]} : vector<8x256xf32> to vector<8x128xf32>
    %148 = vector.extract_strided_slice %146 {offsets = [0, 128], sizes = [8, 128], strides = [1, 1]} : vector<8x256xf32> to vector<8x128xf32>
    %149 = vector.extract_strided_slice %140 {offsets = [0, 256], sizes = [8, 128], strides = [1, 1]} : vector<8x512xf32> to vector<8x128xf32>
    %150 = math.tanh %149 : vector<8x128xf32>
    %151 = vector.extract_strided_slice %140 {offsets = [0, 384], sizes = [8, 128], strides = [1, 1]} : vector<8x512xf32> to vector<8x128xf32>
    %152 = arith.negf %151 : vector<8x128xf32>
    %153 = math.exp %152 : vector<8x128xf32>
    %cst_91 = arith.constant 1.000000e+00 : f32
    %154 = vector.broadcast %cst_91 : f32 to vector<8x128xf32>
    %155 = arith.addf %154, %153 : vector<8x128xf32>
    %156 = arith.divf %154, %155 : vector<8x128xf32>
    %157 = arith.mulf %148, %127 : vector<8x128xf32>
    %158 = arith.mulf %147, %150 : vector<8x128xf32>
    %159 = arith.addf %157, %158 : vector<8x128xf32>
    %160 = math.tanh %159 : vector<8x128xf32>
    %161 = arith.mulf %156, %160 : vector<8x128xf32>
    %c3_i32 = arith.constant 3 : i32
    %162 = arith.index_cast %c3_i32 : i32 to index
    %c0_92 = arith.constant 0 : index
    %c0_93 = arith.constant 0 : index
    %163 = vector.load %arg20[%162, %c0_92, %c0_93] : memref<8x8x512xbf16, #tpu.memory_space<vmem>>, vector<1x8x512xbf16>
    %164 = vector.shape_cast %163 : vector<1x8x512xbf16> to vector<8x512xbf16>
    %165 = arith.truncf %161 : vector<8x128xf32> to vector<8x128xbf16>
    %c0_94 = arith.constant 0 : index
    %c0_95 = arith.constant 0 : index
    %166 = vector.load %arg4[%c0_94, %c0_95] : memref<128x512xbf16, #tpu.memory_space<vmem>>, vector<128x512xbf16>
    %cst_96 = arith.constant dense<0.000000e+00> : vector<8x512xf32>
    %167 = tpu.matmul %165, %166, %cst_96 {dimension_numbers = #tpu.dot_dimension_numbers<[1], [0], [0], [1], [0, 0, 1, 1], [], []>} : vector<8x128xbf16>, vector<128x512xbf16>, vector<8x512xf32> -> vector<8x512xf32>
    %168 = arith.extf %164 : vector<8x512xbf16> to vector<8x512xf32>
    %169 = arith.addf %168, %167 : vector<8x512xf32>
    %c0_97 = arith.constant 0 : index
    %c0_98 = arith.constant 0 : index
    %170 = vector.load %arg5[%c0_97, %c0_98] : memref<1x512xf32, #tpu.memory_space<vmem>>, vector<1x512xf32>
    %171 = vector.broadcast %170 : vector<1x512xf32> to vector<8x512xf32>
    %172 = arith.addf %169, %171 : vector<8x512xf32>
    %173 = vector.extract_strided_slice %172 {offsets = [0, 0], sizes = [8, 256], strides = [1, 1]} : vector<8x512xf32> to vector<8x256xf32>
    %174 = arith.negf %173 : vector<8x256xf32>
    %175 = math.exp %174 : vector<8x256xf32>
    %cst_99 = arith.constant 1.000000e+00 : f32
    %176 = vector.broadcast %cst_99 : f32 to vector<8x256xf32>
    %177 = arith.addf %176, %175 : vector<8x256xf32>
    %178 = arith.divf %176, %177 : vector<8x256xf32>
    %179 = vector.extract_strided_slice %178 {offsets = [0, 0], sizes = [8, 128], strides = [1, 1]} : vector<8x256xf32> to vector<8x128xf32>
    %180 = vector.extract_strided_slice %178 {offsets = [0, 128], sizes = [8, 128], strides = [1, 1]} : vector<8x256xf32> to vector<8x128xf32>
    %181 = vector.extract_strided_slice %172 {offsets = [0, 256], sizes = [8, 128], strides = [1, 1]} : vector<8x512xf32> to vector<8x128xf32>
    %182 = math.tanh %181 : vector<8x128xf32>
    %183 = vector.extract_strided_slice %172 {offsets = [0, 384], sizes = [8, 128], strides = [1, 1]} : vector<8x512xf32> to vector<8x128xf32>
    %184 = arith.negf %183 : vector<8x128xf32>
    %185 = math.exp %184 : vector<8x128xf32>
    %cst_100 = arith.constant 1.000000e+00 : f32
    %186 = vector.broadcast %cst_100 : f32 to vector<8x128xf32>
    %187 = arith.addf %186, %185 : vector<8x128xf32>
    %188 = arith.divf %186, %187 : vector<8x128xf32>
    %189 = arith.mulf %180, %159 : vector<8x128xf32>
    %190 = arith.mulf %179, %182 : vector<8x128xf32>
    %191 = arith.addf %189, %190 : vector<8x128xf32>
    %192 = math.tanh %191 : vector<8x128xf32>
    %193 = arith.mulf %188, %192 : vector<8x128xf32>
    %c4_i32 = arith.constant 4 : i32
    %194 = arith.index_cast %c4_i32 : i32 to index
    %c0_101 = arith.constant 0 : index
    %c0_102 = arith.constant 0 : index
    %195 = vector.load %arg20[%194, %c0_101, %c0_102] : memref<8x8x512xbf16, #tpu.memory_space<vmem>>, vector<1x8x512xbf16>
    %196 = vector.shape_cast %195 : vector<1x8x512xbf16> to vector<8x512xbf16>
    %197 = arith.truncf %193 : vector<8x128xf32> to vector<8x128xbf16>
    %c0_103 = arith.constant 0 : index
    %c0_104 = arith.constant 0 : index
    %198 = vector.load %arg4[%c0_103, %c0_104] : memref<128x512xbf16, #tpu.memory_space<vmem>>, vector<128x512xbf16>
    %cst_105 = arith.constant dense<0.000000e+00> : vector<8x512xf32>
    %199 = tpu.matmul %197, %198, %cst_105 {dimension_numbers = #tpu.dot_dimension_numbers<[1], [0], [0], [1], [0, 0, 1, 1], [], []>} : vector<8x128xbf16>, vector<128x512xbf16>, vector<8x512xf32> -> vector<8x512xf32>
    %200 = arith.extf %196 : vector<8x512xbf16> to vector<8x512xf32>
    %201 = arith.addf %200, %199 : vector<8x512xf32>
    %c0_106 = arith.constant 0 : index
    %c0_107 = arith.constant 0 : index
    %202 = vector.load %arg5[%c0_106, %c0_107] : memref<1x512xf32, #tpu.memory_space<vmem>>, vector<1x512xf32>
    %203 = vector.broadcast %202 : vector<1x512xf32> to vector<8x512xf32>
    %204 = arith.addf %201, %203 : vector<8x512xf32>
    %205 = vector.extract_strided_slice %204 {offsets = [0, 0], sizes = [8, 256], strides = [1, 1]} : vector<8x512xf32> to vector<8x256xf32>
    %206 = arith.negf %205 : vector<8x256xf32>
    %207 = math.exp %206 : vector<8x256xf32>
    %cst_108 = arith.constant 1.000000e+00 : f32
    %208 = vector.broadcast %cst_108 : f32 to vector<8x256xf32>
    %209 = arith.addf %208, %207 : vector<8x256xf32>
    %210 = arith.divf %208, %209 : vector<8x256xf32>
    %211 = vector.extract_strided_slice %210 {offsets = [0, 0], sizes = [8, 128], strides = [1, 1]} : vector<8x256xf32> to vector<8x128xf32>
    %212 = vector.extract_strided_slice %210 {offsets = [0, 128], sizes = [8, 128], strides = [1, 1]} : vector<8x256xf32> to vector<8x128xf32>
    %213 = vector.extract_strided_slice %204 {offsets = [0, 256], sizes = [8, 128], strides = [1, 1]} : vector<8x512xf32> to vector<8x128xf32>
    %214 = math.tanh %213 : vector<8x128xf32>
    %215 = vector.extract_strided_slice %204 {offsets = [0, 384], sizes = [8, 128], strides = [1, 1]} : vector<8x512xf32> to vector<8x128xf32>
    %216 = arith.negf %215 : vector<8x128xf32>
    %217 = math.exp %216 : vector<8x128xf32>
    %cst_109 = arith.constant 1.000000e+00 : f32
    %218 = vector.broadcast %cst_109 : f32 to vector<8x128xf32>
    %219 = arith.addf %218, %217 : vector<8x128xf32>
    %220 = arith.divf %218, %219 : vector<8x128xf32>
    %221 = arith.mulf %212, %191 : vector<8x128xf32>
    %222 = arith.mulf %211, %214 : vector<8x128xf32>
    %223 = arith.addf %221, %222 : vector<8x128xf32>
    %224 = math.tanh %223 : vector<8x128xf32>
    %225 = arith.mulf %220, %224 : vector<8x128xf32>
    %c5_i32 = arith.constant 5 : i32
    %226 = arith.index_cast %c5_i32 : i32 to index
    %c0_110 = arith.constant 0 : index
    %c0_111 = arith.constant 0 : index
    %227 = vector.load %arg20[%226, %c0_110, %c0_111] : memref<8x8x512xbf16, #tpu.memory_space<vmem>>, vector<1x8x512xbf16>
    %228 = vector.shape_cast %227 : vector<1x8x512xbf16> to vector<8x512xbf16>
    %229 = arith.truncf %225 : vector<8x128xf32> to vector<8x128xbf16>
    %c0_112 = arith.constant 0 : index
    %c0_113 = arith.constant 0 : index
    %230 = vector.load %arg4[%c0_112, %c0_113] : memref<128x512xbf16, #tpu.memory_space<vmem>>, vector<128x512xbf16>
    %cst_114 = arith.constant dense<0.000000e+00> : vector<8x512xf32>
    %231 = tpu.matmul %229, %230, %cst_114 {dimension_numbers = #tpu.dot_dimension_numbers<[1], [0], [0], [1], [0, 0, 1, 1], [], []>} : vector<8x128xbf16>, vector<128x512xbf16>, vector<8x512xf32> -> vector<8x512xf32>
    %232 = arith.extf %228 : vector<8x512xbf16> to vector<8x512xf32>
    %233 = arith.addf %232, %231 : vector<8x512xf32>
    %c0_115 = arith.constant 0 : index
    %c0_116 = arith.constant 0 : index
    %234 = vector.load %arg5[%c0_115, %c0_116] : memref<1x512xf32, #tpu.memory_space<vmem>>, vector<1x512xf32>
    %235 = vector.broadcast %234 : vector<1x512xf32> to vector<8x512xf32>
    %236 = arith.addf %233, %235 : vector<8x512xf32>
    %237 = vector.extract_strided_slice %236 {offsets = [0, 0], sizes = [8, 256], strides = [1, 1]} : vector<8x512xf32> to vector<8x256xf32>
    %238 = arith.negf %237 : vector<8x256xf32>
    %239 = math.exp %238 : vector<8x256xf32>
    %cst_117 = arith.constant 1.000000e+00 : f32
    %240 = vector.broadcast %cst_117 : f32 to vector<8x256xf32>
    %241 = arith.addf %240, %239 : vector<8x256xf32>
    %242 = arith.divf %240, %241 : vector<8x256xf32>
    %243 = vector.extract_strided_slice %242 {offsets = [0, 0], sizes = [8, 128], strides = [1, 1]} : vector<8x256xf32> to vector<8x128xf32>
    %244 = vector.extract_strided_slice %242 {offsets = [0, 128], sizes = [8, 128], strides = [1, 1]} : vector<8x256xf32> to vector<8x128xf32>
    %245 = vector.extract_strided_slice %236 {offsets = [0, 256], sizes = [8, 128], strides = [1, 1]} : vector<8x512xf32> to vector<8x128xf32>
    %246 = math.tanh %245 : vector<8x128xf32>
    %247 = vector.extract_strided_slice %236 {offsets = [0, 384], sizes = [8, 128], strides = [1, 1]} : vector<8x512xf32> to vector<8x128xf32>
    %248 = arith.negf %247 : vector<8x128xf32>
    %249 = math.exp %248 : vector<8x128xf32>
    %cst_118 = arith.constant 1.000000e+00 : f32
    %250 = vector.broadcast %cst_118 : f32 to vector<8x128xf32>
    %251 = arith.addf %250, %249 : vector<8x128xf32>
    %252 = arith.divf %250, %251 : vector<8x128xf32>
    %253 = arith.mulf %244, %223 : vector<8x128xf32>
    %254 = arith.mulf %243, %246 : vector<8x128xf32>
    %255 = arith.addf %253, %254 : vector<8x128xf32>
    %256 = math.tanh %255 : vector<8x128xf32>
    %257 = arith.mulf %252, %256 : vector<8x128xf32>
    %c6_i32 = arith.constant 6 : i32
    %258 = arith.index_cast %c6_i32 : i32 to index
    %c0_119 = arith.constant 0 : index
    %c0_120 = arith.constant 0 : index
    %259 = vector.load %arg20[%258, %c0_119, %c0_120] : memref<8x8x512xbf16, #tpu.memory_space<vmem>>, vector<1x8x512xbf16>
    %260 = vector.shape_cast %259 : vector<1x8x512xbf16> to vector<8x512xbf16>
    %261 = arith.truncf %257 : vector<8x128xf32> to vector<8x128xbf16>
    %c0_121 = arith.constant 0 : index
    %c0_122 = arith.constant 0 : index
    %262 = vector.load %arg4[%c0_121, %c0_122] : memref<128x512xbf16, #tpu.memory_space<vmem>>, vector<128x512xbf16>
    %cst_123 = arith.constant dense<0.000000e+00> : vector<8x512xf32>
    %263 = tpu.matmul %261, %262, %cst_123 {dimension_numbers = #tpu.dot_dimension_numbers<[1], [0], [0], [1], [0, 0, 1, 1], [], []>} : vector<8x128xbf16>, vector<128x512xbf16>, vector<8x512xf32> -> vector<8x512xf32>
    %264 = arith.extf %260 : vector<8x512xbf16> to vector<8x512xf32>
    %265 = arith.addf %264, %263 : vector<8x512xf32>
    %c0_124 = arith.constant 0 : index
    %c0_125 = arith.constant 0 : index
    %266 = vector.load %arg5[%c0_124, %c0_125] : memref<1x512xf32, #tpu.memory_space<vmem>>, vector<1x512xf32>
    %267 = vector.broadcast %266 : vector<1x512xf32> to vector<8x512xf32>
    %268 = arith.addf %265, %267 : vector<8x512xf32>
    %269 = vector.extract_strided_slice %268 {offsets = [0, 0], sizes = [8, 256], strides = [1, 1]} : vector<8x512xf32> to vector<8x256xf32>
    %270 = arith.negf %269 : vector<8x256xf32>
    %271 = math.exp %270 : vector<8x256xf32>
    %cst_126 = arith.constant 1.000000e+00 : f32
    %272 = vector.broadcast %cst_126 : f32 to vector<8x256xf32>
    %273 = arith.addf %272, %271 : vector<8x256xf32>
    %274 = arith.divf %272, %273 : vector<8x256xf32>
    %275 = vector.extract_strided_slice %274 {offsets = [0, 0], sizes = [8, 128], strides = [1, 1]} : vector<8x256xf32> to vector<8x128xf32>
    %276 = vector.extract_strided_slice %274 {offsets = [0, 128], sizes = [8, 128], strides = [1, 1]} : vector<8x256xf32> to vector<8x128xf32>
    %277 = vector.extract_strided_slice %268 {offsets = [0, 256], sizes = [8, 128], strides = [1, 1]} : vector<8x512xf32> to vector<8x128xf32>
    %278 = math.tanh %277 : vector<8x128xf32>
    %279 = vector.extract_strided_slice %268 {offsets = [0, 384], sizes = [8, 128], strides = [1, 1]} : vector<8x512xf32> to vector<8x128xf32>
    %280 = arith.negf %279 : vector<8x128xf32>
    %281 = math.exp %280 : vector<8x128xf32>
    %cst_127 = arith.constant 1.000000e+00 : f32
    %282 = vector.broadcast %cst_127 : f32 to vector<8x128xf32>
    %283 = arith.addf %282, %281 : vector<8x128xf32>
    %284 = arith.divf %282, %283 : vector<8x128xf32>
    %285 = arith.mulf %276, %255 : vector<8x128xf32>
    %286 = arith.mulf %275, %278 : vector<8x128xf32>
    %287 = arith.addf %285, %286 : vector<8x128xf32>
    %288 = math.tanh %287 : vector<8x128xf32>
    %289 = arith.mulf %284, %288 : vector<8x128xf32>
    %c7_i32 = arith.constant 7 : i32
    %290 = arith.index_cast %c7_i32 : i32 to index
    %c0_128 = arith.constant 0 : index
    %c0_129 = arith.constant 0 : index
    %291 = vector.load %arg20[%290, %c0_128, %c0_129] : memref<8x8x512xbf16, #tpu.memory_space<vmem>>, vector<1x8x512xbf16>
    %292 = vector.shape_cast %291 : vector<1x8x512xbf16> to vector<8x512xbf16>
    %293 = arith.truncf %289 : vector<8x128xf32> to vector<8x128xbf16>
    %c0_130 = arith.constant 0 : index
    %c0_131 = arith.constant 0 : index
    %294 = vector.load %arg4[%c0_130, %c0_131] : memref<128x512xbf16, #tpu.memory_space<vmem>>, vector<128x512xbf16>
    %cst_132 = arith.constant dense<0.000000e+00> : vector<8x512xf32>
    %295 = tpu.matmul %293, %294, %cst_132 {dimension_numbers = #tpu.dot_dimension_numbers<[1], [0], [0], [1], [0, 0, 1, 1], [], []>} : vector<8x128xbf16>, vector<128x512xbf16>, vector<8x512xf32> -> vector<8x512xf32>
    %296 = arith.extf %292 : vector<8x512xbf16> to vector<8x512xf32>
    %297 = arith.addf %296, %295 : vector<8x512xf32>
    %c0_133 = arith.constant 0 : index
    %c0_134 = arith.constant 0 : index
    %298 = vector.load %arg5[%c0_133, %c0_134] : memref<1x512xf32, #tpu.memory_space<vmem>>, vector<1x512xf32>
    %299 = vector.broadcast %298 : vector<1x512xf32> to vector<8x512xf32>
    %300 = arith.addf %297, %299 : vector<8x512xf32>
    %301 = vector.extract_strided_slice %300 {offsets = [0, 0], sizes = [8, 256], strides = [1, 1]} : vector<8x512xf32> to vector<8x256xf32>
    %302 = arith.negf %301 : vector<8x256xf32>
    %303 = math.exp %302 : vector<8x256xf32>
    %cst_135 = arith.constant 1.000000e+00 : f32
    %304 = vector.broadcast %cst_135 : f32 to vector<8x256xf32>
    %305 = arith.addf %304, %303 : vector<8x256xf32>
    %306 = arith.divf %304, %305 : vector<8x256xf32>
    %307 = vector.extract_strided_slice %306 {offsets = [0, 0], sizes = [8, 128], strides = [1, 1]} : vector<8x256xf32> to vector<8x128xf32>
    %308 = vector.extract_strided_slice %306 {offsets = [0, 128], sizes = [8, 128], strides = [1, 1]} : vector<8x256xf32> to vector<8x128xf32>
    %309 = vector.extract_strided_slice %300 {offsets = [0, 256], sizes = [8, 128], strides = [1, 1]} : vector<8x512xf32> to vector<8x128xf32>
    %310 = math.tanh %309 : vector<8x128xf32>
    %311 = vector.extract_strided_slice %300 {offsets = [0, 384], sizes = [8, 128], strides = [1, 1]} : vector<8x512xf32> to vector<8x128xf32>
    %312 = arith.negf %311 : vector<8x128xf32>
    %313 = math.exp %312 : vector<8x128xf32>
    %cst_136 = arith.constant 1.000000e+00 : f32
    %314 = vector.broadcast %cst_136 : f32 to vector<8x128xf32>
    %315 = arith.addf %314, %313 : vector<8x128xf32>
    %316 = arith.divf %314, %315 : vector<8x128xf32>
    %317 = arith.mulf %308, %287 : vector<8x128xf32>
    %318 = arith.mulf %307, %310 : vector<8x128xf32>
    %319 = arith.addf %317, %318 : vector<8x128xf32>
    %320 = math.tanh %319 : vector<8x128xf32>
    %321 = arith.mulf %316, %320 : vector<8x128xf32>
    %c8_i32 = arith.constant 8 : i32
    %322 = arith.truncf %321 : vector<8x128xf32> to vector<8x128xbf16>
    %c0_137 = arith.constant 0 : index
    %c0_138 = arith.constant 0 : index
    %323 = vector.load %arg6[%c0_137, %c0_138] : memref<128x512xbf16, #tpu.memory_space<vmem>>, vector<128x512xbf16>
    %cst_139 = arith.constant dense<0.000000e+00> : vector<8x512xf32>
    %324 = tpu.matmul %322, %323, %cst_139 {dimension_numbers = #tpu.dot_dimension_numbers<[1], [0], [0], [1], [0, 0, 1, 1], [], []>} : vector<8x128xbf16>, vector<128x512xbf16>, vector<8x512xf32> -> vector<8x512xf32>
    %c0_140 = arith.constant 0 : index
    %c0_141 = arith.constant 0 : index
    %325 = vector.load %arg2[%c0_140, %c0_141] : memref<8x484xbf16, #tpu.memory_space<vmem>>, vector<8x484xbf16>
    %c0_142 = arith.constant 0 : index
    %c0_143 = arith.constant 0 : index
    %326 = vector.load %arg7[%c0_142, %c0_143] : memref<484x512xbf16, #tpu.memory_space<vmem>>, vector<484x512xbf16>
    %cst_144 = arith.constant dense<0.000000e+00> : vector<8x512xf32>
    %327 = tpu.matmul %325, %326, %cst_144 {dimension_numbers = #tpu.dot_dimension_numbers<[1], [0], [0], [1], [0, 0, 1, 1], [], []>} : vector<8x484xbf16>, vector<484x512xbf16>, vector<8x512xf32> -> vector<8x512xf32>
    %328 = arith.addf %324, %327 : vector<8x512xf32>
    %c0_145 = arith.constant 0 : index
    %c0_146 = arith.constant 0 : index
    %329 = vector.load %arg8[%c0_145, %c0_146] : memref<1x512xf32, #tpu.memory_space<vmem>>, vector<1x512xf32>
    %330 = vector.broadcast %329 : vector<1x512xf32> to vector<8x512xf32>
    %331 = arith.addf %328, %330 : vector<8x512xf32>
    %cst_147 = arith.constant 0.000000e+00 : f32
    %332 = vector.broadcast %cst_147 : f32 to vector<8x512xf32>
    %333 = arith.maximumf %331, %332 : vector<8x512xf32>
    %334 = arith.truncf %333 : vector<8x512xf32> to vector<8x512xbf16>
    %c0_148 = arith.constant 0 : index
    %c0_149 = arith.constant 0 : index
    %335 = vector.load %arg9[%c0_148, %c0_149] : memref<512x512xbf16, #tpu.memory_space<vmem>>, vector<512x512xbf16>
    %cst_150 = arith.constant dense<0.000000e+00> : vector<8x512xf32>
    %336 = tpu.matmul %334, %335, %cst_150 {dimension_numbers = #tpu.dot_dimension_numbers<[1], [0], [0], [1], [0, 0, 1, 1], [], []>} : vector<8x512xbf16>, vector<512x512xbf16>, vector<8x512xf32> -> vector<8x512xf32>
    %c0_151 = arith.constant 0 : index
    %c0_152 = arith.constant 0 : index
    %337 = vector.load %arg10[%c0_151, %c0_152] : memref<1x512xf32, #tpu.memory_space<vmem>>, vector<1x512xf32>
    %338 = vector.broadcast %337 : vector<1x512xf32> to vector<8x512xf32>
    %339 = arith.addf %336, %338 : vector<8x512xf32>
    %cst_153 = arith.constant 0.000000e+00 : f32
    %340 = vector.broadcast %cst_153 : f32 to vector<8x512xf32>
    %341 = arith.maximumf %339, %340 : vector<8x512xf32>
    %342 = arith.truncf %341 : vector<8x512xf32> to vector<8x512xbf16>
    %c0_154 = arith.constant 0 : index
    %c0_155 = arith.constant 0 : index
    %343 = vector.load %arg11[%c0_154, %c0_155] : memref<512x512xbf16, #tpu.memory_space<vmem>>, vector<512x512xbf16>
    %cst_156 = arith.constant dense<0.000000e+00> : vector<8x512xf32>
    %344 = tpu.matmul %342, %343, %cst_156 {dimension_numbers = #tpu.dot_dimension_numbers<[1], [0], [0], [1], [0, 0, 1, 1], [], []>} : vector<8x512xbf16>, vector<512x512xbf16>, vector<8x512xf32> -> vector<8x512xf32>
    %c0_157 = arith.constant 0 : index
    %c0_158 = arith.constant 0 : index
    %345 = vector.load %arg12[%c0_157, %c0_158] : memref<1x512xf32, #tpu.memory_space<vmem>>, vector<1x512xf32>
    %346 = vector.broadcast %345 : vector<1x512xf32> to vector<8x512xf32>
    %347 = arith.addf %344, %346 : vector<8x512xf32>
    %cst_159 = arith.constant 0.000000e+00 : f32
    %348 = vector.broadcast %cst_159 : f32 to vector<8x512xf32>
    %349 = arith.maximumf %347, %348 : vector<8x512xf32>
    %350 = arith.truncf %349 : vector<8x512xf32> to vector<8x512xbf16>
    %c0_160 = arith.constant 0 : index
    %c0_161 = arith.constant 0 : index
    %351 = vector.load %arg13[%c0_160, %c0_161] : memref<512x512xbf16, #tpu.memory_space<vmem>>, vector<512x512xbf16>
    %cst_162 = arith.constant dense<0.000000e+00> : vector<8x512xf32>
    %352 = tpu.matmul %350, %351, %cst_162 {dimension_numbers = #tpu.dot_dimension_numbers<[1], [0], [0], [1], [0, 0, 1, 1], [], []>} : vector<8x512xbf16>, vector<512x512xbf16>, vector<8x512xf32> -> vector<8x512xf32>
    %c0_163 = arith.constant 0 : index
    %c0_164 = arith.constant 0 : index
    %353 = vector.load %arg14[%c0_163, %c0_164] : memref<1x512xf32, #tpu.memory_space<vmem>>, vector<1x512xf32>
    %354 = vector.broadcast %353 : vector<1x512xf32> to vector<8x512xf32>
    %355 = arith.addf %352, %354 : vector<8x512xf32>
    %cst_165 = arith.constant 0.000000e+00 : f32
    %356 = vector.broadcast %cst_165 : f32 to vector<8x512xf32>
    %357 = arith.maximumf %355, %356 : vector<8x512xf32>
    %358 = arith.truncf %357 : vector<8x512xf32> to vector<8x512xbf16>
    %c0_166 = arith.constant 0 : index
    %c0_167 = arith.constant 0 : index
    %359 = vector.load %arg15[%c0_166, %c0_167] : memref<512x512xbf16, #tpu.memory_space<vmem>>, vector<512x512xbf16>
    %cst_168 = arith.constant dense<0.000000e+00> : vector<8x512xf32>
    %360 = tpu.matmul %358, %359, %cst_168 {dimension_numbers = #tpu.dot_dimension_numbers<[1], [0], [0], [1], [0, 0, 1, 1], [], []>} : vector<8x512xbf16>, vector<512x512xbf16>, vector<8x512xf32> -> vector<8x512xf32>
    %c0_169 = arith.constant 0 : index
    %c0_170 = arith.constant 0 : index
    %361 = vector.load %arg16[%c0_169, %c0_170] : memref<1x512xf32, #tpu.memory_space<vmem>>, vector<1x512xf32>
    %362 = vector.broadcast %361 : vector<1x512xf32> to vector<8x512xf32>
    %363 = arith.addf %360, %362 : vector<8x512xf32>
    %cst_171 = arith.constant 0.000000e+00 : f32
    %364 = vector.broadcast %cst_171 : f32 to vector<8x512xf32>
    %365 = arith.maximumf %363, %364 : vector<8x512xf32>
    %366 = arith.truncf %365 : vector<8x512xf32> to vector<8x512xbf16>
    %c0_172 = arith.constant 0 : index
    %c0_173 = arith.constant 0 : index
    %367 = vector.load %arg17[%c0_172, %c0_173] : memref<512x128xbf16, #tpu.memory_space<vmem>>, vector<512x128xbf16>
    %cst_174 = arith.constant dense<0.000000e+00> : vector<8x128xf32>
    %368 = tpu.matmul %366, %367, %cst_174 {dimension_numbers = #tpu.dot_dimension_numbers<[1], [0], [0], [1], [0, 0, 1, 1], [], []>} : vector<8x512xbf16>, vector<512x128xbf16>, vector<8x128xf32> -> vector<8x128xf32>
    %c0_175 = arith.constant 0 : index
    %c0_176 = arith.constant 0 : index
    %369 = vector.load %arg18[%c0_175, %c0_176] : memref<1x128xf32, #tpu.memory_space<vmem>>, vector<1x128xf32>
    %370 = vector.broadcast %369 : vector<1x128xf32> to vector<8x128xf32>
    %371 = arith.addf %368, %370 : vector<8x128xf32>
    %c0_177 = arith.constant 0 : index
    %c0_178 = arith.constant 0 : index
    %372 = vector.load %arg19[%c0_177, %c0_178] : memref<8x128xf32, #tpu.memory_space<vmem>>, vector<8x128xf32>
    tpu.vector_store %arg19[%c0_177, %c0_178], %371 {strides = array<i32>} : memref<8x128xf32, #tpu.memory_space<vmem>>, vector<8x128xf32>,
    return
  }
  func.func @transform_0(%arg0: i32) -> (i32, i32, i32) {
    %c0_i32 = arith.constant 0 : i32
    %c0_i32_0 = arith.constant 0 : i32
    %c0_i32_1 = arith.constant 0 : i32
    return %c0_i32, %arg0, %c0_i32_0 : i32, i32, i32
  }
  func.func @transform_1(%arg0: i32) -> (i32, i32) {
    %c0_i32 = arith.constant 0 : i32
    %c0_i32_0 = arith.constant 0 : i32
    return %arg0, %c0_i32 : i32, i32
  }
  func.func @transform_2(%arg0: i32) -> (i32, i32) {
    %c0_i32 = arith.constant 0 : i32
    %c0_i32_0 = arith.constant 0 : i32
    %c0_i32_1 = arith.constant 0 : i32
    return %c0_i32, %c0_i32_0 : i32, i32
  }
  func.func @transform_3(%arg0: i32) -> (i32, i32) {
    %c0_i32 = arith.constant 0 : i32
    %c0_i32_0 = arith.constant 0 : i32
    %c0_i32_1 = arith.constant 0 : i32
    return %c0_i32, %c0_i32_0 : i32, i32
  }
  func.func @transform_4(%arg0: i32) -> (i32, i32) {
    %c0_i32 = arith.constant 0 : i32
    %c0_i32_0 = arith.constant 0 : i32
    %c0_i32_1 = arith.constant 0 : i32
    return %c0_i32, %c0_i32_0 : i32, i32
  }
  func.func @transform_5(%arg0: i32) -> (i32, i32) {
    %c0_i32 = arith.constant 0 : i32
    %c0_i32_0 = arith.constant 0 : i32
    %c0_i32_1 = arith.constant 0 : i32
    return %c0_i32, %c0_i32_0 : i32, i32
  }
  func.func @transform_6(%arg0: i32) -> (i32, i32) {
    %c0_i32 = arith.constant 0 : i32
    %c0_i32_0 = arith.constant 0 : i32
    %c0_i32_1 = arith.constant 0 : i32
    return %c0_i32, %c0_i32_0 : i32, i32
  }
  func.func @transform_7(%arg0: i32) -> (i32, i32) {
    %c0_i32 = arith.constant 0 : i32
    %c0_i32_0 = arith.constant 0 : i32
    %c0_i32_1 = arith.constant 0 : i32
    return %c0_i32, %c0_i32_0 : i32, i32
  }
  func.func @transform_8(%arg0: i32) -> (i32, i32) {
    %c0_i32 = arith.constant 0 : i32
    %c0_i32_0 = arith.constant 0 : i32
    %c0_i32_1 = arith.constant 0 : i32
    return %c0_i32, %c0_i32_0 : i32, i32
  }
  func.func @transform_9(%arg0: i32) -> (i32, i32) {
    %c0_i32 = arith.constant 0 : i32
    %c0_i32_0 = arith.constant 0 : i32
    %c0_i32_1 = arith.constant 0 : i32
    return %c0_i32, %c0_i32_0 : i32, i32
  }
  func.func @transform_10(%arg0: i32) -> (i32, i32) {
    %c0_i32 = arith.constant 0 : i32
    %c0_i32_0 = arith.constant 0 : i32
    %c0_i32_1 = arith.constant 0 : i32
    return %c0_i32, %c0_i32_0 : i32, i32
  }
  func.func @transform_11(%arg0: i32) -> (i32, i32) {
    %c0_i32 = arith.constant 0 : i32
    %c0_i32_0 = arith.constant 0 : i32
    %c0_i32_1 = arith.constant 0 : i32
    return %c0_i32, %c0_i32_0 : i32, i32
  }
  func.func @transform_12(%arg0: i32) -> (i32, i32) {
    %c0_i32 = arith.constant 0 : i32
    %c0_i32_0 = arith.constant 0 : i32
    %c0_i32_1 = arith.constant 0 : i32
    return %c0_i32, %c0_i32_0 : i32, i32
  }
  func.func @transform_13(%arg0: i32) -> (i32, i32) {
    %c0_i32 = arith.constant 0 : i32
    %c0_i32_0 = arith.constant 0 : i32
    %c0_i32_1 = arith.constant 0 : i32
    return %c0_i32, %c0_i32_0 : i32, i32
  }
  func.func @transform_14(%arg0: i32) -> (i32, i32) {
    %c0_i32 = arith.constant 0 : i32
    %c0_i32_0 = arith.constant 0 : i32
    %c0_i32_1 = arith.constant 0 : i32
    return %c0_i32, %c0_i32_0 : i32, i32
  }
  func.func @transform_15(%arg0: i32) -> (i32, i32) {
    %c0_i32 = arith.constant 0 : i32
    %c0_i32_0 = arith.constant 0 : i32
    %c0_i32_1 = arith.constant 0 : i32
    return %c0_i32, %c0_i32_0 : i32, i32
  }
  func.func @transform_16(%arg0: i32) -> (i32, i32) {
    %c0_i32 = arith.constant 0 : i32
    %c0_i32_0 = arith.constant 0 : i32
    %c0_i32_1 = arith.constant 0 : i32
    return %c0_i32, %c0_i32_0 : i32, i32
  }
  func.func @transform_17(%arg0: i32) -> (i32, i32) {
    %c0_i32 = arith.constant 0 : i32
    %c0_i32_0 = arith.constant 0 : i32
    %c0_i32_1 = arith.constant 0 : i32
    return %c0_i32, %c0_i32_0 : i32, i32
  }
  func.func @transform_18(%arg0: i32) -> (i32, i32) {
    %c0_i32 = arith.constant 0 : i32
    %c0_i32_0 = arith.constant 0 : i32
    return %arg0, %c0_i32 : i32, i32
  }
}

</mosaic_0001>

<bundles_post_ra>
// kernel: farmer_forward_values.1
= control target key start
LH: loop header
LB: loop body
LE: loop exit
PB: predicated region body
PF: predicated region fallthrough
CT: control target
= control target key end

     0   :  { %s14388_s0 = inlined_call_operand.vmem [shape: bf16[8,8,162], index: 0, kind: input, shape index: {}]   ;;  %s14389_s1 = inlined_call_operand.vmem [shape: bf16[8,484], index: 1, kind: input, shape index: {}]   ;;  %s14390_s2 = inlined_call_operand.hbm [shape: bf16[162,512], index: 2, kind: input, shape index: {}]   ;;  %s14391_s3 = inlined_call_operand.hbm [shape: bf16[128,512], index: 3, kind: input, shape index: {}]   ;;  %s14392_s4 = inlined_call_operand.vmem [shape: f32[1,512], index: 4, kind: input, shape index: {}]   ;;  %s14393_s5 = inlined_call_operand.vmem [shape: bf16[128,512], index: 5, kind: input, shape index: {}]   ;;  %s14394_s6 = inlined_call_operand.hbm [shape: bf16[484,512], index: 6, kind: input, shape index: {}]   ;;  %s14395_s7 = inlined_call_operand.vmem [shape: f32[1,512], index: 7, kind: input, shape index: {}]   ;;  %s14396_s8 = inlined_call_operand.hbm [shape: bf16[512,512], index: 8, kind: input, shape index: {}]   ;;  %s14397_s9 = inlined_call_operand.vmem [shape: f32[1,512], index: 9, kind: input, shape index: {}]   ;;  %s14398_s10 = inlined_call_operand.hbm [shape: bf16[512,512], index: 10, kind: input, shape index: {}]   ;;  %s14399_s11 = inlined_call_operand.vmem [shape: f32[1,512], index: 11, kind: input, shape index: {}]   ;;  %s14400_s12 = inlined_call_operand.hbm [shape: bf16[512,512], index: 12, kind: input, shape index: {}]   ;;  %s14401_s13 = inlined_call_operand.hbm [shape: f32[1,512], index: 13, kind: input, shape index: {}]   ;;  %s14402_s14 = inlined_call_operand.hbm [shape: bf16[512,512], index: 14, kind: input, shape index: {}]   ;;  %s14403_s15 = inlined_call_operand.hbm [shape: f32[1,512], index: 15, kind: input, shape index: {}]   ;;  %s14404_s16 = inlined_call_operand.hbm [shape: bf16[512,128], index: 16, kind: input, shape index: {}]   ;;  %s14405_s17 = inlined_call_operand.vmem [shape: f32[1,128], index: 17, kind: input, shape index: {}]   ;;  %s14406_s18 = inlined_call_operand.vmem [shape: f32[8,128], index: 18, kind: output, shape index: {}]  }
   0x1   :  { %14428 = sst [smem:[#allocation37_spill]] %s14388_s0 }
   0x2   :  { %14429 = sst [smem:[#allocation38_spill]] %s14389_s1 }
   0x3   :  { %14430 = sst [smem:[#allocation39_spill]] %s14390_s2 }
   0x4   :  { %23 = vsyncpa [#allocation4], 0 }
   0x5   :  { %24 = vsyncpa [#allocation6], 0 }
   0x6   :  { %25 = vsyncpa [#allocation9], 0 }
   0x7   :  { %26 = vsyncpa [#allocation12], 0 }
   0x8   :  { %27 = vsyncpa [#allocation15], 0 }
   0x9   :  { %28 = vsyncpa [#allocation18], 0  ;;  %s12855_s27 = smov [#allocation5]   ;;  %s12856_s29 = smov [#allocation8]  }
   0xa   :  { %s50_s28 = sshll.u32 %s12855_s27, 4  ;;  %s80_s30 = sshll.u32 %s12856_s29, 4  ;;  %s51_s28 = int_to_ptr.vmem [resolvable:$true] %s50_s28  ;;  %s12965_s30 = int_to_ptr.vmem [resolvable:$true] %s80_s30 }
   0xb   :  { %s12623_s1 = scalar_lea.hbm %s14391_s3, 4096 }
   0xc   :  { %p12624_p0 = scmp.ne.s32.totalorder %s14391_s3, %s12623_s1  ;;  %p12627_p1 = scmp.lt.u32.totalorder %s12623_s1, %s14391_s3 }
   0xe   :  { %p12629_p2 = pnand %p12627_p1, %p12624_p0 }
  0x10   :  { %12632 = shalt.err (!%p12629_p2)
}
  0x11   :  { %s12633_s23 = scalar_lea.vmem %s51_s28, 4096  ;;  %p12638_p4 = scmp.lt.s32.totalorder %s51_s28, %s51_s28 }
  0x12   :  { %p12634_p3 = scmp.ne.s32.totalorder %s51_s28, %s12633_s23  ;;  %p12639_p5 = scmp.lt.s32.totalorder %s12633_s23, %s12633_s23 }
  0x14   :  { %p12640_p6 = por %p12639_p5, %p12638_p4 }
  0x16   :  { %p12641_p7 = pnand %p12640_p6, %p12634_p3 }
  0x18   :  { %12644 = shalt.err (!%p12641_p7)
}
  0x19   :  { %s12857_s24 = smov 256   ;;  %s12858_s25 = smov 16  }
  0x1a   :  { %56 = dma.hbm_to_vmem [thread:$0]  %s14391_s3, 4096, %s51_s28, [#allocation6], %s12857_s24, %s12857_s24, %s12858_s25  }
  0x1b   :  { %s12645_s19 = scalar_lea.hbm %s14396_s8, 16384 }
  0x1c   :  { %p12646_p8 = scmp.ne.s32.totalorder %s14396_s8, %s12645_s19  ;;  %p12649_p9 = scmp.lt.u32.totalorder %s12645_s19, %s14396_s8 }
  0x1e   :  { %p12651_p10 = pnand %p12649_p9, %p12646_p8 }
  0x20   :  { %12654 = shalt.err (!%p12651_p10)
}
  0x21   :  { %s12655_s2 = scalar_lea.vmem %s12965_s30, 16384  ;;  %p12660_p12 = scmp.lt.s32.totalorder %s12965_s30, %s12965_s30 }
  0x22   :  { %p12656_p11 = scmp.ne.s32.totalorder %s12965_s30, %s12655_s2  ;;  %p12661_p13 = scmp.lt.s32.totalorder %s12655_s2, %s12655_s2 }
  0x24   :  { %p12662_p0 = por %p12661_p13, %p12660_p12 }
  0x26   :  { %p12663_p1 = pnand %p12662_p0, %p12656_p11 }
  0x28   :  { %12666 = shalt.err (!%p12663_p1)
}
  0x29   :  { %86 = dma.hbm_to_vmem [thread:$0]  %s14396_s8, 16384, %s12965_s30, [#allocation9], %s12857_s24, %s12857_s24, %s12858_s25  }
  0x2a   :  { %s12859_s23 = smov [#allocation11]   ;;  %s12860_s27 = smov [#allocation14]  }
  0x2b   :  { %s108_s26 = sshll.u32 %s12859_s23, 4  ;;  %s130_s29 = sshll.u32 %s12860_s27, 4  ;;  %s109_s26 = int_to_ptr.vmem [resolvable:$true] %s108_s26  ;;  %s13002_s29 = int_to_ptr.vmem [resolvable:$true] %s130_s29 }
  0x2c   :  { %s12667_s1 = scalar_lea.hbm %s14400_s12, 16384 }
  0x2d   :  { %p12668_p2 = scmp.ne.s32.totalorder %s14400_s12, %s12667_s1  ;;  %p12671_p3 = scmp.lt.u32.totalorder %s12667_s1, %s14400_s12 }
  0x2f   :  { %p12673_p4 = pnand %p12671_p3, %p12668_p2 }
  0x31   :  { %12676 = shalt.err (!%p12673_p4)
}
  0x32   :  { %s12677_s8 = scalar_lea.vmem %s109_s26, 16384  ;;  %p12682_p6 = scmp.lt.s32.totalorder %s109_s26, %s109_s26 }
  0x33   :  { %p12678_p5 = scmp.ne.s32.totalorder %s109_s26, %s12677_s8  ;;  %p12683_p7 = scmp.lt.s32.totalorder %s12677_s8, %s12677_s8 }
  0x35   :  { %p12684_p8 = por %p12683_p7, %p12682_p6 }
  0x37   :  { %p12685_p9 = pnand %p12684_p8, %p12678_p5 }
  0x39   :  { %12688 = shalt.err (!%p12685_p9)
}
  0x3a   :  { %114 = dma.hbm_to_vmem [thread:$0]  %s14400_s12, 16384, %s109_s26, [#allocation12], %s12857_s24, %s12857_s24, %s12858_s25  }
  0x3b   :  { %s12689_s27 = scalar_lea.hbm %s14402_s14, 16384 }
  0x3c   :  { %p12690_p10 = scmp.ne.s32.totalorder %s14402_s14, %s12689_s27  ;;  %p12693_p11 = scmp.lt.u32.totalorder %s12689_s27, %s14402_s14 }
  0x3e   :  { %p12695_p12 = pnand %p12693_p11, %p12690_p10 }
  0x40   :  { %12698 = shalt.err (!%p12695_p12)
}
  0x41   :  { %s12699_s21 = scalar_lea.vmem %s13002_s29, 16384  ;;  %p12704_p0 = scmp.lt.s32.totalorder %s13002_s29, %s13002_s29 }
  0x42   :  { %p12700_p13 = scmp.ne.s32.totalorder %s13002_s29, %s12699_s21  ;;  %p12705_p1 = scmp.lt.s32.totalorder %s12699_s21, %s12699_s21 }
  0x44   :  { %p12706_p2 = por %p12705_p1, %p12704_p0 }
  0x46   :  { %p12707_p3 = pnand %p12706_p2, %p12700_p13 }
  0x48   :  { %12710 = shalt.err (!%p12707_p3)
}
  0x49   :  { %136 = dma.hbm_to_vmem [thread:$0]  %s14402_s14, 16384, %s13002_s29, [#allocation15], %s12857_s24, %s12857_s24, %s12858_s25  }
  0x4a   :  { %s12861_s22 = smov [#allocation3]   ;;  %s12862_s8 = smov [#allocation7]  }
  0x4b   :  { %s38_s2 = sshll.u32 %s12861_s22, 4  ;;  %s66_s30 = sshll.u32 %s12862_s8, 4  ;;  %s39_s2 = int_to_ptr.vmem [resolvable:$true] %s38_s2  ;;  %s13039_s30 = int_to_ptr.vmem [resolvable:$true] %s66_s30 }
  0x4c   :  { %s14431_s23 = sld [smem:[#allocation39_spill]] }
  0x52   :  { %s12711_s27 = scalar_lea.hbm %s14431_s23, 5376 }
  0x53   :  { %p12712_p4 = scmp.ne.s32.totalorder %s14431_s23, %s12711_s27  ;;  %p12715_p5 = scmp.lt.u32.totalorder %s12711_s27, %s14431_s23 }
  0x55   :  { %p12717_p6 = pnand %p12715_p5, %p12712_p4 }
  0x57   :  { %12720 = shalt.err (!%p12717_p6)
}
  0x58   :  { %s12721_s14 = scalar_lea.vmem %s39_s2, 5376  ;;  %p12726_p8 = scmp.lt.s32.totalorder %s39_s2, %s39_s2 }
  0x59   :  { %p12722_p7 = scmp.ne.s32.totalorder %s39_s2, %s12721_s14  ;;  %p12727_p9 = scmp.lt.s32.totalorder %s12721_s14, %s12721_s14 }
  0x5b   :  { %p12728_p10 = por %p12727_p9, %p12726_p8 }
  0x5d   :  { %p12729_p11 = pnand %p12728_p10, %p12722_p7 }
  0x5f   :  { %12732 = shalt.err (!%p12729_p11)
}
  0x60   :  { %44 = dma.hbm_to_vmem [thread:$0]  %s14431_s23, 5376, %s39_s2, [#allocation4], %s12857_s24, %s12857_s24, %s12858_s25  }
  0x61   :  { %s12733_s22 = scalar_lea.hbm %s14394_s6, 15616 }
  0x62   :  { %p12734_p12 = scmp.ne.s32.totalorder %s14394_s6, %s12733_s22  ;;  %p12737_p13 = scmp.lt.u32.totalorder %s12733_s22, %s14394_s6 }
  0x64   :  { %p12739_p0 = pnand %p12737_p13, %p12734_p12 }
  0x66   :  { %12742 = shalt.err (!%p12739_p0)
}
  0x67   :  { %s12743_s0 = scalar_lea.vmem %s13039_s30, 15616  ;;  %p12748_p2 = scmp.lt.s32.totalorder %s13039_s30, %s13039_s30 }
  0x68   :  { %p12744_p1 = scmp.ne.s32.totalorder %s13039_s30, %s12743_s0  ;;  %p12749_p3 = scmp.lt.s32.totalorder %s12743_s0, %s12743_s0 }
  0x6a   :  { %p12750_p4 = por %p12749_p3, %p12748_p2 }
  0x6c   :  { %p12751_p5 = pnand %p12750_p4, %p12744_p1 }
  0x6e   :  { %12754 = shalt.err (!%p12751_p5)
}
  0x6f   :  { %72 = dma.hbm_to_vmem [thread:$0]  %s14394_s6, 15616, %s13039_s30, [#allocation6], %s12857_s24, %s12857_s24, %s12858_s25  }
  0x70   :  { %s12863_s19 = smov [#allocation10]   ;;  %s12864_s20 = smov [#allocation13]  }
  0x71   :  { %s94_s1 = sshll.u32 %s12863_s19, 4  ;;  %s121_s14 = sshll.u32 %s12864_s20, 4  ;;  %s95_s1 = int_to_ptr.vmem [resolvable:$true] %s94_s1  ;;  %s122_s14 = int_to_ptr.vmem [resolvable:$true] %s121_s14 }
  0x72   :  { %s12755_s12 = scalar_lea.hbm %s14398_s10, 16384 }
  0x73   :  { %p12756_p6 = scmp.ne.s32.totalorder %s14398_s10, %s12755_s12  ;;  %p12759_p7 = scmp.lt.u32.totalorder %s12755_s12, %s14398_s10 }
  0x75   :  { %p12761_p8 = pnand %p12759_p7, %p12756_p6 }
  0x77   :  { %12764 = shalt.err (!%p12761_p8)
}
  0x78   :  { %s12765_s6 = scalar_lea.vmem %s95_s1, 16384  ;;  %p12770_p10 = scmp.lt.s32.totalorder %s95_s1, %s95_s1 }
  0x79   :  { %p12766_p9 = scmp.ne.s32.totalorder %s95_s1, %s12765_s6  ;;  %p12771_p11 = scmp.lt.s32.totalorder %s12765_s6, %s12765_s6 }
  0x7b   :  { %p12772_p12 = por %p12771_p11, %p12770_p10 }
  0x7d   :  { %p12773_p13 = pnand %p12772_p12, %p12766_p9 }
  0x7f   :  { %12776 = shalt.err (!%p12773_p13)
}
  0x80   :  { %100 = dma.hbm_to_vmem [thread:$0]  %s14398_s10, 16384, %s95_s1, [#allocation9], %s12857_s24, %s12857_s24, %s12858_s25  }
  0x81   :  { %s12777_s2 = scalar_lea.hbm %s14401_s13, 64 }
  0x82   :  { %p12778_p0 = scmp.ne.s32.totalorder %s14401_s13, %s12777_s2  ;;  %p12781_p1 = scmp.lt.u32.totalorder %s12777_s2, %s14401_s13 }
  0x84   :  { %p12783_p2 = pnand %p12781_p1, %p12778_p0 }
  0x86   :  { %12786 = shalt.err (!%p12783_p2)
}
  0x87   :  { %s12787_s21 = scalar_lea.vmem %s122_s14, 64  ;;  %p12792_p4 = scmp.lt.s32.totalorder %s122_s14, %s122_s14 }
  0x88   :  { %p12788_p3 = scmp.ne.s32.totalorder %s122_s14, %s12787_s21  ;;  %p12793_p5 = scmp.lt.s32.totalorder %s12787_s21, %s12787_s21 }
  0x8a   :  { %p12794_p6 = por %p12793_p5, %p12792_p4 }
  0x8c   :  { %p12795_p7 = pnand %p12794_p6, %p12788_p3 }
  0x8e   :  { %12798 = shalt.err (!%p12795_p7)
}
  0x8f   :  { %124 = dma.hbm_to_vmem [thread:$0]  %s14401_s13, 64, %s122_s14, [#allocation12]  }
  0x90   :  { %s12865_s25 = smov [#allocation16]   ;;  %s12866_s12 = smov [#allocation17]  }
  0x91   :  { %s143_s1 = sshll.u32 %s12865_s25, 4  ;;  %s152_s26 = sshll.u32 %s12866_s12, 4  ;;  %s144_s1 = int_to_ptr.vmem [resolvable:$true] %s143_s1  ;;  %s13103_s26 = int_to_ptr.vmem [resolvable:$true] %s152_s26 }
  0x92   :  { %s12799_s3 = scalar_lea.hbm %s14403_s15, 64 }
  0x93   :  { %p12800_p8 = scmp.ne.s32.totalorder %s14403_s15, %s12799_s3  ;;  %p12803_p9 = scmp.lt.u32.totalorder %s12799_s3, %s14403_s15 }
  0x95   :  { %p12805_p10 = pnand %p12803_p9, %p12800_p8 }
  0x97   :  { %12808 = shalt.err (!%p12805_p10)
}
  0x98   :  { %s12809_s13 = scalar_lea.vmem %s144_s1, 64  ;;  %p12814_p12 = scmp.lt.s32.totalorder %s144_s1, %s144_s1 }
  0x99   :  { %p12810_p11 = scmp.ne.s32.totalorder %s144_s1, %s12809_s13  ;;  %p12815_p13 = scmp.lt.s32.totalorder %s12809_s13, %s12809_s13 }
  0x9b   :  { %p12816_p0 = por %p12815_p13, %p12814_p12 }
  0x9d   :  { %p12817_p1 = pnand %p12816_p0, %p12810_p11 }
  0x9f   :  { %12820 = shalt.err (!%p12817_p1)
}
  0xa0   :  { %146 = dma.hbm_to_vmem [thread:$0]  %s14403_s15, 64, %s144_s1, [#allocation15]  }
  0xa1   :  { %s12821_s19 = scalar_lea.hbm %s14404_s16, 4096 }
  0xa2   :  { %p12822_p2 = scmp.ne.s32.totalorder %s14404_s16, %s12821_s19  ;;  %p12825_p3 = scmp.lt.u32.totalorder %s12821_s19, %s14404_s16 }
  0xa4   :  { %p12827_p4 = pnand %p12825_p3, %p12822_p2 }
  0xa6   :  { %12830 = shalt.err (!%p12827_p4)
}
  0xa7   :  { %s12831_s24 = scalar_lea.vmem %s13103_s26, 4096  ;;  %p12836_p6 = scmp.lt.s32.totalorder %s13103_s26, %s13103_s26 }
  0xa8   :  { %p12832_p5 = scmp.ne.s32.totalorder %s13103_s26, %s12831_s24  ;;  %p12837_p7 = scmp.lt.s32.totalorder %s12831_s24, %s12831_s24 }
  0xaa   :  { %p12838_p8 = por %p12837_p7, %p12836_p6 }
  0xac   :  { %p12839_p9 = pnand %p12838_p8, %p12832_p5 }
  0xae   :  { %12842 = shalt.err (!%p12839_p9)
}
  0xaf   :  { %s12867_s15 = smov 64   ;;  %s12868_s25 = smov 4  }
  0xb0   :  { %158 = dma.hbm_to_vmem [thread:$0]  %s14404_s16, 4096, %s13103_s26, [#allocation18], %s12867_s15, %s12867_s15, %s12868_s25  }
  0xb1   :  { %12843 = dma.done.wait [#allocation4], 5376  }
  0xb2   :  { %12844 = vsyncadd [#allocation4], 4294961920 }
  0xb3   :  { %12845 = dma.done.wait [#allocation6], 19712  }
  0xb4   :  { %12846 = vsyncadd [#allocation6], 4294947584 }
  0xb5   :  { %12847 = dma.done.wait [#allocation9], 32768  }
  0xb6   :  { %12848 = vsyncadd [#allocation9], 4294934528 }
  0xb7   :  { %12849 = dma.done.wait [#allocation12], 16448  }
  0xb8   :  { %12850 = vsyncadd [#allocation12], 4294950848 }
  0xb9   :  { %12851 = dma.done.wait [#allocation15], 16448  }
  0xba   :  { %12852 = vsyncadd [#allocation15], 4294950848 }
  0xbb   :  { %12853 = dma.done.wait [#allocation18], 4096  }
  0xbc   :  { %12854 = vsyncadd [#allocation18], 4294963200  ;;  %v13134_v0 = vld [vmem:[#allocation3 + $0x4] ss:$16 sps:$4 sm:$0xff]   ;;  %v13136_v1 = vld [vmem:[#allocation3 + $0xc] ss:$16 sps:$4 sm:$0xff]  }
  0xbd   :  { %468 = vmatprep.subr.bf16.mxu0 %v13134_v0  ;;  %v13139_v2 = vld [vmem:[#allocation3] ss:$16 sps:$4 sm:$0xff]   ;;  %v13141_v3 = vld [vmem:[#allocation3 + $0x8] ss:$16 sps:$4 sm:$0xff]   ;;  %509 = vmatprep.subr.bf16.mxu1 %v13136_v1  ;;  %v13144_v4 = vld [vmem:[#allocation3 + $0x24] ss:$16 sps:$4 sm:$0xff]  }
  0xbe   :  { %469 = vmatpush1.bf16.msra.mxu0 %v13139_v2  ;;  %510 = vmatpush1.bf16.msra.mxu1 %v13141_v3  ;;  %v13148_v5 = vld [vmem:[#allocation3 + $0x2c] ss:$16 sps:$4 sm:$0xff]   ;;  %v13150_v6 = vld [vmem:[#allocation3 + $0x20] ss:$16 sps:$4 sm:$0xff]   ;;  %v13153_v7 = vld [vmem:[#allocation3 + $0x28] ss:$16 sps:$4 sm:$0xff]  }
  0xbf   :  { %470 = vmatprep.subr.bf16.mxu0 %v13144_v4  ;;  %511 = vmatprep.subr.bf16.mxu1 %v13148_v5  ;;  %v13156_v8 = vld [vmem:[#allocation3 + $0x44] ss:$16 sps:$4 sm:$0xff]   ;;  %v13158_v9 = vld [vmem:[#allocation3 + $0x4c] ss:$16 sps:$4 sm:$0xff]   ;;  %v13160_v10 = vld [vmem:[#allocation3 + $0x40] ss:$16 sps:$4 sm:$0xff]  }
  0xc0   :  { %v13162_v11 = vld [vmem:[#allocation3 + $0x48] ss:$16 sps:$4 sm:$0xff]   ;;  %v13166_v12 = vld [vmem:[#allocation3 + $0x64] ss:$16 sps:$4 sm:$0xff]   ;;  %v13170_v13 = vld [vmem:[#allocation3 + $0x6c] ss:$16 sps:$4 sm:$0xff]  }
  0xc1   :  { %v13172_v14 = vld [vmem:[#allocation3 + $0x60] ss:$16 sps:$4 sm:$0xff]   ;;  %v13176_v15 = vld [vmem:[#allocation3 + $0x68] ss:$16 sps:$4 sm:$0xff]   ;;  %v13178_v16 = vld [vmem:[#allocation3 + $0x84] ss:$16 sps:$4 sm:$0xff]  }
  0xc2   :  { %471 = vmatpush1.bf16.msra.mxu0 %v13150_v6  ;;  %512 = vmatpush1.bf16.msra.mxu1 %v13153_v7  ;;  %v13182_v17 = vld [vmem:[#allocation3 + $0x8c] ss:$16 sps:$4 sm:$0xff]   ;;  %v13184_v18 = vld [vmem:[#allocation3 + $0x80] ss:$16 sps:$4 sm:$0xff]   ;;  %v13186_v19 = vld [vmem:[#allocation3 + $0x88] ss:$16 sps:$4 sm:$0xff]  }
  0xc3   :  { %472 = vmatprep.subr.bf16.mxu0 %v13156_v8  ;;  %513 = vmatprep.subr.bf16.mxu1 %v13158_v9  ;;  %v13190_v20 = vld [vmem:[#allocation3 + $0xa4] ss:$16 sps:$4 sm:$0xff]   ;;  %v13194_v21 = vld [vmem:[#allocation3 + $0xac] ss:$16 sps:$4 sm:$0xff]   ;;  %v13196_v22 = vld [vmem:[#allocation3 + $0xa0] ss:$16 sps:$4 sm:$0xff]  }
  0xc4   :  { %v13200_v23 = vld [vmem:[#allocation3 + $0xa8] ss:$16 sps:$4 sm:$0xff]   ;;  %v13202_v24 = vld [vmem:[#allocation3 + $0xc4] ss:$16 sps:$4 sm:$0xff]   ;;  %v13206_v25 = vld [vmem:[#allocation3 + $0xcc] ss:$16 sps:$4 sm:$0xff]  }
  0xc5   :  { %v13208_v26 = vld [vmem:[#allocation3 + $0xc0] ss:$16 sps:$4 sm:$0xff]   ;;  %v13210_v27 = vld [vmem:[#allocation3 + $0xc8] ss:$16 sps:$4 sm:$0xff]   ;;  %v13214_v28 = vld [vmem:[#allocation3 + $0xe4] ss:$16 sps:$4 sm:$0xff]  }
  0xc6   :  { %473 = vmatpush1.bf16.msra.mxu0 %v13160_v10  ;;  %514 = vmatpush1.bf16.msra.mxu1 %v13162_v11  ;;  %v13218_v29 = vld [vmem:[#allocation3 + $0xec] ss:$16 sps:$4 sm:$0xff]   ;;  %s14432_s22 = sld [smem:[#allocation37_spill]]  ;;  %v13225_v31 = vld [vmem:[#allocation3 + $0xe0] ss:$16 sps:$4 sm:$0xff]   ;;  %vm451_vm0 = vcmask 277504  }
  0xc7   :  { %474 = vmatprep.subr.bf16.mxu0 %v13166_v12  ;;  %515 = vmatprep.subr.bf16.mxu1 %v13170_v13  ;;  %v13227_v32 = vld [vmem:[#allocation3 + $0xe8] ss:$16 sps:$4 sm:$0xff]   ;;  %v13231_v33 = vld [vmem:[#allocation3 + $0x104] ss:$16 sps:$4 sm:$0xff]   ;;  %v13233_v34 = vld [vmem:[#allocation3 + $0x10c] ss:$16 sps:$4 sm:$0xff]  }
  0xc8   :  { %v13235_v36 = vld [vmem:[#allocation3 + $0x100] ss:$16 sps:$4 sm:$0xff]   ;;  %v13237_v37 = vld [vmem:[#allocation3 + $0x108] ss:$16 sps:$4 sm:$0xff]   ;;  %v13239_v38 = vld [vmem:[#allocation3 + $0x124] ss:$16 sps:$4 sm:$0xff]  }
  0xc9   :  { %v13241_v39 = vld [vmem:[#allocation3 + $0x12c] ss:$16 sps:$4 sm:$0xff]   ;;  %v233_v40 = vld [vmem:[#allocation3 + $0x140] sm:$0x11]  ;;  %v13251_v43 = vld [vmem:[#allocation3 + $0x128] ss:$16 sps:$4 sm:$0xff]  }
  0xca   :  { %475 = vmatpush1.bf16.msra.mxu0 %v13172_v14  ;;  %516 = vmatpush1.bf16.msra.mxu1 %v13176_v15  ;;  %v234_v41 = vld [vmem:[#allocation3 + $0x148] sm:$0x11]  ;;  %v13249_v42 = vld [vmem:[#allocation3 + $0x120] ss:$16 sps:$4 sm:$0xff]   ;;  %v9863_v44 = vcombine.high %v233_v40, %v233_v40  ;;  %v9862_v46 = vcombine.low %v233_v40, %v233_v40  ;;  %vm455_vm1 = vcmask 1040384   ;;  %s14452_s15 = sld [smem:[#allocation38_spill]] }
  0xcb   :  { %476 = vmatprep.subr.bf16.mxu0 %v13178_v16  ;;  %517 = vmatprep.subr.bf16.mxu1 %v13182_v17  ;;  %v9865_v45 = vcombine.high %v234_v41, %v234_v41  ;;  %v9864_v47 = vcombine.low %v234_v41, %v234_v41  ;;  %v610_v53 = vld [vmem:[#allocation3 + $0x140] sm:$0x11]  ;;  %v611_v54 = vld [vmem:[#allocation3 + $0x148] sm:$0x11]  ;;  %vm5161_vm2 = vcmask 818176   ;;  %vm5165_vm3 = vcmask 1041408  }
  0xcc   :  { %v192_v30 = vld [vmem:[%s14432_s22] sm:$0xff]  ;;  %v457_v48 = vsel %vm455_vm1, %v9862_v46, 0  ;;  %v9872_v50 = vld [vmem:[%s14432_s22 + $0x8] sm:$0xff]  ;;  %v9916_v55 = vcombine.high %v610_v53, %v610_v53  ;;  %v9918_v56 = vcombine.high %v611_v54, %v611_v54  ;;  %v9915_v57 = vcombine.low %v610_v53, %v610_v53  ;;  %v9925_v61 = vld [vmem:[%s14432_s22 + $0x10] sm:$0xff] }
  0xcd   :  { %v9821_v35 = vcombine.high %v192_v30, %v192_v30  ;;  %v463_v49 = vsel %vm455_vm1, %v9864_v47, 0  ;;  %v9820_v51 = vcombine.low %v192_v30, %v192_v30  ;;  %v9874_v52 = vcombine.high %v9872_v50, %v9872_v50  ;;  %v12530_v30 = vld [vmem:[#allocation3 + $0x88] ss:$16 sps:$4 sm:$0xff]   ;;  %v12540_v40 = vld [vmem:[#allocation3 + $0xec] ss:$16 sps:$4 sm:$0xff]  }
  0xce   :  { %477 = vmatpush1.bf16.msra.mxu0 %v13184_v18  ;;  %518 = vmatpush1.bf16.msra.mxu1 %v13186_v19  ;;  %v9917_v58 = vcombine.low %v611_v54, %v611_v54  ;;  %v832_v59 = vsel %vm455_vm1, %v9915_v57, 0  ;;  %v9873_v62 = vcombine.low %v9872_v50, %v9872_v50  ;;  %v9927_v63 = vcombine.high %v9925_v61, %v9925_v61  ;;  %v1362_v41 = vld [vmem:[#allocation3 + $0x140] sm:$0x11]  ;;  %v12544_v46 = vld [vmem:[#allocation3 + $0x10c] ss:$16 sps:$4 sm:$0xff]  }
  0xcf   :  { %478 = vmatprep.subr.bf16.mxu0 %v13190_v20  ;;  %519 = vmatprep.subr.bf16.mxu1 %v13194_v21  ;;  %v12545_v47 = vld [vmem:[#allocation3 + $0x100] ss:$16 sps:$4 sm:$0xff]   ;;  %v12547_v50 = vld [vmem:[#allocation3 + $0x124] ss:$16 sps:$4 sm:$0xff]   ;;  %v10021_v53 = vcombine.low %v1362_v41, %v1362_v41 }
  0xd0   :  { %9867 = vmatprep.mubr.msk.bf16.mxu0 %vm451_vm0, %v9821_v35  ;;  %9869 = vmatprep.mubr.msk.bf16.mxu1 %vm451_vm0, %v9821_v35  ;;  %v838_v60 = vsel %vm455_vm1, %v9917_v58, 0  ;;  %v12535_v35 = vld [vmem:[#allocation3 + $0xc4] ss:$16 sps:$4 sm:$0xff]   ;;  %v12549_v57 = vld [vmem:[#allocation3 + $0x120] ss:$16 sps:$4 sm:$0xff]  }
  0xd1   :  { %v12550_v58 = vld [vmem:[#allocation3 + $0x128] ss:$16 sps:$4 sm:$0xff]  }
  0xd2   :  { %479 = vmatpush1.bf16.msra.mxu0 %v13196_v22  ;;  %520 = vmatpush1.bf16.msra.mxu1 %v13200_v23 }
  0xd3   :  { %480 = vmatprep.subr.bf16.mxu0 %v13202_v24  ;;  %521 = vmatprep.subr.bf16.mxu1 %v13206_v25 }
  0xd6   :  { %481 = vmatpush1.bf16.msra.mxu0 %v13208_v26  ;;  %522 = vmatpush1.bf16.msra.mxu1 %v13210_v27 }
  0xd7   :  { %482 = vmatprep.subr.bf16.mxu0 %v13214_v28  ;;  %523 = vmatprep.subr.bf16.mxu1 %v13218_v29 }
  0xda   :  { %483 = vmatpush1.bf16.msra.mxu0 %v13225_v31  ;;  %524 = vmatpush1.bf16.msra.mxu1 %v13227_v32 }
  0xdb   :  { %484 = vmatprep.subr.bf16.mxu0 %v13231_v33  ;;  %525 = vmatprep.subr.bf16.mxu1 %v13233_v34 }
  0xde   :  { %485 = vmatpush1.bf16.msra.mxu0 %v13235_v36  ;;  %526 = vmatpush1.bf16.msra.mxu1 %v13237_v37 }
  0xdf   :  { %486 = vmatprep.subr.bf16.mxu0 %v13239_v38  ;;  %527 = vmatprep.subr.bf16.mxu1 %v13241_v39 }
  0xe2   :  { %487 = vmatpush1.bf16.msra.mxu0 %v13249_v42  ;;  %528 = vmatpush1.bf16.msra.mxu1 %v13251_v43 }
  0xe3   :  { %9866 = vmatprep.subr.msk.bf16.mxu0 %vm455_vm1, %v9863_v44  ;;  %9868 = vmatprep.subr.msk.bf16.mxu1 %vm455_vm1, %v9865_v45  ;;  %v1363_v44 = vld [vmem:[#allocation3 + $0x148] sm:$0x11]  ;;  %v12543_v45 = vld [vmem:[#allocation3 + $0x104] ss:$16 sps:$4 sm:$0xff]  }
  0xe4   :  { %v10023_v54 = vcombine.low %v1363_v44, %v1363_v44 }
  0xe6   :  { %489 = vmatpush1.bf16.msra.mxu0 %v457_v48  ;;  %530 = vmatpush1.bf16.msra.mxu1 %v463_v49  ;;  %v12546_v48 = vld [vmem:[#allocation3 + $0x108] ss:$16 sps:$4 sm:$0xff]   ;;  %v10022_v49 = vcombine.high %v1362_v41, %v1362_v41 }
  0xe7   :  { %843 = vmatprep.subr.bf16.mxu0 %v13134_v0  ;;  %884 = vmatprep.subr.bf16.mxu1 %v13136_v1 }
  0xe9   :  { %501 = vmatmul.mubr.bf16.vlgmr.msra.gmra.mrb[0].mxu0 %v9820_v51  ;;  %542 = vmatmul.mubr.bf16.vlgmr.msra.gmra.mrb[0].mxu1 %v9820_v51  ;;  %v12548_v51 = vld [vmem:[#allocation3 + $0x12c] ss:$16 sps:$4 sm:$0xff]  }
  0xea   :  { %844 = vmatpush1.bf16.msra.mxu0 %v13139_v2  ;;  %885 = vmatpush1.bf16.msra.mxu1 %v13141_v3 }
  0xeb   :  { %845 = vmatprep.subr.bf16.mxu0 %v13144_v4  ;;  %886 = vmatprep.subr.bf16.mxu1 %v13148_v5 }
  0xec   :  { %9920 = vmatprep.mubr.msk.bf16.mxu0 %vm451_vm0, %v9874_v52  ;;  %9922 = vmatprep.mubr.msk.bf16.mxu1 %vm451_vm0, %v9874_v52  ;;  %v10024_v52 = vcombine.high %v1363_v44, %v1363_v44 }
  0xee   :  { %846 = vmatpush1.bf16.msra.mxu0 %v13150_v6  ;;  %887 = vmatpush1.bf16.msra.mxu1 %v13153_v7 }
  0xef   :  { %847 = vmatprep.subr.bf16.mxu0 %v13156_v8  ;;  %888 = vmatprep.subr.bf16.mxu1 %v13158_v9 }
  0xf2   :  { %848 = vmatpush1.bf16.msra.mxu0 %v13160_v10  ;;  %889 = vmatpush1.bf16.msra.mxu1 %v13162_v11 }
  0xf3   :  { %849 = vmatprep.subr.bf16.mxu0 %v13166_v12  ;;  %890 = vmatprep.subr.bf16.mxu1 %v13170_v13 }
  0xf6   :  { %850 = vmatpush1.bf16.msra.mxu0 %v13172_v14  ;;  %891 = vmatpush1.bf16.msra.mxu1 %v13176_v15 }
  0xf7   :  { %851 = vmatprep.subr.bf16.mxu0 %v13178_v16  ;;  %892 = vmatprep.subr.bf16.mxu1 %v13182_v17 }
  0xfa   :  { %852 = vmatpush1.bf16.msra.mxu0 %v13184_v18  ;;  %893 = vmatpush1.bf16.msra.mxu1 %v13186_v19 }
  0xfb   :  { %853 = vmatprep.subr.bf16.mxu0 %v13190_v20  ;;  %894 = vmatprep.subr.bf16.mxu1 %v13194_v21 }
  0xfe   :  { %854 = vmatpush1.bf16.msra.mxu0 %v13196_v22  ;;  %895 = vmatpush1.bf16.msra.mxu1 %v13200_v23 }
  0xff   :  { %855 = vmatprep.subr.bf16.mxu0 %v13202_v24  ;;  %896 = vmatprep.subr.bf16.mxu1 %v13206_v25 }
 0x102   :  { %856 = vmatpush1.bf16.msra.mxu0 %v13208_v26  ;;  %897 = vmatpush1.bf16.msra.mxu1 %v13210_v27 }
 0x103   :  { %857 = vmatprep.subr.bf16.mxu0 %v13214_v28  ;;  %898 = vmatprep.subr.bf16.mxu1 %v13218_v29 }
 0x106   :  { %858 = vmatpush1.bf16.msra.mxu0 %v13225_v31  ;;  %899 = vmatpush1.bf16.msra.mxu1 %v13227_v32 }
 0x107   :  { %859 = vmatprep.subr.bf16.mxu0 %v13231_v33  ;;  %900 = vmatprep.subr.bf16.mxu1 %v13233_v34 }
 0x10a   :  { %860 = vmatpush1.bf16.msra.mxu0 %v13235_v36  ;;  %901 = vmatpush1.bf16.msra.mxu1 %v13237_v37 }
 0x10b   :  { %861 = vmatprep.subr.bf16.mxu0 %v13239_v38  ;;  %902 = vmatprep.subr.bf16.mxu1 %v13241_v39 }
 0x10e   :  { %862 = vmatpush1.bf16.msra.mxu0 %v13249_v42  ;;  %903 = vmatpush1.bf16.msra.mxu1 %v13251_v43 }
 0x10f   :  { %9919 = vmatprep.subr.msk.bf16.mxu0 %vm455_vm1, %v9916_v55  ;;  %9921 = vmatprep.subr.msk.bf16.mxu1 %vm455_vm1, %v9918_v56  ;;  %v13370_v55 = vld [vmem:[#allocation3 + $0x4] ss:$16 sps:$4 sm:$0xff]   ;;  %v13372_v56 = vld [vmem:[#allocation3 + $0xc] ss:$16 sps:$4 sm:$0xff]  }
 0x112   :  { %864 = vmatpush1.bf16.msra.mxu0 %v832_v59  ;;  %905 = vmatpush1.bf16.msra.mxu1 %v838_v60  ;;  %v1584_v59 = vsel %vm455_vm1, %v10021_v53, 0  ;;  %v1590_v60 = vsel %vm455_vm1, %v10023_v54, 0 }
 0x113   :  { %1219 = vmatprep.subr.bf16.mxu0 %v13134_v0  ;;  %1260 = vmatprep.subr.bf16.mxu1 %v13136_v1  ;;  %v986_v0 = vld [vmem:[#allocation3 + $0x140] sm:$0x11]  ;;  %v987_v1 = vld [vmem:[#allocation3 + $0x148] sm:$0x11] }
 0x115   :  { %876 = vmatmul.mubr.bf16.vlgmr.msra.gmra.mrb[4].mxu0 %v9873_v62  ;;  %917 = vmatmul.mubr.bf16.vlgmr.msra.gmra.mrb[4].mxu1 %v9873_v62  ;;  %v13383_v62 = vld [vmem:[#allocation3] ss:$16 sps:$4 sm:$0xff]  }
 0x116   :  { %1220 = vmatpush1.bf16.msra.mxu0 %v13139_v2  ;;  %1261 = vmatpush1.bf16.msra.mxu1 %v13141_v3  ;;  %v9969_v2 = vcombine.high %v986_v0, %v986_v0  ;;  %v9971_v3 = vcombine.high %v987_v1, %v987_v1 }
 0x117   :  { %1221 = vmatprep.subr.bf16.mxu0 %v13144_v4  ;;  %1262 = vmatprep.subr.bf16.mxu1 %v13148_v5  ;;  %v9968_v4 = vcombine.low %v986_v0, %v986_v0  ;;  %v9970_v5 = vcombine.low %v987_v1, %v987_v1  ;;  %v13389_v1 = vld [vmem:[#allocation3 + $0x24] ss:$16 sps:$4 sm:$0xff]  }
 0x118   :  { %9973 = vmatprep.mubr.msk.bf16.mxu0 %vm451_vm0, %v9927_v63  ;;  %9975 = vmatprep.mubr.msk.bf16.mxu1 %vm451_vm0, %v9927_v63  ;;  %v13385_v63 = vld [vmem:[#allocation3 + $0x8] ss:$16 sps:$4 sm:$0xff]  }
 0x11a   :  { %1222 = vmatpush1.bf16.msra.mxu0 %v13150_v6  ;;  %1263 = vmatpush1.bf16.msra.mxu1 %v13153_v7  ;;  %v1208_v6 = vsel %vm455_vm1, %v9968_v4, 0  ;;  %v1214_v7 = vsel %vm455_vm1, %v9970_v5, 0  ;;  %v13397_v4 = vld [vmem:[#allocation3 + $0x28] ss:$16 sps:$4 sm:$0xff]  }
 0x11b   :  { %1223 = vmatprep.subr.bf16.mxu0 %v13156_v8  ;;  %1264 = vmatprep.subr.bf16.mxu1 %v13158_v9  ;;  %v13364_v8 = vld [vmem:[%s14432_s22 + $0x18] sm:$0xff]  ;;  %v9926_v9 = vcombine.low %v9925_v61, %v9925_v61  ;;  %v13381_v61 = vld [vmem:[%s14432_s22 + $0x20] sm:$0xff] }
 0x11c   :  { %v9979_v0 = vcombine.low %v13364_v8, %v13364_v8  ;;  %v10033_v5 = vcombine.high %v13381_v61, %v13381_v61 }
 0x11e   :  { %1224 = vmatpush1.bf16.msra.mxu0 %v13160_v10  ;;  %1265 = vmatpush1.bf16.msra.mxu1 %v13162_v11  ;;  %v12511_v10 = vld [vmem:[#allocation3 + $0x4] ss:$16 sps:$4 sm:$0xff]   ;;  %v12512_v11 = vld [vmem:[#allocation3 + $0xc] ss:$16 sps:$4 sm:$0xff]  }
 0x11f   :  { %1225 = vmatprep.subr.bf16.mxu0 %v13166_v12  ;;  %1266 = vmatprep.subr.bf16.mxu1 %v13170_v13  ;;  %v9980_v12 = vcombine.high %v13364_v8, %v13364_v8  ;;  %v12513_v13 = vld [vmem:[#allocation3] ss:$16 sps:$4 sm:$0xff]  }
 0x120   :  { %v13409_v8 = vld [vmem:[#allocation3 + $0x40] ss:$16 sps:$4 sm:$0xff]  }
 0x122   :  { %1226 = vmatpush1.bf16.msra.mxu0 %v13172_v14  ;;  %1267 = vmatpush1.bf16.msra.mxu1 %v13176_v15  ;;  %v12514_v14 = vld [vmem:[#allocation3 + $0x8] ss:$16 sps:$4 sm:$0xff]   ;;  %v12515_v15 = vld [vmem:[#allocation3 + $0x24] ss:$16 sps:$4 sm:$0xff]  }
 0x123   :  { %1227 = vmatprep.subr.bf16.mxu0 %v13178_v16  ;;  %1268 = vmatprep.subr.bf16.mxu1 %v13182_v17  ;;  %v12516_v16 = vld [vmem:[#allocation3 + $0x2c] ss:$16 sps:$4 sm:$0xff]   ;;  %v12517_v17 = vld [vmem:[#allocation3 + $0x20] ss:$16 sps:$4 sm:$0xff]  }
 0x126   :  { %1228 = vmatpush1.bf16.msra.mxu0 %v13184_v18  ;;  %1269 = vmatpush1.bf16.msra.mxu1 %v13186_v19  ;;  %v12518_v18 = vld [vmem:[#allocation3 + $0x28] ss:$16 sps:$4 sm:$0xff]   ;;  %v12519_v19 = vld [vmem:[#allocation3 + $0x44] ss:$16 sps:$4 sm:$0xff]  }
 0x127   :  { %1229 = vmatprep.subr.bf16.mxu0 %v13190_v20  ;;  %1270 = vmatprep.subr.bf16.mxu1 %v13194_v21  ;;  %v12520_v20 = vld [vmem:[#allocation3 + $0x4c] ss:$16 sps:$4 sm:$0xff]   ;;  %v12521_v21 = vld [vmem:[#allocation3 + $0x40] ss:$16 sps:$4 sm:$0xff]  }
 0x12a   :  { %1230 = vmatpush1.bf16.msra.mxu0 %v13196_v22  ;;  %1271 = vmatpush1.bf16.msra.mxu1 %v13200_v23  ;;  %v12522_v22 = vld [vmem:[#allocation3 + $0x48] ss:$16 sps:$4 sm:$0xff]   ;;  %v12523_v23 = vld [vmem:[#allocation3 + $0x64] ss:$16 sps:$4 sm:$0xff]  }
 0x12b   :  { %1231 = vmatprep.subr.bf16.mxu0 %v13202_v24  ;;  %1272 = vmatprep.subr.bf16.mxu1 %v13206_v25  ;;  %v12524_v24 = vld [vmem:[#allocation3 + $0x6c] ss:$16 sps:$4 sm:$0xff]   ;;  %v12525_v25 = vld [vmem:[#allocation3 + $0x60] ss:$16 sps:$4 sm:$0xff]  }
 0x12e   :  { %1232 = vmatpush1.bf16.msra.mxu0 %v13208_v26  ;;  %1273 = vmatpush1.bf16.msra.mxu1 %v13210_v27  ;;  %v12526_v26 = vld [vmem:[#allocation3 + $0x68] ss:$16 sps:$4 sm:$0xff]   ;;  %v12527_v27 = vld [vmem:[#allocation3 + $0x84] ss:$16 sps:$4 sm:$0xff]  }
 0x12f   :  { %1233 = vmatprep.subr.bf16.mxu0 %v13214_v28  ;;  %1274 = vmatprep.subr.bf16.mxu1 %v13218_v29  ;;  %v12528_v28 = vld [vmem:[#allocation3 + $0x8c] ss:$16 sps:$4 sm:$0xff]   ;;  %v12529_v29 = vld [vmem:[#allocation3 + $0x80] ss:$16 sps:$4 sm:$0xff]  }
 0x132   :  { %1234 = vmatpush1.bf16.msra.mxu0 %v13225_v31  ;;  %1275 = vmatpush1.bf16.msra.mxu1 %v13227_v32  ;;  %v12531_v31 = vld [vmem:[#allocation3 + $0xa4] ss:$16 sps:$4 sm:$0xff]   ;;  %v12532_v32 = vld [vmem:[#allocation3 + $0xac] ss:$16 sps:$4 sm:$0xff]  }
 0x133   :  { %1235 = vmatprep.subr.bf16.mxu0 %v13231_v33  ;;  %1276 = vmatprep.subr.bf16.mxu1 %v13233_v34  ;;  %v12533_v33 = vld [vmem:[#allocation3 + $0xa0] ss:$16 sps:$4 sm:$0xff]   ;;  %v12534_v34 = vld [vmem:[#allocation3 + $0xa8] ss:$16 sps:$4 sm:$0xff]  }
 0x136   :  { %1236 = vmatpush1.bf16.msra.mxu0 %v13235_v36  ;;  %1277 = vmatpush1.bf16.msra.mxu1 %v13237_v37  ;;  %v12536_v36 = vld [vmem:[#allocation3 + $0xcc] ss:$16 sps:$4 sm:$0xff]   ;;  %v12537_v37 = vld [vmem:[#allocation3 + $0xc0] ss:$16 sps:$4 sm:$0xff]  }
 0x137   :  { %1237 = vmatprep.subr.bf16.mxu0 %v13239_v38  ;;  %1278 = vmatprep.subr.bf16.mxu1 %v13241_v39  ;;  %v12538_v38 = vld [vmem:[#allocation3 + $0xc8] ss:$16 sps:$4 sm:$0xff]   ;;  %v12539_v39 = vld [vmem:[#allocation3 + $0xe4] ss:$16 sps:$4 sm:$0xff]  }
 0x13a   :  { %1238 = vmatpush1.bf16.msra.mxu0 %v13249_v42  ;;  %1279 = vmatpush1.bf16.msra.mxu1 %v13251_v43  ;;  %v12541_v42 = vld [vmem:[#allocation3 + $0xe0] ss:$16 sps:$4 sm:$0xff]   ;;  %v12542_v43 = vld [vmem:[#allocation3 + $0xe8] ss:$16 sps:$4 sm:$0xff]  }
 0x13b   :  { %9972 = vmatprep.subr.msk.bf16.mxu0 %vm455_vm1, %v9969_v2  ;;  %9974 = vmatprep.subr.msk.bf16.mxu1 %vm455_vm1, %v9971_v3  ;;  %v13391_v2 = vld [vmem:[#allocation3 + $0x2c] ss:$16 sps:$4 sm:$0xff]   ;;  %v13395_v3 = vld [vmem:[#allocation3 + $0x20] ss:$16 sps:$4 sm:$0xff]  }
 0x13e   :  { %1240 = vmatpush1.bf16.msra.mxu0 %v1208_v6  ;;  %1281 = vmatpush1.bf16.msra.mxu1 %v1214_v7  ;;  %v13401_v6 = vld [vmem:[#allocation3 + $0x44] ss:$16 sps:$4 sm:$0xff]   ;;  %v13403_v7 = vld [vmem:[#allocation3 + $0x4c] ss:$16 sps:$4 sm:$0xff]  }
 0x13f   :  { %1595 = vmatprep.subr.bf16.mxu0 %v12511_v10  ;;  %1636 = vmatprep.subr.bf16.mxu1 %v12512_v11  ;;  %v13415_v10 = vld [vmem:[#allocation3 + $0x64] ss:$16 sps:$4 sm:$0xff]   ;;  %v13417_v11 = vld [vmem:[#allocation3 + $0x6c] ss:$16 sps:$4 sm:$0xff]  }
 0x141   :  { %1252 = vmatmul.mubr.bf16.vlgmr.msra.gmra.mrb[8].mxu0 %v9926_v9  ;;  %1293 = vmatmul.mubr.bf16.vlgmr.msra.gmra.mrb[8].mxu1 %v9926_v9  ;;  %v13411_v9 = vld [vmem:[#allocation3 + $0x48] ss:$16 sps:$4 sm:$0xff]  }
 0x142   :  { %1596 = vmatpush1.bf16.msra.mxu0 %v12513_v13  ;;  %1637 = vmatpush1.bf16.msra.mxu1 %v12514_v14  ;;  %v13425_v13 = vld [vmem:[#allocation3 + $0x68] ss:$16 sps:$4 sm:$0xff]   ;;  %v13427_v14 = vld [vmem:[#allocation3 + $0x84] ss:$16 sps:$4 sm:$0xff]  }
 0x143   :  { %1597 = vmatprep.subr.bf16.mxu0 %v12515_v15  ;;  %1638 = vmatprep.subr.bf16.mxu1 %v12516_v16  ;;  %v13429_v15 = vld [vmem:[#allocation3 + $0x8c] ss:$16 sps:$4 sm:$0xff]   ;;  %v13435_v16 = vld [vmem:[#allocation3 + $0x80] ss:$16 sps:$4 sm:$0xff]  }
 0x144   :  { %10026 = vmatprep.mubr.msk.bf16.mxu0 %vm451_vm0, %v9980_v12  ;;  %10028 = vmatprep.mubr.msk.bf16.mxu1 %vm451_vm0, %v9980_v12  ;;  %v13423_v12 = vld [vmem:[#allocation3 + $0x60] ss:$16 sps:$4 sm:$0xff]  }
 0x146   :  { %1598 = vmatpush1.bf16.msra.mxu0 %v12517_v17  ;;  %1639 = vmatpush1.bf16.msra.mxu1 %v12518_v18  ;;  %v13437_v17 = vld [vmem:[#allocation3 + $0x88] ss:$16 sps:$4 sm:$0xff]   ;;  %v13439_v18 = vld [vmem:[#allocation3 + $0xa4] ss:$16 sps:$4 sm:$0xff]  }
 0x147   :  { %1599 = vmatprep.subr.bf16.mxu0 %v12519_v19  ;;  %1640 = vmatprep.subr.bf16.mxu1 %v12520_v20  ;;  %v13441_v19 = vld [vmem:[#allocation3 + $0xac] ss:$16 sps:$4 sm:$0xff]   ;;  %v13447_v20 = vld [vmem:[#allocation3 + $0xa0] ss:$16 sps:$4 sm:$0xff]  }
 0x14a   :  { %1600 = vmatpush1.bf16.msra.mxu0 %v12521_v21  ;;  %1641 = vmatpush1.bf16.msra.mxu1 %v12522_v22  ;;  %v13449_v21 = vld [vmem:[#allocation3 + $0xa8] ss:$16 sps:$4 sm:$0xff]   ;;  %v13451_v22 = vld [vmem:[#allocation3 + $0xc4] ss:$16 sps:$4 sm:$0xff]  }
 0x14b   :  { %1601 = vmatprep.subr.bf16.mxu0 %v12523_v23  ;;  %1642 = vmatprep.subr.bf16.mxu1 %v12524_v24  ;;  %v13453_v23 = vld [vmem:[#allocation3 + $0xcc] ss:$16 sps:$4 sm:$0xff]   ;;  %v13459_v24 = vld [vmem:[#allocation3 + $0xc0] ss:$16 sps:$4 sm:$0xff]  }
 0x14e   :  { %1602 = vmatpush1.bf16.msra.mxu0 %v12525_v25  ;;  %1643 = vmatpush1.bf16.msra.mxu1 %v12526_v26  ;;  %v13461_v25 = vld [vmem:[#allocation3 + $0xc8] ss:$16 sps:$4 sm:$0xff]   ;;  %v13463_v26 = vld [vmem:[#allocation3 + $0xe4] ss:$16 sps:$4 sm:$0xff]  }
 0x14f   :  { %1603 = vmatprep.subr.bf16.mxu0 %v12527_v27  ;;  %1644 = vmatprep.subr.bf16.mxu1 %v12528_v28  ;;  %v13465_v27 = vld [vmem:[#allocation3 + $0xec] ss:$16 sps:$4 sm:$0xff]   ;;  %v13471_v28 = vld [vmem:[#allocation3 + $0xe0] ss:$16 sps:$4 sm:$0xff]  }
 0x152   :  { %1604 = vmatpush1.bf16.msra.mxu0 %v12529_v29  ;;  %1645 = vmatpush1.bf16.msra.mxu1 %v12530_v30  ;;  %v13473_v29 = vld [vmem:[#allocation3 + $0xe8] ss:$16 sps:$4 sm:$0xff]   ;;  %v13475_v30 = vld [vmem:[#allocation3 + $0x104] ss:$16 sps:$4 sm:$0xff]  }
 0x153   :  { %1605 = vmatprep.subr.bf16.mxu0 %v12531_v31  ;;  %1646 = vmatprep.subr.bf16.mxu1 %v12532_v32  ;;  %v13477_v31 = vld [vmem:[#allocation3 + $0x10c] ss:$16 sps:$4 sm:$0xff]   ;;  %v13483_v32 = vld [vmem:[#allocation3 + $0x100] ss:$16 sps:$4 sm:$0xff]  }
 0x156   :  { %1606 = vmatpush1.bf16.msra.mxu0 %v12533_v33  ;;  %1647 = vmatpush1.bf16.msra.mxu1 %v12534_v34  ;;  %v13485_v33 = vld [vmem:[#allocation3 + $0x108] ss:$16 sps:$4 sm:$0xff]   ;;  %v13487_v34 = vld [vmem:[#allocation3 + $0x124] ss:$16 sps:$4 sm:$0xff]  }
 0x157   :  { %1607 = vmatprep.subr.bf16.mxu0 %v12535_v35  ;;  %1648 = vmatprep.subr.bf16.mxu1 %v12536_v36  ;;  %v13489_v35 = vld [vmem:[#allocation3 + $0x12c] ss:$16 sps:$4 sm:$0xff]   ;;  %v1738_v36 = vld [vmem:[#allocation3 + $0x140] sm:$0x11] }
 0x15a   :  { %1608 = vmatpush1.bf16.msra.mxu0 %v12537_v37  ;;  %1649 = vmatpush1.bf16.msra.mxu1 %v12538_v38  ;;  %v1739_v37 = vld [vmem:[#allocation3 + $0x148] sm:$0x11]  ;;  %v13495_v38 = vld [vmem:[#allocation3 + $0x120] ss:$16 sps:$4 sm:$0xff]  }
 0x15b   :  { %1609 = vmatprep.subr.bf16.mxu0 %v12539_v39  ;;  %1650 = vmatprep.subr.bf16.mxu1 %v12540_v40  ;;  %v13497_v39 = vld [vmem:[#allocation3 + $0x128] ss:$16 sps:$4 sm:$0xff]   ;;  %v10075_v40 = vcombine.high %v1738_v36, %v1738_v36  ;;  %v10077_v41 = vcombine.high %v1739_v37, %v1739_v37 }
 0x15e   :  { %1610 = vmatpush1.bf16.msra.mxu0 %v12541_v42  ;;  %1651 = vmatpush1.bf16.msra.mxu1 %v12542_v43  ;;  %v10074_v42 = vcombine.low %v1738_v36, %v1738_v36  ;;  %v10076_v43 = vcombine.low %v1739_v37, %v1739_v37 }
 0x15f   :  { %1611 = vmatprep.subr.bf16.mxu0 %v12543_v45  ;;  %1652 = vmatprep.subr.bf16.mxu1 %v12544_v46  ;;  %v13512_v46 = vld [vmem:[%s14432_s22 + $0x28] sm:$0xff] }
 0x160   :  { %v1960_v44 = vsel %vm455_vm1, %v10074_v42, 0  ;;  %v1966_v45 = vsel %vm455_vm1, %v10076_v43, 0  ;;  %v13571_v43 = vld [vmem:[%s14432_s22 + $0x30] sm:$0xff] }
 0x162   :  { %1612 = vmatpush1.bf16.msra.mxu0 %v12545_v47  ;;  %1653 = vmatpush1.bf16.msra.mxu1 %v12546_v48  ;;  %v10032_v47 = vcombine.low %v13381_v61, %v13381_v61  ;;  %v10086_v48 = vcombine.high %v13512_v46, %v13512_v46 }
 0x163   :  { %1613 = vmatprep.subr.bf16.mxu0 %v12547_v50  ;;  %1654 = vmatprep.subr.bf16.mxu1 %v12548_v51  ;;  %v2115_v50 = vld [vmem:[#allocation3 + $0x148] sm:$0x11] }
 0x164   :  { %v10130_v53 = vcombine.high %v2115_v50, %v2115_v50  ;;  %v10129_v54 = vcombine.low %v2115_v50, %v2115_v50  ;;  %v12574_v50 = vld [vmem:[#allocation3 + $0xa8] ss:$16 sps:$4 sm:$0xff]  }
 0x166   :  { %1614 = vmatpush1.bf16.msra.mxu0 %v12549_v57  ;;  %1655 = vmatpush1.bf16.msra.mxu1 %v12550_v58 }
 0x167   :  { %10025 = vmatprep.subr.msk.bf16.mxu0 %vm455_vm1, %v10022_v49  ;;  %10027 = vmatprep.subr.msk.bf16.mxu1 %vm455_vm1, %v10024_v52  ;;  %v2114_v49 = vld [vmem:[#allocation3 + $0x140] sm:$0x11] }
 0x168   :  { %v10127_v51 = vcombine.low %v2114_v49, %v2114_v49  ;;  %v10128_v52 = vcombine.high %v2114_v49, %v2114_v49  ;;  %v12573_v49 = vld [vmem:[#allocation3 + $0xa0] ss:$16 sps:$4 sm:$0xff]  }
 0x16a   :  { %1616 = vmatpush1.bf16.msra.mxu0 %v1584_v59  ;;  %1657 = vmatpush1.bf16.msra.mxu1 %v1590_v60 }
 0x16b   :  { %1971 = vmatprep.subr.bf16.mxu0 %v13370_v55  ;;  %2012 = vmatprep.subr.bf16.mxu1 %v13372_v56 }
 0x16d   :  { %1628 = vmatmul.mubr.bf16.vlgmr.msra.gmra.mrb[12].mxu0 %v9979_v0  ;;  %1669 = vmatmul.mubr.bf16.vlgmr.msra.gmra.mrb[12].mxu1 %v9979_v0 }
 0x16e   :  { %1972 = vmatpush1.bf16.msra.mxu0 %v13383_v62  ;;  %2013 = vmatpush1.bf16.msra.mxu1 %v13385_v63 }
 0x16f   :  { %1973 = vmatprep.subr.bf16.mxu0 %v13389_v1  ;;  %2014 = vmatprep.subr.bf16.mxu1 %v13391_v2 }
 0x170   :  { %10079 = vmatprep.mubr.msk.bf16.mxu0 %vm451_vm0, %v10033_v5  ;;  %10081 = vmatprep.mubr.msk.bf16.mxu1 %vm451_vm0, %v10033_v5  ;;  %v2336_v5 = vsel %vm455_vm1, %v10127_v51, 0  ;;  %v12575_v51 = vld [vmem:[#allocation3 + $0xc4] ss:$16 sps:$4 sm:$0xff]  }
 0x172   :  { %1974 = vmatpush1.bf16.msra.mxu0 %v13395_v3  ;;  %2015 = vmatpush1.bf16.msra.mxu1 %v13397_v4 }
 0x173   :  { %1975 = vmatprep.subr.bf16.mxu0 %v13401_v6  ;;  %2016 = vmatprep.subr.bf16.mxu1 %v13403_v7 }
 0x176   :  { %1976 = vmatpush1.bf16.msra.mxu0 %v13409_v8  ;;  %2017 = vmatpush1.bf16.msra.mxu1 %v13411_v9 }
 0x177   :  { %1977 = vmatprep.subr.bf16.mxu0 %v13415_v10  ;;  %2018 = vmatprep.subr.bf16.mxu1 %v13417_v11 }
 0x17a   :  { %1978 = vmatpush1.bf16.msra.mxu0 %v13423_v12  ;;  %2019 = vmatpush1.bf16.msra.mxu1 %v13425_v13 }
 0x17b   :  { %1979 = vmatprep.subr.bf16.mxu0 %v13427_v14  ;;  %2020 = vmatprep.subr.bf16.mxu1 %v13429_v15 }
 0x17e   :  { %1980 = vmatpush1.bf16.msra.mxu0 %v13435_v16  ;;  %2021 = vmatpush1.bf16.msra.mxu1 %v13437_v17 }
 0x17f   :  { %1981 = vmatprep.subr.bf16.mxu0 %v13439_v18  ;;  %2022 = vmatprep.subr.bf16.mxu1 %v13441_v19 }
 0x182   :  { %1982 = vmatpush1.bf16.msra.mxu0 %v13447_v20  ;;  %2023 = vmatpush1.bf16.msra.mxu1 %v13449_v21 }
 0x183   :  { %1983 = vmatprep.subr.bf16.mxu0 %v13451_v22  ;;  %2024 = vmatprep.subr.bf16.mxu1 %v13453_v23 }
 0x186   :  { %1984 = vmatpush1.bf16.msra.mxu0 %v13459_v24  ;;  %2025 = vmatpush1.bf16.msra.mxu1 %v13461_v25 }
 0x187   :  { %1985 = vmatprep.subr.bf16.mxu0 %v13463_v26  ;;  %2026 = vmatprep.subr.bf16.mxu1 %v13465_v27 }
 0x18a   :  { %1986 = vmatpush1.bf16.msra.mxu0 %v13471_v28  ;;  %2027 = vmatpush1.bf16.msra.mxu1 %v13473_v29 }
 0x18b   :  { %1987 = vmatprep.subr.bf16.mxu0 %v13475_v30  ;;  %2028 = vmatprep.subr.bf16.mxu1 %v13477_v31 }
 0x18e   :  { %1988 = vmatpush1.bf16.msra.mxu0 %v13483_v32  ;;  %2029 = vmatpush1.bf16.msra.mxu1 %v13485_v33 }
 0x18f   :  { %1989 = vmatprep.subr.bf16.mxu0 %v13487_v34  ;;  %2030 = vmatprep.subr.bf16.mxu1 %v13489_v35 }
 0x192   :  { %1990 = vmatpush1.bf16.msra.mxu0 %v13495_v38  ;;  %2031 = vmatpush1.bf16.msra.mxu1 %v13497_v39 }
 0x193   :  { %10078 = vmatprep.subr.msk.bf16.mxu0 %vm455_vm1, %v10075_v40  ;;  %10080 = vmatprep.subr.msk.bf16.mxu1 %vm455_vm1, %v10077_v41  ;;  %v2342_v41 = vsel %vm455_vm1, %v10129_v54, 0  ;;  %v12578_v54 = vld [vmem:[#allocation3 + $0xc8] ss:$16 sps:$4 sm:$0xff]  }
 0x196   :  { %1992 = vmatpush1.bf16.msra.mxu0 %v1960_v44  ;;  %2033 = vmatpush1.bf16.msra.mxu1 %v1966_v45  ;;  %v10085_v44 = vcombine.low %v13512_v46, %v13512_v46  ;;  %v10139_v45 = vcombine.high %v13571_v43, %v13571_v43  ;;  %v12570_v46 = vld [vmem:[#allocation3 + $0x88] ss:$16 sps:$4 sm:$0xff]  }
 0x197   :  { %2347 = vmatprep.subr.bf16.mxu0 %v13370_v55  ;;  %2388 = vmatprep.subr.bf16.mxu1 %v13372_v56 }
 0x199   :  { %2004 = vmatmul.mubr.bf16.vlgmr.msra.gmra.mrb[16].mxu0 %v10032_v47  ;;  %2045 = vmatmul.mubr.bf16.vlgmr.msra.gmra.mrb[16].mxu1 %v10032_v47  ;;  %v12571_v47 = vld [vmem:[#allocation3 + $0xa4] ss:$16 sps:$4 sm:$0xff]  }
 0x19a   :  { %2348 = vmatpush1.bf16.msra.mxu0 %v13383_v62  ;;  %2389 = vmatpush1.bf16.msra.mxu1 %v13385_v63 }
 0x19b   :  { %2349 = vmatprep.subr.bf16.mxu0 %v13389_v1  ;;  %2390 = vmatprep.subr.bf16.mxu1 %v13391_v2 }
 0x19c   :  { %10132 = vmatprep.mubr.msk.bf16.mxu0 %vm451_vm0, %v10086_v48  ;;  %10134 = vmatprep.mubr.msk.bf16.mxu1 %vm451_vm0, %v10086_v48  ;;  %v12572_v48 = vld [vmem:[#allocation3 + $0xac] ss:$16 sps:$4 sm:$0xff]  }
 0x19e   :  { %2350 = vmatpush1.bf16.msra.mxu0 %v13395_v3  ;;  %2391 = vmatpush1.bf16.msra.mxu1 %v13397_v4 }
 0x19f   :  { %2351 = vmatprep.subr.bf16.mxu0 %v13401_v6  ;;  %2392 = vmatprep.subr.bf16.mxu1 %v13403_v7 }
 0x1a2   :  { %2352 = vmatpush1.bf16.msra.mxu0 %v13409_v8  ;;  %2393 = vmatpush1.bf16.msra.mxu1 %v13411_v9 }
 0x1a3   :  { %2353 = vmatprep.subr.bf16.mxu0 %v13415_v10  ;;  %2394 = vmatprep.subr.bf16.mxu1 %v13417_v11 }
 0x1a6   :  { %2354 = vmatpush1.bf16.msra.mxu0 %v13423_v12  ;;  %2395 = vmatpush1.bf16.msra.mxu1 %v13425_v13 }
 0x1a7   :  { %2355 = vmatprep.subr.bf16.mxu0 %v13427_v14  ;;  %2396 = vmatprep.subr.bf16.mxu1 %v13429_v15 }
 0x1aa   :  { %2356 = vmatpush1.bf16.msra.mxu0 %v13435_v16  ;;  %2397 = vmatpush1.bf16.msra.mxu1 %v13437_v17 }
 0x1ab   :  { %2357 = vmatprep.subr.bf16.mxu0 %v13439_v18  ;;  %2398 = vmatprep.subr.bf16.mxu1 %v13441_v19 }
 0x1ae   :  { %2358 = vmatpush1.bf16.msra.mxu0 %v13447_v20  ;;  %2399 = vmatpush1.bf16.msra.mxu1 %v13449_v21 }
 0x1af   :  { %2359 = vmatprep.subr.bf16.mxu0 %v13451_v22  ;;  %2400 = vmatprep.subr.bf16.mxu1 %v13453_v23 }
 0x1b2   :  { %2360 = vmatpush1.bf16.msra.mxu0 %v13459_v24  ;;  %2401 = vmatpush1.bf16.msra.mxu1 %v13461_v25 }
 0x1b3   :  { %2361 = vmatprep.subr.bf16.mxu0 %v13463_v26  ;;  %2402 = vmatprep.subr.bf16.mxu1 %v13465_v27 }
 0x1b6   :  { %2362 = vmatpush1.bf16.msra.mxu0 %v13471_v28  ;;  %2403 = vmatpush1.bf16.msra.mxu1 %v13473_v29 }
 0x1b7   :  { %2363 = vmatprep.subr.bf16.mxu0 %v13475_v30  ;;  %2404 = vmatprep.subr.bf16.mxu1 %v13477_v31 }
 0x1ba   :  { %2364 = vmatpush1.bf16.msra.mxu0 %v13483_v32  ;;  %2405 = vmatpush1.bf16.msra.mxu1 %v13485_v33 }
 0x1bb   :  { %2365 = vmatprep.subr.bf16.mxu0 %v13487_v34  ;;  %2406 = vmatprep.subr.bf16.mxu1 %v13489_v35 }
 0x1bc   :  { %v502_v57 = vpop.f32.mrb[0].mxu0  ;;  %v543_v58 = vpop.f32.mrb[0].mxu1 }
 0x1bd   :  { %v504_v59 = vpop.f32.mrb[1].mxu0  ;;  %v545_v60 = vpop.f32.mrb[1].mxu1 }
 0x1be   :  { %v13558_v61 = vpack.c.bf16 %v504_v59, %v502_v57  ;;  %v506_v0 = vpop.f32.mrb[2].mxu0  ;;  %2366 = vmatpush1.bf16.msra.mxu0 %v13495_v38  ;;  %2407 = vmatpush1.bf16.msra.mxu1 %v13497_v39  ;;  %v13563_v36 = vpack.c.bf16 %v545_v60, %v543_v58  ;;  %v547_v37 = vpop.f32.mrb[2].mxu1  ;;  %v12579_v57 = vld [vmem:[#allocation3 + $0xe4] ss:$16 sps:$4 sm:$0xff]   ;;  %v12580_v58 = vld [vmem:[#allocation3 + $0xec] ss:$16 sps:$4 sm:$0xff]  }
 0x1bf   :  { %v507_v40 = vpop.f32.mrb[3].mxu0  ;;  %10131 = vmatprep.subr.msk.bf16.mxu0 %vm455_vm1, %v10128_v52  ;;  %10133 = vmatprep.subr.msk.bf16.mxu1 %vm455_vm1, %v10130_v53  ;;  %v548_v42 = vpop.f32.mrb[3].mxu1  ;;  %v12576_v52 = vld [vmem:[#allocation3 + $0xcc] ss:$16 sps:$4 sm:$0xff]   ;;  %v12577_v53 = vld [vmem:[#allocation3 + $0xc0] ss:$16 sps:$4 sm:$0xff]  }
 0x1c0   :  { %v12581_v59 = vld [vmem:[#allocation3 + $0xe0] ss:$16 sps:$4 sm:$0xff]   ;;  %v12582_v60 = vld [vmem:[#allocation3 + $0xe8] ss:$16 sps:$4 sm:$0xff]   ;;  %v12583_v0 = vld [vmem:[#allocation3 + $0x104] ss:$16 sps:$4 sm:$0xff]  }
 0x1c1   :  { %v2866_v37 = vld [vmem:[#allocation3 + $0x140] sm:$0x11]  ;;  %v2867_v40 = vld [vmem:[#allocation3 + $0x148] sm:$0x11] }
 0x1c2   :  { %2368 = vmatpush1.bf16.msra.mxu0 %v2336_v5  ;;  %2409 = vmatpush1.bf16.msra.mxu1 %v2342_v41  ;;  %v12584_v5 = vld [vmem:[#allocation3 + $0x10c] ss:$16 sps:$4 sm:$0xff]   ;;  %v12585_v41 = vld [vmem:[#allocation3 + $0x100] ss:$16 sps:$4 sm:$0xff]   ;;  %v12586_v42 = vld [vmem:[#allocation3 + $0x108] ss:$16 sps:$4 sm:$0xff]  }
 0x1c3   :  { %2723 = vmatprep.subr.bf16.mxu0 %v13370_v55  ;;  %2764 = vmatprep.subr.bf16.mxu1 %v13372_v56  ;;  %v2490_v55 = vld [vmem:[#allocation3 + $0x140] sm:$0x11]  ;;  %v2491_v56 = vld [vmem:[#allocation3 + $0x148] sm:$0x11] }
 0x1c5   :  { %2380 = vmatmul.mubr.bf16.vlgmr.msra.gmra.mrb[20].mxu0 %v10085_v44  ;;  %2421 = vmatmul.mubr.bf16.vlgmr.msra.gmra.mrb[20].mxu1 %v10085_v44  ;;  %v10235_v44 = vcombine.low %v2867_v40, %v2867_v40 }
 0x1c6   :  { %2724 = vmatpush1.bf16.msra.mxu0 %v13383_v62  ;;  %2765 = vmatpush1.bf16.msra.mxu1 %v13385_v63  ;;  %v10180_v62 = vcombine.low %v2490_v55, %v2490_v55  ;;  %v10182_v63 = vcombine.low %v2491_v56, %v2491_v56 }
 0x1c7   :  { %2725 = vmatprep.subr.bf16.mxu0 %v13389_v1  ;;  %2766 = vmatprep.subr.bf16.mxu1 %v13391_v2  ;;  %v10181_v1 = vcombine.high %v2490_v55, %v2490_v55  ;;  %v10183_v2 = vcombine.high %v2491_v56, %v2491_v56  ;;  %v12588_v55 = vld [vmem:[#allocation3 + $0x12c] ss:$16 sps:$4 sm:$0xff]   ;;  %v10234_v56 = vcombine.high %v2866_v37, %v2866_v37 }
 0x1c8   :  { %10185 = vmatprep.mubr.msk.bf16.mxu0 %vm451_vm0, %v10139_v45  ;;  %10187 = vmatprep.mubr.msk.bf16.mxu1 %vm451_vm0, %v10139_v45  ;;  %v12587_v45 = vld [vmem:[#allocation3 + $0x124] ss:$16 sps:$4 sm:$0xff]  }
 0x1ca   :  { %2726 = vmatpush1.bf16.msra.mxu0 %v13395_v3  ;;  %2767 = vmatpush1.bf16.msra.mxu1 %v13397_v4  ;;  %v2712_v4 = vsel %vm455_vm1, %v10180_v62, 0  ;;  %v10236_v62 = vcombine.high %v2867_v40, %v2867_v40 }
 0x1cb   :  { %2727 = vmatprep.subr.bf16.mxu0 %v13401_v6  ;;  %2768 = vmatprep.subr.bf16.mxu1 %v13403_v7 }
 0x1ce   :  { %2728 = vmatpush1.bf16.msra.mxu0 %v13409_v8  ;;  %2769 = vmatpush1.bf16.msra.mxu1 %v13411_v9  ;;  %v2718_v8 = vsel %vm455_vm1, %v10182_v63, 0 }
 0x1cf   :  { %2729 = vmatprep.subr.bf16.mxu0 %v13415_v10  ;;  %2770 = vmatprep.subr.bf16.mxu1 %v13417_v11 }
 0x1d2   :  { %2730 = vmatpush1.bf16.msra.mxu0 %v13423_v12  ;;  %2771 = vmatpush1.bf16.msra.mxu1 %v13425_v13 }
 0x1d3   :  { %2731 = vmatprep.subr.bf16.mxu0 %v13427_v14  ;;  %2772 = vmatprep.subr.bf16.mxu1 %v13429_v15 }
 0x1d6   :  { %2732 = vmatpush1.bf16.msra.mxu0 %v13435_v16  ;;  %2773 = vmatpush1.bf16.msra.mxu1 %v13437_v17  ;;  %v13630_v16 = vld [vmem:[%s14432_s22 + $0x38] sm:$0xff]  ;;  %v10138_v17 = vcombine.low %v13571_v43, %v13571_v43  ;;  %v10233_v43 = vcombine.low %v2866_v37, %v2866_v37 }
 0x1d7   :  { %2733 = vmatprep.subr.bf16.mxu0 %v13439_v18  ;;  %2774 = vmatprep.subr.bf16.mxu1 %v13441_v19  ;;  %v12551_v18 = vld [vmem:[#allocation3 + $0x4] ss:$16 sps:$4 sm:$0xff]   ;;  %v12552_v19 = vld [vmem:[#allocation3 + $0xc] ss:$16 sps:$4 sm:$0xff]  }
 0x1da   :  { %2734 = vmatpush1.bf16.msra.mxu0 %v13447_v20  ;;  %2775 = vmatpush1.bf16.msra.mxu1 %v13449_v21  ;;  %v10192_v20 = vcombine.high %v13630_v16, %v13630_v16  ;;  %v12553_v21 = vld [vmem:[#allocation3] ss:$16 sps:$4 sm:$0xff]  }
 0x1db   :  { %2735 = vmatprep.subr.bf16.mxu0 %v13451_v22  ;;  %2776 = vmatprep.subr.bf16.mxu1 %v13453_v23  ;;  %v12554_v22 = vld [vmem:[#allocation3 + $0x8] ss:$16 sps:$4 sm:$0xff]   ;;  %v12555_v23 = vld [vmem:[#allocation3 + $0x24] ss:$16 sps:$4 sm:$0xff]  }
 0x1de   :  { %2736 = vmatpush1.bf16.msra.mxu0 %v13459_v24  ;;  %2777 = vmatpush1.bf16.msra.mxu1 %v13461_v25  ;;  %v12556_v24 = vld [vmem:[#allocation3 + $0x2c] ss:$16 sps:$4 sm:$0xff]   ;;  %v12557_v25 = vld [vmem:[#allocation3 + $0x20] ss:$16 sps:$4 sm:$0xff]  }
 0x1df   :  { %2737 = vmatprep.subr.bf16.mxu0 %v13463_v26  ;;  %2778 = vmatprep.subr.bf16.mxu1 %v13465_v27  ;;  %v12558_v26 = vld [vmem:[#allocation3 + $0x28] ss:$16 sps:$4 sm:$0xff]   ;;  %v12559_v27 = vld [vmem:[#allocation3 + $0x44] ss:$16 sps:$4 sm:$0xff]  }
 0x1e2   :  { %2738 = vmatpush1.bf16.msra.mxu0 %v13471_v28  ;;  %2779 = vmatpush1.bf16.msra.mxu1 %v13473_v29  ;;  %v12560_v28 = vld [vmem:[#allocation3 + $0x4c] ss:$16 sps:$4 sm:$0xff]   ;;  %v12561_v29 = vld [vmem:[#allocation3 + $0x40] ss:$16 sps:$4 sm:$0xff]  }
 0x1e3   :  { %2739 = vmatprep.subr.bf16.mxu0 %v13475_v30  ;;  %2780 = vmatprep.subr.bf16.mxu1 %v13477_v31  ;;  %v12562_v30 = vld [vmem:[#allocation3 + $0x48] ss:$16 sps:$4 sm:$0xff]   ;;  %v12563_v31 = vld [vmem:[#allocation3 + $0x64] ss:$16 sps:$4 sm:$0xff]  }
 0x1e6   :  { %2740 = vmatpush1.bf16.msra.mxu0 %v13483_v32  ;;  %2781 = vmatpush1.bf16.msra.mxu1 %v13485_v33  ;;  %v12564_v32 = vld [vmem:[#allocation3 + $0x6c] ss:$16 sps:$4 sm:$0xff]   ;;  %v12565_v33 = vld [vmem:[#allocation3 + $0x60] ss:$16 sps:$4 sm:$0xff]  }
 0x1e7   :  { %2741 = vmatprep.subr.bf16.mxu0 %v13487_v34  ;;  %2782 = vmatprep.subr.bf16.mxu1 %v13489_v35  ;;  %v12566_v34 = vld [vmem:[#allocation3 + $0x68] ss:$16 sps:$4 sm:$0xff]   ;;  %v12567_v35 = vld [vmem:[#allocation3 + $0x84] ss:$16 sps:$4 sm:$0xff]  }
 0x1e8   :  { %v877_v3 = vpop.f32.mrb[4].mxu0  ;;  %v918_v6 = vpop.f32.mrb[4].mxu1 }
 0x1e9   :  { %v879_v7 = vpop.f32.mrb[5].mxu0  ;;  %v920_v9 = vpop.f32.mrb[5].mxu1 }
 0x1ea   :  { %v13619_v10 = vpack.c.bf16 %v879_v7, %v877_v3  ;;  %v881_v11 = vpop.f32.mrb[6].mxu0  ;;  %2742 = vmatpush1.bf16.msra.mxu0 %v13495_v38  ;;  %2783 = vmatpush1.bf16.msra.mxu1 %v13497_v39  ;;  %v13623_v12 = vpack.c.bf16 %v920_v9, %v918_v6  ;;  %v922_v13 = vpop.f32.mrb[6].mxu1  ;;  %v12568_v38 = vld [vmem:[#allocation3 + $0x8c] ss:$16 sps:$4 sm:$0xff]   ;;  %v12569_v39 = vld [vmem:[#allocation3 + $0x80] ss:$16 sps:$4 sm:$0xff]  }
 0x1eb   :  { %v882_v14 = vpop.f32.mrb[7].mxu0  ;;  %10184 = vmatprep.subr.msk.bf16.mxu0 %vm455_vm1, %v10181_v1  ;;  %10186 = vmatprep.subr.msk.bf16.mxu1 %vm455_vm1, %v10183_v2  ;;  %v923_v15 = vpop.f32.mrb[7].mxu1  ;;  %v12589_v7 = vld [vmem:[#allocation3 + $0x120] ss:$16 sps:$4 sm:$0xff]   ;;  %v3088_v9 = vsel %vm455_vm1, %v10233_v43, 0  ;;  %v3094_v11 = vsel %vm455_vm1, %v10235_v44, 0 }
 0x1ee   :  { %2744 = vmatpush1.bf16.msra.mxu0 %v2712_v4  ;;  %2785 = vmatpush1.bf16.msra.mxu1 %v2718_v8  ;;  %v12590_v8 = vld [vmem:[#allocation3 + $0x128] ss:$16 sps:$4 sm:$0xff]  }
 0x1ef   :  { %3099 = vmatprep.subr.bf16.mxu0 %v12551_v18  ;;  %3140 = vmatprep.subr.bf16.mxu1 %v12552_v19  ;;  %v13648_v18 = vld [vmem:[#allocation5 + $0xc] ss:$16 sps:$4 sm:$0xff]  }
 0x1f1   :  { %2756 = vmatmul.mubr.bf16.vlgmr.msra.gmra.mrb[24].mxu0 %v10138_v17  ;;  %2797 = vmatmul.mubr.bf16.vlgmr.msra.gmra.mrb[24].mxu1 %v10138_v17  ;;  %v13646_v17 = vld [vmem:[#allocation5 + $0x4] ss:$16 sps:$4 sm:$0xff]  }
 0x1f2   :  { %3100 = vmatpush1.bf16.msra.mxu0 %v12553_v21  ;;  %3141 = vmatpush1.bf16.msra.mxu1 %v12554_v22  ;;  %v13652_v21 = vld [vmem:[#allocation5] ss:$16 sps:$4 sm:$0xff]   ;;  %v13654_v22 = vld [vmem:[#allocation5 + $0x8] ss:$16 sps:$4 sm:$0xff]  }
 0x1f3   :  { %3101 = vmatprep.subr.bf16.mxu0 %v12555_v23  ;;  %3142 = vmatprep.subr.bf16.mxu1 %v12556_v24  ;;  %v13658_v23 = vld [vmem:[#allocation5 + $0x24] ss:$16 sps:$4 sm:$0xff]   ;;  %v13660_v24 = vld [vmem:[#allocation5 + $0x2c] ss:$16 sps:$4 sm:$0xff]  }
 0x1f4   :  { %10238 = vmatprep.mubr.msk.bf16.mxu0 %vm451_vm0, %v10192_v20  ;;  %10240 = vmatprep.mubr.msk.bf16.mxu1 %vm451_vm0, %v10192_v20  ;;  %v10191_v20 = vcombine.low %v13630_v16, %v13630_v16  ;;  %v13664_v16 = vld [vmem:[#allocation5 + $0x20] ss:$16 sps:$4 sm:$0xff]  }
 0x1f6   :  { %3102 = vmatpush1.bf16.msra.mxu0 %v12557_v25  ;;  %3143 = vmatpush1.bf16.msra.mxu1 %v12558_v26  ;;  %v13666_v25 = vld [vmem:[#allocation5 + $0x28] ss:$16 sps:$4 sm:$0xff]   ;;  %v13670_v26 = vld [vmem:[#allocation5 + $0x44] ss:$16 sps:$4 sm:$0xff]  }
 0x1f7   :  { %3103 = vmatprep.subr.bf16.mxu0 %v12559_v27  ;;  %3144 = vmatprep.subr.bf16.mxu1 %v12560_v28  ;;  %v13672_v27 = vld [vmem:[#allocation5 + $0x4c] ss:$16 sps:$4 sm:$0xff]   ;;  %v14410_v28 = vmov 0  }
 0x1fa   :  { %3104 = vmatpush1.bf16.msra.mxu0 %v12561_v29  ;;  %3145 = vmatpush1.bf16.msra.mxu1 %v12562_v30  ;;  %v13678_v29 = vld [vmem:[#allocation5 + $0x40] ss:$16 sps:$4 sm:$0xff]   ;;  %v13680_v30 = vld [vmem:[#allocation5 + $0x48] ss:$16 sps:$4 sm:$0xff]  }
 0x1fb   :  { %3105 = vmatprep.subr.bf16.mxu0 %v12563_v31  ;;  %3146 = vmatprep.subr.bf16.mxu1 %v12564_v32  ;;  %v13684_v31 = vld [vmem:[#allocation5 + $0x64] ss:$16 sps:$4 sm:$0xff]   ;;  %v13686_v32 = vld [vmem:[#allocation5 + $0x6c] ss:$16 sps:$4 sm:$0xff]  }
 0x1fe   :  { %3106 = vmatpush1.bf16.msra.mxu0 %v12565_v33  ;;  %3147 = vmatpush1.bf16.msra.mxu1 %v12566_v34  ;;  %v13690_v33 = vld [vmem:[#allocation5 + $0x60] ss:$16 sps:$4 sm:$0xff]   ;;  %v13692_v34 = vld [vmem:[#allocation5 + $0x68] ss:$16 sps:$4 sm:$0xff]  }
 0x1ff   :  { %3107 = vmatprep.subr.bf16.mxu0 %v12567_v35  ;;  %3148 = vmatprep.subr.bf16.mxu1 %v12568_v38  ;;  %v13696_v35 = vld [vmem:[#allocation5 + $0x84] ss:$16 sps:$4 sm:$0xff]   ;;  %v13698_v38 = vld [vmem:[#allocation5 + $0x8c] ss:$16 sps:$4 sm:$0xff]  }
 0x202   :  { %3108 = vmatpush1.bf16.msra.mxu0 %v12569_v39  ;;  %3149 = vmatpush1.bf16.msra.mxu1 %v12570_v46  ;;  %v13702_v39 = vld [vmem:[#allocation5 + $0x80] ss:$16 sps:$4 sm:$0xff]   ;;  %v13704_v46 = vld [vmem:[#allocation5 + $0x88] ss:$16 sps:$4 sm:$0xff]  }
 0x203   :  { %3109 = vmatprep.subr.bf16.mxu0 %v12571_v47  ;;  %3150 = vmatprep.subr.bf16.mxu1 %v12572_v48  ;;  %v13708_v47 = vld [vmem:[#allocation5 + $0xa4] ss:$16 sps:$4 sm:$0xff]   ;;  %v13710_v48 = vld [vmem:[#allocation5 + $0xac] ss:$16 sps:$4 sm:$0xff]  }
 0x206   :  { %3110 = vmatpush1.bf16.msra.mxu0 %v12573_v49  ;;  %3151 = vmatpush1.bf16.msra.mxu1 %v12574_v50  ;;  %v13714_v49 = vld [vmem:[#allocation5 + $0xa0] ss:$16 sps:$4 sm:$0xff]   ;;  %v13716_v50 = vld [vmem:[#allocation5 + $0xa8] ss:$16 sps:$4 sm:$0xff]  }
 0x207   :  { %3111 = vmatprep.subr.bf16.mxu0 %v12575_v51  ;;  %3152 = vmatprep.subr.bf16.mxu1 %v12576_v52  ;;  %v13720_v51 = vld [vmem:[#allocation5 + $0xc4] ss:$16 sps:$4 sm:$0xff]   ;;  %v13722_v52 = vld [vmem:[#allocation5 + $0xcc] ss:$16 sps:$4 sm:$0xff]  }
 0x20a   :  { %3112 = vmatpush1.bf16.msra.mxu0 %v12577_v53  ;;  %3153 = vmatpush1.bf16.msra.mxu1 %v12578_v54  ;;  %v13726_v53 = vld [vmem:[#allocation5 + $0xc0] ss:$16 sps:$4 sm:$0xff]   ;;  %v13728_v54 = vld [vmem:[#allocation5 + $0xc8] ss:$16 sps:$4 sm:$0xff]  }
 0x20b   :  { %3113 = vmatprep.subr.bf16.mxu0 %v12579_v57  ;;  %3154 = vmatprep.subr.bf16.mxu1 %v12580_v58  ;;  %v13732_v57 = vld [vmem:[#allocation5 + $0xe4] ss:$16 sps:$4 sm:$0xff]   ;;  %v13734_v58 = vld [vmem:[#allocation5 + $0xec] ss:$16 sps:$4 sm:$0xff]  }
 0x20e   :  { %3114 = vmatpush1.bf16.msra.mxu0 %v12581_v59  ;;  %3155 = vmatpush1.bf16.msra.mxu1 %v12582_v60  ;;  %v13738_v59 = vld [vmem:[#allocation5 + $0xe0] ss:$16 sps:$4 sm:$0xff]   ;;  %v13740_v60 = vld [vmem:[#allocation5 + $0xe8] ss:$16 sps:$4 sm:$0xff]  }
 0x20f   :  { %3115 = vmatprep.subr.bf16.mxu0 %v12583_v0  ;;  %3156 = vmatprep.subr.bf16.mxu1 %v12584_v5 }
 0x212   :  { %3116 = vmatpush1.bf16.msra.mxu0 %v12585_v41  ;;  %3157 = vmatpush1.bf16.msra.mxu1 %v12586_v42 }
 0x213   :  { %3117 = vmatprep.subr.bf16.mxu0 %v12587_v45  ;;  %3158 = vmatprep.subr.bf16.mxu1 %v12588_v55 }
 0x214   :  { %v1253_v63 = vpop.f32.mrb[8].mxu0  ;;  %v1294_v1 = vpop.f32.mrb[8].mxu1 }
 0x215   :  { %v1255_v2 = vpop.f32.mrb[9].mxu0  ;;  %v1296_v3 = vpop.f32.mrb[9].mxu1 }
 0x216   :  { %v13638_v4 = vpack.c.bf16 %v1255_v2, %v1253_v63  ;;  %v1257_v6 = vpop.f32.mrb[10].mxu0  ;;  %3118 = vmatpush1.bf16.msra.mxu0 %v12589_v7  ;;  %3159 = vmatpush1.bf16.msra.mxu1 %v12590_v8  ;;  %v13642_v13 = vpack.c.bf16 %v1296_v3, %v1294_v1  ;;  %v1298_v14 = vpop.f32.mrb[10].mxu1 }
 0x217   :  { %v1258_v15 = vpop.f32.mrb[11].mxu0  ;;  %10237 = vmatprep.subr.msk.bf16.mxu0 %vm455_vm1, %v10234_v56  ;;  %10239 = vmatprep.subr.msk.bf16.mxu1 %vm455_vm1, %v10236_v62  ;;  %v1299_v19 = vpop.f32.mrb[11].mxu1 }
 0x21a   :  { %3120 = vmatpush1.bf16.msra.mxu0 %v3088_v9  ;;  %3161 = vmatpush1.bf16.msra.mxu1 %v3094_v11 }
 0x21b   :  { %3394 = vmatprep.subr.bf16.mxu0 %v13646_v17  ;;  %3435 = vmatprep.subr.bf16.mxu1 %v13648_v18 }
 0x21d   :  { %3132 = vmatmul.mubr.bf16.vlgmr.msra.gmra.mrb[28].mxu0 %v10191_v20  ;;  %3173 = vmatmul.mubr.bf16.vlgmr.msra.gmra.mrb[28].mxu1 %v10191_v20 }
 0x21e   :  { %3395 = vmatpush1.bf16.msra.mxu0 %v13652_v21  ;;  %3436 = vmatpush1.bf16.msra.mxu1 %v13654_v22 }
 0x21f   :  { %3396 = vmatprep.subr.bf16.mxu0 %v13658_v23  ;;  %3437 = vmatprep.subr.bf16.mxu1 %v13660_v24 }
 0x220   :  { %3426 = vmatprep.mubr.bf16.mxu0 %v14410_v28  ;;  %3467 = vmatprep.mubr.bf16.mxu1 %v14410_v28 }
 0x222   :  { %3397 = vmatpush1.bf16.msra.mxu0 %v13664_v16  ;;  %3438 = vmatpush1.bf16.msra.mxu1 %v13666_v25 }
 0x223   :  { %3398 = vmatprep.subr.bf16.mxu0 %v13670_v26  ;;  %3439 = vmatprep.subr.bf16.mxu1 %v13672_v27 }
 0x226   :  { %3399 = vmatpush1.bf16.msra.mxu0 %v13678_v29  ;;  %3440 = vmatpush1.bf16.msra.mxu1 %v13680_v30 }
 0x227   :  { %3400 = vmatprep.subr.bf16.mxu0 %v13684_v31  ;;  %3441 = vmatprep.subr.bf16.mxu1 %v13686_v32 }
 0x22a   :  { %3401 = vmatpush1.bf16.msra.mxu0 %v13690_v33  ;;  %3442 = vmatpush1.bf16.msra.mxu1 %v13692_v34 }
 0x22b   :  { %3402 = vmatprep.subr.bf16.mxu0 %v13696_v35  ;;  %3443 = vmatprep.subr.bf16.mxu1 %v13698_v38 }
 0x22e   :  { %3403 = vmatpush1.bf16.msra.mxu0 %v13702_v39  ;;  %3444 = vmatpush1.bf16.msra.mxu1 %v13704_v46 }
 0x22f   :  { %3404 = vmatprep.subr.bf16.mxu0 %v13708_v47  ;;  %3445 = vmatprep.subr.bf16.mxu1 %v13710_v48 }
 0x232   :  { %3405 = vmatpush1.bf16.msra.mxu0 %v13714_v49  ;;  %3446 = vmatpush1.bf16.msra.mxu1 %v13716_v50 }
 0x233   :  { %3406 = vmatprep.subr.bf16.mxu0 %v13720_v51  ;;  %3447 = vmatprep.subr.bf16.mxu1 %v13722_v52 }
 0x236   :  { %3407 = vmatpush1.bf16.msra.mxu0 %v13726_v53  ;;  %3448 = vmatpush1.bf16.msra.mxu1 %v13728_v54 }
 0x237   :  { %3408 = vmatprep.subr.bf16.mxu0 %v13732_v57  ;;  %3449 = vmatprep.subr.bf16.mxu1 %v13734_v58 }
 0x23a   :  { %3409 = vmatpush1.bf16.msra.mxu0 %v13738_v59  ;;  %3450 = vmatpush1.bf16.msra.mxu1 %v13740_v60 }
 0x23b   :  { %3537 = vmatprep.subr.bf16.mxu0 %v13646_v17  ;;  %3578 = vmatprep.subr.bf16.mxu1 %v13648_v18 }
 0x23d   :  { %3427 = vmatmul.mubr.bf16.vlgmr.msra.gmra.mrb[32].mxu0 %v14410_v28  ;;  %3468 = vmatmul.mubr.bf16.vlgmr.msra.gmra.mrb[32].mxu1 %v14410_v28 }
 0x23e   :  { %3538 = vmatpush1.bf16.msra.mxu0 %v13652_v21  ;;  %3579 = vmatpush1.bf16.msra.mxu1 %v13654_v22 }
 0x23f   :  { %3539 = vmatprep.subr.bf16.mxu0 %v13658_v23  ;;  %3580 = vmatprep.subr.bf16.mxu1 %v13660_v24 }
 0x240   :  { %v1629_v0 = vpop.f32.mrb[12].mxu0  ;;  %v1670_v5 = vpop.f32.mrb[12].mxu1  ;;  %3569 = vmatprep.mubr.bf16.mxu0 %v14410_v28  ;;  %3610 = vmatprep.mubr.bf16.mxu1 %v14410_v28 }
 0x241   :  { %v1631_v37 = vpop.f32.mrb[13].mxu0  ;;  %v1672_v40 = vpop.f32.mrb[13].mxu1 }
 0x242   :  { %v13756_v41 = vpack.c.bf16 %v1631_v37, %v1629_v0  ;;  %v1633_v42 = vpop.f32.mrb[14].mxu0  ;;  %v13758_v43 = vpack.c.bf16 %v1672_v40, %v1670_v5  ;;  %v1674_v44 = vpop.f32.mrb[14].mxu1  ;;  %3540 = vmatpush1.bf16.msra.mxu0 %v13664_v16  ;;  %3581 = vmatpush1.bf16.msra.mxu1 %v13666_v25 }
 0x243   :  { %v1634_v45 = vpop.f32.mrb[15].mxu0  ;;  %v1675_v55 = vpop.f32.mrb[15].mxu1  ;;  %3541 = vmatprep.subr.bf16.mxu0 %v13670_v26  ;;  %3582 = vmatprep.subr.bf16.mxu1 %v13672_v27 }
 0x246   :  { %3542 = vmatpush1.bf16.msra.mxu0 %v13678_v29  ;;  %3583 = vmatpush1.bf16.msra.mxu1 %v13680_v30 }
 0x247   :  { %3543 = vmatprep.subr.bf16.mxu0 %v13684_v31  ;;  %3584 = vmatprep.subr.bf16.mxu1 %v13686_v32 }
 0x24a   :  { %3544 = vmatpush1.bf16.msra.mxu0 %v13690_v33  ;;  %3585 = vmatpush1.bf16.msra.mxu1 %v13692_v34 }
 0x24b   :  { %3545 = vmatprep.subr.bf16.mxu0 %v13696_v35  ;;  %3586 = vmatprep.subr.bf16.mxu1 %v13698_v38 }
 0x24e   :  { %3546 = vmatpush1.bf16.msra.mxu0 %v13702_v39  ;;  %3587 = vmatpush1.bf16.msra.mxu1 %v13704_v46 }
 0x24f   :  { %3547 = vmatprep.subr.bf16.mxu0 %v13708_v47  ;;  %3588 = vmatprep.subr.bf16.mxu1 %v13710_v48 }
 0x252   :  { %3548 = vmatpush1.bf16.msra.mxu0 %v13714_v49  ;;  %3589 = vmatpush1.bf16.msra.mxu1 %v13716_v50 }
 0x253   :  { %3549 = vmatprep.subr.bf16.mxu0 %v13720_v51  ;;  %3590 = vmatprep.subr.bf16.mxu1 %v13722_v52 }
 0x256   :  { %3550 = vmatpush1.bf16.msra.mxu0 %v13726_v53  ;;  %3591 = vmatpush1.bf16.msra.mxu1 %v13728_v54 }
 0x257   :  { %3551 = vmatprep.subr.bf16.mxu0 %v13732_v57  ;;  %3592 = vmatprep.subr.bf16.mxu1 %v13734_v58 }
 0x25a   :  { %3552 = vmatpush1.bf16.msra.mxu0 %v13738_v59  ;;  %3593 = vmatpush1.bf16.msra.mxu1 %v13740_v60 }
 0x25b   :  { %3658 = vmatprep.subr.bf16.mxu0 %v13646_v17  ;;  %3699 = vmatprep.subr.bf16.mxu1 %v13648_v18 }
 0x26c   :  { %v2005_v56 = vpop.f32.mrb[16].mxu0  ;;  %v2046_v62 = vpop.f32.mrb[16].mxu1 }
 0x26d   :  { %v2007_v63 = vpop.f32.mrb[17].mxu0  ;;  %v2048_v1 = vpop.f32.mrb[17].mxu1 }
 0x26e   :  { %v13788_v2 = vpack.c.bf16 %v2007_v63, %v2005_v56  ;;  %v2009_v3 = vpop.f32.mrb[18].mxu0  ;;  %v13790_v6 = vpack.c.bf16 %v2048_v1, %v2046_v62  ;;  %v2050_v7 = vpop.f32.mrb[18].mxu1 }
 0x26f   :  { %v2010_v8 = vpop.f32.mrb[19].mxu0  ;;  %v2051_v9 = vpop.f32.mrb[19].mxu1 }
 0x270   :  { %14433 = vst [vmem:[#allocation25_spill] sm:$0xff] %v13788_v2  ;;  %14434 = vst [vmem:[#allocation26_spill] sm:$0xff] %v13790_v6 }
 0x298   :  { %v2381_v11 = vpop.f32.mrb[20].mxu0  ;;  %v2422_v14 = vpop.f32.mrb[20].mxu1 }
 0x299   :  { %v2383_v15 = vpop.f32.mrb[21].mxu0  ;;  %v2424_v19 = vpop.f32.mrb[21].mxu1 }
 0x29a   :  { %v13792_v20 = vpack.c.bf16 %v2383_v15, %v2381_v11  ;;  %v2385_v0 = vpop.f32.mrb[22].mxu0  ;;  %v13794_v5 = vpack.c.bf16 %v2424_v19, %v2422_v14  ;;  %v2426_v37 = vpop.f32.mrb[22].mxu1 }
 0x29b   :  { %v2386_v40 = vpop.f32.mrb[23].mxu0  ;;  %v2427_v42 = vpop.f32.mrb[23].mxu1 }
 0x29c   :  { %14435 = vst [vmem:[#allocation27_spill] sm:$0xff] %v13792_v20  ;;  %14436 = vst [vmem:[#allocation28_spill] sm:$0xff] %v13794_v5 }
 0x2c4   :  { %v2757_v44 = vpop.f32.mrb[24].mxu0  ;;  %v2798_v45 = vpop.f32.mrb[24].mxu1 }
 0x2c5   :  { %v2759_v55 = vpop.f32.mrb[25].mxu0  ;;  %v2800_v56 = vpop.f32.mrb[25].mxu1 }
 0x2c6   :  { %v13796_v62 = vpack.c.bf16 %v2759_v55, %v2757_v44  ;;  %v2761_v63 = vpop.f32.mrb[26].mxu0  ;;  %v13798_v1 = vpack.c.bf16 %v2800_v56, %v2798_v45  ;;  %v2802_v3 = vpop.f32.mrb[26].mxu1  ;;  %v3486_v44 = vlaneseq  ;;  %v3484_v45 = vld [vmem:[%s14392_s4] sm:$0xf] }
 0x2c7   :  { %v2762_v7 = vpop.f32.mrb[27].mxu0  ;;  %v2803_v8 = vpop.f32.mrb[27].mxu1  ;;  %v3476_v3 = vunpack.c.l.bf16 %v13558_v61 }
 0x2c8   :  { %14437 = vst [vmem:[#allocation29_spill] sm:$0xff] %v13796_v62  ;;  %14438 = vst [vmem:[#allocation30_spill] sm:$0xff] %v13798_v1  ;;  %v3487_v55 = vshrl.u32 %v3486_v44, 7  ;;  %v3478_v8 = vunpack.c.l.bf16 %v13563_v36 }
 0x2ca   :  { %v13804_v63 = vsub.s32 0, %v3487_v55  ;;  %v13809_v56 = vsub.s32 1, %v3487_v55  ;;  %v13821_v1 = vsub.s32 3, %v3487_v55 }
 0x2cc   :  { %14441 = vst [vmem:[#allocation33_spill] sm:$0xff] %v13804_v63  ;;  %14442 = vst [vmem:[#allocation34_spill] sm:$0xff] %v13809_v56  ;;  %v13813_v7 = vrot.slane %v3484_v45, %v13804_v63 }
 0x2cd   :  { %14443 = vst [vmem:[#allocation35_spill] sm:$0xff] %v13821_v1 }
 0x2f0   :  { %v3133_v9 = vpop.f32.mrb[28].mxu0  ;;  %v3174_v11 = vpop.f32.mrb[28].mxu1 }
 0x2f1   :  { %v3135_v15 = vpop.f32.mrb[29].mxu0  ;;  %v3176_v14 = vpop.f32.mrb[29].mxu1 }
 0x2f2   :  { %v13800_v19 = vpack.c.bf16 %v3135_v15, %v3133_v9  ;;  %v3137_v0 = vpop.f32.mrb[30].mxu0  ;;  %v13802_v37 = vpack.c.bf16 %v3176_v14, %v3174_v11  ;;  %v3178_v40 = vpop.f32.mrb[30].mxu1  ;;  %v13818_v15 = vrot.slane %v3484_v45, %v13809_v56  ;;  %v3479_v14 = vunpack.c.h.bf16 %v13563_v36 }
 0x2f3   :  { %v3138_v42 = vpop.f32.mrb[31].mxu0  ;;  %v3179_v28 = vpop.f32.mrb[31].mxu1  ;;  %v13826_v36 = vrot.slane %v3484_v45, %v13821_v1 }
 0x2f4   :  { %14439 = vst [vmem:[#allocation31_spill] sm:$0xff] %v13800_v19  ;;  %14440 = vst [vmem:[#allocation32_spill] sm:$0xff] %v13802_v37  ;;  %v3477_v28 = vunpack.c.h.bf16 %v13558_v61 }
 0x310   :  { %v3428_v9 = vpop.f32.mrb[32].mxu0  ;;  %v3469_v11 = vpop.f32.mrb[32].mxu1 }
 0x311   :  { %v3480_v0 = vadd.f32 %v3476_v3, %v3428_v9  ;;  %v3482_v40 = vadd.f32 %v3478_v8, %v3469_v11  ;;  %v3430_v42 = vpop.f32.mrb[33].mxu0  ;;  %v3471_v44 = vpop.f32.mrb[33].mxu1  ;;  %v13828_v3 = vsub.s32 2, %v3487_v55 }
 0x312   :  { %v3481_v37 = vadd.f32 %v3477_v28, %v3430_v42  ;;  %v3483_v19 = vadd.f32 %v3479_v14, %v3471_v44  ;;  %v3432_v63 = vpop.f32.mrb[34].mxu0  ;;  %v3473_v62 = vpop.f32.mrb[34].mxu1 }
 0x313   :  { %v3506_v5 = vadd.f32 %v13813_v7, %v3480_v0  ;;  %v3433_v20 = vpop.f32.mrb[35].mxu0  ;;  %v3474_v6 = vpop.f32.mrb[35].mxu1  ;;  %14444 = vst [vmem:[#allocation36_spill] sm:$0xff] %v13828_v3  ;;  %v13832_v63 = vrot.slane %v3484_v45, %v13828_v3 }
 0x314   :  { %v3507_v61 = vadd.f32 %v13818_v15, %v3481_v37  ;;  %v3509_v8 = vadd.f32 %v13826_v36, %v3483_v19 }
 0x315   :  { %v10275_v56 = vmul.f32 -1.442695, %v3506_v5  ;;  %v3508_v20 = vadd.f32 %v13832_v63, %v3482_v40 }
 0x316   :  { %v10276_v2 = vmul.f32 -1.442695, %v3507_v61  ;;  %v10277_v62 = vmul.f32 -1.442695, %v3509_v8  ;;  %v14445_v61 = vmov 0   ;;  %v3619_v8 = vunpack.c.l.bf16 %v13619_v10 }
 0x317   :  { %12383 = vpow2.f32 %v10275_v56 }
 0x318   :  { %12385 = vpow2.f32 %v10276_v2 }
 0x319   :  { %12387 = vpow2.f32 %v10277_v62  ;;  %v3621_v62 = vunpack.c.l.bf16 %v13623_v12 }
 0x31a   :  { %12389 = vtanh.f32 %v3508_v20 }
 0x321   :  { %v12384_v6 = vpop.eup %12383 }
 0x322   :  { %v12386_v9 = vpop.eup %12385  ;;  %v3516_v37 = vadd.f32 1.0, %v12384_v6 }
 0x323   :  { %v3517_v5 = vadd.f32 1.0, %v12386_v9  ;;  %v12388_v56 = vpop.eup %12387  ;;  %v3620_v9 = vunpack.c.h.bf16 %v13619_v10 }
 0x324   :  { %12391 = vrcp.f32 %v3516_v37  ;;  %v12390_v55 = vpop.eup %12389  ;;  %v3526_v19 = vadd.f32 1.0, %v12388_v56  ;;  %v3622_v37 = vunpack.c.h.bf16 %v13623_v12 }
 0x325   :  { %12393 = vrcp.f32 %v3517_v5 }
 0x326   :  { %12395 = vrcp.f32 %v3526_v19 }
 0x32e   :  { %v12392_v11 = vpop.eup %12391 }
 0x32f   :  { %v12394_v2 = vpop.eup %12393  ;;  %v3530_v28 = vmul.f32 %v12392_v11, %v12390_v55 }
 0x330   :  { %v3529_v14 = vmul.f32 0.0, %v12394_v2  ;;  %v12396_v0 = vpop.eup %12395 }
 0x332   :  { %v13835_v45 = vadd.f32 %v3530_v28, %v3529_v14 }
 0x334   :  { %12397 = vtanh.f32 %v13835_v45 }
 0x33e   :  { %v12398_v40 = vpop.eup %12397 }
 0x33f   :  { %v3533_v42 = vmul.f32 %v12398_v40, %v12396_v0 }
 0x341   :  { %v3536_v44 = vpack.c.bf16 %v3533_v42, %v3533_v42 }
 0x343   :  { %3570 = vmatmul.mubr.bf16.vlgmr.msra.gmra.mrb[36].mxu0 %v3536_v44  ;;  %3611 = vmatmul.mubr.bf16.vlgmr.msra.gmra.mrb[36].mxu1 %v3536_v44 }
 0x344   :  { %3659 = vmatpush1.bf16.msra.mxu0 %v13652_v21  ;;  %3700 = vmatpush1.bf16.msra.mxu1 %v13654_v22 }
 0x345   :  { %3660 = vmatprep.subr.bf16.mxu0 %v13658_v23  ;;  %3701 = vmatprep.subr.bf16.mxu1 %v13660_v24 }
 0x346   :  { %3690 = vmatprep.mubr.bf16.mxu0 %v14445_v61  ;;  %3731 = vmatprep.mubr.bf16.mxu1 %v14445_v61 }
 0x348   :  { %3661 = vmatpush1.bf16.msra.mxu0 %v13664_v16  ;;  %3702 = vmatpush1.bf16.msra.mxu1 %v13666_v25 }
 0x349   :  { %3662 = vmatprep.subr.bf16.mxu0 %v13670_v26  ;;  %3703 = vmatprep.subr.bf16.mxu1 %v13672_v27 }
 0x34c   :  { %3663 = vmatpush1.bf16.msra.mxu0 %v13678_v29  ;;  %3704 = vmatpush1.bf16.msra.mxu1 %v13680_v30 }
 0x34d   :  { %3664 = vmatprep.subr.bf16.mxu0 %v13684_v31  ;;  %3705 = vmatprep.subr.bf16.mxu1 %v13686_v32 }
 0x350   :  { %3665 = vmatpush1.bf16.msra.mxu0 %v13690_v33  ;;  %3706 = vmatpush1.bf16.msra.mxu1 %v13692_v34 }
 0x351   :  { %3666 = vmatprep.subr.bf16.mxu0 %v13696_v35  ;;  %3707 = vmatprep.subr.bf16.mxu1 %v13698_v38 }
 0x354   :  { %3667 = vmatpush1.bf16.msra.mxu0 %v13702_v39  ;;  %3708 = vmatpush1.bf16.msra.mxu1 %v13704_v46 }
 0x355   :  { %3668 = vmatprep.subr.bf16.mxu0 %v13708_v47  ;;  %3709 = vmatprep.subr.bf16.mxu1 %v13710_v48 }
 0x358   :  { %3669 = vmatpush1.bf16.msra.mxu0 %v13714_v49  ;;  %3710 = vmatpush1.bf16.msra.mxu1 %v13716_v50 }
 0x359   :  { %3670 = vmatprep.subr.bf16.mxu0 %v13720_v51  ;;  %3711 = vmatprep.subr.bf16.mxu1 %v13722_v52 }
 0x35c   :  { %3671 = vmatpush1.bf16.msra.mxu0 %v13726_v53  ;;  %3712 = vmatpush1.bf16.msra.mxu1 %v13728_v54 }
 0x35d   :  { %3672 = vmatprep.subr.bf16.mxu0 %v13732_v57  ;;  %3713 = vmatprep.subr.bf16.mxu1 %v13734_v58 }
 0x360   :  { %3673 = vmatpush1.bf16.msra.mxu0 %v13738_v59  ;;  %3714 = vmatpush1.bf16.msra.mxu1 %v13740_v60 }
 0x361   :  { %3779 = vmatprep.subr.bf16.mxu0 %v13646_v17  ;;  %3820 = vmatprep.subr.bf16.mxu1 %v13648_v18 }
 0x416   :  { %v3571_v20 = vpop.f32.mrb[36].mxu0  ;;  %v3612_v6 = vpop.f32.mrb[36].mxu1 }
 0x417   :  { %v3623_v5 = vadd.f32 %v3619_v8, %v3571_v20  ;;  %v3625_v56 = vadd.f32 %v3621_v62, %v3612_v6  ;;  %v3573_v55 = vpop.f32.mrb[37].mxu0  ;;  %v3614_v11 = vpop.f32.mrb[37].mxu1 }
 0x418   :  { %v3624_v2 = vadd.f32 %v3620_v9, %v3573_v55  ;;  %v3626_v28 = vadd.f32 %v3622_v37, %v3614_v11  ;;  %v3575_v19 = vpop.f32.mrb[38].mxu0  ;;  %v3616_v14 = vpop.f32.mrb[38].mxu1 }
 0x419   :  { %v3627_v0 = vadd.f32 %v3623_v5, %v13813_v7  ;;  %v3576_v40 = vpop.f32.mrb[39].mxu0  ;;  %v3617_v42 = vpop.f32.mrb[39].mxu1  ;;  %v3629_v8 = vadd.f32 %v3625_v56, %v13832_v63 }
 0x41a   :  { %v3628_v44 = vadd.f32 %v3624_v2, %v13818_v15  ;;  %v3630_v10 = vadd.f32 %v3626_v28, %v13826_v36  ;;  %v3742_v40 = vunpack.c.l.bf16 %v13642_v13 }
 0x41b   :  { %v10278_v1 = vmul.f32 -1.442695, %v3627_v0 }
 0x41c   :  { %v10279_v3 = vmul.f32 -1.442695, %v3628_v44  ;;  %v10280_v12 = vmul.f32 -1.442695, %v3630_v10  ;;  %v3741_v10 = vunpack.c.h.bf16 %v13638_v4 }
 0x41d   :  { %12399 = vpow2.f32 %v10278_v1 }
 0x41e   :  { %12401 = vpow2.f32 %v10279_v3 }
 0x41f   :  { %12403 = vpow2.f32 %v10280_v12  ;;  %v3743_v12 = vunpack.c.h.bf16 %v13642_v13 }
 0x420   :  { %12405 = vtanh.f32 %v3629_v8 }
 0x427   :  { %v12400_v62 = vpop.eup %12399 }
 0x428   :  { %v12402_v20 = vpop.eup %12401  ;;  %v3637_v6 = vadd.f32 1.0, %v12400_v62 }
 0x429   :  { %v3638_v9 = vadd.f32 1.0, %v12402_v20  ;;  %v12404_v37 = vpop.eup %12403 }
 0x42a   :  { %12407 = vrcp.f32 %v3637_v6  ;;  %v12406_v5 = vpop.eup %12405  ;;  %v3647_v1 = vadd.f32 1.0, %v12404_v37 }
 0x42b   :  { %12409 = vrcp.f32 %v3638_v9 }
 0x42c   :  { %12411 = vrcp.f32 %v3647_v1 }
 0x434   :  { %v12408_v55 = vpop.eup %12407 }
 0x435   :  { %v12410_v11 = vpop.eup %12409  ;;  %v3651_v2 = vmul.f32 %v12408_v55, %v12406_v5 }
 0x436   :  { %v3650_v3 = vmul.f32 %v12410_v11, %v13835_v45  ;;  %v12412_v56 = vpop.eup %12411  ;;  %v3740_v45 = vunpack.c.l.bf16 %v13638_v4 }
 0x438   :  { %v13881_v28 = vadd.f32 %v3651_v2, %v3650_v3 }
 0x43a   :  { %12413 = vtanh.f32 %v13881_v28 }
 0x444   :  { %v12414_v19 = vpop.eup %12413 }
 0x445   :  { %v3654_v14 = vmul.f32 %v12414_v19, %v12412_v56 }
 0x447   :  { %v3657_v0 = vpack.c.bf16 %v3654_v14, %v3654_v14 }
 0x449   :  { %3691 = vmatmul.mubr.bf16.vlgmr.msra.gmra.mrb[40].mxu0 %v3657_v0  ;;  %3732 = vmatmul.mubr.bf16.vlgmr.msra.gmra.mrb[40].mxu1 %v3657_v0 }
 0x44a   :  { %3780 = vmatpush1.bf16.msra.mxu0 %v13652_v21  ;;  %3821 = vmatpush1.bf16.msra.mxu1 %v13654_v22 }
 0x44b   :  { %3781 = vmatprep.subr.bf16.mxu0 %v13658_v23  ;;  %3822 = vmatprep.subr.bf16.mxu1 %v13660_v24 }
 0x44c   :  { %3811 = vmatprep.mubr.bf16.mxu0 %v14445_v61  ;;  %3852 = vmatprep.mubr.bf16.mxu1 %v14445_v61 }
 0x44e   :  { %3782 = vmatpush1.bf16.msra.mxu0 %v13664_v16  ;;  %3823 = vmatpush1.bf16.msra.mxu1 %v13666_v25 }
 0x44f   :  { %3783 = vmatprep.subr.bf16.mxu0 %v13670_v26  ;;  %3824 = vmatprep.subr.bf16.mxu1 %v13672_v27 }
 0x452   :  { %3784 = vmatpush1.bf16.msra.mxu0 %v13678_v29  ;;  %3825 = vmatpush1.bf16.msra.mxu1 %v13680_v30 }
 0x453   :  { %3785 = vmatprep.subr.bf16.mxu0 %v13684_v31  ;;  %3826 = vmatprep.subr.bf16.mxu1 %v13686_v32 }
 0x456   :  { %3786 = vmatpush1.bf16.msra.mxu0 %v13690_v33  ;;  %3827 = vmatpush1.bf16.msra.mxu1 %v13692_v34 }
 0x457   :  { %3787 = vmatprep.subr.bf16.mxu0 %v13696_v35  ;;  %3828 = vmatprep.subr.bf16.mxu1 %v13698_v38 }
 0x45a   :  { %3788 = vmatpush1.bf16.msra.mxu0 %v13702_v39  ;;  %3829 = vmatpush1.bf16.msra.mxu1 %v13704_v46 }
 0x45b   :  { %3789 = vmatprep.subr.bf16.mxu0 %v13708_v47  ;;  %3830 = vmatprep.subr.bf16.mxu1 %v13710_v48 }
 0x45e   :  { %3790 = vmatpush1.bf16.msra.mxu0 %v13714_v49  ;;  %3831 = vmatpush1.bf16.msra.mxu1 %v13716_v50 }
 0x45f   :  { %3791 = vmatprep.subr.bf16.mxu0 %v13720_v51  ;;  %3832 = vmatprep.subr.bf16.mxu1 %v13722_v52 }
 0x462   :  { %3792 = vmatpush1.bf16.msra.mxu0 %v13726_v53  ;;  %3833 = vmatpush1.bf16.msra.mxu1 %v13728_v54 }
 0x463   :  { %3793 = vmatprep.subr.bf16.mxu0 %v13732_v57  ;;  %3834 = vmatprep.subr.bf16.mxu1 %v13734_v58 }
 0x466   :  { %3794 = vmatpush1.bf16.msra.mxu0 %v13738_v59  ;;  %3835 = vmatpush1.bf16.msra.mxu1 %v13740_v60 }
 0x467   :  { %3900 = vmatprep.subr.bf16.mxu0 %v13646_v17  ;;  %3941 = vmatprep.subr.bf16.mxu1 %v13648_v18 }
 0x51c   :  { %v3692_v42 = vpop.f32.mrb[40].mxu0  ;;  %v3733_v44 = vpop.f32.mrb[40].mxu1 }
 0x51d   :  { %v3744_v8 = vadd.f32 %v3740_v45, %v3692_v42  ;;  %v3746_v62 = vadd.f32 %v3742_v40, %v3733_v44  ;;  %v3694_v20 = vpop.f32.mrb[41].mxu0  ;;  %v3735_v6 = vpop.f32.mrb[41].mxu1 }
 0x51e   :  { %v3745_v9 = vadd.f32 %v3741_v10, %v3694_v20  ;;  %v3747_v37 = vadd.f32 %v3743_v12, %v3735_v6  ;;  %v3696_v5 = vpop.f32.mrb[42].mxu0  ;;  %v3737_v55 = vpop.f32.mrb[42].mxu1 }
 0x51f   :  { %v3748_v11 = vadd.f32 %v3744_v8, %v13813_v7  ;;  %v3697_v2 = vpop.f32.mrb[43].mxu0  ;;  %v3738_v1 = vpop.f32.mrb[43].mxu1  ;;  %v3750_v14 = vadd.f32 %v3746_v62, %v13832_v63 }
 0x520   :  { %v3749_v3 = vadd.f32 %v3745_v9, %v13818_v15  ;;  %v3751_v4 = vadd.f32 %v3747_v37, %v13826_v36  ;;  %v3863_v2 = vunpack.c.l.bf16 %v13758_v43 }
 0x521   :  { %v10281_v56 = vmul.f32 -1.442695, %v3748_v11 }
 0x522   :  { %v10282_v19 = vmul.f32 -1.442695, %v3749_v3  ;;  %v10283_v13 = vmul.f32 -1.442695, %v3751_v4 }
 0x523   :  { %12415 = vpow2.f32 %v10281_v56  ;;  %v3862_v56 = vunpack.c.h.bf16 %v13756_v41 }
 0x524   :  { %12417 = vpow2.f32 %v10282_v19  ;;  %v3864_v19 = vunpack.c.h.bf16 %v13758_v43 }
 0x525   :  { %12419 = vpow2.f32 %v10283_v13 }
 0x526   :  { %12421 = vtanh.f32 %v3750_v14 }
 0x52d   :  { %v12416_v0 = vpop.eup %12415 }
 0x52e   :  { %v12418_v45 = vpop.eup %12417  ;;  %v3758_v40 = vadd.f32 1.0, %v12416_v0 }
 0x52f   :  { %v3759_v42 = vadd.f32 1.0, %v12418_v45  ;;  %v12420_v44 = vpop.eup %12419 }
 0x530   :  { %12423 = vrcp.f32 %v3758_v40  ;;  %v12422_v10 = vpop.eup %12421  ;;  %v3768_v6 = vadd.f32 1.0, %v12420_v44 }
 0x531   :  { %12425 = vrcp.f32 %v3759_v42 }
 0x532   :  { %12427 = vrcp.f32 %v3768_v6 }
 0x53a   :  { %v12424_v12 = vpop.eup %12423 }
 0x53b   :  { %v12426_v8 = vpop.eup %12425  ;;  %v3772_v20 = vmul.f32 %v12424_v12, %v12422_v10 }
 0x53c   :  { %v3771_v9 = vmul.f32 %v12426_v8, %v13881_v28  ;;  %v12428_v62 = vpop.eup %12427  ;;  %v3861_v28 = vunpack.c.l.bf16 %v13756_v41 }
 0x53e   :  { %v13927_v37 = vadd.f32 %v3772_v20, %v3771_v9 }
 0x540   :  { %12429 = vtanh.f32 %v13927_v37 }
 0x54a   :  { %v12430_v5 = vpop.eup %12429 }
 0x54b   :  { %v3775_v55 = vmul.f32 %v12430_v5, %v12428_v62 }
 0x54d   :  { %v3778_v11 = vpack.c.bf16 %v3775_v55, %v3775_v55 }
 0x54f   :  { %3812 = vmatmul.mubr.bf16.vlgmr.msra.gmra.mrb[44].mxu0 %v3778_v11  ;;  %3853 = vmatmul.mubr.bf16.vlgmr.msra.gmra.mrb[44].mxu1 %v3778_v11 }
 0x550   :  { %3901 = vmatpush1.bf16.msra.mxu0 %v13652_v21  ;;  %3942 = vmatpush1.bf16.msra.mxu1 %v13654_v22 }
 0x551   :  { %3902 = vmatprep.subr.bf16.mxu0 %v13658_v23  ;;  %3943 = vmatprep.subr.bf16.mxu1 %v13660_v24 }
 0x552   :  { %3932 = vmatprep.mubr.bf16.mxu0 %v14445_v61  ;;  %3973 = vmatprep.mubr.bf16.mxu1 %v14445_v61 }
 0x554   :  { %3903 = vmatpush1.bf16.msra.mxu0 %v13664_v16  ;;  %3944 = vmatpush1.bf16.msra.mxu1 %v13666_v25 }
 0x555   :  { %3904 = vmatprep.subr.bf16.mxu0 %v13670_v26  ;;  %3945 = vmatprep.subr.bf16.mxu1 %v13672_v27 }
 0x558   :  { %3905 = vmatpush1.bf16.msra.mxu0 %v13678_v29  ;;  %3946 = vmatpush1.bf16.msra.mxu1 %v13680_v30 }
 0x559   :  { %3906 = vmatprep.subr.bf16.mxu0 %v13684_v31  ;;  %3947 = vmatprep.subr.bf16.mxu1 %v13686_v32 }
 0x55c   :  { %3907 = vmatpush1.bf16.msra.mxu0 %v13690_v33  ;;  %3948 = vmatpush1.bf16.msra.mxu1 %v13692_v34 }
 0x55d   :  { %3908 = vmatprep.subr.bf16.mxu0 %v13696_v35  ;;  %3949 = vmatprep.subr.bf16.mxu1 %v13698_v38 }
 0x560   :  { %3909 = vmatpush1.bf16.msra.mxu0 %v13702_v39  ;;  %3950 = vmatpush1.bf16.msra.mxu1 %v13704_v46 }
 0x561   :  { %3910 = vmatprep.subr.bf16.mxu0 %v13708_v47  ;;  %3951 = vmatprep.subr.bf16.mxu1 %v13710_v48 }
 0x564   :  { %3911 = vmatpush1.bf16.msra.mxu0 %v13714_v49  ;;  %3952 = vmatpush1.bf16.msra.mxu1 %v13716_v50 }
 0x565   :  { %3912 = vmatprep.subr.bf16.mxu0 %v13720_v51  ;;  %3953 = vmatprep.subr.bf16.mxu1 %v13722_v52 }
 0x568   :  { %3913 = vmatpush1.bf16.msra.mxu0 %v13726_v53  ;;  %3954 = vmatpush1.bf16.msra.mxu1 %v13728_v54 }
 0x569   :  { %3914 = vmatprep.subr.bf16.mxu0 %v13732_v57  ;;  %3955 = vmatprep.subr.bf16.mxu1 %v13734_v58 }
 0x56c   :  { %3915 = vmatpush1.bf16.msra.mxu0 %v13738_v59  ;;  %3956 = vmatpush1.bf16.msra.mxu1 %v13740_v60 }
 0x56d   :  { %4021 = vmatprep.subr.bf16.mxu0 %v13646_v17  ;;  %4062 = vmatprep.subr.bf16.mxu1 %v13648_v18 }
 0x622   :  { %v3813_v1 = vpop.f32.mrb[44].mxu0  ;;  %v3854_v3 = vpop.f32.mrb[44].mxu1 }
 0x623   :  { %v3865_v4 = vadd.f32 %v3861_v28, %v3813_v1  ;;  %v3867_v13 = vadd.f32 %v3863_v2, %v3854_v3  ;;  %v3815_v14 = vpop.f32.mrb[45].mxu0  ;;  %v3856_v0 = vpop.f32.mrb[45].mxu1 }
 0x624   :  { %v3866_v45 = vadd.f32 %v3862_v56, %v3815_v14  ;;  %v3868_v40 = vadd.f32 %v3864_v19, %v3856_v0  ;;  %v3817_v42 = vpop.f32.mrb[46].mxu0  ;;  %v3858_v44 = vpop.f32.mrb[46].mxu1 }
 0x625   :  { %v3869_v10 = vadd.f32 %v3865_v4, %v13813_v7  ;;  %v3818_v12 = vpop.f32.mrb[47].mxu0  ;;  %v3859_v8 = vpop.f32.mrb[47].mxu1  ;;  %v3871_v62 = vadd.f32 %v3867_v13, %v13832_v63 }
 0x626   :  { %v3870_v20 = vadd.f32 %v3866_v45, %v13818_v15  ;;  %v3872_v41 = vadd.f32 %v3868_v40, %v13826_v36 }
 0x627   :  { %v10284_v6 = vmul.f32 -1.442695, %v3869_v10 }
 0x628   :  { %v10285_v9 = vmul.f32 -1.442695, %v3870_v20  ;;  %v10286_v43 = vmul.f32 -1.442695, %v3872_v41 }
 0x629   :  { %12431 = vpow2.f32 %v10284_v6 }
 0x62a   :  { %12433 = vpow2.f32 %v10285_v9 }
 0x62b   :  { %12435 = vpow2.f32 %v10286_v43  ;;  %v14022_v43 = vld [vmem:[#allocation5] ss:$16 sps:$4 sm:$0xff]  }
 0x62c   :  { %12437 = vtanh.f32 %v3871_v62  ;;  %v14025_v62 = vld [vmem:[#allocation5 + $0x8] ss:$16 sps:$4 sm:$0xff]  }
 0x633   :  { %v12432_v5 = vpop.eup %12431 }
 0x634   :  { %v12434_v55 = vpop.eup %12433  ;;  %v3879_v11 = vadd.f32 1.0, %v12432_v5  ;;  %v14028_v5 = vld [vmem:[#allocation5 + $0x24] ss:$16 sps:$4 sm:$0xff]  }
 0x635   :  { %v3880_v28 = vadd.f32 1.0, %v12434_v55  ;;  %v12436_v2 = vpop.eup %12435  ;;  %v14031_v55 = vld [vmem:[#allocation5 + $0x2c] ss:$16 sps:$4 sm:$0xff]  }
 0x636   :  { %12439 = vrcp.f32 %v3879_v11  ;;  %v12438_v1 = vpop.eup %12437  ;;  %v3889_v4 = vadd.f32 1.0, %v12436_v2  ;;  %v14036_v11 = vld [vmem:[#allocation5 + $0x20] ss:$16 sps:$4 sm:$0xff]   ;;  %v14042_v2 = vld [vmem:[#allocation5 + $0x44] ss:$16 sps:$4 sm:$0xff]  }
 0x637   :  { %12441 = vrcp.f32 %v3880_v28  ;;  %v14039_v28 = vld [vmem:[#allocation5 + $0x28] ss:$16 sps:$4 sm:$0xff]  }
 0x638   :  { %12443 = vrcp.f32 %v3889_v4  ;;  %v14057_v4 = vld [vmem:[#allocation5 + $0x6c] ss:$16 sps:$4 sm:$0xff]  }
 0x640   :  { %v12440_v3 = vpop.eup %12439 }
 0x641   :  { %v12442_v56 = vpop.eup %12441  ;;  %v3893_v19 = vmul.f32 %v12440_v3, %v12438_v1  ;;  %v14045_v1 = vld [vmem:[#allocation5 + $0x4c] ss:$16 sps:$4 sm:$0xff]   ;;  %v14048_v3 = vld [vmem:[#allocation5 + $0x40] ss:$16 sps:$4 sm:$0xff]  }
 0x642   :  { %v3892_v14 = vmul.f32 %v12442_v56, %v13927_v37  ;;  %v12444_v13 = vpop.eup %12443  ;;  %v14051_v56 = vld [vmem:[#allocation5 + $0x48] ss:$16 sps:$4 sm:$0xff]  }
 0x644   :  { %v13973_v0 = vadd.f32 %v3893_v19, %v3892_v14  ;;  %v14054_v19 = vld [vmem:[#allocation5 + $0x64] ss:$16 sps:$4 sm:$0xff]   ;;  %v14060_v14 = vld [vmem:[#allocation5 + $0x60] ss:$16 sps:$4 sm:$0xff]  }
 0x646   :  { %12445 = vtanh.f32 %v13973_v0 }
 0x650   :  { %v12446_v45 = vpop.eup %12445 }
 0x651   :  { %v3896_v40 = vmul.f32 %v12446_v45, %v12444_v13  ;;  %v14066_v13 = vld [vmem:[#allocation5 + $0x84] ss:$16 sps:$4 sm:$0xff]   ;;  %v14069_v45 = vld [vmem:[#allocation5 + $0x8c] ss:$16 sps:$4 sm:$0xff]  }
 0x653   :  { %v3899_v42 = vpack.c.bf16 %v3896_v40, %v3896_v40  ;;  %v14072_v40 = vld [vmem:[#allocation5 + $0x80] ss:$16 sps:$4 sm:$0xff]  }
 0x655   :  { %3933 = vmatmul.mubr.bf16.vlgmr.msra.gmra.mrb[48].mxu0 %v3899_v42  ;;  %3974 = vmatmul.mubr.bf16.vlgmr.msra.gmra.mrb[48].mxu1 %v3899_v42  ;;  %v14075_v42 = vld [vmem:[#allocation5 + $0x88] ss:$16 sps:$4 sm:$0xff]  }
 0x656   :  { %4022 = vmatpush1.bf16.msra.mxu0 %v13652_v21  ;;  %4063 = vmatpush1.bf16.msra.mxu1 %v13654_v22  ;;  %v14446_v21 = vld [vmem:[#allocation25_spill] sm:$0xff] }
 0x657   :  { %4023 = vmatprep.subr.bf16.mxu0 %v13658_v23  ;;  %4064 = vmatprep.subr.bf16.mxu1 %v13660_v24  ;;  %v3982_v22 = vunpack.c.l.bf16 %v14446_v21  ;;  %v14447_v23 = vld [vmem:[#allocation26_spill] sm:$0xff] }
 0x658   :  { %4053 = vmatprep.mubr.bf16.mxu0 %v14445_v61  ;;  %4094 = vmatprep.mubr.bf16.mxu1 %v14445_v61  ;;  %v3984_v24 = vunpack.c.l.bf16 %v14447_v23 }
 0x65a   :  { %4024 = vmatpush1.bf16.msra.mxu0 %v13664_v16  ;;  %4065 = vmatpush1.bf16.msra.mxu1 %v13666_v25 }
 0x65b   :  { %4025 = vmatprep.subr.bf16.mxu0 %v13670_v26  ;;  %4066 = vmatprep.subr.bf16.mxu1 %v13672_v27  ;;  %v3983_v26 = vunpack.c.h.bf16 %v14446_v21  ;;  %v3985_v27 = vunpack.c.h.bf16 %v14447_v23  ;;  %v14078_v21 = vld [vmem:[#allocation5 + $0xa4] ss:$16 sps:$4 sm:$0xff]   ;;  %v14084_v23 = vld [vmem:[#allocation5 + $0xa0] ss:$16 sps:$4 sm:$0xff]  }
 0x65e   :  { %4026 = vmatpush1.bf16.msra.mxu0 %v13678_v29  ;;  %4067 = vmatpush1.bf16.msra.mxu1 %v13680_v30 }
 0x65f   :  { %4027 = vmatprep.subr.bf16.mxu0 %v13684_v31  ;;  %4068 = vmatprep.subr.bf16.mxu1 %v13686_v32 }
 0x662   :  { %4028 = vmatpush1.bf16.msra.mxu0 %v13690_v33  ;;  %4069 = vmatpush1.bf16.msra.mxu1 %v13692_v34 }
 0x663   :  { %4029 = vmatprep.subr.bf16.mxu0 %v13696_v35  ;;  %4070 = vmatprep.subr.bf16.mxu1 %v13698_v38 }
 0x666   :  { %4030 = vmatpush1.bf16.msra.mxu0 %v13702_v39  ;;  %4071 = vmatpush1.bf16.msra.mxu1 %v13704_v46 }
 0x667   :  { %4031 = vmatprep.subr.bf16.mxu0 %v13708_v47  ;;  %4072 = vmatprep.subr.bf16.mxu1 %v13710_v48 }
 0x66a   :  { %4032 = vmatpush1.bf16.msra.mxu0 %v13714_v49  ;;  %4073 = vmatpush1.bf16.msra.mxu1 %v13716_v50 }
 0x66b   :  { %4033 = vmatprep.subr.bf16.mxu0 %v13720_v51  ;;  %4074 = vmatprep.subr.bf16.mxu1 %v13722_v52 }
 0x66e   :  { %4034 = vmatpush1.bf16.msra.mxu0 %v13726_v53  ;;  %4075 = vmatpush1.bf16.msra.mxu1 %v13728_v54 }
 0x66f   :  { %4035 = vmatprep.subr.bf16.mxu0 %v13732_v57  ;;  %4076 = vmatprep.subr.bf16.mxu1 %v13734_v58 }
 0x672   :  { %4036 = vmatpush1.bf16.msra.mxu0 %v13738_v59  ;;  %4077 = vmatpush1.bf16.msra.mxu1 %v13740_v60 }
 0x673   :  { %4142 = vmatprep.subr.bf16.mxu0 %v13646_v17  ;;  %4183 = vmatprep.subr.bf16.mxu1 %v13648_v18 }
 0x728   :  { %v3934_v16 = vpop.f32.mrb[48].mxu0  ;;  %v3975_v25 = vpop.f32.mrb[48].mxu1 }
 0x729   :  { %v3986_v29 = vadd.f32 %v3982_v22, %v3934_v16  ;;  %v3988_v30 = vadd.f32 %v3984_v24, %v3975_v25  ;;  %v3936_v31 = vpop.f32.mrb[49].mxu0  ;;  %v3977_v32 = vpop.f32.mrb[49].mxu1  ;;  %v14081_v22 = vld [vmem:[#allocation5 + $0xac] ss:$16 sps:$4 sm:$0xff]   ;;  %v14087_v24 = vld [vmem:[#allocation5 + $0xa8] ss:$16 sps:$4 sm:$0xff]  }
 0x72a   :  { %v3987_v33 = vadd.f32 %v3983_v26, %v3936_v31  ;;  %v3989_v34 = vadd.f32 %v3985_v27, %v3977_v32  ;;  %v3938_v35 = vpop.f32.mrb[50].mxu0  ;;  %v3979_v17 = vpop.f32.mrb[50].mxu1  ;;  %v14090_v16 = vld [vmem:[#allocation5 + $0xc4] ss:$16 sps:$4 sm:$0xff]   ;;  %v14093_v25 = vld [vmem:[#allocation5 + $0xcc] ss:$16 sps:$4 sm:$0xff]  }
 0x72b   :  { %v3990_v18 = vadd.f32 %v3986_v29, %v13813_v7  ;;  %v3939_v38 = vpop.f32.mrb[51].mxu0  ;;  %v3980_v39 = vpop.f32.mrb[51].mxu1  ;;  %v3992_v51 = vadd.f32 %v3988_v30, %v13832_v63  ;;  %v14096_v26 = vld [vmem:[#allocation5 + $0xc0] ss:$16 sps:$4 sm:$0xff]   ;;  %v14099_v27 = vld [vmem:[#allocation5 + $0xc8] ss:$16 sps:$4 sm:$0xff]  }
 0x72c   :  { %v3991_v46 = vadd.f32 %v3987_v33, %v13818_v15  ;;  %v3993_v49 = vadd.f32 %v3989_v34, %v13826_v36  ;;  %v14102_v29 = vld [vmem:[#allocation5 + $0xe4] ss:$16 sps:$4 sm:$0xff]   ;;  %v14105_v30 = vld [vmem:[#allocation5 + $0xec] ss:$16 sps:$4 sm:$0xff]   ;;  %v14108_v31 = vld [vmem:[#allocation5 + $0xe0] ss:$16 sps:$4 sm:$0xff]  }
 0x72d   :  { %v10287_v47 = vmul.f32 -1.442695, %v3990_v18  ;;  %v14111_v32 = vld [vmem:[#allocation5 + $0xe8] ss:$16 sps:$4 sm:$0xff]   ;;  %v12621_v33 = vld [vmem:[#allocation5 + $0x4] ss:$16 sps:$4 sm:$0xff]  }
 0x72e   :  { %v10288_v48 = vmul.f32 -1.442695, %v3991_v46  ;;  %v10289_v50 = vmul.f32 -1.442695, %v3993_v49  ;;  %v12622_v34 = vld [vmem:[#allocation5 + $0xc] ss:$16 sps:$4 sm:$0xff]  }
 0x72f   :  { %12447 = vpow2.f32 %v10287_v47  ;;  %v14448_v35 = vld [vmem:[#allocation27_spill] sm:$0xff]  ;;  %v14449_v18 = vld [vmem:[#allocation28_spill] sm:$0xff] }
 0x730   :  { %12449 = vpow2.f32 %v10288_v48  ;;  %v4103_v17 = vunpack.c.l.bf16 %v14448_v35  ;;  %v4105_v38 = vunpack.c.l.bf16 %v14449_v18  ;;  %v4104_v47 = vunpack.c.h.bf16 %v14448_v35 }
 0x731   :  { %12451 = vpow2.f32 %v10289_v50  ;;  %v4106_v48 = vunpack.c.h.bf16 %v14449_v18 }
 0x732   :  { %12453 = vtanh.f32 %v3992_v51 }
 0x739   :  { %v12448_v52 = vpop.eup %12447 }
 0x73a   :  { %v12450_v53 = vpop.eup %12449  ;;  %v4000_v54 = vadd.f32 1.0, %v12448_v52 }
 0x73b   :  { %v4001_v57 = vadd.f32 1.0, %v12450_v53  ;;  %v12452_v58 = vpop.eup %12451 }
 0x73c   :  { %12455 = vrcp.f32 %v4000_v54  ;;  %v12454_v59 = vpop.eup %12453  ;;  %v4010_v10 = vadd.f32 1.0, %v12452_v58 }
 0x73d   :  { %12457 = vrcp.f32 %v4001_v57 }
 0x73e   :  { %12459 = vrcp.f32 %v4010_v10 }
 0x746   :  { %v12456_v60 = vpop.eup %12455 }
 0x747   :  { %v12458_v37 = vpop.eup %12457  ;;  %v4014_v44 = vmul.f32 %v12456_v60, %v12454_v59 }
 0x748   :  { %v4013_v12 = vmul.f32 %v12458_v37, %v13973_v0  ;;  %v12460_v20 = vpop.eup %12459  ;;  %v14063_v0 = vld [vmem:[#allocation5 + $0x68] ss:$16 sps:$4 sm:$0xff]  }
 0x74a   :  { %v14019_v8 = vadd.f32 %v4014_v44, %v4013_v12 }
 0x74c   :  { %12461 = vtanh.f32 %v14019_v8 }
 0x756   :  { %v12462_v6 = vpop.eup %12461 }
 0x757   :  { %v4017_v9 = vmul.f32 %v12462_v6, %v12460_v20 }
 0x759   :  { %v4020_v41 = vpack.c.bf16 %v4017_v9, %v4017_v9 }
 0x75b   :  { %4054 = vmatmul.mubr.bf16.vlgmr.msra.gmra.mrb[52].mxu0 %v4020_v41  ;;  %4095 = vmatmul.mubr.bf16.vlgmr.msra.gmra.mrb[52].mxu1 %v4020_v41 }
 0x75c   :  { %4143 = vmatpush1.bf16.msra.mxu0 %v14022_v43  ;;  %4184 = vmatpush1.bf16.msra.mxu1 %v14025_v62 }
 0x75d   :  { %4144 = vmatprep.subr.bf16.mxu0 %v14028_v5  ;;  %4185 = vmatprep.subr.bf16.mxu1 %v14031_v55 }
 0x75e   :  { %4174 = vmatprep.mubr.bf16.mxu0 %v14445_v61  ;;  %4215 = vmatprep.mubr.bf16.mxu1 %v14445_v61 }
 0x760   :  { %4145 = vmatpush1.bf16.msra.mxu0 %v14036_v11  ;;  %4186 = vmatpush1.bf16.msra.mxu1 %v14039_v28 }
 0x761   :  { %4146 = vmatprep.subr.bf16.mxu0 %v14042_v2  ;;  %4187 = vmatprep.subr.bf16.mxu1 %v14045_v1 }
 0x764   :  { %4147 = vmatpush1.bf16.msra.mxu0 %v14048_v3  ;;  %4188 = vmatpush1.bf16.msra.mxu1 %v14051_v56 }
 0x765   :  { %4148 = vmatprep.subr.bf16.mxu0 %v14054_v19  ;;  %4189 = vmatprep.subr.bf16.mxu1 %v14057_v4 }
 0x768   :  { %4149 = vmatpush1.bf16.msra.mxu0 %v14060_v14  ;;  %4190 = vmatpush1.bf16.msra.mxu1 %v14063_v0 }
 0x769   :  { %4150 = vmatprep.subr.bf16.mxu0 %v14066_v13  ;;  %4191 = vmatprep.subr.bf16.mxu1 %v14069_v45 }
 0x76c   :  { %4151 = vmatpush1.bf16.msra.mxu0 %v14072_v40  ;;  %4192 = vmatpush1.bf16.msra.mxu1 %v14075_v42 }
 0x76d   :  { %4152 = vmatprep.subr.bf16.mxu0 %v14078_v21  ;;  %4193 = vmatprep.subr.bf16.mxu1 %v14081_v22 }
 0x770   :  { %4153 = vmatpush1.bf16.msra.mxu0 %v14084_v23  ;;  %4194 = vmatpush1.bf16.msra.mxu1 %v14087_v24 }
 0x771   :  { %4154 = vmatprep.subr.bf16.mxu0 %v14090_v16  ;;  %4195 = vmatprep.subr.bf16.mxu1 %v14093_v25 }
 0x774   :  { %4155 = vmatpush1.bf16.msra.mxu0 %v14096_v26  ;;  %4196 = vmatpush1.bf16.msra.mxu1 %v14099_v27 }
 0x775   :  { %4156 = vmatprep.subr.bf16.mxu0 %v14102_v29  ;;  %4197 = vmatprep.subr.bf16.mxu1 %v14105_v30 }
 0x778   :  { %4157 = vmatpush1.bf16.msra.mxu0 %v14108_v31  ;;  %4198 = vmatpush1.bf16.msra.mxu1 %v14111_v32 }
 0x779   :  { %4263 = vmatprep.subr.bf16.mxu0 %v12621_v33  ;;  %4304 = vmatprep.subr.bf16.mxu1 %v12622_v34 }
 0x82e   :  { %v4055_v39 = vpop.f32.mrb[52].mxu0  ;;  %v4096_v46 = vpop.f32.mrb[52].mxu1 }
 0x82f   :  { %v4107_v49 = vadd.f32 %v4103_v17, %v4055_v39  ;;  %v4109_v50 = vadd.f32 %v4105_v38, %v4096_v46  ;;  %v4057_v51 = vpop.f32.mrb[53].mxu0  ;;  %v4098_v52 = vpop.f32.mrb[53].mxu1 }
 0x830   :  { %v4108_v53 = vadd.f32 %v4104_v47, %v4057_v51  ;;  %v4110_v54 = vadd.f32 %v4106_v48, %v4098_v52  ;;  %v4059_v57 = vpop.f32.mrb[54].mxu0  ;;  %v4100_v58 = vpop.f32.mrb[54].mxu1 }
 0x831   :  { %v4111_v59 = vadd.f32 %v4107_v49, %v13813_v7  ;;  %v4060_v60 = vpop.f32.mrb[55].mxu0  ;;  %v4101_v37 = vpop.f32.mrb[55].mxu1  ;;  %v4113_v9 = vadd.f32 %v4109_v50, %v13832_v63 }
 0x832   :  { %v4112_v44 = vadd.f32 %v4108_v53, %v13818_v15  ;;  %v4114_v20 = vadd.f32 %v4110_v54, %v13826_v36 }
 0x833   :  { %v10290_v10 = vmul.f32 -1.442695, %v4111_v59 }
 0x834   :  { %v10291_v12 = vmul.f32 -1.442695, %v4112_v44  ;;  %v10292_v6 = vmul.f32 -1.442695, %v4114_v20 }
 0x835   :  { %12463 = vpow2.f32 %v10290_v10 }
 0x836   :  { %12465 = vpow2.f32 %v10291_v12 }
 0x837   :  { %12467 = vpow2.f32 %v10292_v6 }
 0x838   :  { %12469 = vtanh.f32 %v4113_v9  ;;  %v14173_v9 = vld [vmem:[%s14452_s15 + $0x8] sm:$0xff] }
 0x83f   :  { %v12464_v41 = vpop.eup %12463 }
 0x840   :  { %v12466_v33 = vpop.eup %12465  ;;  %v4121_v34 = vadd.f32 1.0, %v12464_v41  ;;  %v14178_v41 = vld [vmem:[%s14452_s15] sm:$0xff] }
 0x841   :  { %v4122_v35 = vadd.f32 1.0, %v12466_v33  ;;  %v12468_v17 = vpop.eup %12467  ;;  %v11347_v33 = vld [vmem:[#allocation7] ss:$16 sps:$4 sm:$0xff]  }
 0x842   :  { %12471 = vrcp.f32 %v4121_v34  ;;  %v12470_v18 = vpop.eup %12469  ;;  %v4131_v47 = vadd.f32 1.0, %v12468_v17  ;;  %v11350_v34 = vld [vmem:[#allocation7 + $0x200] ss:$16 sps:$4 sm:$0xff]   ;;  %v11355_v17 = vld [vmem:[#allocation7 + $0x24] ss:$16 sps:$4 sm:$0xff]  }
 0x843   :  { %12473 = vrcp.f32 %v4122_v35 }
 0x844   :  { %12475 = vrcp.f32 %v4131_v47  ;;  %v11356_v47 = vld [vmem:[#allocation7 + $0x220] ss:$16 sps:$4 sm:$0xff]  }
 0x84c   :  { %v12472_v38 = vpop.eup %12471 }
 0x84d   :  { %v12474_v39 = vpop.eup %12473  ;;  %v4135_v46 = vmul.f32 %v12472_v38, %v12470_v18  ;;  %v11358_v18 = vld [vmem:[#allocation7 + $0x224] ss:$16 sps:$4 sm:$0xff]   ;;  %v14182_v38 = vcombine.high %v14173_v9, %v14173_v9 }
 0x84e   :  { %v4134_v48 = vmul.f32 %v12474_v39, %v14019_v8  ;;  %v12476_v50 = vpop.eup %12475  ;;  %v11349_v8 = vld [vmem:[#allocation7 + $0x4] ss:$16 sps:$4 sm:$0xff]   ;;  %v14186_v39 = vcombine.high %v14178_v41, %v14178_v41 }
 0x850   :  { %v14123_v49 = vadd.f32 %v4135_v46, %v4134_v48  ;;  %v11353_v46 = vld [vmem:[#allocation7 + $0x20] ss:$16 sps:$4 sm:$0xff]   ;;  %v11361_v48 = vld [vmem:[#allocation7 + $0x44] ss:$16 sps:$4 sm:$0xff]  }
 0x852   :  { %12477 = vtanh.f32 %v14123_v49 }
 0x85c   :  { %v12478_v51 = vpop.eup %12477 }
 0x85d   :  { %v4138_v52 = vmul.f32 %v12478_v51, %v12476_v50  ;;  %v11359_v50 = vld [vmem:[#allocation7 + $0x40] ss:$16 sps:$4 sm:$0xff]  }
 0x85e   :  { %v11362_v51 = vld [vmem:[#allocation7 + $0x240] ss:$16 sps:$4 sm:$0xff]  }
 0x85f   :  { %v4141_v53 = vpack.c.bf16 %v4138_v52, %v4138_v52  ;;  %v11367_v52 = vld [vmem:[#allocation7 + $0x64] ss:$16 sps:$4 sm:$0xff]  }
 0x861   :  { %4175 = vmatmul.mubr.bf16.vlgmr.msra.gmra.mrb[56].mxu0 %v4141_v53  ;;  %4216 = vmatmul.mubr.bf16.vlgmr.msra.gmra.mrb[56].mxu1 %v4141_v53  ;;  %v11370_v53 = vld [vmem:[#allocation7 + $0x264] ss:$16 sps:$4 sm:$0xff]  }
 0x862   :  { %4264 = vmatpush1.bf16.msra.mxu0 %v14022_v43  ;;  %4305 = vmatpush1.bf16.msra.mxu1 %v14025_v62  ;;  %v11352_v43 = vld [vmem:[#allocation7 + $0x204] ss:$16 sps:$4 sm:$0xff]   ;;  %v14450_v62 = vld [vmem:[#allocation29_spill] sm:$0xff] }
 0x863   :  { %4265 = vmatprep.subr.bf16.mxu0 %v14028_v5  ;;  %4306 = vmatprep.subr.bf16.mxu1 %v14031_v55  ;;  %v4224_v5 = vunpack.c.l.bf16 %v14450_v62  ;;  %v14451_v55 = vld [vmem:[#allocation30_spill] sm:$0xff] }
 0x864   :  { %4295 = vmatprep.mubr.bf16.mxu0 %v14445_v61  ;;  %4336 = vmatprep.mubr.bf16.mxu1 %v14445_v61 }
 0x866   :  { %4266 = vmatpush1.bf16.msra.mxu0 %v14036_v11  ;;  %4307 = vmatpush1.bf16.msra.mxu1 %v14039_v28  ;;  %v4226_v11 = vunpack.c.l.bf16 %v14451_v55 }
 0x867   :  { %4267 = vmatprep.subr.bf16.mxu0 %v14042_v2  ;;  %4308 = vmatprep.subr.bf16.mxu1 %v14045_v1  ;;  %v4225_v1 = vunpack.c.h.bf16 %v14450_v62  ;;  %v11373_v62 = vld [vmem:[#allocation7 + $0x84] ss:$16 sps:$4 sm:$0xff]  }
 0x86a   :  { %4268 = vmatpush1.bf16.msra.mxu0 %v14048_v3  ;;  %4309 = vmatpush1.bf16.msra.mxu1 %v14051_v56  ;;  %v4227_v3 = vunpack.c.h.bf16 %v14451_v55  ;;  %v11371_v55 = vld [vmem:[#allocation7 + $0x80] ss:$16 sps:$4 sm:$0xff]  }
 0x86b   :  { %4269 = vmatprep.subr.bf16.mxu0 %v14054_v19  ;;  %4310 = vmatprep.subr.bf16.mxu1 %v14057_v4 }
 0x86e   :  { %4270 = vmatpush1.bf16.msra.mxu0 %v14060_v14  ;;  %4311 = vmatpush1.bf16.msra.mxu1 %v14063_v0 }
 0x86f   :  { %4271 = vmatprep.subr.bf16.mxu0 %v14066_v13  ;;  %4312 = vmatprep.subr.bf16.mxu1 %v14069_v45 }
 0x872   :  { %4272 = vmatpush1.bf16.msra.mxu0 %v14072_v40  ;;  %4313 = vmatpush1.bf16.msra.mxu1 %v14075_v42 }
 0x873   :  { %4273 = vmatprep.subr.bf16.mxu0 %v14078_v21  ;;  %4314 = vmatprep.subr.bf16.mxu1 %v14081_v22 }
 0x876   :  { %4274 = vmatpush1.bf16.msra.mxu0 %v14084_v23  ;;  %4315 = vmatpush1.bf16.msra.mxu1 %v14087_v24 }
 0x877   :  { %4275 = vmatprep.subr.bf16.mxu0 %v14090_v16  ;;  %4316 = vmatprep.subr.bf16.mxu1 %v14093_v25 }
 0x87a   :  { %4276 = vmatpush1.bf16.msra.mxu0 %v14096_v26  ;;  %4317 = vmatpush1.bf16.msra.mxu1 %v14099_v27 }
 0x87b   :  { %4277 = vmatprep.subr.bf16.mxu0 %v14102_v29  ;;  %4318 = vmatprep.subr.bf16.mxu1 %v14105_v30 }
 0x87e   :  { %4278 = vmatpush1.bf16.msra.mxu0 %v14108_v31  ;;  %4319 = vmatpush1.bf16.msra.mxu1 %v14111_v32 }
 0x87f   :  { %5178 = vmatprep.subr.bf16.mxu0 %v11349_v8  ;;  %5219 = vmatprep.subr.bf16.mxu1 %v11352_v43  ;;  %v11365_v8 = vld [vmem:[#allocation7 + $0x60] ss:$16 sps:$4 sm:$0xff]  }
 0x880   :  { %v11368_v43 = vld [vmem:[#allocation7 + $0x260] ss:$16 sps:$4 sm:$0xff]  }
 0x934   :  { %v4176_v28 = vpop.f32.mrb[56].mxu0  ;;  %v4217_v2 = vpop.f32.mrb[56].mxu1 }
 0x935   :  { %v4228_v56 = vadd.f32 %v4224_v5, %v4176_v28  ;;  %v4230_v19 = vadd.f32 %v4226_v11, %v4217_v2  ;;  %v4178_v4 = vpop.f32.mrb[57].mxu0  ;;  %v4219_v14 = vpop.f32.mrb[57].mxu1  ;;  %v11376_v5 = vld [vmem:[#allocation7 + $0x284] ss:$16 sps:$4 sm:$0xff]   ;;  %v11374_v11 = vld [vmem:[#allocation7 + $0x280] ss:$16 sps:$4 sm:$0xff]  }
 0x936   :  { %v4229_v0 = vadd.f32 %v4225_v1, %v4178_v4  ;;  %v4231_v13 = vadd.f32 %v4227_v3, %v4219_v14  ;;  %v4180_v45 = vpop.f32.mrb[58].mxu0  ;;  %v4221_v40 = vpop.f32.mrb[58].mxu1  ;;  %v11379_v28 = vld [vmem:[#allocation7 + $0xa4] ss:$16 sps:$4 sm:$0xff]   ;;  %v11377_v1 = vld [vmem:[#allocation7 + $0xa0] ss:$16 sps:$4 sm:$0xff]  }
 0x937   :  { %v4232_v42 = vadd.f32 %v4228_v56, %v13813_v7  ;;  %v4181_v21 = vpop.f32.mrb[59].mxu0  ;;  %v4222_v22 = vpop.f32.mrb[59].mxu1  ;;  %v4234_v27 = vadd.f32 %v4230_v19, %v13832_v63  ;;  %v11382_v2 = vld [vmem:[#allocation7 + $0x2a4] ss:$16 sps:$4 sm:$0xff]   ;;  %v11380_v3 = vld [vmem:[#allocation7 + $0x2a0] ss:$16 sps:$4 sm:$0xff]  }
 0x938   :  { %v4233_v23 = vadd.f32 %v4229_v0, %v13818_v15  ;;  %v4235_v25 = vadd.f32 %v4231_v13, %v13826_v36  ;;  %v11385_v56 = vld [vmem:[#allocation7 + $0xc4] ss:$16 sps:$4 sm:$0xff]   ;;  %v11383_v4 = vld [vmem:[#allocation7 + $0xc0] ss:$16 sps:$4 sm:$0xff]  }
 0x939   :  { %v10293_v24 = vmul.f32 -1.442695, %v4232_v42  ;;  %v11388_v19 = vld [vmem:[#allocation7 + $0x2c4] ss:$16 sps:$4 sm:$0xff]   ;;  %v11386_v14 = vld [vmem:[#allocation7 + $0x2c0] ss:$16 sps:$4 sm:$0xff]  }
 0x93a   :  { %v10294_v16 = vmul.f32 -1.442695, %v4233_v23  ;;  %v10295_v26 = vmul.f32 -1.442695, %v4235_v25  ;;  %v11391_v0 = vld [vmem:[#allocation7 + $0xe4] ss:$16 sps:$4 sm:$0xff]  }
 0x93b   :  { %12479 = vpow2.f32 %v10293_v24  ;;  %v11394_v13 = vld [vmem:[#allocation7 + $0x2e4] ss:$16 sps:$4 sm:$0xff]   ;;  %v11389_v45 = vld [vmem:[#allocation7 + $0xe0] ss:$16 sps:$4 sm:$0xff]  }
 0x93c   :  { %12481 = vpow2.f32 %v10294_v16  ;;  %v11392_v40 = vld [vmem:[#allocation7 + $0x2e0] ss:$16 sps:$4 sm:$0xff]   ;;  %v11397_v42 = vld [vmem:[#allocation7 + $0x104] ss:$16 sps:$4 sm:$0xff]  }
 0x93d   :  { %12483 = vpow2.f32 %v10295_v26  ;;  %v11400_v21 = vld [vmem:[#allocation7 + $0x304] ss:$16 sps:$4 sm:$0xff]   ;;  %v11395_v22 = vld [vmem:[#allocation7 + $0x100] ss:$16 sps:$4 sm:$0xff]  }
 0x93e   :  { %12485 = vtanh.f32 %v4234_v27  ;;  %v11398_v23 = vld [vmem:[#allocation7 + $0x300] ss:$16 sps:$4 sm:$0xff]   ;;  %v11403_v24 = vld [vmem:[#allocation7 + $0x124] ss:$16 sps:$4 sm:$0xff]  }
 0x93f   :  { %v11406_v16 = vld [vmem:[#allocation7 + $0x324] ss:$16 sps:$4 sm:$0xff]   ;;  %v11401_v25 = vld [vmem:[#allocation7 + $0x120] ss:$16 sps:$4 sm:$0xff]  }
 0x940   :  { %v11404_v26 = vld [vmem:[#allocation7 + $0x320] ss:$16 sps:$4 sm:$0xff]   ;;  %v11409_v27 = vld [vmem:[#allocation7 + $0x144] ss:$16 sps:$4 sm:$0xff]  }
 0x945   :  { %v12480_v29 = vpop.eup %12479 }
 0x946   :  { %v12482_v30 = vpop.eup %12481  ;;  %v4242_v31 = vadd.f32 1.0, %v12480_v29  ;;  %v11412_v29 = vld [vmem:[#allocation7 + $0x344] ss:$16 sps:$4 sm:$0xff]  }
 0x947   :  { %v4243_v32 = vadd.f32 1.0, %v12482_v30  ;;  %v12484_v54 = vpop.eup %12483  ;;  %v11407_v30 = vld [vmem:[#allocation7 + $0x140] ss:$16 sps:$4 sm:$0xff]  }
 0x948   :  { %12487 = vrcp.f32 %v4242_v31  ;;  %v12486_v57 = vpop.eup %12485  ;;  %v4252_v37 = vadd.f32 1.0, %v12484_v54  ;;  %v11410_v31 = vld [vmem:[#allocation7 + $0x340] ss:$16 sps:$4 sm:$0xff]   ;;  %v11418_v54 = vld [vmem:[#allocation7 + $0x364] ss:$16 sps:$4 sm:$0xff]  }
 0x949   :  { %12489 = vrcp.f32 %v4243_v32  ;;  %v11415_v32 = vld [vmem:[#allocation7 + $0x164] ss:$16 sps:$4 sm:$0xff]  }
 0x94a   :  { %12491 = vrcp.f32 %v4252_v37  ;;  %v11419_v37 = vld [vmem:[#allocation7 + $0x180] ss:$16 sps:$4 sm:$0xff]  }
 0x952   :  { %v12488_v58 = vpop.eup %12487 }
 0x953   :  { %v12490_v59 = vpop.eup %12489  ;;  %v4256_v60 = vmul.f32 %v12488_v58, %v12486_v57  ;;  %v11413_v57 = vld [vmem:[#allocation7 + $0x160] ss:$16 sps:$4 sm:$0xff]  }
 0x954   :  { %v4255_v44 = vmul.f32 %v12490_v59, %v14123_v49  ;;  %v12492_v12 = vpop.eup %12491  ;;  %v11364_v49 = vld [vmem:[#allocation7 + $0x244] ss:$16 sps:$4 sm:$0xff]   ;;  %v11416_v58 = vld [vmem:[#allocation7 + $0x360] ss:$16 sps:$4 sm:$0xff]  }
 0x955   :  { %v11421_v59 = vld [vmem:[#allocation7 + $0x184] ss:$16 sps:$4 sm:$0xff]  }
 0x956   :  { %v14167_v10 = vadd.f32 %v4256_v60, %v4255_v44  ;;  %v11424_v60 = vld [vmem:[#allocation7 + $0x384] ss:$16 sps:$4 sm:$0xff]   ;;  %v11422_v44 = vld [vmem:[#allocation7 + $0x380] ss:$16 sps:$4 sm:$0xff]  }
 0x958   :  { %12493 = vtanh.f32 %v14167_v10 }
 0x962   :  { %v12494_v20 = vpop.eup %12493 }
 0x963   :  { %v4259_v6 = vmul.f32 %v12494_v20, %v12492_v12  ;;  %v11427_v12 = vld [vmem:[#allocation7 + $0x1a4] ss:$16 sps:$4 sm:$0xff]  }
 0x964   :  { %v11430_v20 = vld [vmem:[#allocation7 + $0x3a4] ss:$16 sps:$4 sm:$0xff]  }
 0x965   :  { %v4262_v35 = vpack.c.bf16 %v4259_v6, %v4259_v6  ;;  %v4536_v6 = vld [vmem:[#allocation7 + $0x3c0] sm:$0x33] }
 0x967   :  { %4296 = vmatmul.mubr.bf16.vlgmr.msra.gmra.mrb[60].mxu0 %v4262_v35  ;;  %4337 = vmatmul.mubr.bf16.vlgmr.msra.gmra.mrb[60].mxu1 %v4262_v35  ;;  %v11433_v35 = vld [vmem:[#allocation7 + $0x1c4] ss:$16 sps:$4 sm:$0xff]  }
 0x968   :  { %5179 = vmatpush1.bf16.msra.mxu0 %v11347_v33  ;;  %5220 = vmatpush1.bf16.msra.mxu1 %v11350_v34  ;;  %v11425_v33 = vld [vmem:[#allocation7 + $0x1a0] ss:$16 sps:$4 sm:$0xff]  }
 0x969   :  { %5180 = vmatprep.subr.bf16.mxu0 %v11355_v17  ;;  %5221 = vmatprep.subr.bf16.mxu1 %v11358_v18  ;;  %v11428_v34 = vld [vmem:[#allocation7 + $0x3a0] ss:$16 sps:$4 sm:$0xff]   ;;  %v10424_v17 = vcombine.high %v4536_v6, %v4536_v6  ;;  %v10423_v18 = vcombine.low %v4536_v6, %v4536_v6  ;;  %v11514_v6 = vld [vmem:[#allocation7 + $0x36c] ss:$16 sps:$4 sm:$0xff]  }
 0x96a   :  { %10428 = vmatprep.mubr.msk.bf16.mxu1 %vm5161_vm2, %v14182_v38  ;;  %5210 = vmatprep.mubr.bf16.mxu0 %v14186_v39 }
 0x96c   :  { %5181 = vmatpush1.bf16.msra.mxu0 %v11353_v46  ;;  %5222 = vmatpush1.bf16.msra.mxu1 %v11356_v47  ;;  %v11431_v46 = vld [vmem:[#allocation7 + $0x1c0] ss:$16 sps:$4 sm:$0xff]   ;;  %v5167_v47 = vsel %vm5165_vm3, %v10423_v18, 0  ;;  %v11523_v18 = vld [vmem:[#allocation7 + $0x1ac] ss:$16 sps:$4 sm:$0xff]  }
 0x96d   :  { %5182 = vmatprep.subr.bf16.mxu0 %v11361_v48  ;;  %5223 = vmatprep.subr.bf16.mxu1 %v11364_v49  ;;  %v11438_v48 = vld [vmem:[#allocation7 + $0x1e4] ss:$16 sps:$4 sm:$0xff]   ;;  %v11442_v49 = vld [vmem:[#allocation7 + $0xc] ss:$16 sps:$4 sm:$0xff]  }
 0x970   :  { %5183 = vmatpush1.bf16.msra.mxu0 %v11359_v50  ;;  %5224 = vmatpush1.bf16.msra.mxu1 %v11362_v51  ;;  %v14195_v50 = vcombine.low %v14173_v9, %v14173_v9  ;;  %v11436_v51 = vld [vmem:[#allocation7 + $0x1e0] ss:$16 sps:$4 sm:$0xff]   ;;  %v11454_v9 = vld [vmem:[#allocation7 + $0x22c] ss:$16 sps:$4 sm:$0xff]  }
 0x971   :  { %5184 = vmatprep.subr.bf16.mxu0 %v11367_v52  ;;  %5225 = vmatprep.subr.bf16.mxu1 %v11370_v53  ;;  %v11440_v52 = vld [vmem:[#allocation7 + $0x8] ss:$16 sps:$4 sm:$0xff]   ;;  %v11448_v53 = vld [vmem:[#allocation7 + $0x20c] ss:$16 sps:$4 sm:$0xff]  }
 0x974   :  { %5185 = vmatpush1.bf16.msra.mxu0 %v11365_v8  ;;  %5226 = vmatpush1.bf16.msra.mxu1 %v11368_v43  ;;  %v11451_v8 = vld [vmem:[#allocation7 + $0x2c] ss:$16 sps:$4 sm:$0xff]   ;;  %v14199_v43 = vcombine.low %v14178_v41, %v14178_v41 }
 0x975   :  { %5186 = vmatprep.subr.bf16.mxu0 %v11373_v62  ;;  %5227 = vmatprep.subr.bf16.mxu1 %v11376_v5  ;;  %v11446_v62 = vld [vmem:[#allocation7 + $0x208] ss:$16 sps:$4 sm:$0xff]   ;;  %v11460_v41 = vld [vmem:[#allocation7 + $0x24c] ss:$16 sps:$4 sm:$0xff]  }
 0x976   :  { %v11449_v5 = vld [vmem:[#allocation7 + $0x28] ss:$16 sps:$4 sm:$0xff]  }
 0x978   :  { %5187 = vmatpush1.bf16.msra.mxu0 %v11371_v55  ;;  %5228 = vmatpush1.bf16.msra.mxu1 %v11374_v11  ;;  %v11457_v55 = vld [vmem:[#allocation7 + $0x4c] ss:$16 sps:$4 sm:$0xff]   ;;  %v11452_v11 = vld [vmem:[#allocation7 + $0x228] ss:$16 sps:$4 sm:$0xff]  }
 0x979   :  { %5188 = vmatprep.subr.bf16.mxu0 %v11379_v28  ;;  %5229 = vmatprep.subr.bf16.mxu1 %v11382_v2  ;;  %v11455_v28 = vld [vmem:[#allocation7 + $0x48] ss:$16 sps:$4 sm:$0xff]   ;;  %v11463_v2 = vld [vmem:[#allocation7 + $0x6c] ss:$16 sps:$4 sm:$0xff]  }
 0x97c   :  { %5189 = vmatpush1.bf16.msra.mxu0 %v11377_v1  ;;  %5230 = vmatpush1.bf16.msra.mxu1 %v11380_v3  ;;  %v11458_v1 = vld [vmem:[#allocation7 + $0x248] ss:$16 sps:$4 sm:$0xff]  }
 0x97d   :  { %5190 = vmatprep.subr.bf16.mxu0 %v11385_v56  ;;  %5231 = vmatprep.subr.bf16.mxu1 %v11388_v19  ;;  %v11461_v3 = vld [vmem:[#allocation7 + $0x68] ss:$16 sps:$4 sm:$0xff]   ;;  %v11469_v56 = vld [vmem:[#allocation7 + $0x8c] ss:$16 sps:$4 sm:$0xff]  }
 0x97e   :  { %v11464_v19 = vld [vmem:[#allocation7 + $0x268] ss:$16 sps:$4 sm:$0xff]  }
 0x980   :  { %5191 = vmatpush1.bf16.msra.mxu0 %v11383_v4  ;;  %5232 = vmatpush1.bf16.msra.mxu1 %v11386_v14  ;;  %v11467_v4 = vld [vmem:[#allocation7 + $0x88] ss:$16 sps:$4 sm:$0xff]   ;;  %v11472_v14 = vld [vmem:[#allocation7 + $0x28c] ss:$16 sps:$4 sm:$0xff]  }
 0x981   :  { %5192 = vmatprep.subr.bf16.mxu0 %v11391_v0  ;;  %5233 = vmatprep.subr.bf16.mxu1 %v11394_v13  ;;  %v11475_v0 = vld [vmem:[#allocation7 + $0xac] ss:$16 sps:$4 sm:$0xff]   ;;  %v11470_v13 = vld [vmem:[#allocation7 + $0x288] ss:$16 sps:$4 sm:$0xff]  }
 0x984   :  { %5193 = vmatpush1.bf16.msra.mxu0 %v11389_v45  ;;  %5234 = vmatpush1.bf16.msra.mxu1 %v11392_v40  ;;  %v11478_v45 = vld [vmem:[#allocation7 + $0x2ac] ss:$16 sps:$4 sm:$0xff]  }
 0x985   :  { %5194 = vmatprep.subr.bf16.mxu0 %v11397_v42  ;;  %5235 = vmatprep.subr.bf16.mxu1 %v11400_v21  ;;  %v11481_v40 = vld [vmem:[#allocation7 + $0xcc] ss:$16 sps:$4 sm:$0xff]   ;;  %v11476_v42 = vld [vmem:[#allocation7 + $0x2a8] ss:$16 sps:$4 sm:$0xff]  }
 0x986   :  { %v11479_v21 = vld [vmem:[#allocation7 + $0xc8] ss:$16 sps:$4 sm:$0xff]  }
 0x988   :  { %5195 = vmatpush1.bf16.msra.mxu0 %v11395_v22  ;;  %5236 = vmatpush1.bf16.msra.mxu1 %v11398_v23  ;;  %v11484_v22 = vld [vmem:[#allocation7 + $0x2cc] ss:$16 sps:$4 sm:$0xff]  }
 0x989   :  { %5196 = vmatprep.subr.bf16.mxu0 %v11403_v24  ;;  %5237 = vmatprep.subr.bf16.mxu1 %v11406_v16  ;;  %v11487_v23 = vld [vmem:[#allocation7 + $0xec] ss:$16 sps:$4 sm:$0xff]   ;;  %v11482_v24 = vld [vmem:[#allocation7 + $0x2c8] ss:$16 sps:$4 sm:$0xff]  }
 0x98a   :  { %v11485_v16 = vld [vmem:[#allocation7 + $0xe8] ss:$16 sps:$4 sm:$0xff]  }
 0x98c   :  { %5197 = vmatpush1.bf16.msra.mxu0 %v11401_v25  ;;  %5238 = vmatpush1.bf16.msra.mxu1 %v11404_v26  ;;  %v11490_v25 = vld [vmem:[#allocation7 + $0x2ec] ss:$16 sps:$4 sm:$0xff]  }
 0x98d   :  { %5198 = vmatprep.subr.bf16.mxu0 %v11409_v27  ;;  %5239 = vmatprep.subr.bf16.mxu1 %v11412_v29  ;;  %v11493_v26 = vld [vmem:[#allocation7 + $0x10c] ss:$16 sps:$4 sm:$0xff]   ;;  %v11488_v27 = vld [vmem:[#allocation7 + $0x2e8] ss:$16 sps:$4 sm:$0xff]  }
 0x98e   :  { %v11491_v29 = vld [vmem:[#allocation7 + $0x108] ss:$16 sps:$4 sm:$0xff]  }
 0x990   :  { %5199 = vmatpush1.bf16.msra.mxu0 %v11407_v30  ;;  %5240 = vmatpush1.bf16.msra.mxu1 %v11410_v31  ;;  %v11496_v30 = vld [vmem:[#allocation7 + $0x30c] ss:$16 sps:$4 sm:$0xff]  }
 0x991   :  { %5200 = vmatprep.subr.bf16.mxu0 %v11415_v32  ;;  %5241 = vmatprep.subr.bf16.mxu1 %v11418_v54  ;;  %v11499_v31 = vld [vmem:[#allocation7 + $0x12c] ss:$16 sps:$4 sm:$0xff]   ;;  %v11494_v32 = vld [vmem:[#allocation7 + $0x308] ss:$16 sps:$4 sm:$0xff]  }
 0x992   :  { %v11497_v54 = vld [vmem:[#allocation7 + $0x128] ss:$16 sps:$4 sm:$0xff]  }
 0x994   :  { %5201 = vmatpush1.bf16.msra.mxu0 %v11413_v57  ;;  %5242 = vmatpush1.bf16.msra.mxu1 %v11416_v58  ;;  %v11502_v57 = vld [vmem:[#allocation7 + $0x32c] ss:$16 sps:$4 sm:$0xff]  }
 0x995   :  { %5202 = vmatprep.subr.bf16.mxu0 %v11421_v59  ;;  %5243 = vmatprep.subr.bf16.mxu1 %v11424_v60  ;;  %v11505_v58 = vld [vmem:[#allocation7 + $0x14c] ss:$16 sps:$4 sm:$0xff]   ;;  %v11500_v59 = vld [vmem:[#allocation7 + $0x328] ss:$16 sps:$4 sm:$0xff]  }
 0x996   :  { %v11503_v60 = vld [vmem:[#allocation7 + $0x148] ss:$16 sps:$4 sm:$0xff]  }
 0x998   :  { %5203 = vmatpush1.bf16.msra.mxu0 %v11419_v37  ;;  %5244 = vmatpush1.bf16.msra.mxu1 %v11422_v44  ;;  %v11508_v37 = vld [vmem:[#allocation7 + $0x34c] ss:$16 sps:$4 sm:$0xff]  }
 0x999   :  { %5204 = vmatprep.subr.bf16.mxu0 %v11427_v12  ;;  %5245 = vmatprep.subr.bf16.mxu1 %v11430_v20  ;;  %v11511_v44 = vld [vmem:[#allocation7 + $0x16c] ss:$16 sps:$4 sm:$0xff]   ;;  %v11506_v12 = vld [vmem:[#allocation7 + $0x348] ss:$16 sps:$4 sm:$0xff]  }
 0x99a   :  { %v11509_v20 = vld [vmem:[#allocation7 + $0x168] ss:$16 sps:$4 sm:$0xff]  }
 0x99c   :  { %5205 = vmatpush1.bf16.msra.mxu0 %v11425_v33  ;;  %5246 = vmatpush1.bf16.msra.mxu1 %v11428_v34  ;;  %v11517_v33 = vld [vmem:[#allocation7 + $0x18c] ss:$16 sps:$4 sm:$0xff]   ;;  %v11512_v34 = vld [vmem:[#allocation7 + $0x368] ss:$16 sps:$4 sm:$0xff]  }
 0x99d   :  { %5206 = vmatprep.subr.bf16.mxu0 %v11433_v35  ;;  %10427 = vmatprep.subr.msk.bf16.mxu1 %vm5165_vm3, %v10424_v17  ;;  %v11515_v35 = vld [vmem:[#allocation7 + $0x188] ss:$16 sps:$4 sm:$0xff]   ;;  %v11520_v17 = vld [vmem:[#allocation7 + $0x38c] ss:$16 sps:$4 sm:$0xff]  }
 0x9a0   :  { %5207 = vmatpush1.bf16.msra.mxu0 %v11431_v46  ;;  %5248 = vmatpush1.bf16.msra.mxu1 %v5167_v47  ;;  %v11518_v46 = vld [vmem:[#allocation7 + $0x388] ss:$16 sps:$4 sm:$0xff]  }
 0x9a1   :  { %5208 = vmatprep.subr.bf16.mxu0 %v11438_v48  ;;  %5260 = vmatprep.subr.bf16.mxu1 %v11442_v49  ;;  %v11521_v47 = vld [vmem:[#allocation7 + $0x1a8] ss:$16 sps:$4 sm:$0xff]   ;;  %v11526_v48 = vld [vmem:[#allocation7 + $0x3ac] ss:$16 sps:$4 sm:$0xff]  }
 0x9a2   :  { %v11529_v49 = vld [vmem:[#allocation7 + $0x1cc] ss:$16 sps:$4 sm:$0xff]  }
 0x9a3   :  { %5252 = vmatmul.mubr.bf16.vlgmr.msra.gmra.mrb[64].mxu1 %v14195_v50 }
 0x9a4   :  { %5209 = vmatpush1.bf16.msra.mxu0 %v11436_v51  ;;  %5261 = vmatpush1.bf16.msra.mxu1 %v11440_v52  ;;  %v4537_v51 = vld [vmem:[#allocation7 + $0x3c8] sm:$0x33] }
 0x9a5   :  { %5301 = vmatprep.subr.bf16.mxu0 %v11448_v53  ;;  %5262 = vmatprep.subr.bf16.mxu1 %v11451_v8  ;;  %v11524_v52 = vld [vmem:[#allocation7 + $0x3a8] ss:$16 sps:$4 sm:$0xff]   ;;  %v10426_v8 = vcombine.high %v4537_v51, %v4537_v51 }
 0x9a6   :  { %5292 = vmatprep.mubr.bf16.mxu1 %v14186_v39  ;;  %v11466_v39 = vld [vmem:[#allocation7 + $0x26c] ss:$16 sps:$4 sm:$0xff]   ;;  %v11527_v53 = vld [vmem:[#allocation7 + $0x1c8] ss:$16 sps:$4 sm:$0xff]  }
 0x9a7   :  { %5211 = vmatmul.mubr.bf16.vlgmr.msra.gmra.mrb[64].mxu0 %v14199_v43 }
 0x9a8   :  { %5302 = vmatpush1.bf16.msra.mxu0 %v11446_v62  ;;  %5263 = vmatpush1.bf16.msra.mxu1 %v11449_v5  ;;  %v10425_v62 = vcombine.low %v4537_v51, %v4537_v51  ;;  %v11534_v5 = vld [vmem:[#allocation7 + $0x1ec] ss:$16 sps:$4 sm:$0xff]  }
 0x9a9   :  { %5303 = vmatprep.subr.bf16.mxu0 %v11454_v9  ;;  %5264 = vmatprep.subr.bf16.mxu1 %v11457_v55  ;;  %v11532_v9 = vld [vmem:[#allocation7 + $0x1e8] ss:$16 sps:$4 sm:$0xff]  }
 0x9aa   :  { %10430 = vmatprep.mubr.msk.bf16.mxu0 %vm5161_vm2, %v14182_v38  ;;  %v11473_v38 = vld [vmem:[#allocation7 + $0xa8] ss:$16 sps:$4 sm:$0xff]   ;;  %v5173_v55 = vsel %vm5165_vm3, %v10425_v62, 0 }
 0x9ac   :  { %5304 = vmatpush1.bf16.msra.mxu0 %v11452_v11  ;;  %5265 = vmatpush1.bf16.msra.mxu1 %v11455_v28  ;;  %v11537_v11 = vld [vmem:[%s14393_s5 + $0x4] ss:$16 sps:$4 sm:$0xff]   ;;  %v11540_v28 = vld [vmem:[%s14393_s5 + $0xc] ss:$16 sps:$4 sm:$0xff]  }
 0x9ad   :  { %5305 = vmatprep.subr.bf16.mxu0 %v11460_v41  ;;  %5266 = vmatprep.subr.bf16.mxu1 %v11463_v2  ;;  %v11535_v41 = vld [vmem:[%s14393_s5] ss:$16 sps:$4 sm:$0xff]   ;;  %v11538_v2 = vld [vmem:[%s14393_s5 + $0x8] ss:$16 sps:$4 sm:$0xff]  }
 0x9b0   :  { %5306 = vmatpush1.bf16.msra.mxu0 %v11458_v1  ;;  %5267 = vmatpush1.bf16.msra.mxu1 %v11461_v3  ;;  %v11543_v1 = vld [vmem:[%s14393_s5 + $0x24] ss:$16 sps:$4 sm:$0xff]   ;;  %v11546_v3 = vld [vmem:[%s14393_s5 + $0x2c] ss:$16 sps:$4 sm:$0xff]  }
 0x9b1   :  { %5307 = vmatprep.subr.bf16.mxu0 %v11466_v39  ;;  %5268 = vmatprep.subr.bf16.mxu1 %v11469_v56  ;;  %v11541_v39 = vld [vmem:[%s14393_s5 + $0x20] ss:$16 sps:$4 sm:$0xff]   ;;  %v11544_v56 = vld [vmem:[%s14393_s5 + $0x28] ss:$16 sps:$4 sm:$0xff]  }
 0x9b4   :  { %5308 = vmatpush1.bf16.msra.mxu0 %v11464_v19  ;;  %5269 = vmatpush1.bf16.msra.mxu1 %v11467_v4  ;;  %v11549_v19 = vld [vmem:[%s14393_s5 + $0x44] ss:$16 sps:$4 sm:$0xff]   ;;  %v11550_v4 = vld [vmem:[%s14393_s5 + $0x48] ss:$16 sps:$4 sm:$0xff]  }
 0x9b5   :  { %5309 = vmatprep.subr.bf16.mxu0 %v11472_v14  ;;  %5270 = vmatprep.subr.bf16.mxu1 %v11475_v0  ;;  %v11555_v14 = vld [vmem:[%s14393_s5 + $0x64] ss:$16 sps:$4 sm:$0xff]   ;;  %v11553_v0 = vld [vmem:[%s14393_s5 + $0x60] ss:$16 sps:$4 sm:$0xff]  }
 0x9b8   :  { %5310 = vmatpush1.bf16.msra.mxu0 %v11470_v13  ;;  %5271 = vmatpush1.bf16.msra.mxu1 %v11473_v38  ;;  %v11556_v13 = vld [vmem:[%s14393_s5 + $0x68] ss:$16 sps:$4 sm:$0xff]   ;;  %v11561_v38 = vld [vmem:[%s14393_s5 + $0x84] ss:$16 sps:$4 sm:$0xff]  }
 0x9b9   :  { %5311 = vmatprep.subr.bf16.mxu0 %v11478_v45  ;;  %5272 = vmatprep.subr.bf16.mxu1 %v11481_v40  ;;  %v11564_v45 = vld [vmem:[%s14393_s5 + $0x8c] ss:$16 sps:$4 sm:$0xff]   ;;  %v11559_v40 = vld [vmem:[%s14393_s5 + $0x80] ss:$16 sps:$4 sm:$0xff]  }
 0x9bc   :  { %5312 = vmatpush1.bf16.msra.mxu0 %v11476_v42  ;;  %5273 = vmatpush1.bf16.msra.mxu1 %v11479_v21  ;;  %v11562_v42 = vld [vmem:[%s14393_s5 + $0x88] ss:$16 sps:$4 sm:$0xff]   ;;  %v11567_v21 = vld [vmem:[%s14393_s5 + $0xa4] ss:$16 sps:$4 sm:$0xff]  }
 0x9bd   :  { %5313 = vmatprep.subr.bf16.mxu0 %v11484_v22  ;;  %5274 = vmatprep.subr.bf16.mxu1 %v11487_v23  ;;  %v11570_v22 = vld [vmem:[%s14393_s5 + $0xac] ss:$16 sps:$4 sm:$0xff]   ;;  %v11565_v23 = vld [vmem:[%s14393_s5 + $0xa0] ss:$16 sps:$4 sm:$0xff]  }
 0x9c0   :  { %5314 = vmatpush1.bf16.msra.mxu0 %v11482_v24  ;;  %5275 = vmatpush1.bf16.msra.mxu1 %v11485_v16  ;;  %v11568_v24 = vld [vmem:[%s14393_s5 + $0xa8] ss:$16 sps:$4 sm:$0xff]   ;;  %v11573_v16 = vld [vmem:[%s14393_s5 + $0xc4] ss:$16 sps:$4 sm:$0xff]  }
 0x9c1   :  { %5315 = vmatprep.subr.bf16.mxu0 %v11490_v25  ;;  %5276 = vmatprep.subr.bf16.mxu1 %v11493_v26  ;;  %v11576_v25 = vld [vmem:[%s14393_s5 + $0xcc] ss:$16 sps:$4 sm:$0xff]   ;;  %v11571_v26 = vld [vmem:[%s14393_s5 + $0xc0] ss:$16 sps:$4 sm:$0xff]  }
 0x9c4   :  { %5316 = vmatpush1.bf16.msra.mxu0 %v11488_v27  ;;  %5277 = vmatpush1.bf16.msra.mxu1 %v11491_v29  ;;  %v11574_v27 = vld [vmem:[%s14393_s5 + $0xc8] ss:$16 sps:$4 sm:$0xff]   ;;  %v11579_v29 = vld [vmem:[%s14393_s5 + $0xe4] ss:$16 sps:$4 sm:$0xff]  }
 0x9c5   :  { %5317 = vmatprep.subr.bf16.mxu0 %v11496_v30  ;;  %5278 = vmatprep.subr.bf16.mxu1 %v11499_v31  ;;  %v11582_v30 = vld [vmem:[%s14393_s5 + $0xec] ss:$16 sps:$4 sm:$0xff]   ;;  %v11577_v31 = vld [vmem:[%s14393_s5 + $0xe0] ss:$16 sps:$4 sm:$0xff]  }
 0x9c8   :  { %5318 = vmatpush1.bf16.msra.mxu0 %v11494_v32  ;;  %5279 = vmatpush1.bf16.msra.mxu1 %v11497_v54  ;;  %v11580_v32 = vld [vmem:[%s14393_s5 + $0xe8] ss:$16 sps:$4 sm:$0xff]   ;;  %v11585_v54 = vld [vmem:[#allocation8 + $0x4] ss:$16 sps:$4 sm:$0xff]  }
 0x9c9   :  { %5319 = vmatprep.subr.bf16.mxu0 %v11502_v57  ;;  %5280 = vmatprep.subr.bf16.mxu1 %v11505_v58  ;;  %v11588_v57 = vld [vmem:[#allocation8 + $0xc] ss:$16 sps:$4 sm:$0xff]  }
 0x9ca   :  { %v14453_v58 = vld [vmem:[#allocation31_spill] sm:$0xff] }
 0x9cc   :  { %5320 = vmatpush1.bf16.msra.mxu0 %v11500_v59  ;;  %5281 = vmatpush1.bf16.msra.mxu1 %v11503_v60  ;;  %v4345_v59 = vunpack.c.l.bf16 %v14453_v58  ;;  %v14454_v60 = vld [vmem:[#allocation32_spill] sm:$0xff] }
 0x9cd   :  { %5321 = vmatprep.subr.bf16.mxu0 %v11508_v37  ;;  %5282 = vmatprep.subr.bf16.mxu1 %v11511_v44  ;;  %v4347_v37 = vunpack.c.l.bf16 %v14454_v60 }
 0x9d0   :  { %5322 = vmatpush1.bf16.msra.mxu0 %v11506_v12  ;;  %5283 = vmatpush1.bf16.msra.mxu1 %v11509_v20  ;;  %v4346_v20 = vunpack.c.h.bf16 %v14453_v58 }
 0x9d1   :  { %5323 = vmatprep.subr.bf16.mxu0 %v11514_v6  ;;  %5284 = vmatprep.subr.bf16.mxu1 %v11517_v33  ;;  %v4348_v6 = vunpack.c.h.bf16 %v14454_v60  ;;  %v11615_v60 = vld [vmem:[#allocation8 + $0xa4] ss:$16 sps:$4 sm:$0xff]  }
 0x9d4   :  { %5324 = vmatpush1.bf16.msra.mxu0 %v11512_v34  ;;  %5285 = vmatpush1.bf16.msra.mxu1 %v11515_v35 }
 0x9d5   :  { %5325 = vmatprep.subr.bf16.mxu0 %v11520_v17  ;;  %5286 = vmatprep.subr.bf16.mxu1 %v11523_v18 }
 0x9d8   :  { %5326 = vmatpush1.bf16.msra.mxu0 %v11518_v46  ;;  %5287 = vmatpush1.bf16.msra.mxu1 %v11521_v47 }
 0x9d9   :  { %5327 = vmatprep.subr.bf16.mxu0 %v11526_v48  ;;  %5288 = vmatprep.subr.bf16.mxu1 %v11529_v49 }
 0x9dc   :  { %5328 = vmatpush1.bf16.msra.mxu0 %v11524_v52  ;;  %5289 = vmatpush1.bf16.msra.mxu1 %v11527_v53 }
 0x9dd   :  { %10429 = vmatprep.subr.msk.bf16.mxu0 %vm5165_vm3, %v10426_v8  ;;  %5290 = vmatprep.subr.bf16.mxu1 %v11534_v5 }
 0x9e0   :  { %5330 = vmatpush1.bf16.msra.mxu0 %v5173_v55  ;;  %5291 = vmatpush1.bf16.msra.mxu1 %v11532_v9 }
 0x9e1   :  { %5502 = vmatprep.subr.bf16.mxu0 %v11537_v11  ;;  %5543 = vmatprep.subr.bf16.mxu1 %v11540_v28 }
 0x9e3   :  { %5334 = vmatmul.mubr.bf16.vlgmr.msra.gmra.mrb[68].mxu0 %v14195_v50  ;;  %5293 = vmatmul.mubr.bf16.vlgmr.msra.gmra.mrb[68].mxu1 %v14199_v43  ;;  %v11552_v50 = vld [vmem:[%s14393_s5 + $0x4c] ss:$16 sps:$4 sm:$0xff]   ;;  %v11547_v43 = vld [vmem:[%s14393_s5 + $0x40] ss:$16 sps:$4 sm:$0xff]  }
 0x9e4   :  { %5503 = vmatpush1.bf16.msra.mxu0 %v11535_v41  ;;  %5544 = vmatpush1.bf16.msra.mxu1 %v11538_v2 }
 0x9e5   :  { %5504 = vmatprep.subr.bf16.mxu0 %v11543_v1  ;;  %5545 = vmatprep.subr.bf16.mxu1 %v11546_v3 }
 0x9e6   :  { %5534 = vmatprep.mubr.bf16.mxu0 %v14445_v61  ;;  %5575 = vmatprep.mubr.bf16.mxu1 %v14445_v61  ;;  %v11558_v61 = vld [vmem:[%s14393_s5 + $0x6c] ss:$16 sps:$4 sm:$0xff]  }
 0x9e8   :  { %5505 = vmatpush1.bf16.msra.mxu0 %v11541_v39  ;;  %5546 = vmatpush1.bf16.msra.mxu1 %v11544_v56 }
 0x9e9   :  { %5506 = vmatprep.subr.bf16.mxu0 %v11549_v19  ;;  %5547 = vmatprep.subr.bf16.mxu1 %v11552_v50 }
 0x9ec   :  { %5507 = vmatpush1.bf16.msra.mxu0 %v11547_v43  ;;  %5548 = vmatpush1.bf16.msra.mxu1 %v11550_v4  ;;  %v11583_v4 = vld [vmem:[#allocation8] ss:$16 sps:$4 sm:$0xff]  }
 0x9ed   :  { %5508 = vmatprep.subr.bf16.mxu0 %v11555_v14  ;;  %5549 = vmatprep.subr.bf16.mxu1 %v11558_v61  ;;  %v11586_v14 = vld [vmem:[#allocation8 + $0x8] ss:$16 sps:$4 sm:$0xff]  }
 0x9f0   :  { %5509 = vmatpush1.bf16.msra.mxu0 %v11553_v0  ;;  %5550 = vmatpush1.bf16.msra.mxu1 %v11556_v13  ;;  %v11591_v0 = vld [vmem:[#allocation8 + $0x24] ss:$16 sps:$4 sm:$0xff]   ;;  %v11594_v13 = vld [vmem:[#allocation8 + $0x2c] ss:$16 sps:$4 sm:$0xff]  }
 0x9f1   :  { %5510 = vmatprep.subr.bf16.mxu0 %v11561_v38  ;;  %5551 = vmatprep.subr.bf16.mxu1 %v11564_v45  ;;  %v11589_v38 = vld [vmem:[#allocation8 + $0x20] ss:$16 sps:$4 sm:$0xff]   ;;  %v11592_v45 = vld [vmem:[#allocation8 + $0x28] ss:$16 sps:$4 sm:$0xff]  }
 0x9f4   :  { %5511 = vmatpush1.bf16.msra.mxu0 %v11559_v40  ;;  %5552 = vmatpush1.bf16.msra.mxu1 %v11562_v42  ;;  %v11600_v40 = vld [vmem:[#allocation8 + $0x4c] ss:$16 sps:$4 sm:$0xff]   ;;  %v11595_v42 = vld [vmem:[#allocation8 + $0x40] ss:$16 sps:$4 sm:$0xff]  }
 0x9f5   :  { %5512 = vmatprep.subr.bf16.mxu0 %v11567_v21  ;;  %5553 = vmatprep.subr.bf16.mxu1 %v11570_v22  ;;  %v11598_v21 = vld [vmem:[#allocation8 + $0x48] ss:$16 sps:$4 sm:$0xff]   ;;  %v11603_v22 = vld [vmem:[#allocation8 + $0x64] ss:$16 sps:$4 sm:$0xff]  }
 0x9f8   :  { %5513 = vmatpush1.bf16.msra.mxu0 %v11565_v23  ;;  %5554 = vmatpush1.bf16.msra.mxu1 %v11568_v24  ;;  %v11606_v23 = vld [vmem:[#allocation8 + $0x6c] ss:$16 sps:$4 sm:$0xff]  }
 0x9f9   :  { %5514 = vmatprep.subr.bf16.mxu0 %v11573_v16  ;;  %5555 = vmatprep.subr.bf16.mxu1 %v11576_v25  ;;  %v11601_v16 = vld [vmem:[#allocation8 + $0x60] ss:$16 sps:$4 sm:$0xff]   ;;  %v11604_v25 = vld [vmem:[#allocation8 + $0x68] ss:$16 sps:$4 sm:$0xff]  }
 0x9fc   :  { %5515 = vmatpush1.bf16.msra.mxu0 %v11571_v26  ;;  %5556 = vmatpush1.bf16.msra.mxu1 %v11574_v27  ;;  %v11609_v27 = vld [vmem:[#allocation8 + $0x84] ss:$16 sps:$4 sm:$0xff]  }
 0x9fd   :  { %5516 = vmatprep.subr.bf16.mxu0 %v11579_v29  ;;  %5557 = vmatprep.subr.bf16.mxu1 %v11582_v30  ;;  %v11612_v29 = vld [vmem:[#allocation8 + $0x8c] ss:$16 sps:$4 sm:$0xff]  }
 0xa00   :  { %5517 = vmatpush1.bf16.msra.mxu0 %v11577_v31  ;;  %5558 = vmatpush1.bf16.msra.mxu1 %v11580_v32 }
 0xa01   :  { %6408 = vmatprep.subr.bf16.mxu0 %v11585_v54  ;;  %6490 = vmatprep.subr.bf16.mxu1 %v11588_v57  ;;  %v11607_v54 = vld [vmem:[#allocation8 + $0x80] ss:$16 sps:$4 sm:$0xff]   ;;  %v11610_v57 = vld [vmem:[#allocation8 + $0x88] ss:$16 sps:$4 sm:$0xff]  }
 0xa3a   :  { %v4297_v44 = vpop.f32.mrb[60].mxu0  ;;  %v4338_v12 = vpop.f32.mrb[60].mxu1 }
 0xa3b   :  { %v4349_v33 = vadd.f32 %v4345_v59, %v4297_v44  ;;  %v4351_v34 = vadd.f32 %v4347_v37, %v4338_v12  ;;  %v4299_v35 = vpop.f32.mrb[61].mxu0  ;;  %v4340_v17 = vpop.f32.mrb[61].mxu1  ;;  %v11618_v37 = vld [vmem:[#allocation8 + $0xac] ss:$16 sps:$4 sm:$0xff]  }
 0xa3c   :  { %v4350_v18 = vadd.f32 %v4346_v20, %v4299_v35  ;;  %v4352_v46 = vadd.f32 %v4348_v6, %v4340_v17  ;;  %v4301_v47 = vpop.f32.mrb[62].mxu0  ;;  %v4342_v48 = vpop.f32.mrb[62].mxu1  ;;  %v11613_v6 = vld [vmem:[#allocation8 + $0xa0] ss:$16 sps:$4 sm:$0xff]   ;;  %v11624_v35 = vld [vmem:[#allocation8 + $0xcc] ss:$16 sps:$4 sm:$0xff]  }
 0xa3d   :  { %v4353_v49 = vadd.f32 %v4349_v33, %v13813_v7  ;;  %v4302_v51 = vpop.f32.mrb[63].mxu0  ;;  %v4343_v52 = vpop.f32.mrb[63].mxu1  ;;  %v4355_v55 = vadd.f32 %v4351_v34, %v13832_v63  ;;  %v11616_v33 = vld [vmem:[#allocation8 + $0xa8] ss:$16 sps:$4 sm:$0xff]   ;;  %v11621_v34 = vld [vmem:[#allocation8 + $0xc4] ss:$16 sps:$4 sm:$0xff]  }
 0xa3e   :  { %v4354_v53 = vadd.f32 %v4350_v18, %v13818_v15  ;;  %v4356_v5 = vadd.f32 %v4352_v46, %v13826_v36  ;;  %v11619_v17 = vld [vmem:[#allocation8 + $0xc0] ss:$16 sps:$4 sm:$0xff]   ;;  %v11622_v18 = vld [vmem:[#allocation8 + $0xc8] ss:$16 sps:$4 sm:$0xff]   ;;  %v11627_v46 = vld [vmem:[#allocation8 + $0xe4] ss:$16 sps:$4 sm:$0xff]  }
 0xa3f   :  { %v10296_v8 = vmul.f32 -1.442695, %v4353_v49  ;;  %v11630_v47 = vld [vmem:[#allocation8 + $0xec] ss:$16 sps:$4 sm:$0xff]   ;;  %v11625_v48 = vld [vmem:[#allocation8 + $0xe0] ss:$16 sps:$4 sm:$0xff]  }
 0xa40   :  { %v10297_v62 = vmul.f32 -1.442695, %v4354_v53  ;;  %v10298_v9 = vmul.f32 -1.442695, %v4356_v5  ;;  %v11628_v49 = vld [vmem:[#allocation8 + $0xe8] ss:$16 sps:$4 sm:$0xff]  }
 0xa41   :  { %12495 = vpow2.f32 %v10296_v8  ;;  %v11633_v51 = vld [vmem:[#allocation8 + $0x104] ss:$16 sps:$4 sm:$0xff]   ;;  %v11636_v52 = vld [vmem:[#allocation8 + $0x10c] ss:$16 sps:$4 sm:$0xff]   ;;  %v11631_v53 = vld [vmem:[#allocation8 + $0x100] ss:$16 sps:$4 sm:$0xff]  }
 0xa42   :  { %12497 = vpow2.f32 %v10297_v62  ;;  %v11634_v8 = vld [vmem:[#allocation8 + $0x108] ss:$16 sps:$4 sm:$0xff]   ;;  %v11639_v62 = vld [vmem:[#allocation8 + $0x124] ss:$16 sps:$4 sm:$0xff]   ;;  %v11642_v5 = vld [vmem:[#allocation8 + $0x12c] ss:$16 sps:$4 sm:$0xff]  }
 0xa43   :  { %12499 = vpow2.f32 %v10298_v9  ;;  %v11637_v9 = vld [vmem:[#allocation8 + $0x120] ss:$16 sps:$4 sm:$0xff]  }
 0xa44   :  { %12501 = vtanh.f32 %v4355_v55  ;;  %v11640_v55 = vld [vmem:[#allocation8 + $0x128] ss:$16 sps:$4 sm:$0xff]  }
 0xa4b   :  { %v12496_v11 = vpop.eup %12495 }
 0xa4c   :  { %v12498_v28 = vpop.eup %12497  ;;  %v4363_v41 = vadd.f32 1.0, %v12496_v11  ;;  %v11645_v11 = vld [vmem:[#allocation8 + $0x144] ss:$16 sps:$4 sm:$0xff]  }
 0xa4d   :  { %v4364_v2 = vadd.f32 1.0, %v12498_v28  ;;  %v12500_v7 = vpop.eup %12499  ;;  %v11648_v28 = vld [vmem:[#allocation8 + $0x14c] ss:$16 sps:$4 sm:$0xff]  }
 0xa4e   :  { %12503 = vrcp.f32 %v4363_v41  ;;  %v12502_v1 = vpop.eup %12501  ;;  %v4373_v56 = vadd.f32 1.0, %v12500_v7  ;;  %v11643_v41 = vld [vmem:[#allocation8 + $0x140] ss:$16 sps:$4 sm:$0xff]   ;;  %v11651_v7 = vld [vmem:[#allocation8 + $0x164] ss:$16 sps:$4 sm:$0xff]  }
 0xa4f   :  { %12505 = vrcp.f32 %v4364_v2  ;;  %v11646_v2 = vld [vmem:[#allocation8 + $0x148] ss:$16 sps:$4 sm:$0xff]  }
 0xa50   :  { %12507 = vrcp.f32 %v4373_v56  ;;  %v11660_v56 = vld [vmem:[#allocation8 + $0x18c] ss:$16 sps:$4 sm:$0xff]  }
 0xa58   :  { %v12504_v15 = vpop.eup %12503 }
 0xa59   :  { %v12506_v3 = vpop.eup %12505  ;;  %v4377_v39 = vmul.f32 %v12504_v15, %v12502_v1  ;;  %v11654_v1 = vld [vmem:[#allocation8 + $0x16c] ss:$16 sps:$4 sm:$0xff]   ;;  %v11649_v15 = vld [vmem:[#allocation8 + $0x160] ss:$16 sps:$4 sm:$0xff]  }
 0xa5a   :  { %v4376_v19 = vmul.f32 %v12506_v3, %v14167_v10  ;;  %v12508_v63 = vpop.eup %12507  ;;  %v11597_v10 = vld [vmem:[#allocation8 + $0x44] ss:$16 sps:$4 sm:$0xff]   ;;  %v11652_v3 = vld [vmem:[#allocation8 + $0x168] ss:$16 sps:$4 sm:$0xff]  }
 0xa5c   :  { %v4378_v36 = vadd.f32 %v4377_v39, %v4376_v19  ;;  %v11657_v39 = vld [vmem:[#allocation8 + $0x184] ss:$16 sps:$4 sm:$0xff]   ;;  %v11655_v19 = vld [vmem:[#allocation8 + $0x180] ss:$16 sps:$4 sm:$0xff]  }
 0xa5e   :  { %12509 = vtanh.f32 %v4378_v36  ;;  %v11658_v36 = vld [vmem:[#allocation8 + $0x188] ss:$16 sps:$4 sm:$0xff]  }
 0xa68   :  { %v12510_v50 = vpop.eup %12509 }
 0xa69   :  { %v4380_v43 = vmul.f32 %v12510_v50, %v12508_v63  ;;  %v11663_v63 = vld [vmem:[#allocation8 + $0x1a4] ss:$16 sps:$4 sm:$0xff]   ;;  %v11666_v50 = vld [vmem:[#allocation8 + $0x1ac] ss:$16 sps:$4 sm:$0xff]  }
 0xa6b   :  { %v4381_v61 = vpack.c.bf16 %v4380_v43, %v4380_v43  ;;  %v11661_v43 = vld [vmem:[#allocation8 + $0x1a0] ss:$16 sps:$4 sm:$0xff]  }
 0xa6d   :  { %5535 = vmatmul.mubr.bf16.vlgmr.msra.gmra.mrb[72].mxu0 %v4381_v61  ;;  %5576 = vmatmul.mubr.bf16.vlgmr.msra.gmra.mrb[72].mxu1 %v4381_v61 }
 0xa6e   :  { %6409 = vmatpush1.bf16.msra.mxu0 %v11583_v4  ;;  %6491 = vmatpush1.bf16.msra.mxu1 %v11586_v14  ;;  %v11664_v4 = vld [vmem:[#allocation8 + $0x1a8] ss:$16 sps:$4 sm:$0xff]  }
 0xa6f   :  { %6410 = vmatprep.subr.bf16.mxu0 %v11591_v0  ;;  %6492 = vmatprep.subr.bf16.mxu1 %v11594_v13 }
 0xa72   :  { %6411 = vmatpush1.bf16.msra.mxu0 %v11589_v38  ;;  %6493 = vmatpush1.bf16.msra.mxu1 %v11592_v45 }
 0xa73   :  { %6412 = vmatprep.subr.bf16.mxu0 %v11597_v10  ;;  %6494 = vmatprep.subr.bf16.mxu1 %v11600_v40 }
 0xa76   :  { %v5253_v24 = vpop.f32.mrb[64].mxu1  ;;  %6413 = vmatpush1.bf16.msra.mxu0 %v11595_v42  ;;  %6495 = vmatpush1.bf16.msra.mxu1 %v11598_v21 }
 0xa77   :  { %v5255_v26 = vpop.f32.mrb[65].mxu1  ;;  %6414 = vmatprep.subr.bf16.mxu0 %v11603_v22  ;;  %6496 = vmatprep.subr.bf16.mxu1 %v11606_v23  ;;  %v11669_v22 = vld [vmem:[#allocation8 + $0x1c4] ss:$16 sps:$4 sm:$0xff]   ;;  %v11672_v23 = vld [vmem:[#allocation8 + $0x1cc] ss:$16 sps:$4 sm:$0xff]  }
 0xa78   :  { %v5257_v30 = vpop.f32.mrb[66].mxu1 }
 0xa79   :  { %v5258_v31 = vpop.f32.mrb[67].mxu1  ;;  %v11681_v30 = vld [vmem:[#allocation8 + $0x204] ss:$16 sps:$4 sm:$0xff]  }
 0xa7a   :  { %v5212_v32 = vpop.f32.mrb[64].mxu0  ;;  %6415 = vmatpush1.bf16.msra.mxu0 %v11601_v16  ;;  %6497 = vmatpush1.bf16.msra.mxu1 %v11604_v25  ;;  %v11670_v16 = vld [vmem:[#allocation8 + $0x1c8] ss:$16 sps:$4 sm:$0xff]   ;;  %v11675_v25 = vld [vmem:[#allocation8 + $0x1e4] ss:$16 sps:$4 sm:$0xff]  }
 0xa7b   :  { %v5214_v58 = vpop.f32.mrb[65].mxu0  ;;  %v14317_v59 = vadd.f32 %v5253_v24, %v5212_v32  ;;  %6416 = vmatprep.subr.bf16.mxu0 %v11609_v27  ;;  %6498 = vmatprep.subr.bf16.mxu1 %v11612_v29  ;;  %v11667_v24 = vld [vmem:[#allocation8 + $0x1c0] ss:$16 sps:$4 sm:$0xff]   ;;  %v11676_v29 = vld [vmem:[#allocation8 + $0x1e8] ss:$16 sps:$4 sm:$0xff]  }
 0xa7c   :  { %v5216_v44 = vpop.f32.mrb[66].mxu0  ;;  %v14319_v12 = vadd.f32 %v5255_v26, %v5214_v58  ;;  %v11678_v26 = vld [vmem:[#allocation8 + $0x1ec] ss:$16 sps:$4 sm:$0xff]   ;;  %v11673_v27 = vld [vmem:[#allocation8 + $0x1e0] ss:$16 sps:$4 sm:$0xff]  }
 0xa7d   :  { %v5217_v20 = vpop.f32.mrb[67].mxu0  ;;  %v11684_v31 = vld [vmem:[#allocation8 + $0x20c] ss:$16 sps:$4 sm:$0xff]   ;;  %v5584_v32 = vld [vmem:[%s14395_s7] sm:$0xf] }
 0xa7e   :  { %6417 = vmatpush1.bf16.msra.mxu0 %v11607_v54  ;;  %6499 = vmatpush1.bf16.msra.mxu1 %v11610_v57  ;;  %v14455_v54 = vld [vmem:[#allocation33_spill] sm:$0xff]  ;;  %v14456_v58 = vld [vmem:[#allocation36_spill] sm:$0xff]  ;;  %v14457_v20 = vld [vmem:[#allocation34_spill] sm:$0xff] }
 0xa7f   :  { %6418 = vmatprep.subr.bf16.mxu0 %v11615_v60  ;;  %6500 = vmatprep.subr.bf16.mxu1 %v11618_v37  ;;  %v5589_v57 = vrot.slane %v5584_v32, %v14455_v54  ;;  %v5597_v60 = vrot.slane %v5584_v32, %v14456_v58 }
 0xa82   :  { %6419 = vmatpush1.bf16.msra.mxu0 %v11613_v6  ;;  %6501 = vmatpush1.bf16.msra.mxu1 %v11616_v33  ;;  %v5593_v6 = vrot.slane %v5584_v32, %v14457_v20  ;;  %v14458_v33 = vld [vmem:[#allocation35_spill] sm:$0xff] }
 0xa83   :  { %6420 = vmatprep.subr.bf16.mxu0 %v11621_v34  ;;  %6502 = vmatprep.subr.bf16.mxu1 %v11624_v35  ;;  %v5601_v34 = vrot.slane %v5584_v32, %v14458_v33  ;;  %v11730_v32 = vld [vmem:[#allocation8 + $0x308] ss:$16 sps:$4 sm:$0xff]  }
 0xa86   :  { %6421 = vmatpush1.bf16.msra.mxu0 %v11619_v17  ;;  %6503 = vmatpush1.bf16.msra.mxu1 %v11622_v18 }
 0xa87   :  { %6422 = vmatprep.subr.bf16.mxu0 %v11627_v46  ;;  %6504 = vmatprep.subr.bf16.mxu1 %v11630_v47 }
 0xa8a   :  { %6423 = vmatpush1.bf16.msra.mxu0 %v11625_v48  ;;  %6505 = vmatpush1.bf16.msra.mxu1 %v11628_v49 }
 0xa8b   :  { %6424 = vmatprep.subr.bf16.mxu0 %v11633_v51  ;;  %6506 = vmatprep.subr.bf16.mxu1 %v11636_v52 }
 0xa8e   :  { %6425 = vmatpush1.bf16.msra.mxu0 %v11631_v53  ;;  %6507 = vmatpush1.bf16.msra.mxu1 %v11634_v8 }
 0xa8f   :  { %6426 = vmatprep.subr.bf16.mxu0 %v11639_v62  ;;  %6508 = vmatprep.subr.bf16.mxu1 %v11642_v5 }
 0xa92   :  { %6427 = vmatpush1.bf16.msra.mxu0 %v11637_v9  ;;  %6509 = vmatpush1.bf16.msra.mxu1 %v11640_v55 }
 0xa93   :  { %6428 = vmatprep.subr.bf16.mxu0 %v11645_v11  ;;  %6510 = vmatprep.subr.bf16.mxu1 %v11648_v28 }
 0xa96   :  { %6429 = vmatpush1.bf16.msra.mxu0 %v11643_v41  ;;  %6511 = vmatpush1.bf16.msra.mxu1 %v11646_v2  ;;  %v11682_v2 = vld [vmem:[#allocation8 + $0x208] ss:$16 sps:$4 sm:$0xff]  }
 0xa97   :  { %6430 = vmatprep.subr.bf16.mxu0 %v11651_v7  ;;  %6512 = vmatprep.subr.bf16.mxu1 %v11654_v1  ;;  %v11690_v1 = vld [vmem:[#allocation8 + $0x22c] ss:$16 sps:$4 sm:$0xff]  }
 0xa9a   :  { %6431 = vmatpush1.bf16.msra.mxu0 %v11649_v15  ;;  %6513 = vmatpush1.bf16.msra.mxu1 %v11652_v3  ;;  %v11685_v3 = vld [vmem:[#allocation8 + $0x220] ss:$16 sps:$4 sm:$0xff]  }
 0xa9b   :  { %6432 = vmatprep.subr.bf16.mxu0 %v11657_v39  ;;  %6514 = vmatprep.subr.bf16.mxu1 %v11660_v56  ;;  %v11688_v39 = vld [vmem:[#allocation8 + $0x228] ss:$16 sps:$4 sm:$0xff]   ;;  %v11693_v56 = vld [vmem:[#allocation8 + $0x244] ss:$16 sps:$4 sm:$0xff]  }
 0xa9e   :  { %6433 = vmatpush1.bf16.msra.mxu0 %v11655_v19  ;;  %6515 = vmatpush1.bf16.msra.mxu1 %v11658_v36  ;;  %v11696_v19 = vld [vmem:[#allocation8 + $0x24c] ss:$16 sps:$4 sm:$0xff]   ;;  %v11691_v36 = vld [vmem:[#allocation8 + $0x240] ss:$16 sps:$4 sm:$0xff]  }
 0xa9f   :  { %6434 = vmatprep.subr.bf16.mxu0 %v11663_v63  ;;  %6516 = vmatprep.subr.bf16.mxu1 %v11666_v50  ;;  %v11694_v63 = vld [vmem:[#allocation8 + $0x248] ss:$16 sps:$4 sm:$0xff]   ;;  %v11699_v50 = vld [vmem:[#allocation8 + $0x264] ss:$16 sps:$4 sm:$0xff]  }
 0xaa2   :  { %6435 = vmatpush1.bf16.msra.mxu0 %v11661_v43  ;;  %6517 = vmatpush1.bf16.msra.mxu1 %v11664_v4  ;;  %v11702_v43 = vld [vmem:[#allocation8 + $0x26c] ss:$16 sps:$4 sm:$0xff]   ;;  %v11697_v4 = vld [vmem:[#allocation8 + $0x260] ss:$16 sps:$4 sm:$0xff]  }
 0xaa3   :  { %6436 = vmatprep.subr.bf16.mxu0 %v11669_v22  ;;  %6518 = vmatprep.subr.bf16.mxu1 %v11672_v23  ;;  %v11720_v22 = vld [vmem:[#allocation8 + $0x2cc] ss:$16 sps:$4 sm:$0xff]   ;;  %v11715_v23 = vld [vmem:[#allocation8 + $0x2c0] ss:$16 sps:$4 sm:$0xff]  }
 0xaa6   :  { %6437 = vmatpush1.bf16.msra.mxu0 %v11667_v24  ;;  %6519 = vmatpush1.bf16.msra.mxu1 %v11670_v16  ;;  %v11718_v24 = vld [vmem:[#allocation8 + $0x2c8] ss:$16 sps:$4 sm:$0xff]   ;;  %v11723_v16 = vld [vmem:[#allocation8 + $0x2e4] ss:$16 sps:$4 sm:$0xff]  }
 0xaa7   :  { %6438 = vmatprep.subr.bf16.mxu0 %v11675_v25  ;;  %6520 = vmatprep.subr.bf16.mxu1 %v11678_v26  ;;  %v11726_v25 = vld [vmem:[#allocation8 + $0x2ec] ss:$16 sps:$4 sm:$0xff]   ;;  %v11721_v26 = vld [vmem:[#allocation8 + $0x2e0] ss:$16 sps:$4 sm:$0xff]  }
 0xaaa   :  { %6439 = vmatpush1.bf16.msra.mxu0 %v11673_v27  ;;  %6521 = vmatpush1.bf16.msra.mxu1 %v11676_v29  ;;  %v11724_v27 = vld [vmem:[#allocation8 + $0x2e8] ss:$16 sps:$4 sm:$0xff]   ;;  %v11729_v29 = vld [vmem:[#allocation8 + $0x304] ss:$16 sps:$4 sm:$0xff]  }
 0xaab   :  { %6449 = vmatprep.subr.bf16.mxu0 %v11681_v30  ;;  %6531 = vmatprep.subr.bf16.mxu1 %v11684_v31  ;;  %v11732_v30 = vld [vmem:[#allocation8 + $0x30c] ss:$16 sps:$4 sm:$0xff]   ;;  %v11727_v31 = vld [vmem:[#allocation8 + $0x300] ss:$16 sps:$4 sm:$0xff]  }
 0xab6   :  { %v5335_v14 = vpop.f32.mrb[68].mxu0  ;;  %v5294_v61 = vpop.f32.mrb[68].mxu1 }
 0xab7   :  { %v5337_v0 = vpop.f32.mrb[69].mxu0  ;;  %v5336_v13 = vadd.f32 %v5335_v14, %v5294_v61  ;;  %v5296_v38 = vpop.f32.mrb[69].mxu1  ;;  %v11700_v14 = vld [vmem:[#allocation8 + $0x268] ss:$16 sps:$4 sm:$0xff]   ;;  %v11705_v61 = vld [vmem:[#allocation8 + $0x284] ss:$16 sps:$4 sm:$0xff]  }
 0xab8   :  { %v5339_v45 = vpop.f32.mrb[70].mxu0  ;;  %v5338_v10 = vadd.f32 %v5337_v0, %v5296_v38  ;;  %v5298_v40 = vpop.f32.mrb[70].mxu1  ;;  %v11708_v0 = vld [vmem:[#allocation8 + $0x28c] ss:$16 sps:$4 sm:$0xff]   ;;  %v11706_v38 = vld [vmem:[#allocation8 + $0x288] ss:$16 sps:$4 sm:$0xff]  }
 0xab9   :  { %v5340_v42 = vpop.f32.mrb[71].mxu0  ;;  %v5299_v21 = vpop.f32.mrb[71].mxu1  ;;  %v11711_v45 = vld [vmem:[#allocation8 + $0x2a4] ss:$16 sps:$4 sm:$0xff]   ;;  %v11709_v40 = vld [vmem:[#allocation8 + $0x2a0] ss:$16 sps:$4 sm:$0xff]  }
 0xaba   :  { %v11712_v42 = vld [vmem:[#allocation8 + $0x2a8] ss:$16 sps:$4 sm:$0xff]   ;;  %v11717_v21 = vld [vmem:[#allocation8 + $0x2c4] ss:$16 sps:$4 sm:$0xff]  }
 0xb40   :  { %v5536_v37 = vpop.f32.mrb[72].mxu0  ;;  %v5577_v44 = vpop.f32.mrb[72].mxu1 }
 0xb41   :  { %v5537_v35 = vadd.f32 %v5536_v37, %v14317_v59  ;;  %v5578_v17 = vadd.f32 %v5577_v44, %v5336_v13  ;;  %v5538_v18 = vpop.f32.mrb[73].mxu0  ;;  %v5579_v46 = vpop.f32.mrb[73].mxu1  ;;  %v11679_v59 = vld [vmem:[#allocation8 + $0x200] ss:$16 sps:$4 sm:$0xff]   ;;  %v11736_v44 = vld [vmem:[#allocation8 + $0x328] ss:$16 sps:$4 sm:$0xff]  }
 0xb42   :  { %v5539_v47 = vadd.f32 %v5538_v18, %v14319_v12  ;;  %v5580_v48 = vadd.f32 %v5579_v46, %v5338_v10  ;;  %v5540_v49 = vpop.f32.mrb[74].mxu0  ;;  %v5581_v51 = vpop.f32.mrb[74].mxu1  ;;  %v11687_v12 = vld [vmem:[#allocation8 + $0x224] ss:$16 sps:$4 sm:$0xff]   ;;  %v11703_v13 = vld [vmem:[#allocation8 + $0x280] ss:$16 sps:$4 sm:$0xff]  }
 0xb43   :  { %v5606_v52 = vadd.f32 %v5589_v57, %v5537_v35  ;;  %v14330_v53 = vadd.f32 %v5597_v60, %v5578_v17  ;;  %v5541_v8 = vpop.f32.mrb[75].mxu0  ;;  %v5582_v62 = vpop.f32.mrb[75].mxu1  ;;  %v11714_v10 = vld [vmem:[#allocation8 + $0x2ac] ss:$16 sps:$4 sm:$0xff]   ;;  %v11735_v57 = vld [vmem:[#allocation8 + $0x324] ss:$16 sps:$4 sm:$0xff]  }
 0xb44   :  { %v5607_v5 = vadd.f32 %v5593_v6, %v5539_v47  ;;  %v5609_v9 = vadd.f32 %v5601_v34, %v5580_v48  ;;  %v11738_v60 = vld [vmem:[#allocation8 + $0x32c] ss:$16 sps:$4 sm:$0xff]   ;;  %v11733_v37 = vld [vmem:[#allocation8 + $0x320] ss:$16 sps:$4 sm:$0xff]   ;;  %v11741_v6 = vld [vmem:[#allocation8 + $0x344] ss:$16 sps:$4 sm:$0xff]  }
 0xb45   :  { %v5610_v55 = vmax.f32 %v5606_v52, 0.0  ;;  %v11744_v34 = vld [vmem:[#allocation8 + $0x34c] ss:$16 sps:$4 sm:$0xff]   ;;  %v11739_v35 = vld [vmem:[#allocation8 + $0x340] ss:$16 sps:$4 sm:$0xff]  }
 0xb46   :  { %v5611_v11 = vmax.f32 %v5607_v5, 0.0  ;;  %v5613_v28 = vmax.f32 %v5609_v9, 0.0  ;;  %v11742_v17 = vld [vmem:[#allocation8 + $0x348] ss:$16 sps:$4 sm:$0xff]   ;;  %v11747_v18 = vld [vmem:[#allocation8 + $0x364] ss:$16 sps:$4 sm:$0xff]  }
 0xb47   :  { %v5614_v7 = vpack.c.bf16 %v5610_v55, %v5610_v55  ;;  %v11750_v46 = vld [vmem:[#allocation8 + $0x36c] ss:$16 sps:$4 sm:$0xff]   ;;  %v11745_v47 = vld [vmem:[#allocation8 + $0x360] ss:$16 sps:$4 sm:$0xff]   ;;  %v11748_v48 = vld [vmem:[#allocation8 + $0x368] ss:$16 sps:$4 sm:$0xff]  }
 0xb48   :  { %v5615_v41 = vpack.c.bf16 %v5611_v11, %v5611_v11  ;;  %v5617_v15 = vpack.c.bf16 %v5613_v28, %v5613_v28  ;;  %v11753_v49 = vld [vmem:[#allocation8 + $0x384] ss:$16 sps:$4 sm:$0xff]   ;;  %v11756_v51 = vld [vmem:[#allocation8 + $0x38c] ss:$16 sps:$4 sm:$0xff]   ;;  %v11751_v52 = vld [vmem:[#allocation8 + $0x380] ss:$16 sps:$4 sm:$0xff]  }
 0xb49   :  { %v11754_v8 = vld [vmem:[#allocation8 + $0x388] ss:$16 sps:$4 sm:$0xff]   ;;  %v11759_v62 = vld [vmem:[#allocation8 + $0x3a4] ss:$16 sps:$4 sm:$0xff]   ;;  %v11762_v5 = vld [vmem:[#allocation8 + $0x3ac] ss:$16 sps:$4 sm:$0xff]  }
 0xb4a   :  { %6440 = vmatprep.mubr.bf16.mxu0 %v5615_v41  ;;  %6522 = vmatprep.mubr.bf16.mxu1 %v5615_v41  ;;  %v11757_v9 = vld [vmem:[#allocation8 + $0x3a0] ss:$16 sps:$4 sm:$0xff]   ;;  %v11760_v55 = vld [vmem:[#allocation8 + $0x3a8] ss:$16 sps:$4 sm:$0xff]   ;;  %v11765_v11 = vld [vmem:[#allocation8 + $0x3c4] ss:$16 sps:$4 sm:$0xff]  }
 0xb4b   :  { %6441 = vmatmul.mubr.bf16.vlgmr.msra.gmra.mrb[76].mxu0 %v5614_v7  ;;  %6523 = vmatmul.mubr.bf16.vlgmr.msra.gmra.mrb[76].mxu1 %v5614_v7  ;;  %v11768_v28 = vld [vmem:[#allocation8 + $0x3cc] ss:$16 sps:$4 sm:$0xff]   ;;  %v11763_v41 = vld [vmem:[#allocation8 + $0x3c0] ss:$16 sps:$4 sm:$0xff]  }
 0xb4c   :  { %6450 = vmatpush1.bf16.msra.mxu0 %v11679_v59  ;;  %6532 = vmatpush1.bf16.msra.mxu1 %v11682_v2  ;;  %v11766_v59 = vld [vmem:[#allocation8 + $0x3c8] ss:$16 sps:$4 sm:$0xff]   ;;  %v11771_v2 = vld [vmem:[#allocation8 + $0x3e4] ss:$16 sps:$4 sm:$0xff]   ;;  %v11774_v7 = vld [vmem:[#allocation8 + $0x3ec] ss:$16 sps:$4 sm:$0xff]  }
 0xb4d   :  { %6481 = vmatprep.mubr.bf16.mxu0 %v5617_v15  ;;  %6563 = vmatprep.mubr.bf16.mxu1 %v5617_v15  ;;  %v5612_v15 = vmax.f32 %v14330_v53, 0.0  ;;  %v11789_v53 = vld [vmem:[#allocation10 + $0x44] ss:$16 sps:$4 sm:$0xff]  }
 0xb4e   :  { %6451 = vmatprep.subr.bf16.mxu0 %v11687_v12  ;;  %6533 = vmatprep.subr.bf16.mxu1 %v11690_v1  ;;  %v11769_v12 = vld [vmem:[#allocation8 + $0x3e0] ss:$16 sps:$4 sm:$0xff]   ;;  %v11772_v1 = vld [vmem:[#allocation8 + $0x3e8] ss:$16 sps:$4 sm:$0xff]  }
 0xb50   :  { %6452 = vmatpush1.bf16.msra.mxu0 %v11685_v3  ;;  %6534 = vmatpush1.bf16.msra.mxu1 %v11688_v39  ;;  %v11777_v3 = vld [vmem:[#allocation10 + $0x4] ss:$16 sps:$4 sm:$0xff]   ;;  %v11780_v39 = vld [vmem:[#allocation10 + $0xc] ss:$16 sps:$4 sm:$0xff]  }
 0xb51   :  { %6453 = vmatprep.subr.bf16.mxu0 %v11693_v56  ;;  %6535 = vmatprep.subr.bf16.mxu1 %v11696_v19  ;;  %v11775_v56 = vld [vmem:[#allocation10] ss:$16 sps:$4 sm:$0xff]   ;;  %v11778_v19 = vld [vmem:[#allocation10 + $0x8] ss:$16 sps:$4 sm:$0xff]  }
 0xb54   :  { %6454 = vmatpush1.bf16.msra.mxu0 %v11691_v36  ;;  %6536 = vmatpush1.bf16.msra.mxu1 %v11694_v63  ;;  %v5616_v36 = vpack.c.bf16 %v5612_v15, %v5612_v15  ;;  %v11783_v63 = vld [vmem:[#allocation10 + $0x24] ss:$16 sps:$4 sm:$0xff]   ;;  %v11859_v15 = vld [vmem:[#allocation10 + $0x1c0] ss:$16 sps:$4 sm:$0xff]  }
 0xb55   :  { %6455 = vmatprep.subr.bf16.mxu0 %v11699_v50  ;;  %6537 = vmatprep.subr.bf16.mxu1 %v11702_v43  ;;  %v11786_v50 = vld [vmem:[#allocation10 + $0x2c] ss:$16 sps:$4 sm:$0xff]   ;;  %v11781_v43 = vld [vmem:[#allocation10 + $0x20] ss:$16 sps:$4 sm:$0xff]  }
 0xb58   :  { %6456 = vmatpush1.bf16.msra.mxu0 %v11697_v4  ;;  %6538 = vmatpush1.bf16.msra.mxu1 %v11700_v14  ;;  %v11784_v4 = vld [vmem:[#allocation10 + $0x28] ss:$16 sps:$4 sm:$0xff]   ;;  %v11792_v14 = vld [vmem:[#allocation10 + $0x4c] ss:$16 sps:$4 sm:$0xff]  }
 0xb59   :  { %6457 = vmatprep.subr.bf16.mxu0 %v11705_v61  ;;  %6539 = vmatprep.subr.bf16.mxu1 %v11708_v0  ;;  %v11787_v61 = vld [vmem:[#allocation10 + $0x40] ss:$16 sps:$4 sm:$0xff]   ;;  %v11790_v0 = vld [vmem:[#allocation10 + $0x48] ss:$16 sps:$4 sm:$0xff]  }
 0xb5c   :  { %6458 = vmatpush1.bf16.msra.mxu0 %v11703_v13  ;;  %6540 = vmatpush1.bf16.msra.mxu1 %v11706_v38  ;;  %v11795_v13 = vld [vmem:[#allocation10 + $0x64] ss:$16 sps:$4 sm:$0xff]   ;;  %v11798_v38 = vld [vmem:[#allocation10 + $0x6c] ss:$16 sps:$4 sm:$0xff]  }
 0xb5d   :  { %6459 = vmatprep.subr.bf16.mxu0 %v11711_v45  ;;  %6541 = vmatprep.subr.bf16.mxu1 %v11714_v10  ;;  %v11793_v45 = vld [vmem:[#allocation10 + $0x60] ss:$16 sps:$4 sm:$0xff]   ;;  %v11796_v10 = vld [vmem:[#allocation10 + $0x68] ss:$16 sps:$4 sm:$0xff]  }
 0xb60   :  { %6460 = vmatpush1.bf16.msra.mxu0 %v11709_v40  ;;  %6542 = vmatpush1.bf16.msra.mxu1 %v11712_v42  ;;  %v11801_v40 = vld [vmem:[#allocation10 + $0x84] ss:$16 sps:$4 sm:$0xff]   ;;  %v11804_v42 = vld [vmem:[#allocation10 + $0x8c] ss:$16 sps:$4 sm:$0xff]  }
 0xb61   :  { %6461 = vmatprep.subr.bf16.mxu0 %v11717_v21  ;;  %6543 = vmatprep.subr.bf16.mxu1 %v11720_v22  ;;  %v11799_v21 = vld [vmem:[#allocation10 + $0x80] ss:$16 sps:$4 sm:$0xff]   ;;  %v11802_v22 = vld [vmem:[#allocation10 + $0x88] ss:$16 sps:$4 sm:$0xff]  }
 0xb64   :  { %6462 = vmatpush1.bf16.msra.mxu0 %v11715_v23  ;;  %6544 = vmatpush1.bf16.msra.mxu1 %v11718_v24  ;;  %v11807_v23 = vld [vmem:[#allocation10 + $0xa4] ss:$16 sps:$4 sm:$0xff]   ;;  %v11810_v24 = vld [vmem:[#allocation10 + $0xac] ss:$16 sps:$4 sm:$0xff]  }
 0xb65   :  { %6463 = vmatprep.subr.bf16.mxu0 %v11723_v16  ;;  %6545 = vmatprep.subr.bf16.mxu1 %v11726_v25  ;;  %v11805_v16 = vld [vmem:[#allocation10 + $0xa0] ss:$16 sps:$4 sm:$0xff]   ;;  %v11808_v25 = vld [vmem:[#allocation10 + $0xa8] ss:$16 sps:$4 sm:$0xff]  }
 0xb68   :  { %6464 = vmatpush1.bf16.msra.mxu0 %v11721_v26  ;;  %6546 = vmatpush1.bf16.msra.mxu1 %v11724_v27  ;;  %v11813_v26 = vld [vmem:[#allocation10 + $0xc4] ss:$16 sps:$4 sm:$0xff]   ;;  %v11816_v27 = vld [vmem:[#allocation10 + $0xcc] ss:$16 sps:$4 sm:$0xff]  }
 0xb69   :  { %6465 = vmatprep.subr.bf16.mxu0 %v11729_v29  ;;  %6547 = vmatprep.subr.bf16.mxu1 %v11732_v30  ;;  %v11811_v29 = vld [vmem:[#allocation10 + $0xc0] ss:$16 sps:$4 sm:$0xff]   ;;  %v11814_v30 = vld [vmem:[#allocation10 + $0xc8] ss:$16 sps:$4 sm:$0xff]  }
 0xb6c   :  { %6466 = vmatpush1.bf16.msra.mxu0 %v11727_v31  ;;  %6548 = vmatpush1.bf16.msra.mxu1 %v11730_v32  ;;  %v11819_v31 = vld [vmem:[#allocation10 + $0xe4] ss:$16 sps:$4 sm:$0xff]   ;;  %v11822_v32 = vld [vmem:[#allocation10 + $0xec] ss:$16 sps:$4 sm:$0xff]  }
 0xb6d   :  { %6467 = vmatprep.subr.bf16.mxu0 %v11735_v57  ;;  %6549 = vmatprep.subr.bf16.mxu1 %v11738_v60  ;;  %v11817_v57 = vld [vmem:[#allocation10 + $0xe0] ss:$16 sps:$4 sm:$0xff]   ;;  %v11820_v60 = vld [vmem:[#allocation10 + $0xe8] ss:$16 sps:$4 sm:$0xff]  }
 0xb70   :  { %6468 = vmatpush1.bf16.msra.mxu0 %v11733_v37  ;;  %6550 = vmatpush1.bf16.msra.mxu1 %v11736_v44  ;;  %v11825_v37 = vld [vmem:[#allocation10 + $0x104] ss:$16 sps:$4 sm:$0xff]   ;;  %v11828_v44 = vld [vmem:[#allocation10 + $0x10c] ss:$16 sps:$4 sm:$0xff]  }
 0xb71   :  { %6469 = vmatprep.subr.bf16.mxu0 %v11741_v6  ;;  %6551 = vmatprep.subr.bf16.mxu1 %v11744_v34  ;;  %v11823_v6 = vld [vmem:[#allocation10 + $0x100] ss:$16 sps:$4 sm:$0xff]   ;;  %v11826_v34 = vld [vmem:[#allocation10 + $0x108] ss:$16 sps:$4 sm:$0xff]  }
 0xb74   :  { %6470 = vmatpush1.bf16.msra.mxu0 %v11739_v35  ;;  %6552 = vmatpush1.bf16.msra.mxu1 %v11742_v17  ;;  %v11831_v35 = vld [vmem:[#allocation10 + $0x124] ss:$16 sps:$4 sm:$0xff]   ;;  %v11834_v17 = vld [vmem:[#allocation10 + $0x12c] ss:$16 sps:$4 sm:$0xff]  }
 0xb75   :  { %6471 = vmatprep.subr.bf16.mxu0 %v11747_v18  ;;  %6553 = vmatprep.subr.bf16.mxu1 %v11750_v46  ;;  %v11829_v18 = vld [vmem:[#allocation10 + $0x120] ss:$16 sps:$4 sm:$0xff]   ;;  %v11832_v46 = vld [vmem:[#allocation10 + $0x128] ss:$16 sps:$4 sm:$0xff]  }
 0xb78   :  { %6472 = vmatpush1.bf16.msra.mxu0 %v11745_v47  ;;  %6554 = vmatpush1.bf16.msra.mxu1 %v11748_v48  ;;  %v11837_v47 = vld [vmem:[#allocation10 + $0x144] ss:$16 sps:$4 sm:$0xff]   ;;  %v11840_v48 = vld [vmem:[#allocation10 + $0x14c] ss:$16 sps:$4 sm:$0xff]  }
 0xb79   :  { %6473 = vmatprep.subr.bf16.mxu0 %v11753_v49  ;;  %6555 = vmatprep.subr.bf16.mxu1 %v11756_v51  ;;  %v11835_v49 = vld [vmem:[#allocation10 + $0x140] ss:$16 sps:$4 sm:$0xff]   ;;  %v11838_v51 = vld [vmem:[#allocation10 + $0x148] ss:$16 sps:$4 sm:$0xff]  }
 0xb7c   :  { %6474 = vmatpush1.bf16.msra.mxu0 %v11751_v52  ;;  %6556 = vmatpush1.bf16.msra.mxu1 %v11754_v8  ;;  %v11843_v52 = vld [vmem:[#allocation10 + $0x164] ss:$16 sps:$4 sm:$0xff]   ;;  %v11846_v8 = vld [vmem:[#allocation10 + $0x16c] ss:$16 sps:$4 sm:$0xff]  }
 0xb7d   :  { %6475 = vmatprep.subr.bf16.mxu0 %v11759_v62  ;;  %6557 = vmatprep.subr.bf16.mxu1 %v11762_v5  ;;  %v11841_v62 = vld [vmem:[#allocation10 + $0x160] ss:$16 sps:$4 sm:$0xff]   ;;  %v11844_v5 = vld [vmem:[#allocation10 + $0x168] ss:$16 sps:$4 sm:$0xff]  }
 0xb80   :  { %6476 = vmatpush1.bf16.msra.mxu0 %v11757_v9  ;;  %6558 = vmatpush1.bf16.msra.mxu1 %v11760_v55  ;;  %v11849_v9 = vld [vmem:[#allocation10 + $0x184] ss:$16 sps:$4 sm:$0xff]   ;;  %v11852_v55 = vld [vmem:[#allocation10 + $0x18c] ss:$16 sps:$4 sm:$0xff]  }
 0xb81   :  { %6477 = vmatprep.subr.bf16.mxu0 %v11765_v11  ;;  %6559 = vmatprep.subr.bf16.mxu1 %v11768_v28  ;;  %v11847_v11 = vld [vmem:[#allocation10 + $0x180] ss:$16 sps:$4 sm:$0xff]   ;;  %v11850_v28 = vld [vmem:[#allocation10 + $0x188] ss:$16 sps:$4 sm:$0xff]  }
 0xb84   :  { %6478 = vmatpush1.bf16.msra.mxu0 %v11763_v41  ;;  %6560 = vmatpush1.bf16.msra.mxu1 %v11766_v59  ;;  %v11855_v41 = vld [vmem:[#allocation10 + $0x1a4] ss:$16 sps:$4 sm:$0xff]   ;;  %v11858_v59 = vld [vmem:[#allocation10 + $0x1ac] ss:$16 sps:$4 sm:$0xff]  }
 0xb85   :  { %6479 = vmatprep.subr.bf16.mxu0 %v11771_v2  ;;  %6561 = vmatprep.subr.bf16.mxu1 %v11774_v7  ;;  %v11853_v2 = vld [vmem:[#allocation10 + $0x1a0] ss:$16 sps:$4 sm:$0xff]   ;;  %v11856_v7 = vld [vmem:[#allocation10 + $0x1a8] ss:$16 sps:$4 sm:$0xff]  }
 0xb88   :  { %6480 = vmatpush1.bf16.msra.mxu0 %v11769_v12  ;;  %6562 = vmatpush1.bf16.msra.mxu1 %v11772_v1  ;;  %v11861_v12 = vld [vmem:[#allocation10 + $0x1c4] ss:$16 sps:$4 sm:$0xff]   ;;  %v11864_v1 = vld [vmem:[#allocation10 + $0x1cc] ss:$16 sps:$4 sm:$0xff]  }
 0xb89   :  { %7370 = vmatprep.subr.bf16.mxu0 %v11777_v3  ;;  %7452 = vmatprep.subr.bf16.mxu1 %v11780_v39  ;;  %v11862_v3 = vld [vmem:[#allocation10 + $0x1c8] ss:$16 sps:$4 sm:$0xff]   ;;  %v11867_v39 = vld [vmem:[#allocation10 + $0x1e4] ss:$16 sps:$4 sm:$0xff]  }
 0xb8b   :  { %6482 = vmatmul.mubr.bf16.vlgmr.msra.gmra.mrb[76].mxu0 %v5616_v36  ;;  %6564 = vmatmul.mubr.bf16.vlgmr.msra.gmra.mrb[76].mxu1 %v5616_v36  ;;  %v11868_v36 = vld [vmem:[#allocation10 + $0x1e8] ss:$16 sps:$4 sm:$0xff]  }
 0xb8c   :  { %7371 = vmatpush1.bf16.msra.mxu0 %v11775_v56  ;;  %7453 = vmatpush1.bf16.msra.mxu1 %v11778_v19  ;;  %v11870_v56 = vld [vmem:[#allocation10 + $0x1ec] ss:$16 sps:$4 sm:$0xff]   ;;  %v11865_v19 = vld [vmem:[#allocation10 + $0x1e0] ss:$16 sps:$4 sm:$0xff]  }
 0xb8d   :  { %7372 = vmatprep.subr.bf16.mxu0 %v11783_v63  ;;  %7454 = vmatprep.subr.bf16.mxu1 %v11786_v50  ;;  %v11873_v63 = vld [vmem:[#allocation10 + $0x204] ss:$16 sps:$4 sm:$0xff]   ;;  %v11876_v50 = vld [vmem:[#allocation10 + $0x20c] ss:$16 sps:$4 sm:$0xff]  }
 0xb90   :  { %7373 = vmatpush1.bf16.msra.mxu0 %v11781_v43  ;;  %7455 = vmatpush1.bf16.msra.mxu1 %v11784_v4  ;;  %v14336_v43 = vld [vmem:[%s14397_s9] sm:$0xf] }
 0xb91   :  { %7374 = vmatprep.subr.bf16.mxu0 %v11789_v53  ;;  %7456 = vmatprep.subr.bf16.mxu1 %v11792_v14  ;;  %v5751_v4 = vrot.slane %v14336_v43, %v14455_v54  ;;  %v5755_v53 = vrot.slane %v14336_v43, %v14457_v20  ;;  %v5763_v14 = vrot.slane %v14336_v43, %v14458_v33 }
 0xb94   :  { %7375 = vmatpush1.bf16.msra.mxu0 %v11787_v61  ;;  %7457 = vmatpush1.bf16.msra.mxu1 %v11790_v0 }
 0xb95   :  { %7376 = vmatprep.subr.bf16.mxu0 %v11795_v13  ;;  %7458 = vmatprep.subr.bf16.mxu1 %v11798_v38 }
 0xb98   :  { %7377 = vmatpush1.bf16.msra.mxu0 %v11793_v45  ;;  %7459 = vmatpush1.bf16.msra.mxu1 %v11796_v10 }
 0xb99   :  { %7378 = vmatprep.subr.bf16.mxu0 %v11801_v40  ;;  %7460 = vmatprep.subr.bf16.mxu1 %v11804_v42 }
 0xb9c   :  { %7379 = vmatpush1.bf16.msra.mxu0 %v11799_v21  ;;  %7461 = vmatpush1.bf16.msra.mxu1 %v11802_v22 }
 0xb9d   :  { %7380 = vmatprep.subr.bf16.mxu0 %v11807_v23  ;;  %7462 = vmatprep.subr.bf16.mxu1 %v11810_v24 }
 0xba0   :  { %7381 = vmatpush1.bf16.msra.mxu0 %v11805_v16  ;;  %7463 = vmatpush1.bf16.msra.mxu1 %v11808_v25 }
 0xba1   :  { %7382 = vmatprep.subr.bf16.mxu0 %v11813_v26  ;;  %7464 = vmatprep.subr.bf16.mxu1 %v11816_v27  ;;  %v11871_v27 = vld [vmem:[#allocation10 + $0x200] ss:$16 sps:$4 sm:$0xff]  }
 0xba4   :  { %7383 = vmatpush1.bf16.msra.mxu0 %v11811_v29  ;;  %7465 = vmatpush1.bf16.msra.mxu1 %v11814_v30  ;;  %v11874_v29 = vld [vmem:[#allocation10 + $0x208] ss:$16 sps:$4 sm:$0xff]  }
 0xba5   :  { %7384 = vmatprep.subr.bf16.mxu0 %v11819_v31  ;;  %7466 = vmatprep.subr.bf16.mxu1 %v11822_v32  ;;  %v11879_v31 = vld [vmem:[#allocation10 + $0x224] ss:$16 sps:$4 sm:$0xff]   ;;  %v11882_v32 = vld [vmem:[#allocation10 + $0x22c] ss:$16 sps:$4 sm:$0xff]  }
 0xba8   :  { %7385 = vmatpush1.bf16.msra.mxu0 %v11817_v57  ;;  %7467 = vmatpush1.bf16.msra.mxu1 %v11820_v60  ;;  %v11877_v60 = vld [vmem:[#allocation10 + $0x220] ss:$16 sps:$4 sm:$0xff]  }
 0xba9   :  { %7386 = vmatprep.subr.bf16.mxu0 %v11825_v37  ;;  %7468 = vmatprep.subr.bf16.mxu1 %v11828_v44  ;;  %v11880_v37 = vld [vmem:[#allocation10 + $0x228] ss:$16 sps:$4 sm:$0xff]   ;;  %v11885_v44 = vld [vmem:[#allocation10 + $0x244] ss:$16 sps:$4 sm:$0xff]  }
 0xbac   :  { %7387 = vmatpush1.bf16.msra.mxu0 %v11823_v6  ;;  %7469 = vmatpush1.bf16.msra.mxu1 %v11826_v34  ;;  %v11888_v6 = vld [vmem:[#allocation10 + $0x24c] ss:$16 sps:$4 sm:$0xff]   ;;  %v11883_v34 = vld [vmem:[#allocation10 + $0x240] ss:$16 sps:$4 sm:$0xff]  }
 0xbad   :  { %7388 = vmatprep.subr.bf16.mxu0 %v11831_v35  ;;  %7470 = vmatprep.subr.bf16.mxu1 %v11834_v17  ;;  %v11886_v35 = vld [vmem:[#allocation10 + $0x248] ss:$16 sps:$4 sm:$0xff]   ;;  %v11891_v17 = vld [vmem:[#allocation10 + $0x264] ss:$16 sps:$4 sm:$0xff]  }
 0xbb0   :  { %7389 = vmatpush1.bf16.msra.mxu0 %v11829_v18  ;;  %7471 = vmatpush1.bf16.msra.mxu1 %v11832_v46  ;;  %v11894_v18 = vld [vmem:[#allocation10 + $0x26c] ss:$16 sps:$4 sm:$0xff]   ;;  %v11889_v46 = vld [vmem:[#allocation10 + $0x260] ss:$16 sps:$4 sm:$0xff]  }
 0xbb1   :  { %7390 = vmatprep.subr.bf16.mxu0 %v11837_v47  ;;  %7472 = vmatprep.subr.bf16.mxu1 %v11840_v48  ;;  %v11892_v47 = vld [vmem:[#allocation10 + $0x268] ss:$16 sps:$4 sm:$0xff]   ;;  %v11897_v48 = vld [vmem:[#allocation10 + $0x284] ss:$16 sps:$4 sm:$0xff]  }
 0xbb4   :  { %7391 = vmatpush1.bf16.msra.mxu0 %v11835_v49  ;;  %7473 = vmatpush1.bf16.msra.mxu1 %v11838_v51  ;;  %v11900_v49 = vld [vmem:[#allocation10 + $0x28c] ss:$16 sps:$4 sm:$0xff]   ;;  %v11895_v51 = vld [vmem:[#allocation10 + $0x280] ss:$16 sps:$4 sm:$0xff]  }
 0xbb5   :  { %7392 = vmatprep.subr.bf16.mxu0 %v11843_v52  ;;  %7474 = vmatprep.subr.bf16.mxu1 %v11846_v8  ;;  %v11898_v52 = vld [vmem:[#allocation10 + $0x288] ss:$16 sps:$4 sm:$0xff]   ;;  %v11903_v8 = vld [vmem:[#allocation10 + $0x2a4] ss:$16 sps:$4 sm:$0xff]  }
 0xbb8   :  { %7393 = vmatpush1.bf16.msra.mxu0 %v11841_v62  ;;  %7475 = vmatpush1.bf16.msra.mxu1 %v11844_v5  ;;  %v11906_v62 = vld [vmem:[#allocation10 + $0x2ac] ss:$16 sps:$4 sm:$0xff]   ;;  %v11901_v5 = vld [vmem:[#allocation10 + $0x2a0] ss:$16 sps:$4 sm:$0xff]  }
 0xbb9   :  { %7394 = vmatprep.subr.bf16.mxu0 %v11849_v9  ;;  %7476 = vmatprep.subr.bf16.mxu1 %v11852_v55  ;;  %v11904_v9 = vld [vmem:[#allocation10 + $0x2a8] ss:$16 sps:$4 sm:$0xff]   ;;  %v11909_v55 = vld [vmem:[#allocation10 + $0x2c4] ss:$16 sps:$4 sm:$0xff]  }
 0xbbc   :  { %7395 = vmatpush1.bf16.msra.mxu0 %v11847_v11  ;;  %7477 = vmatpush1.bf16.msra.mxu1 %v11850_v28  ;;  %v11912_v11 = vld [vmem:[#allocation10 + $0x2cc] ss:$16 sps:$4 sm:$0xff]   ;;  %v11907_v28 = vld [vmem:[#allocation10 + $0x2c0] ss:$16 sps:$4 sm:$0xff]  }
 0xbbd   :  { %7396 = vmatprep.subr.bf16.mxu0 %v11855_v41  ;;  %7478 = vmatprep.subr.bf16.mxu1 %v11858_v59  ;;  %v11910_v41 = vld [vmem:[#allocation10 + $0x2c8] ss:$16 sps:$4 sm:$0xff]   ;;  %v11915_v59 = vld [vmem:[#allocation10 + $0x2e4] ss:$16 sps:$4 sm:$0xff]  }
 0xbc0   :  { %7397 = vmatpush1.bf16.msra.mxu0 %v11853_v2  ;;  %7479 = vmatpush1.bf16.msra.mxu1 %v11856_v7  ;;  %v11918_v2 = vld [vmem:[#allocation10 + $0x2ec] ss:$16 sps:$4 sm:$0xff]   ;;  %v11913_v7 = vld [vmem:[#allocation10 + $0x2e0] ss:$16 sps:$4 sm:$0xff]  }
 0xbc1   :  { %7398 = vmatprep.subr.bf16.mxu0 %v11861_v12  ;;  %7480 = vmatprep.subr.bf16.mxu1 %v11864_v1  ;;  %v11916_v12 = vld [vmem:[#allocation10 + $0x2e8] ss:$16 sps:$4 sm:$0xff]   ;;  %v11921_v1 = vld [vmem:[#allocation10 + $0x304] ss:$16 sps:$4 sm:$0xff]  }
 0xbc4   :  { %7399 = vmatpush1.bf16.msra.mxu0 %v11859_v15  ;;  %7481 = vmatpush1.bf16.msra.mxu1 %v11862_v3  ;;  %v11924_v15 = vld [vmem:[#allocation10 + $0x30c] ss:$16 sps:$4 sm:$0xff]   ;;  %v11919_v3 = vld [vmem:[#allocation10 + $0x300] ss:$16 sps:$4 sm:$0xff]  }
 0xbc5   :  { %7400 = vmatprep.subr.bf16.mxu0 %v11867_v39  ;;  %7482 = vmatprep.subr.bf16.mxu1 %v11870_v56  ;;  %v11922_v39 = vld [vmem:[#allocation10 + $0x308] ss:$16 sps:$4 sm:$0xff]   ;;  %v11927_v56 = vld [vmem:[#allocation10 + $0x324] ss:$16 sps:$4 sm:$0xff]  }
 0xbc8   :  { %7401 = vmatpush1.bf16.msra.mxu0 %v11865_v19  ;;  %7483 = vmatpush1.bf16.msra.mxu1 %v11868_v36  ;;  %v11930_v19 = vld [vmem:[#allocation10 + $0x32c] ss:$16 sps:$4 sm:$0xff]   ;;  %v11925_v36 = vld [vmem:[#allocation10 + $0x320] ss:$16 sps:$4 sm:$0xff]  }
 0xbc9   :  { %7411 = vmatprep.subr.bf16.mxu0 %v11873_v63  ;;  %7493 = vmatprep.subr.bf16.mxu1 %v11876_v50  ;;  %v11928_v63 = vld [vmem:[#allocation10 + $0x328] ss:$16 sps:$4 sm:$0xff]   ;;  %v11933_v50 = vld [vmem:[#allocation10 + $0x344] ss:$16 sps:$4 sm:$0xff]  }
 0xc5e   :  { %v6483_v61 = vpop.f32.mrb[76].mxu0  ;;  %v14344_v0 = vpop.f32.mrb[76].mxu1 }
 0xc5f   :  { %v11068_v13 = vadd.f32 %v6483_v61, %v5751_v4  ;;  %v6485_v38 = vpop.f32.mrb[77].mxu0  ;;  %v6567_v45 = vpop.f32.mrb[77].mxu1  ;;  %v11936_v4 = vld [vmem:[#allocation10 + $0x34c] ss:$16 sps:$4 sm:$0xff]   ;;  %v11939_v61 = vld [vmem:[#allocation10 + $0x364] ss:$16 sps:$4 sm:$0xff]  }
 0xc60   :  { %v11069_v10 = vadd.f32 %v6485_v38, %v5755_v53  ;;  %v11071_v40 = vadd.f32 %v6567_v45, %v5763_v14  ;;  %v6487_v42 = vpop.f32.mrb[78].mxu0  ;;  %v6569_v21 = vpop.f32.mrb[78].mxu1  ;;  %v11931_v53 = vld [vmem:[#allocation10 + $0x340] ss:$16 sps:$4 sm:$0xff]   ;;  %v11934_v14 = vld [vmem:[#allocation10 + $0x348] ss:$16 sps:$4 sm:$0xff]  }
 0xc61   :  { %v6572_v22 = vmax.f32 %v11068_v13, 0.0  ;;  %v6488_v23 = vpop.f32.mrb[79].mxu0  ;;  %v6570_v24 = vpop.f32.mrb[79].mxu1  ;;  %v11942_v13 = vld [vmem:[#allocation10 + $0x36c] ss:$16 sps:$4 sm:$0xff]  }
 0xc62   :  { %v6573_v16 = vmax.f32 %v11069_v10, 0.0  ;;  %v6575_v25 = vmax.f32 %v11071_v40, 0.0  ;;  %v11937_v38 = vld [vmem:[#allocation10 + $0x360] ss:$16 sps:$4 sm:$0xff]   ;;  %v11940_v45 = vld [vmem:[#allocation10 + $0x368] ss:$16 sps:$4 sm:$0xff]  }
 0xc63   :  { %v6576_v30 = vpack.c.bf16 %v6572_v22, %v6572_v22  ;;  %v11945_v10 = vld [vmem:[#allocation10 + $0x384] ss:$16 sps:$4 sm:$0xff]   ;;  %v11948_v40 = vld [vmem:[#allocation10 + $0x38c] ss:$16 sps:$4 sm:$0xff]   ;;  %v11943_v42 = vld [vmem:[#allocation10 + $0x380] ss:$16 sps:$4 sm:$0xff]  }
 0xc64   :  { %v6577_v26 = vpack.c.bf16 %v6573_v16, %v6573_v16  ;;  %v6579_v57 = vpack.c.bf16 %v6575_v25, %v6575_v25  ;;  %v11946_v21 = vld [vmem:[#allocation10 + $0x388] ss:$16 sps:$4 sm:$0xff]   ;;  %v11951_v22 = vld [vmem:[#allocation10 + $0x3a4] ss:$16 sps:$4 sm:$0xff]   ;;  %v11954_v23 = vld [vmem:[#allocation10 + $0x3ac] ss:$16 sps:$4 sm:$0xff]   ;;  %v5759_v25 = vrot.slane %v14336_v43, %v14456_v58 }
 0xc65   :  { %v11949_v24 = vld [vmem:[#allocation10 + $0x3a0] ss:$16 sps:$4 sm:$0xff]   ;;  %v11952_v16 = vld [vmem:[#allocation10 + $0x3a8] ss:$16 sps:$4 sm:$0xff]   ;;  %v11969_v43 = vld [vmem:[#allocation11 + $0x4] ss:$16 sps:$4 sm:$0xff]  }
 0xc66   :  { %7402 = vmatprep.mubr.bf16.mxu0 %v6577_v26  ;;  %7484 = vmatprep.mubr.bf16.mxu1 %v6577_v26  ;;  %v11957_v26 = vld [vmem:[#allocation10 + $0x3c4] ss:$16 sps:$4 sm:$0xff]  }
 0xc67   :  { %7403 = vmatmul.mubr.bf16.vlgmr.msra.gmra.mrb[80].mxu0 %v6576_v30  ;;  %7485 = vmatmul.mubr.bf16.vlgmr.msra.gmra.mrb[80].mxu1 %v6576_v30  ;;  %v11958_v30 = vld [vmem:[#allocation10 + $0x3c8] ss:$16 sps:$4 sm:$0xff]  }
 0xc68   :  { %7412 = vmatpush1.bf16.msra.mxu0 %v11871_v27  ;;  %7494 = vmatpush1.bf16.msra.mxu1 %v11874_v29  ;;  %v11960_v27 = vld [vmem:[#allocation10 + $0x3cc] ss:$16 sps:$4 sm:$0xff]   ;;  %v11955_v29 = vld [vmem:[#allocation10 + $0x3c0] ss:$16 sps:$4 sm:$0xff]  }
 0xc69   :  { %7443 = vmatprep.mubr.bf16.mxu0 %v6579_v57  ;;  %7525 = vmatprep.mubr.bf16.mxu1 %v6579_v57  ;;  %v11966_v57 = vld [vmem:[#allocation10 + $0x3ec] ss:$16 sps:$4 sm:$0xff]  }
 0xc6a   :  { %7413 = vmatprep.subr.bf16.mxu0 %v11879_v31  ;;  %7495 = vmatprep.subr.bf16.mxu1 %v11882_v32  ;;  %v11070_v31 = vadd.f32 %v14344_v0, %v5759_v25  ;;  %v11963_v32 = vld [vmem:[#allocation10 + $0x3e4] ss:$16 sps:$4 sm:$0xff]  }
 0xc6b   :  { %v11975_v0 = vld [vmem:[#allocation11 + $0x24] ss:$16 sps:$4 sm:$0xff]  }
 0xc6c   :  { %7414 = vmatpush1.bf16.msra.mxu0 %v11877_v60  ;;  %7496 = vmatpush1.bf16.msra.mxu1 %v11880_v37  ;;  %v11961_v60 = vld [vmem:[#allocation10 + $0x3e0] ss:$16 sps:$4 sm:$0xff]   ;;  %v11964_v37 = vld [vmem:[#allocation10 + $0x3e8] ss:$16 sps:$4 sm:$0xff]   ;;  %v12041_v25 = vld [vmem:[#allocation11 + $0x184] ss:$16 sps:$4 sm:$0xff]  }
 0xc6d   :  { %7415 = vmatprep.subr.bf16.mxu0 %v11885_v44  ;;  %7497 = vmatprep.subr.bf16.mxu1 %v11888_v6  ;;  %v6574_v44 = vmax.f32 %v11070_v31, 0.0  ;;  %v11972_v6 = vld [vmem:[#allocation11 + $0xc] ss:$16 sps:$4 sm:$0xff]  }
 0xc6e   :  { %v12050_v31 = vld [vmem:[#allocation11 + $0x1ac] ss:$16 sps:$4 sm:$0xff]  }
 0xc70   :  { %7416 = vmatpush1.bf16.msra.mxu0 %v11883_v34  ;;  %7498 = vmatpush1.bf16.msra.mxu1 %v11886_v35  ;;  %v11967_v34 = vld [vmem:[#allocation11] ss:$16 sps:$4 sm:$0xff]   ;;  %v11970_v35 = vld [vmem:[#allocation11 + $0x8] ss:$16 sps:$4 sm:$0xff]  }
 0xc71   :  { %7417 = vmatprep.subr.bf16.mxu0 %v11891_v17  ;;  %7499 = vmatprep.subr.bf16.mxu1 %v11894_v18  ;;  %v6578_v17 = vpack.c.bf16 %v6574_v44, %v6574_v44  ;;  %v11978_v18 = vld [vmem:[#allocation11 + $0x2c] ss:$16 sps:$4 sm:$0xff]   ;;  %v12051_v44 = vld [vmem:[#allocation11 + $0x1c0] ss:$16 sps:$4 sm:$0xff]  }
 0xc74   :  { %7418 = vmatpush1.bf16.msra.mxu0 %v11889_v46  ;;  %7500 = vmatpush1.bf16.msra.mxu1 %v11892_v47  ;;  %v11973_v46 = vld [vmem:[#allocation11 + $0x20] ss:$16 sps:$4 sm:$0xff]   ;;  %v11976_v47 = vld [vmem:[#allocation11 + $0x28] ss:$16 sps:$4 sm:$0xff]  }
 0xc75   :  { %7419 = vmatprep.subr.bf16.mxu0 %v11897_v48  ;;  %7501 = vmatprep.subr.bf16.mxu1 %v11900_v49  ;;  %v11981_v48 = vld [vmem:[#allocation11 + $0x44] ss:$16 sps:$4 sm:$0xff]   ;;  %v11984_v49 = vld [vmem:[#allocation11 + $0x4c] ss:$16 sps:$4 sm:$0xff]  }
 0xc78   :  { %7420 = vmatpush1.bf16.msra.mxu0 %v11895_v51  ;;  %7502 = vmatpush1.bf16.msra.mxu1 %v11898_v52  ;;  %v11979_v51 = vld [vmem:[#allocation11 + $0x40] ss:$16 sps:$4 sm:$0xff]   ;;  %v11982_v52 = vld [vmem:[#allocation11 + $0x48] ss:$16 sps:$4 sm:$0xff]  }
 0xc79   :  { %7421 = vmatprep.subr.bf16.mxu0 %v11903_v8  ;;  %7503 = vmatprep.subr.bf16.mxu1 %v11906_v62  ;;  %v11987_v8 = vld [vmem:[#allocation11 + $0x64] ss:$16 sps:$4 sm:$0xff]   ;;  %v11990_v62 = vld [vmem:[#allocation11 + $0x6c] ss:$16 sps:$4 sm:$0xff]  }
 0xc7c   :  { %7422 = vmatpush1.bf16.msra.mxu0 %v11901_v5  ;;  %7504 = vmatpush1.bf16.msra.mxu1 %v11904_v9  ;;  %v11985_v5 = vld [vmem:[#allocation11 + $0x60] ss:$16 sps:$4 sm:$0xff]   ;;  %v11988_v9 = vld [vmem:[#allocation11 + $0x68] ss:$16 sps:$4 sm:$0xff]  }
 0xc7d   :  { %7423 = vmatprep.subr.bf16.mxu0 %v11909_v55  ;;  %7505 = vmatprep.subr.bf16.mxu1 %v11912_v11  ;;  %v11993_v55 = vld [vmem:[#allocation11 + $0x84] ss:$16 sps:$4 sm:$0xff]   ;;  %v11996_v11 = vld [vmem:[#allocation11 + $0x8c] ss:$16 sps:$4 sm:$0xff]  }
 0xc80   :  { %7424 = vmatpush1.bf16.msra.mxu0 %v11907_v28  ;;  %7506 = vmatpush1.bf16.msra.mxu1 %v11910_v41  ;;  %v11991_v28 = vld [vmem:[#allocation11 + $0x80] ss:$16 sps:$4 sm:$0xff]   ;;  %v11994_v41 = vld [vmem:[#allocation11 + $0x88] ss:$16 sps:$4 sm:$0xff]  }
 0xc81   :  { %7425 = vmatprep.subr.bf16.mxu0 %v11915_v59  ;;  %7507 = vmatprep.subr.bf16.mxu1 %v11918_v2  ;;  %v11999_v59 = vld [vmem:[#allocation11 + $0xa4] ss:$16 sps:$4 sm:$0xff]   ;;  %v12002_v2 = vld [vmem:[#allocation11 + $0xac] ss:$16 sps:$4 sm:$0xff]  }
 0xc84   :  { %7426 = vmatpush1.bf16.msra.mxu0 %v11913_v7  ;;  %7508 = vmatpush1.bf16.msra.mxu1 %v11916_v12  ;;  %v11997_v7 = vld [vmem:[#allocation11 + $0xa0] ss:$16 sps:$4 sm:$0xff]   ;;  %v12000_v12 = vld [vmem:[#allocation11 + $0xa8] ss:$16 sps:$4 sm:$0xff]  }
 0xc85   :  { %7427 = vmatprep.subr.bf16.mxu0 %v11921_v1  ;;  %7509 = vmatprep.subr.bf16.mxu1 %v11924_v15  ;;  %v12005_v1 = vld [vmem:[#allocation11 + $0xc4] ss:$16 sps:$4 sm:$0xff]   ;;  %v12008_v15 = vld [vmem:[#allocation11 + $0xcc] ss:$16 sps:$4 sm:$0xff]  }
 0xc88   :  { %7428 = vmatpush1.bf16.msra.mxu0 %v11919_v3  ;;  %7510 = vmatpush1.bf16.msra.mxu1 %v11922_v39  ;;  %v12003_v3 = vld [vmem:[#allocation11 + $0xc0] ss:$16 sps:$4 sm:$0xff]   ;;  %v12006_v39 = vld [vmem:[#allocation11 + $0xc8] ss:$16 sps:$4 sm:$0xff]  }
 0xc89   :  { %7429 = vmatprep.subr.bf16.mxu0 %v11927_v56  ;;  %7511 = vmatprep.subr.bf16.mxu1 %v11930_v19  ;;  %v12011_v56 = vld [vmem:[#allocation11 + $0xe4] ss:$16 sps:$4 sm:$0xff]   ;;  %v12014_v19 = vld [vmem:[#allocation11 + $0xec] ss:$16 sps:$4 sm:$0xff]  }
 0xc8c   :  { %7430 = vmatpush1.bf16.msra.mxu0 %v11925_v36  ;;  %7512 = vmatpush1.bf16.msra.mxu1 %v11928_v63  ;;  %v12009_v36 = vld [vmem:[#allocation11 + $0xe0] ss:$16 sps:$4 sm:$0xff]   ;;  %v12012_v63 = vld [vmem:[#allocation11 + $0xe8] ss:$16 sps:$4 sm:$0xff]  }
 0xc8d   :  { %7431 = vmatprep.subr.bf16.mxu0 %v11933_v50  ;;  %7513 = vmatprep.subr.bf16.mxu1 %v11936_v4  ;;  %v12017_v50 = vld [vmem:[#allocation11 + $0x104] ss:$16 sps:$4 sm:$0xff]   ;;  %v12020_v4 = vld [vmem:[#allocation11 + $0x10c] ss:$16 sps:$4 sm:$0xff]  }
 0xc90   :  { %7432 = vmatpush1.bf16.msra.mxu0 %v11931_v53  ;;  %7514 = vmatpush1.bf16.msra.mxu1 %v11934_v14  ;;  %v12015_v53 = vld [vmem:[#allocation11 + $0x100] ss:$16 sps:$4 sm:$0xff]   ;;  %v12018_v14 = vld [vmem:[#allocation11 + $0x108] ss:$16 sps:$4 sm:$0xff]  }
 0xc91   :  { %7433 = vmatprep.subr.bf16.mxu0 %v11939_v61  ;;  %7515 = vmatprep.subr.bf16.mxu1 %v11942_v13  ;;  %v12023_v61 = vld [vmem:[#allocation11 + $0x124] ss:$16 sps:$4 sm:$0xff]   ;;  %v12026_v13 = vld [vmem:[#allocation11 + $0x12c] ss:$16 sps:$4 sm:$0xff]  }
 0xc94   :  { %7434 = vmatpush1.bf16.msra.mxu0 %v11937_v38  ;;  %7516 = vmatpush1.bf16.msra.mxu1 %v11940_v45  ;;  %v12021_v38 = vld [vmem:[#allocation11 + $0x120] ss:$16 sps:$4 sm:$0xff]   ;;  %v12024_v45 = vld [vmem:[#allocation11 + $0x128] ss:$16 sps:$4 sm:$0xff]  }
 0xc95   :  { %7435 = vmatprep.subr.bf16.mxu0 %v11945_v10  ;;  %7517 = vmatprep.subr.bf16.mxu1 %v11948_v40  ;;  %v12029_v10 = vld [vmem:[#allocation11 + $0x144] ss:$16 sps:$4 sm:$0xff]   ;;  %v12032_v40 = vld [vmem:[#allocation11 + $0x14c] ss:$16 sps:$4 sm:$0xff]  }
 0xc98   :  { %7436 = vmatpush1.bf16.msra.mxu0 %v11943_v42  ;;  %7518 = vmatpush1.bf16.msra.mxu1 %v11946_v21  ;;  %v12027_v42 = vld [vmem:[#allocation11 + $0x140] ss:$16 sps:$4 sm:$0xff]   ;;  %v12030_v21 = vld [vmem:[#allocation11 + $0x148] ss:$16 sps:$4 sm:$0xff]  }
 0xc99   :  { %7437 = vmatprep.subr.bf16.mxu0 %v11951_v22  ;;  %7519 = vmatprep.subr.bf16.mxu1 %v11954_v23  ;;  %v12035_v22 = vld [vmem:[#allocation11 + $0x164] ss:$16 sps:$4 sm:$0xff]   ;;  %v12038_v23 = vld [vmem:[#allocation11 + $0x16c] ss:$16 sps:$4 sm:$0xff]  }
 0xc9c   :  { %7438 = vmatpush1.bf16.msra.mxu0 %v11949_v24  ;;  %7520 = vmatpush1.bf16.msra.mxu1 %v11952_v16  ;;  %v12033_v24 = vld [vmem:[#allocation11 + $0x160] ss:$16 sps:$4 sm:$0xff]   ;;  %v12036_v16 = vld [vmem:[#allocation11 + $0x168] ss:$16 sps:$4 sm:$0xff]  }
 0xc9d   :  { %7439 = vmatprep.subr.bf16.mxu0 %v11957_v26  ;;  %7521 = vmatprep.subr.bf16.mxu1 %v11960_v27  ;;  %v12044_v26 = vld [vmem:[#allocation11 + $0x18c] ss:$16 sps:$4 sm:$0xff]   ;;  %v12039_v27 = vld [vmem:[#allocation11 + $0x180] ss:$16 sps:$4 sm:$0xff]  }
 0xca0   :  { %7440 = vmatpush1.bf16.msra.mxu0 %v11955_v29  ;;  %7522 = vmatpush1.bf16.msra.mxu1 %v11958_v30  ;;  %v12042_v29 = vld [vmem:[#allocation11 + $0x188] ss:$16 sps:$4 sm:$0xff]   ;;  %v12047_v30 = vld [vmem:[#allocation11 + $0x1a4] ss:$16 sps:$4 sm:$0xff]  }
 0xca1   :  { %7441 = vmatprep.subr.bf16.mxu0 %v11963_v32  ;;  %7523 = vmatprep.subr.bf16.mxu1 %v11966_v57  ;;  %v12045_v32 = vld [vmem:[#allocation11 + $0x1a0] ss:$16 sps:$4 sm:$0xff]   ;;  %v12048_v57 = vld [vmem:[#allocation11 + $0x1a8] ss:$16 sps:$4 sm:$0xff]  }
 0xca4   :  { %7442 = vmatpush1.bf16.msra.mxu0 %v11961_v60  ;;  %7524 = vmatpush1.bf16.msra.mxu1 %v11964_v37  ;;  %v12053_v60 = vld [vmem:[#allocation11 + $0x1c4] ss:$16 sps:$4 sm:$0xff]   ;;  %v12056_v37 = vld [vmem:[#allocation11 + $0x1cc] ss:$16 sps:$4 sm:$0xff]  }
 0xca5   :  { %8332 = vmatprep.subr.bf16.mxu0 %v11969_v43  ;;  %8414 = vmatprep.subr.bf16.mxu1 %v11972_v6  ;;  %v12054_v43 = vld [vmem:[#allocation11 + $0x1c8] ss:$16 sps:$4 sm:$0xff]   ;;  %v12059_v6 = vld [vmem:[#allocation11 + $0x1e4] ss:$16 sps:$4 sm:$0xff]  }
 0xca7   :  { %7444 = vmatmul.mubr.bf16.vlgmr.msra.gmra.mrb[80].mxu0 %v6578_v17  ;;  %7526 = vmatmul.mubr.bf16.vlgmr.msra.gmra.mrb[80].mxu1 %v6578_v17  ;;  %v12060_v17 = vld [vmem:[#allocation11 + $0x1e8] ss:$16 sps:$4 sm:$0xff]  }
 0xca8   :  { %8333 = vmatpush1.bf16.msra.mxu0 %v11967_v34  ;;  %8415 = vmatpush1.bf16.msra.mxu1 %v11970_v35  ;;  %v12062_v34 = vld [vmem:[#allocation11 + $0x1ec] ss:$16 sps:$4 sm:$0xff]   ;;  %v12057_v35 = vld [vmem:[#allocation11 + $0x1e0] ss:$16 sps:$4 sm:$0xff]  }
 0xca9   :  { %8334 = vmatprep.subr.bf16.mxu0 %v11975_v0  ;;  %8416 = vmatprep.subr.bf16.mxu1 %v11978_v18  ;;  %v12065_v0 = vld [vmem:[#allocation11 + $0x204] ss:$16 sps:$4 sm:$0xff]   ;;  %v12068_v18 = vld [vmem:[#allocation11 + $0x20c] ss:$16 sps:$4 sm:$0xff]  }
 0xcac   :  { %8335 = vmatpush1.bf16.msra.mxu0 %v11973_v46  ;;  %8417 = vmatpush1.bf16.msra.mxu1 %v11976_v47  ;;  %v14352_v46 = vld [vmem:[%s14399_s11] sm:$0xf] }
 0xcad   :  { %8336 = vmatprep.subr.bf16.mxu0 %v11981_v48  ;;  %8418 = vmatprep.subr.bf16.mxu1 %v11984_v49  ;;  %v6713_v47 = vrot.slane %v14352_v46, %v14455_v54  ;;  %v6717_v48 = vrot.slane %v14352_v46, %v14457_v20  ;;  %v6725_v49 = vrot.slane %v14352_v46, %v14458_v33 }
 0xcb0   :  { %8337 = vmatpush1.bf16.msra.mxu0 %v11979_v51  ;;  %8419 = vmatpush1.bf16.msra.mxu1 %v11982_v52 }
 0xcb1   :  { %8338 = vmatprep.subr.bf16.mxu0 %v11987_v8  ;;  %8420 = vmatprep.subr.bf16.mxu1 %v11990_v62 }
 0xcb4   :  { %8339 = vmatpush1.bf16.msra.mxu0 %v11985_v5  ;;  %8421 = vmatpush1.bf16.msra.mxu1 %v11988_v9 }
 0xcb5   :  { %8340 = vmatprep.subr.bf16.mxu0 %v11993_v55  ;;  %8422 = vmatprep.subr.bf16.mxu1 %v11996_v11 }
 0xcb8   :  { %8341 = vmatpush1.bf16.msra.mxu0 %v11991_v28  ;;  %8423 = vmatpush1.bf16.msra.mxu1 %v11994_v41 }
 0xcb9   :  { %8342 = vmatprep.subr.bf16.mxu0 %v11999_v59  ;;  %8424 = vmatprep.subr.bf16.mxu1 %v12002_v2 }
 0xcbc   :  { %8343 = vmatpush1.bf16.msra.mxu0 %v11997_v7  ;;  %8425 = vmatpush1.bf16.msra.mxu1 %v12000_v12 }
 0xcbd   :  { %8344 = vmatprep.subr.bf16.mxu0 %v12005_v1  ;;  %8426 = vmatprep.subr.bf16.mxu1 %v12008_v15  ;;  %v12063_v15 = vld [vmem:[#allocation11 + $0x200] ss:$16 sps:$4 sm:$0xff]  }
 0xcc0   :  { %8345 = vmatpush1.bf16.msra.mxu0 %v12003_v3  ;;  %8427 = vmatpush1.bf16.msra.mxu1 %v12006_v39  ;;  %v12066_v3 = vld [vmem:[#allocation11 + $0x208] ss:$16 sps:$4 sm:$0xff]  }
 0xcc1   :  { %8346 = vmatprep.subr.bf16.mxu0 %v12011_v56  ;;  %8428 = vmatprep.subr.bf16.mxu1 %v12014_v19  ;;  %v12071_v56 = vld [vmem:[#allocation11 + $0x224] ss:$16 sps:$4 sm:$0xff]   ;;  %v12074_v19 = vld [vmem:[#allocation11 + $0x22c] ss:$16 sps:$4 sm:$0xff]  }
 0xcc4   :  { %8347 = vmatpush1.bf16.msra.mxu0 %v12009_v36  ;;  %8429 = vmatpush1.bf16.msra.mxu1 %v12012_v63  ;;  %v12069_v63 = vld [vmem:[#allocation11 + $0x220] ss:$16 sps:$4 sm:$0xff]  }
 0xcc5   :  { %8348 = vmatprep.subr.bf16.mxu0 %v12017_v50  ;;  %8430 = vmatprep.subr.bf16.mxu1 %v12020_v4  ;;  %v12072_v50 = vld [vmem:[#allocation11 + $0x228] ss:$16 sps:$4 sm:$0xff]   ;;  %v12077_v4 = vld [vmem:[#allocation11 + $0x244] ss:$16 sps:$4 sm:$0xff]  }
 0xcc8   :  { %8349 = vmatpush1.bf16.msra.mxu0 %v12015_v53  ;;  %8431 = vmatpush1.bf16.msra.mxu1 %v12018_v14  ;;  %v12080_v53 = vld [vmem:[#allocation11 + $0x24c] ss:$16 sps:$4 sm:$0xff]   ;;  %v12075_v14 = vld [vmem:[#allocation11 + $0x240] ss:$16 sps:$4 sm:$0xff]  }
 0xcc9   :  { %8350 = vmatprep.subr.bf16.mxu0 %v12023_v61  ;;  %8432 = vmatprep.subr.bf16.mxu1 %v12026_v13  ;;  %v12078_v61 = vld [vmem:[#allocation11 + $0x248] ss:$16 sps:$4 sm:$0xff]   ;;  %v12083_v13 = vld [vmem:[#allocation11 + $0x264] ss:$16 sps:$4 sm:$0xff]  }
 0xccc   :  { %8351 = vmatpush1.bf16.msra.mxu0 %v12021_v38  ;;  %8433 = vmatpush1.bf16.msra.mxu1 %v12024_v45  ;;  %v12086_v38 = vld [vmem:[#allocation11 + $0x26c] ss:$16 sps:$4 sm:$0xff]   ;;  %v12081_v45 = vld [vmem:[#allocation11 + $0x260] ss:$16 sps:$4 sm:$0xff]  }
 0xccd   :  { %8352 = vmatprep.subr.bf16.mxu0 %v12029_v10  ;;  %8434 = vmatprep.subr.bf16.mxu1 %v12032_v40  ;;  %v12084_v10 = vld [vmem:[#allocation11 + $0x268] ss:$16 sps:$4 sm:$0xff]   ;;  %v12089_v40 = vld [vmem:[#allocation11 + $0x284] ss:$16 sps:$4 sm:$0xff]  }
 0xcd0   :  { %8353 = vmatpush1.bf16.msra.mxu0 %v12027_v42  ;;  %8435 = vmatpush1.bf16.msra.mxu1 %v12030_v21  ;;  %v12092_v42 = vld [vmem:[#allocation11 + $0x28c] ss:$16 sps:$4 sm:$0xff]   ;;  %v12087_v21 = vld [vmem:[#allocation11 + $0x280] ss:$16 sps:$4 sm:$0xff]  }
 0xcd1   :  { %8354 = vmatprep.subr.bf16.mxu0 %v12035_v22  ;;  %8436 = vmatprep.subr.bf16.mxu1 %v12038_v23  ;;  %v12090_v22 = vld [vmem:[#allocation11 + $0x288] ss:$16 sps:$4 sm:$0xff]   ;;  %v12095_v23 = vld [vmem:[#allocation11 + $0x2a4] ss:$16 sps:$4 sm:$0xff]  }
 0xcd4   :  { %8355 = vmatpush1.bf16.msra.mxu0 %v12033_v24  ;;  %8437 = vmatpush1.bf16.msra.mxu1 %v12036_v16  ;;  %v12098_v24 = vld [vmem:[#allocation11 + $0x2ac] ss:$16 sps:$4 sm:$0xff]   ;;  %v12093_v16 = vld [vmem:[#allocation11 + $0x2a0] ss:$16 sps:$4 sm:$0xff]  }
 0xcd5   :  { %8356 = vmatprep.subr.bf16.mxu0 %v12041_v25  ;;  %8438 = vmatprep.subr.bf16.mxu1 %v12044_v26  ;;  %v12096_v25 = vld [vmem:[#allocation11 + $0x2a8] ss:$16 sps:$4 sm:$0xff]   ;;  %v12101_v26 = vld [vmem:[#allocation11 + $0x2c4] ss:$16 sps:$4 sm:$0xff]  }
 0xcd8   :  { %8357 = vmatpush1.bf16.msra.mxu0 %v12039_v27  ;;  %8439 = vmatpush1.bf16.msra.mxu1 %v12042_v29  ;;  %v12104_v27 = vld [vmem:[#allocation11 + $0x2cc] ss:$16 sps:$4 sm:$0xff]   ;;  %v12099_v29 = vld [vmem:[#allocation11 + $0x2c0] ss:$16 sps:$4 sm:$0xff]  }
 0xcd9   :  { %8358 = vmatprep.subr.bf16.mxu0 %v12047_v30  ;;  %8440 = vmatprep.subr.bf16.mxu1 %v12050_v31  ;;  %v12102_v30 = vld [vmem:[#allocation11 + $0x2c8] ss:$16 sps:$4 sm:$0xff]   ;;  %v12107_v31 = vld [vmem:[#allocation11 + $0x2e4] ss:$16 sps:$4 sm:$0xff]  }
 0xcdc   :  { %8359 = vmatpush1.bf16.msra.mxu0 %v12045_v32  ;;  %8441 = vmatpush1.bf16.msra.mxu1 %v12048_v57  ;;  %v12110_v32 = vld [vmem:[#allocation11 + $0x2ec] ss:$16 sps:$4 sm:$0xff]   ;;  %v12105_v57 = vld [vmem:[#allocation11 + $0x2e0] ss:$16 sps:$4 sm:$0xff]  }
 0xcdd   :  { %8360 = vmatprep.subr.bf16.mxu0 %v12053_v60  ;;  %8442 = vmatprep.subr.bf16.mxu1 %v12056_v37  ;;  %v12108_v60 = vld [vmem:[#allocation11 + $0x2e8] ss:$16 sps:$4 sm:$0xff]   ;;  %v12113_v37 = vld [vmem:[#allocation11 + $0x304] ss:$16 sps:$4 sm:$0xff]  }
 0xce0   :  { %8361 = vmatpush1.bf16.msra.mxu0 %v12051_v44  ;;  %8443 = vmatpush1.bf16.msra.mxu1 %v12054_v43  ;;  %v12116_v44 = vld [vmem:[#allocation11 + $0x30c] ss:$16 sps:$4 sm:$0xff]   ;;  %v12111_v43 = vld [vmem:[#allocation11 + $0x300] ss:$16 sps:$4 sm:$0xff]  }
 0xce1   :  { %8362 = vmatprep.subr.bf16.mxu0 %v12059_v6  ;;  %8444 = vmatprep.subr.bf16.mxu1 %v12062_v34  ;;  %v12114_v6 = vld [vmem:[#allocation11 + $0x308] ss:$16 sps:$4 sm:$0xff]   ;;  %v12119_v34 = vld [vmem:[#allocation11 + $0x324] ss:$16 sps:$4 sm:$0xff]  }
 0xce4   :  { %8363 = vmatpush1.bf16.msra.mxu0 %v12057_v35  ;;  %8445 = vmatpush1.bf16.msra.mxu1 %v12060_v17  ;;  %v12122_v35 = vld [vmem:[#allocation11 + $0x32c] ss:$16 sps:$4 sm:$0xff]   ;;  %v12117_v17 = vld [vmem:[#allocation11 + $0x320] ss:$16 sps:$4 sm:$0xff]  }
 0xce5   :  { %8373 = vmatprep.subr.bf16.mxu0 %v12065_v0  ;;  %8455 = vmatprep.subr.bf16.mxu1 %v12068_v18  ;;  %v12120_v0 = vld [vmem:[#allocation11 + $0x328] ss:$16 sps:$4 sm:$0xff]   ;;  %v12125_v18 = vld [vmem:[#allocation11 + $0x344] ss:$16 sps:$4 sm:$0xff]  }
 0xd7a   :  { %v7445_v51 = vpop.f32.mrb[80].mxu0  ;;  %v14360_v52 = vpop.f32.mrb[80].mxu1 }
 0xd7b   :  { %v11072_v8 = vadd.f32 %v7445_v51, %v6713_v47  ;;  %v7447_v62 = vpop.f32.mrb[81].mxu0  ;;  %v7529_v5 = vpop.f32.mrb[81].mxu1  ;;  %v12128_v47 = vld [vmem:[#allocation11 + $0x34c] ss:$16 sps:$4 sm:$0xff]   ;;  %v12131_v51 = vld [vmem:[#allocation11 + $0x364] ss:$16 sps:$4 sm:$0xff]  }
 0xd7c   :  { %v11073_v9 = vadd.f32 %v7447_v62, %v6717_v48  ;;  %v11075_v55 = vadd.f32 %v7529_v5, %v6725_v49  ;;  %v7449_v11 = vpop.f32.mrb[82].mxu0  ;;  %v7531_v28 = vpop.f32.mrb[82].mxu1  ;;  %v12123_v48 = vld [vmem:[#allocation11 + $0x340] ss:$16 sps:$4 sm:$0xff]   ;;  %v12126_v49 = vld [vmem:[#allocation11 + $0x348] ss:$16 sps:$4 sm:$0xff]  }
 0xd7d   :  { %v7534_v41 = vmax.f32 %v11072_v8, 0.0  ;;  %v7450_v59 = vpop.f32.mrb[83].mxu0  ;;  %v7532_v2 = vpop.f32.mrb[83].mxu1  ;;  %v12134_v8 = vld [vmem:[#allocation11 + $0x36c] ss:$16 sps:$4 sm:$0xff]  }
 0xd7e   :  { %v7535_v7 = vmax.f32 %v11073_v9, 0.0  ;;  %v7537_v12 = vmax.f32 %v11075_v55, 0.0  ;;  %v12129_v62 = vld [vmem:[#allocation11 + $0x360] ss:$16 sps:$4 sm:$0xff]   ;;  %v12132_v5 = vld [vmem:[#allocation11 + $0x368] ss:$16 sps:$4 sm:$0xff]  }
 0xd7f   :  { %v7538_v39 = vpack.c.bf16 %v7534_v41, %v7534_v41  ;;  %v12137_v9 = vld [vmem:[#allocation11 + $0x384] ss:$16 sps:$4 sm:$0xff]   ;;  %v12140_v55 = vld [vmem:[#allocation11 + $0x38c] ss:$16 sps:$4 sm:$0xff]   ;;  %v12135_v11 = vld [vmem:[#allocation11 + $0x380] ss:$16 sps:$4 sm:$0xff]  }
 0xd80   :  { %v7539_v1 = vpack.c.bf16 %v7535_v7, %v7535_v7  ;;  %v7541_v36 = vpack.c.bf16 %v7537_v12, %v7537_v12  ;;  %v12138_v28 = vld [vmem:[#allocation11 + $0x388] ss:$16 sps:$4 sm:$0xff]   ;;  %v12143_v41 = vld [vmem:[#allocation11 + $0x3a4] ss:$16 sps:$4 sm:$0xff]   ;;  %v12146_v59 = vld [vmem:[#allocation11 + $0x3ac] ss:$16 sps:$4 sm:$0xff]   ;;  %v6721_v12 = vrot.slane %v14352_v46, %v14456_v58 }
 0xd81   :  { %v12141_v2 = vld [vmem:[#allocation11 + $0x3a0] ss:$16 sps:$4 sm:$0xff]   ;;  %v12144_v7 = vld [vmem:[#allocation11 + $0x3a8] ss:$16 sps:$4 sm:$0xff]  }
 0xd82   :  { %8364 = vmatprep.mubr.bf16.mxu0 %v7539_v1  ;;  %8446 = vmatprep.mubr.bf16.mxu1 %v7539_v1  ;;  %v12149_v1 = vld [vmem:[#allocation11 + $0x3c4] ss:$16 sps:$4 sm:$0xff]   ;;  %v12161_v46 = vld [vmem:[#allocation14 + $0x4] ss:$16 sps:$4 sm:$0xff]  }
 0xd83   :  { %8365 = vmatmul.mubr.bf16.vlgmr.msra.gmra.mrb[84].mxu0 %v7538_v39  ;;  %8447 = vmatmul.mubr.bf16.vlgmr.msra.gmra.mrb[84].mxu1 %v7538_v39  ;;  %v12150_v39 = vld [vmem:[#allocation11 + $0x3c8] ss:$16 sps:$4 sm:$0xff]  }
 0xd84   :  { %8374 = vmatpush1.bf16.msra.mxu0 %v12063_v15  ;;  %8456 = vmatpush1.bf16.msra.mxu1 %v12066_v3  ;;  %v12152_v15 = vld [vmem:[#allocation11 + $0x3cc] ss:$16 sps:$4 sm:$0xff]   ;;  %v12147_v3 = vld [vmem:[#allocation11 + $0x3c0] ss:$16 sps:$4 sm:$0xff]  }
 0xd85   :  { %8405 = vmatprep.mubr.bf16.mxu0 %v7541_v36  ;;  %8487 = vmatprep.mubr.bf16.mxu1 %v7541_v36  ;;  %v12158_v36 = vld [vmem:[#allocation11 + $0x3ec] ss:$16 sps:$4 sm:$0xff]  }
 0xd86   :  { %8375 = vmatprep.subr.bf16.mxu0 %v12071_v56  ;;  %8457 = vmatprep.subr.bf16.mxu1 %v12074_v19  ;;  %v11074_v56 = vadd.f32 %v14360_v52, %v6721_v12  ;;  %v12155_v19 = vld [vmem:[#allocation11 + $0x3e4] ss:$16 sps:$4 sm:$0xff]   ;;  %v12167_v52 = vld [vmem:[#allocation14 + $0x24] ss:$16 sps:$4 sm:$0xff]  }
 0xd87   :  { %v12233_v12 = vld [vmem:[#allocation14 + $0x184] ss:$16 sps:$4 sm:$0xff]  }
 0xd88   :  { %8376 = vmatpush1.bf16.msra.mxu0 %v12069_v63  ;;  %8458 = vmatpush1.bf16.msra.mxu1 %v12072_v50  ;;  %v12153_v63 = vld [vmem:[#allocation11 + $0x3e0] ss:$16 sps:$4 sm:$0xff]   ;;  %v12156_v50 = vld [vmem:[#allocation11 + $0x3e8] ss:$16 sps:$4 sm:$0xff]  }
 0xd89   :  { %8377 = vmatprep.subr.bf16.mxu0 %v12077_v4  ;;  %8459 = vmatprep.subr.bf16.mxu1 %v12080_v53  ;;  %v7536_v4 = vmax.f32 %v11074_v56, 0.0  ;;  %v12164_v53 = vld [vmem:[#allocation14 + $0xc] ss:$16 sps:$4 sm:$0xff]  }
 0xd8a   :  { %v12242_v56 = vld [vmem:[#allocation14 + $0x1ac] ss:$16 sps:$4 sm:$0xff]  }
 0xd8c   :  { %8378 = vmatpush1.bf16.msra.mxu0 %v12075_v14  ;;  %8460 = vmatpush1.bf16.msra.mxu1 %v12078_v61  ;;  %v12159_v14 = vld [vmem:[#allocation14] ss:$16 sps:$4 sm:$0xff]   ;;  %v12162_v61 = vld [vmem:[#allocation14 + $0x8] ss:$16 sps:$4 sm:$0xff]  }
 0xd8d   :  { %8379 = vmatprep.subr.bf16.mxu0 %v12083_v13  ;;  %8461 = vmatprep.subr.bf16.mxu1 %v12086_v38  ;;  %v7540_v13 = vpack.c.bf16 %v7536_v4, %v7536_v4  ;;  %v12170_v38 = vld [vmem:[#allocation14 + $0x2c] ss:$16 sps:$4 sm:$0xff]   ;;  %v12243_v4 = vld [vmem:[#allocation14 + $0x1c0] ss:$16 sps:$4 sm:$0xff]  }
 0xd90   :  { %8380 = vmatpush1.bf16.msra.mxu0 %v12081_v45  ;;  %8462 = vmatpush1.bf16.msra.mxu1 %v12084_v10  ;;  %v12165_v45 = vld [vmem:[#allocation14 + $0x20] ss:$16 sps:$4 sm:$0xff]   ;;  %v12168_v10 = vld [vmem:[#allocation14 + $0x28] ss:$16 sps:$4 sm:$0xff]  }
 0xd91   :  { %8381 = vmatprep.subr.bf16.mxu0 %v12089_v40  ;;  %8463 = vmatprep.subr.bf16.mxu1 %v12092_v42  ;;  %v12173_v40 = vld [vmem:[#allocation14 + $0x44] ss:$16 sps:$4 sm:$0xff]   ;;  %v12176_v42 = vld [vmem:[#allocation14 + $0x4c] ss:$16 sps:$4 sm:$0xff]  }
 0xd94   :  { %8382 = vmatpush1.bf16.msra.mxu0 %v12087_v21  ;;  %8464 = vmatpush1.bf16.msra.mxu1 %v12090_v22  ;;  %v12171_v21 = vld [vmem:[#allocation14 + $0x40] ss:$16 sps:$4 sm:$0xff]   ;;  %v12174_v22 = vld [vmem:[#allocation14 + $0x48] ss:$16 sps:$4 sm:$0xff]  }
 0xd95   :  { %8383 = vmatprep.subr.bf16.mxu0 %v12095_v23  ;;  %8465 = vmatprep.subr.bf16.mxu1 %v12098_v24  ;;  %v12179_v23 = vld [vmem:[#allocation14 + $0x64] ss:$16 sps:$4 sm:$0xff]   ;;  %v12182_v24 = vld [vmem:[#allocation14 + $0x6c] ss:$16 sps:$4 sm:$0xff]  }
 0xd98   :  { %8384 = vmatpush1.bf16.msra.mxu0 %v12093_v16  ;;  %8466 = vmatpush1.bf16.msra.mxu1 %v12096_v25  ;;  %v12177_v16 = vld [vmem:[#allocation14 + $0x60] ss:$16 sps:$4 sm:$0xff]   ;;  %v12180_v25 = vld [vmem:[#allocation14 + $0x68] ss:$16 sps:$4 sm:$0xff]  }
 0xd99   :  { %8385 = vmatprep.subr.bf16.mxu0 %v12101_v26  ;;  %8467 = vmatprep.subr.bf16.mxu1 %v12104_v27  ;;  %v12185_v26 = vld [vmem:[#allocation14 + $0x84] ss:$16 sps:$4 sm:$0xff]   ;;  %v12188_v27 = vld [vmem:[#allocation14 + $0x8c] ss:$16 sps:$4 sm:$0xff]  }
 0xd9c   :  { %8386 = vmatpush1.bf16.msra.mxu0 %v12099_v29  ;;  %8468 = vmatpush1.bf16.msra.mxu1 %v12102_v30  ;;  %v12183_v29 = vld [vmem:[#allocation14 + $0x80] ss:$16 sps:$4 sm:$0xff]   ;;  %v12186_v30 = vld [vmem:[#allocation14 + $0x88] ss:$16 sps:$4 sm:$0xff]  }
 0xd9d   :  { %8387 = vmatprep.subr.bf16.mxu0 %v12107_v31  ;;  %8469 = vmatprep.subr.bf16.mxu1 %v12110_v32  ;;  %v12191_v31 = vld [vmem:[#allocation14 + $0xa4] ss:$16 sps:$4 sm:$0xff]   ;;  %v12194_v32 = vld [vmem:[#allocation14 + $0xac] ss:$16 sps:$4 sm:$0xff]  }
 0xda0   :  { %8388 = vmatpush1.bf16.msra.mxu0 %v12105_v57  ;;  %8470 = vmatpush1.bf16.msra.mxu1 %v12108_v60  ;;  %v12189_v57 = vld [vmem:[#allocation14 + $0xa0] ss:$16 sps:$4 sm:$0xff]   ;;  %v12192_v60 = vld [vmem:[#allocation14 + $0xa8] ss:$16 sps:$4 sm:$0xff]  }
 0xda1   :  { %8389 = vmatprep.subr.bf16.mxu0 %v12113_v37  ;;  %8471 = vmatprep.subr.bf16.mxu1 %v12116_v44  ;;  %v12197_v37 = vld [vmem:[#allocation14 + $0xc4] ss:$16 sps:$4 sm:$0xff]   ;;  %v12200_v44 = vld [vmem:[#allocation14 + $0xcc] ss:$16 sps:$4 sm:$0xff]  }
 0xda4   :  { %8390 = vmatpush1.bf16.msra.mxu0 %v12111_v43  ;;  %8472 = vmatpush1.bf16.msra.mxu1 %v12114_v6  ;;  %v12195_v43 = vld [vmem:[#allocation14 + $0xc0] ss:$16 sps:$4 sm:$0xff]   ;;  %v12198_v6 = vld [vmem:[#allocation14 + $0xc8] ss:$16 sps:$4 sm:$0xff]  }
 0xda5   :  { %8391 = vmatprep.subr.bf16.mxu0 %v12119_v34  ;;  %8473 = vmatprep.subr.bf16.mxu1 %v12122_v35  ;;  %v12203_v34 = vld [vmem:[#allocation14 + $0xe4] ss:$16 sps:$4 sm:$0xff]   ;;  %v12206_v35 = vld [vmem:[#allocation14 + $0xec] ss:$16 sps:$4 sm:$0xff]  }
 0xda8   :  { %8392 = vmatpush1.bf16.msra.mxu0 %v12117_v17  ;;  %8474 = vmatpush1.bf16.msra.mxu1 %v12120_v0  ;;  %v12201_v17 = vld [vmem:[#allocation14 + $0xe0] ss:$16 sps:$4 sm:$0xff]   ;;  %v12204_v0 = vld [vmem:[#allocation14 + $0xe8] ss:$16 sps:$4 sm:$0xff]  }
 0xda9   :  { %8393 = vmatprep.subr.bf16.mxu0 %v12125_v18  ;;  %8475 = vmatprep.subr.bf16.mxu1 %v12128_v47  ;;  %v12209_v18 = vld [vmem:[#allocation14 + $0x104] ss:$16 sps:$4 sm:$0xff]   ;;  %v12212_v47 = vld [vmem:[#allocation14 + $0x10c] ss:$16 sps:$4 sm:$0xff]  }
 0xdac   :  { %8394 = vmatpush1.bf16.msra.mxu0 %v12123_v48  ;;  %8476 = vmatpush1.bf16.msra.mxu1 %v12126_v49  ;;  %v12207_v48 = vld [vmem:[#allocation14 + $0x100] ss:$16 sps:$4 sm:$0xff]   ;;  %v12210_v49 = vld [vmem:[#allocation14 + $0x108] ss:$16 sps:$4 sm:$0xff]  }
 0xdad   :  { %8395 = vmatprep.subr.bf16.mxu0 %v12131_v51  ;;  %8477 = vmatprep.subr.bf16.mxu1 %v12134_v8  ;;  %v12215_v51 = vld [vmem:[#allocation14 + $0x124] ss:$16 sps:$4 sm:$0xff]   ;;  %v12218_v8 = vld [vmem:[#allocation14 + $0x12c] ss:$16 sps:$4 sm:$0xff]  }
 0xdb0   :  { %8396 = vmatpush1.bf16.msra.mxu0 %v12129_v62  ;;  %8478 = vmatpush1.bf16.msra.mxu1 %v12132_v5  ;;  %v12213_v62 = vld [vmem:[#allocation14 + $0x120] ss:$16 sps:$4 sm:$0xff]   ;;  %v12216_v5 = vld [vmem:[#allocation14 + $0x128] ss:$16 sps:$4 sm:$0xff]  }
 0xdb1   :  { %8397 = vmatprep.subr.bf16.mxu0 %v12137_v9  ;;  %8479 = vmatprep.subr.bf16.mxu1 %v12140_v55  ;;  %v12221_v9 = vld [vmem:[#allocation14 + $0x144] ss:$16 sps:$4 sm:$0xff]   ;;  %v12224_v55 = vld [vmem:[#allocation14 + $0x14c] ss:$16 sps:$4 sm:$0xff]  }
 0xdb4   :  { %8398 = vmatpush1.bf16.msra.mxu0 %v12135_v11  ;;  %8480 = vmatpush1.bf16.msra.mxu1 %v12138_v28  ;;  %v12219_v11 = vld [vmem:[#allocation14 + $0x140] ss:$16 sps:$4 sm:$0xff]   ;;  %v12222_v28 = vld [vmem:[#allocation14 + $0x148] ss:$16 sps:$4 sm:$0xff]  }
 0xdb5   :  { %8399 = vmatprep.subr.bf16.mxu0 %v12143_v41  ;;  %8481 = vmatprep.subr.bf16.mxu1 %v12146_v59  ;;  %v12227_v41 = vld [vmem:[#allocation14 + $0x164] ss:$16 sps:$4 sm:$0xff]   ;;  %v12230_v59 = vld [vmem:[#allocation14 + $0x16c] ss:$16 sps:$4 sm:$0xff]  }
 0xdb8   :  { %8400 = vmatpush1.bf16.msra.mxu0 %v12141_v2  ;;  %8482 = vmatpush1.bf16.msra.mxu1 %v12144_v7  ;;  %v12225_v2 = vld [vmem:[#allocation14 + $0x160] ss:$16 sps:$4 sm:$0xff]   ;;  %v12228_v7 = vld [vmem:[#allocation14 + $0x168] ss:$16 sps:$4 sm:$0xff]  }
 0xdb9   :  { %8401 = vmatprep.subr.bf16.mxu0 %v12149_v1  ;;  %8483 = vmatprep.subr.bf16.mxu1 %v12152_v15  ;;  %v12236_v1 = vld [vmem:[#allocation14 + $0x18c] ss:$16 sps:$4 sm:$0xff]   ;;  %v12231_v15 = vld [vmem:[#allocation14 + $0x180] ss:$16 sps:$4 sm:$0xff]  }
 0xdbc   :  { %8402 = vmatpush1.bf16.msra.mxu0 %v12147_v3  ;;  %8484 = vmatpush1.bf16.msra.mxu1 %v12150_v39  ;;  %v12234_v3 = vld [vmem:[#allocation14 + $0x188] ss:$16 sps:$4 sm:$0xff]   ;;  %v12239_v39 = vld [vmem:[#allocation14 + $0x1a4] ss:$16 sps:$4 sm:$0xff]  }
 0xdbd   :  { %8403 = vmatprep.subr.bf16.mxu0 %v12155_v19  ;;  %8485 = vmatprep.subr.bf16.mxu1 %v12158_v36  ;;  %v12237_v19 = vld [vmem:[#allocation14 + $0x1a0] ss:$16 sps:$4 sm:$0xff]   ;;  %v12240_v36 = vld [vmem:[#allocation14 + $0x1a8] ss:$16 sps:$4 sm:$0xff]  }
 0xdc0   :  { %8404 = vmatpush1.bf16.msra.mxu0 %v12153_v63  ;;  %8486 = vmatpush1.bf16.msra.mxu1 %v12156_v50  ;;  %v12245_v63 = vld [vmem:[#allocation14 + $0x1c4] ss:$16 sps:$4 sm:$0xff]   ;;  %v12248_v50 = vld [vmem:[#allocation14 + $0x1cc] ss:$16 sps:$4 sm:$0xff]  }
 0xdc1   :  { %9294 = vmatprep.subr.bf16.mxu0 %v12161_v46  ;;  %9376 = vmatprep.subr.bf16.mxu1 %v12164_v53  ;;  %v12246_v46 = vld [vmem:[#allocation14 + $0x1c8] ss:$16 sps:$4 sm:$0xff]   ;;  %v12251_v53 = vld [vmem:[#allocation14 + $0x1e4] ss:$16 sps:$4 sm:$0xff]  }
 0xdc3   :  { %8406 = vmatmul.mubr.bf16.vlgmr.msra.gmra.mrb[84].mxu0 %v7540_v13  ;;  %8488 = vmatmul.mubr.bf16.vlgmr.msra.gmra.mrb[84].mxu1 %v7540_v13  ;;  %v12252_v13 = vld [vmem:[#allocation14 + $0x1e8] ss:$16 sps:$4 sm:$0xff]  }
 0xdc4   :  { %9295 = vmatpush1.bf16.msra.mxu0 %v12159_v14  ;;  %9377 = vmatpush1.bf16.msra.mxu1 %v12162_v61  ;;  %v12254_v14 = vld [vmem:[#allocation14 + $0x1ec] ss:$16 sps:$4 sm:$0xff]   ;;  %v12249_v61 = vld [vmem:[#allocation14 + $0x1e0] ss:$16 sps:$4 sm:$0xff]  }
 0xdc5   :  { %9296 = vmatprep.subr.bf16.mxu0 %v12167_v52  ;;  %9378 = vmatprep.subr.bf16.mxu1 %v12170_v38  ;;  %v12257_v52 = vld [vmem:[#allocation14 + $0x204] ss:$16 sps:$4 sm:$0xff]   ;;  %v12260_v38 = vld [vmem:[#allocation14 + $0x20c] ss:$16 sps:$4 sm:$0xff]  }
 0xdc8   :  { %9297 = vmatpush1.bf16.msra.mxu0 %v12165_v45  ;;  %9379 = vmatpush1.bf16.msra.mxu1 %v12168_v10  ;;  %v14365_v45 = vld [vmem:[#allocation13] sm:$0xf] }
 0xdc9   :  { %9298 = vmatprep.subr.bf16.mxu0 %v12173_v40  ;;  %9380 = vmatprep.subr.bf16.mxu1 %v12176_v42  ;;  %v7675_v10 = vrot.slane %v14365_v45, %v14455_v54  ;;  %v7679_v40 = vrot.slane %v14365_v45, %v14457_v20  ;;  %v7687_v42 = vrot.slane %v14365_v45, %v14458_v33 }
 0xdcc   :  { %9299 = vmatpush1.bf16.msra.mxu0 %v12171_v21  ;;  %9381 = vmatpush1.bf16.msra.mxu1 %v12174_v22 }
 0xdcd   :  { %9300 = vmatprep.subr.bf16.mxu0 %v12179_v23  ;;  %9382 = vmatprep.subr.bf16.mxu1 %v12182_v24 }
 0xdd0   :  { %9301 = vmatpush1.bf16.msra.mxu0 %v12177_v16  ;;  %9383 = vmatpush1.bf16.msra.mxu1 %v12180_v25 }
 0xdd1   :  { %9302 = vmatprep.subr.bf16.mxu0 %v12185_v26  ;;  %9384 = vmatprep.subr.bf16.mxu1 %v12188_v27 }
 0xdd4   :  { %9303 = vmatpush1.bf16.msra.mxu0 %v12183_v29  ;;  %9385 = vmatpush1.bf16.msra.mxu1 %v12186_v30 }
 0xdd5   :  { %9304 = vmatprep.subr.bf16.mxu0 %v12191_v31  ;;  %9386 = vmatprep.subr.bf16.mxu1 %v12194_v32 }
 0xdd8   :  { %9305 = vmatpush1.bf16.msra.mxu0 %v12189_v57  ;;  %9387 = vmatpush1.bf16.msra.mxu1 %v12192_v60 }
 0xdd9   :  { %9306 = vmatprep.subr.bf16.mxu0 %v12197_v37  ;;  %9388 = vmatprep.subr.bf16.mxu1 %v12200_v44  ;;  %v12255_v44 = vld [vmem:[#allocation14 + $0x200] ss:$16 sps:$4 sm:$0xff]  }
 0xddc   :  { %9307 = vmatpush1.bf16.msra.mxu0 %v12195_v43  ;;  %9389 = vmatpush1.bf16.msra.mxu1 %v12198_v6  ;;  %v12258_v43 = vld [vmem:[#allocation14 + $0x208] ss:$16 sps:$4 sm:$0xff]  }
 0xddd   :  { %9308 = vmatprep.subr.bf16.mxu0 %v12203_v34  ;;  %9390 = vmatprep.subr.bf16.mxu1 %v12206_v35  ;;  %v12263_v34 = vld [vmem:[#allocation14 + $0x224] ss:$16 sps:$4 sm:$0xff]   ;;  %v12266_v35 = vld [vmem:[#allocation14 + $0x22c] ss:$16 sps:$4 sm:$0xff]  }
 0xde0   :  { %9309 = vmatpush1.bf16.msra.mxu0 %v12201_v17  ;;  %9391 = vmatpush1.bf16.msra.mxu1 %v12204_v0  ;;  %v12261_v0 = vld [vmem:[#allocation14 + $0x220] ss:$16 sps:$4 sm:$0xff]  }
 0xde1   :  { %9310 = vmatprep.subr.bf16.mxu0 %v12209_v18  ;;  %9392 = vmatprep.subr.bf16.mxu1 %v12212_v47  ;;  %v12264_v18 = vld [vmem:[#allocation14 + $0x228] ss:$16 sps:$4 sm:$0xff]   ;;  %v12269_v47 = vld [vmem:[#allocation14 + $0x244] ss:$16 sps:$4 sm:$0xff]  }
 0xde4   :  { %9311 = vmatpush1.bf16.msra.mxu0 %v12207_v48  ;;  %9393 = vmatpush1.bf16.msra.mxu1 %v12210_v49  ;;  %v12272_v48 = vld [vmem:[#allocation14 + $0x24c] ss:$16 sps:$4 sm:$0xff]   ;;  %v12267_v49 = vld [vmem:[#allocation14 + $0x240] ss:$16 sps:$4 sm:$0xff]  }
 0xde5   :  { %9312 = vmatprep.subr.bf16.mxu0 %v12215_v51  ;;  %9394 = vmatprep.subr.bf16.mxu1 %v12218_v8  ;;  %v12270_v51 = vld [vmem:[#allocation14 + $0x248] ss:$16 sps:$4 sm:$0xff]   ;;  %v12275_v8 = vld [vmem:[#allocation14 + $0x264] ss:$16 sps:$4 sm:$0xff]  }
 0xde8   :  { %9313 = vmatpush1.bf16.msra.mxu0 %v12213_v62  ;;  %9395 = vmatpush1.bf16.msra.mxu1 %v12216_v5  ;;  %v12278_v62 = vld [vmem:[#allocation14 + $0x26c] ss:$16 sps:$4 sm:$0xff]   ;;  %v12273_v5 = vld [vmem:[#allocation14 + $0x260] ss:$16 sps:$4 sm:$0xff]  }
 0xde9   :  { %9314 = vmatprep.subr.bf16.mxu0 %v12221_v9  ;;  %9396 = vmatprep.subr.bf16.mxu1 %v12224_v55  ;;  %v12276_v9 = vld [vmem:[#allocation14 + $0x268] ss:$16 sps:$4 sm:$0xff]   ;;  %v12281_v55 = vld [vmem:[#allocation14 + $0x284] ss:$16 sps:$4 sm:$0xff]  }
 0xdec   :  { %9315 = vmatpush1.bf16.msra.mxu0 %v12219_v11  ;;  %9397 = vmatpush1.bf16.msra.mxu1 %v12222_v28  ;;  %v12284_v11 = vld [vmem:[#allocation14 + $0x28c] ss:$16 sps:$4 sm:$0xff]   ;;  %v12279_v28 = vld [vmem:[#allocation14 + $0x280] ss:$16 sps:$4 sm:$0xff]  }
 0xded   :  { %9316 = vmatprep.subr.bf16.mxu0 %v12227_v41  ;;  %9398 = vmatprep.subr.bf16.mxu1 %v12230_v59  ;;  %v12282_v41 = vld [vmem:[#allocation14 + $0x288] ss:$16 sps:$4 sm:$0xff]   ;;  %v12287_v59 = vld [vmem:[#allocation14 + $0x2a4] ss:$16 sps:$4 sm:$0xff]  }
 0xdf0   :  { %9317 = vmatpush1.bf16.msra.mxu0 %v12225_v2  ;;  %9399 = vmatpush1.bf16.msra.mxu1 %v12228_v7  ;;  %v12290_v2 = vld [vmem:[#allocation14 + $0x2ac] ss:$16 sps:$4 sm:$0xff]   ;;  %v12285_v7 = vld [vmem:[#allocation14 + $0x2a0] ss:$16 sps:$4 sm:$0xff]  }
 0xdf1   :  { %9318 = vmatprep.subr.bf16.mxu0 %v12233_v12  ;;  %9400 = vmatprep.subr.bf16.mxu1 %v12236_v1  ;;  %v12288_v12 = vld [vmem:[#allocation14 + $0x2a8] ss:$16 sps:$4 sm:$0xff]   ;;  %v12293_v1 = vld [vmem:[#allocation14 + $0x2c4] ss:$16 sps:$4 sm:$0xff]  }
 0xdf4   :  { %9319 = vmatpush1.bf16.msra.mxu0 %v12231_v15  ;;  %9401 = vmatpush1.bf16.msra.mxu1 %v12234_v3  ;;  %v12296_v15 = vld [vmem:[#allocation14 + $0x2cc] ss:$16 sps:$4 sm:$0xff]   ;;  %v12291_v3 = vld [vmem:[#allocation14 + $0x2c0] ss:$16 sps:$4 sm:$0xff]  }
 0xdf5   :  { %9320 = vmatprep.subr.bf16.mxu0 %v12239_v39  ;;  %9402 = vmatprep.subr.bf16.mxu1 %v12242_v56  ;;  %v12294_v39 = vld [vmem:[#allocation14 + $0x2c8] ss:$16 sps:$4 sm:$0xff]   ;;  %v12299_v56 = vld [vmem:[#allocation14 + $0x2e4] ss:$16 sps:$4 sm:$0xff]  }
 0xdf8   :  { %9321 = vmatpush1.bf16.msra.mxu0 %v12237_v19  ;;  %9403 = vmatpush1.bf16.msra.mxu1 %v12240_v36  ;;  %v12302_v19 = vld [vmem:[#allocation14 + $0x2ec] ss:$16 sps:$4 sm:$0xff]   ;;  %v12297_v36 = vld [vmem:[#allocation14 + $0x2e0] ss:$16 sps:$4 sm:$0xff]  }
 0xdf9   :  { %9322 = vmatprep.subr.bf16.mxu0 %v12245_v63  ;;  %9404 = vmatprep.subr.bf16.mxu1 %v12248_v50  ;;  %v12300_v63 = vld [vmem:[#allocation14 + $0x2e8] ss:$16 sps:$4 sm:$0xff]   ;;  %v12305_v50 = vld [vmem:[#allocation14 + $0x304] ss:$16 sps:$4 sm:$0xff]  }
 0xdfc   :  { %9323 = vmatpush1.bf16.msra.mxu0 %v12243_v4  ;;  %9405 = vmatpush1.bf16.msra.mxu1 %v12246_v46  ;;  %v12308_v4 = vld [vmem:[#allocation14 + $0x30c] ss:$16 sps:$4 sm:$0xff]   ;;  %v12303_v46 = vld [vmem:[#allocation14 + $0x300] ss:$16 sps:$4 sm:$0xff]  }
 0xdfd   :  { %9324 = vmatprep.subr.bf16.mxu0 %v12251_v53  ;;  %9406 = vmatprep.subr.bf16.mxu1 %v12254_v14  ;;  %v12306_v53 = vld [vmem:[#allocation14 + $0x308] ss:$16 sps:$4 sm:$0xff]   ;;  %v12311_v14 = vld [vmem:[#allocation14 + $0x324] ss:$16 sps:$4 sm:$0xff]  }
 0xe00   :  { %9325 = vmatpush1.bf16.msra.mxu0 %v12249_v61  ;;  %9407 = vmatpush1.bf16.msra.mxu1 %v12252_v13  ;;  %v12314_v61 = vld [vmem:[#allocation14 + $0x32c] ss:$16 sps:$4 sm:$0xff]   ;;  %v12309_v13 = vld [vmem:[#allocation14 + $0x320] ss:$16 sps:$4 sm:$0xff]  }
 0xe01   :  { %9335 = vmatprep.subr.bf16.mxu0 %v12257_v52  ;;  %9417 = vmatprep.subr.bf16.mxu1 %v12260_v38  ;;  %v12312_v52 = vld [vmem:[#allocation14 + $0x328] ss:$16 sps:$4 sm:$0xff]   ;;  %v12317_v38 = vld [vmem:[#allocation14 + $0x344] ss:$16 sps:$4 sm:$0xff]  }
 0xe96   :  { %v8407_v21 = vpop.f32.mrb[84].mxu0  ;;  %v14373_v22 = vpop.f32.mrb[84].mxu1 }
 0xe97   :  { %v11076_v23 = vadd.f32 %v8407_v21, %v7675_v10  ;;  %v8409_v24 = vpop.f32.mrb[85].mxu0  ;;  %v8491_v16 = vpop.f32.mrb[85].mxu1  ;;  %v12320_v10 = vld [vmem:[#allocation14 + $0x34c] ss:$16 sps:$4 sm:$0xff]   ;;  %v12323_v21 = vld [vmem:[#allocation14 + $0x364] ss:$16 sps:$4 sm:$0xff]  }
 0xe98   :  { %v11077_v25 = vadd.f32 %v8409_v24, %v7679_v40  ;;  %v11079_v26 = vadd.f32 %v8491_v16, %v7687_v42  ;;  %v8411_v27 = vpop.f32.mrb[86].mxu0  ;;  %v8493_v29 = vpop.f32.mrb[86].mxu1  ;;  %v12315_v40 = vld [vmem:[#allocation14 + $0x340] ss:$16 sps:$4 sm:$0xff]   ;;  %v12318_v42 = vld [vmem:[#allocation14 + $0x348] ss:$16 sps:$4 sm:$0xff]  }
 0xe99   :  { %v8496_v30 = vmax.f32 %v11076_v23, 0.0  ;;  %v8412_v31 = vpop.f32.mrb[87].mxu0  ;;  %v8494_v32 = vpop.f32.mrb[87].mxu1  ;;  %v12326_v23 = vld [vmem:[#allocation14 + $0x36c] ss:$16 sps:$4 sm:$0xff]  }
 0xe9a   :  { %v8497_v57 = vmax.f32 %v11077_v25, 0.0  ;;  %v8499_v60 = vmax.f32 %v11079_v26, 0.0  ;;  %v12321_v24 = vld [vmem:[#allocation14 + $0x360] ss:$16 sps:$4 sm:$0xff]   ;;  %v12324_v16 = vld [vmem:[#allocation14 + $0x368] ss:$16 sps:$4 sm:$0xff]  }
 0xe9b   :  { %v8500_v6 = vpack.c.bf16 %v8496_v30, %v8496_v30  ;;  %v12329_v25 = vld [vmem:[#allocation14 + $0x384] ss:$16 sps:$4 sm:$0xff]   ;;  %v12332_v26 = vld [vmem:[#allocation14 + $0x38c] ss:$16 sps:$4 sm:$0xff]   ;;  %v12327_v27 = vld [vmem:[#allocation14 + $0x380] ss:$16 sps:$4 sm:$0xff]  }
 0xe9c   :  { %v8501_v37 = vpack.c.bf16 %v8497_v57, %v8497_v57  ;;  %v8503_v17 = vpack.c.bf16 %v8499_v60, %v8499_v60  ;;  %v12330_v29 = vld [vmem:[#allocation14 + $0x388] ss:$16 sps:$4 sm:$0xff]   ;;  %v12335_v30 = vld [vmem:[#allocation14 + $0x3a4] ss:$16 sps:$4 sm:$0xff]   ;;  %v12338_v31 = vld [vmem:[#allocation14 + $0x3ac] ss:$16 sps:$4 sm:$0xff]   ;;  %v7683_v60 = vrot.slane %v14365_v45, %v14456_v58 }
 0xe9d   :  { %v12333_v32 = vld [vmem:[#allocation14 + $0x3a0] ss:$16 sps:$4 sm:$0xff]   ;;  %v12336_v57 = vld [vmem:[#allocation14 + $0x3a8] ss:$16 sps:$4 sm:$0xff]  }
 0xe9e   :  { %9326 = vmatprep.mubr.bf16.mxu0 %v8501_v37  ;;  %9408 = vmatprep.mubr.bf16.mxu1 %v8501_v37  ;;  %v12341_v37 = vld [vmem:[#allocation14 + $0x3c4] ss:$16 sps:$4 sm:$0xff]  }
 0xe9f   :  { %9327 = vmatmul.mubr.bf16.vlgmr.msra.gmra.mrb[88].mxu0 %v8500_v6  ;;  %9409 = vmatmul.mubr.bf16.vlgmr.msra.gmra.mrb[88].mxu1 %v8500_v6  ;;  %v12342_v6 = vld [vmem:[#allocation14 + $0x3c8] ss:$16 sps:$4 sm:$0xff]  }
 0xea0   :  { %9336 = vmatpush1.bf16.msra.mxu0 %v12255_v44  ;;  %9418 = vmatpush1.bf16.msra.mxu1 %v12258_v43  ;;  %v12344_v44 = vld [vmem:[#allocation14 + $0x3cc] ss:$16 sps:$4 sm:$0xff]   ;;  %v12339_v43 = vld [vmem:[#allocation14 + $0x3c0] ss:$16 sps:$4 sm:$0xff]   ;;  %v12351_v45 = vld [vmem:[#allocation17 + $0x40] sm:$0xff]  }
 0xea1   :  { %9367 = vmatprep.mubr.bf16.mxu0 %v8503_v17  ;;  %9449 = vmatprep.mubr.bf16.mxu1 %v8503_v17  ;;  %v12350_v17 = vld [vmem:[#allocation14 + $0x3ec] ss:$16 sps:$4 sm:$0xff]  }
 0xea2   :  { %9337 = vmatprep.subr.bf16.mxu0 %v12263_v34  ;;  %9419 = vmatprep.subr.bf16.mxu1 %v12266_v35  ;;  %v11078_v34 = vadd.f32 %v14373_v22, %v7683_v60  ;;  %v12347_v35 = vld [vmem:[#allocation14 + $0x3e4] ss:$16 sps:$4 sm:$0xff]   ;;  %v12355_v22 = vld [vmem:[#allocation17 + $0x48] sm:$0xff]  }
 0xea4   :  { %9338 = vmatpush1.bf16.msra.mxu0 %v12261_v0  ;;  %9420 = vmatpush1.bf16.msra.mxu1 %v12264_v18  ;;  %v12345_v0 = vld [vmem:[#allocation14 + $0x3e0] ss:$16 sps:$4 sm:$0xff]   ;;  %v12348_v18 = vld [vmem:[#allocation14 + $0x3e8] ss:$16 sps:$4 sm:$0xff]  }
 0xea5   :  { %9339 = vmatprep.subr.bf16.mxu0 %v12269_v47  ;;  %9421 = vmatprep.subr.bf16.mxu1 %v12272_v48  ;;  %v8498_v47 = vmax.f32 %v11078_v34, 0.0  ;;  %v12352_v48 = vld [vmem:[#allocation17 + $0xc0] sm:$0xff]  }
 0xea8   :  { %9340 = vmatpush1.bf16.msra.mxu0 %v12267_v49  ;;  %9422 = vmatpush1.bf16.msra.mxu1 %v12270_v51  ;;  %v12353_v49 = vld [vmem:[#allocation17] sm:$0xff]  }
 0xea9   :  { %9341 = vmatprep.subr.bf16.mxu0 %v12275_v8  ;;  %9423 = vmatprep.subr.bf16.mxu1 %v12278_v62  ;;  %v12354_v51 = vld [vmem:[#allocation17 + $0x80] sm:$0xff]   ;;  %v8502_v8 = vpack.c.bf16 %v8498_v47, %v8498_v47  ;;  %v12356_v62 = vld [vmem:[#allocation17 + $0xc8] sm:$0xff]  }
 0xeac   :  { %9342 = vmatpush1.bf16.msra.mxu0 %v12273_v5  ;;  %9424 = vmatpush1.bf16.msra.mxu1 %v12276_v9  ;;  %v12357_v5 = vld [vmem:[#allocation17 + $0x8] sm:$0xff]  }
 0xead   :  { %9343 = vmatprep.subr.bf16.mxu0 %v12281_v55  ;;  %9425 = vmatprep.subr.bf16.mxu1 %v12284_v11  ;;  %v12358_v9 = vld [vmem:[#allocation17 + $0x88] sm:$0xff]   ;;  %v12359_v55 = vld [vmem:[#allocation17 + $0x50] sm:$0xff]  }
 0xeae   :  { %v12360_v11 = vld [vmem:[#allocation17 + $0xd0] sm:$0xff]  }
 0xeb0   :  { %9344 = vmatpush1.bf16.msra.mxu0 %v12279_v28  ;;  %9426 = vmatpush1.bf16.msra.mxu1 %v12282_v41  ;;  %v12361_v28 = vld [vmem:[#allocation17 + $0x10] sm:$0xff]  }
 0xeb1   :  { %9345 = vmatprep.subr.bf16.mxu0 %v12287_v59  ;;  %9427 = vmatprep.subr.bf16.mxu1 %v12290_v2  ;;  %v12362_v41 = vld [vmem:[#allocation17 + $0x90] sm:$0xff]   ;;  %v12363_v59 = vld [vmem:[#allocation17 + $0x58] sm:$0xff]  }
 0xeb2   :  { %v12364_v2 = vld [vmem:[#allocation17 + $0xd8] sm:$0xff]  }
 0xeb4   :  { %9346 = vmatpush1.bf16.msra.mxu0 %v12285_v7  ;;  %9428 = vmatpush1.bf16.msra.mxu1 %v12288_v12  ;;  %v12365_v7 = vld [vmem:[#allocation17 + $0x18] sm:$0xff]  }
 0xeb5   :  { %9347 = vmatprep.subr.bf16.mxu0 %v12293_v1  ;;  %9429 = vmatprep.subr.bf16.mxu1 %v12296_v15  ;;  %v12366_v12 = vld [vmem:[#allocation17 + $0x98] sm:$0xff]   ;;  %v12367_v1 = vld [vmem:[#allocation17 + $0x60] sm:$0xff]  }
 0xeb6   :  { %v12368_v15 = vld [vmem:[#allocation17 + $0xe0] sm:$0xff]  }
 0xeb8   :  { %9348 = vmatpush1.bf16.msra.mxu0 %v12291_v3  ;;  %9430 = vmatpush1.bf16.msra.mxu1 %v12294_v39  ;;  %v12369_v3 = vld [vmem:[#allocation17 + $0x20] sm:$0xff]  }
 0xeb9   :  { %9349 = vmatprep.subr.bf16.mxu0 %v12299_v56  ;;  %9431 = vmatprep.subr.bf16.mxu1 %v12302_v19  ;;  %v12370_v39 = vld [vmem:[#allocation17 + $0xa0] sm:$0xff]   ;;  %v12371_v56 = vld [vmem:[#allocation17 + $0x68] sm:$0xff]  }
 0xeba   :  { %v12372_v19 = vld [vmem:[#allocation17 + $0xe8] sm:$0xff]  }
 0xebc   :  { %9350 = vmatpush1.bf16.msra.mxu0 %v12297_v36  ;;  %9432 = vmatpush1.bf16.msra.mxu1 %v12300_v63  ;;  %v12373_v36 = vld [vmem:[#allocation17 + $0x28] sm:$0xff]  }
 0xebd   :  { %9351 = vmatprep.subr.bf16.mxu0 %v12305_v50  ;;  %9433 = vmatprep.subr.bf16.mxu1 %v12308_v4  ;;  %v12374_v63 = vld [vmem:[#allocation17 + $0xa8] sm:$0xff]   ;;  %v12375_v50 = vld [vmem:[#allocation17 + $0x70] sm:$0xff]  }
 0xebe   :  { %v12376_v4 = vld [vmem:[#allocation17 + $0xf0] sm:$0xff]  }
 0xec0   :  { %9352 = vmatpush1.bf16.msra.mxu0 %v12303_v46  ;;  %9434 = vmatpush1.bf16.msra.mxu1 %v12306_v53  ;;  %v12377_v46 = vld [vmem:[#allocation17 + $0x30] sm:$0xff]  }
 0xec1   :  { %9353 = vmatprep.subr.bf16.mxu0 %v12311_v14  ;;  %9435 = vmatprep.subr.bf16.mxu1 %v12314_v61  ;;  %v12378_v53 = vld [vmem:[#allocation17 + $0xb0] sm:$0xff]   ;;  %v12379_v14 = vld [vmem:[#allocation17 + $0x78] sm:$0xff]  }
 0xec2   :  { %v12380_v61 = vld [vmem:[#allocation17 + $0xf8] sm:$0xff]  }
 0xec4   :  { %9354 = vmatpush1.bf16.msra.mxu0 %v12309_v13  ;;  %9436 = vmatpush1.bf16.msra.mxu1 %v12312_v52  ;;  %v12381_v13 = vld [vmem:[#allocation17 + $0x38] sm:$0xff]  }
 0xec5   :  { %9355 = vmatprep.subr.bf16.mxu0 %v12317_v38  ;;  %9437 = vmatprep.subr.bf16.mxu1 %v12320_v10  ;;  %v12382_v52 = vld [vmem:[#allocation17 + $0xb8] sm:$0xff]  }
 0xec6   :  { %v8632_v38 = vld [vmem:[#allocation16] sm:$0xf] }
 0xec7   :  { %v8637_v10 = vrot.slane %v8632_v38, %v14455_v54 }
 0xec8   :  { %9356 = vmatpush1.bf16.msra.mxu0 %v12315_v40  ;;  %9438 = vmatpush1.bf16.msra.mxu1 %v12318_v42  ;;  %v8645_v40 = vrot.slane %v8632_v38, %v14456_v58  ;;  %v8641_v42 = vrot.slane %v8632_v38, %v14457_v20 }
 0xec9   :  { %9357 = vmatprep.subr.bf16.mxu0 %v12323_v21  ;;  %9439 = vmatprep.subr.bf16.mxu1 %v12326_v23  ;;  %v8649_v21 = vrot.slane %v8632_v38, %v14458_v33 }
 0xecc   :  { %9358 = vmatpush1.bf16.msra.mxu0 %v12321_v24  ;;  %9440 = vmatpush1.bf16.msra.mxu1 %v12324_v16 }
 0xecd   :  { %9359 = vmatprep.subr.bf16.mxu0 %v12329_v25  ;;  %9441 = vmatprep.subr.bf16.mxu1 %v12332_v26 }
 0xed0   :  { %9360 = vmatpush1.bf16.msra.mxu0 %v12327_v27  ;;  %9442 = vmatpush1.bf16.msra.mxu1 %v12330_v29 }
 0xed1   :  { %9361 = vmatprep.subr.bf16.mxu0 %v12335_v30  ;;  %9443 = vmatprep.subr.bf16.mxu1 %v12338_v31 }
 0xed4   :  { %9362 = vmatpush1.bf16.msra.mxu0 %v12333_v32  ;;  %9444 = vmatpush1.bf16.msra.mxu1 %v12336_v57 }
 0xed5   :  { %9363 = vmatprep.subr.bf16.mxu0 %v12341_v37  ;;  %9445 = vmatprep.subr.bf16.mxu1 %v12344_v44 }
 0xed8   :  { %9364 = vmatpush1.bf16.msra.mxu0 %v12339_v43  ;;  %9446 = vmatpush1.bf16.msra.mxu1 %v12342_v6 }
 0xed9   :  { %9365 = vmatprep.subr.bf16.mxu0 %v12347_v35  ;;  %9447 = vmatprep.subr.bf16.mxu1 %v12350_v17  ;;  %v10975_v17 = vld [vmem:[%s14405_s17] ss:$0 sm:$0xff] }
 0xedc   :  { %9366 = vmatpush1.bf16.msra.mxu0 %v12345_v0  ;;  %9448 = vmatpush1.bf16.msra.mxu1 %v12348_v18 }
 0xedd   :  { %11024 = vmatprep.subr.bf16.mxu0 %v12351_v45  ;;  %11046 = vmatprep.subr.bf16.mxu1 %v12352_v48 }
 0xedf   :  { %9368 = vmatmul.mubr.bf16.vlgmr.msra.gmra.mrb[88].mxu0 %v8502_v8  ;;  %9450 = vmatmul.mubr.bf16.vlgmr.msra.gmra.mrb[88].mxu1 %v8502_v8 }
 0xee0   :  { %11025 = vmatpush3.bf16.msra.mxu0 %v12353_v49  ;;  %11047 = vmatpush3.bf16.msra.mxu1 %v12354_v51 }
 0xee1   :  { %11026 = vmatprep.subr.bf16.mxu0 %v12355_v22  ;;  %11048 = vmatprep.subr.bf16.mxu1 %v12356_v62 }
 0xee4   :  { %11027 = vmatpush3.bf16.msra.mxu0 %v12357_v5  ;;  %11049 = vmatpush3.bf16.msra.mxu1 %v12358_v9 }
 0xee5   :  { %11028 = vmatprep.subr.bf16.mxu0 %v12359_v55  ;;  %11050 = vmatprep.subr.bf16.mxu1 %v12360_v11 }
 0xee8   :  { %11029 = vmatpush3.bf16.msra.mxu0 %v12361_v28  ;;  %11051 = vmatpush3.bf16.msra.mxu1 %v12362_v41 }
 0xee9   :  { %11030 = vmatprep.subr.bf16.mxu0 %v12363_v59  ;;  %11052 = vmatprep.subr.bf16.mxu1 %v12364_v2 }
 0xeec   :  { %11031 = vmatpush3.bf16.msra.mxu0 %v12365_v7  ;;  %11053 = vmatpush3.bf16.msra.mxu1 %v12366_v12 }
 0xeed   :  { %11032 = vmatprep.subr.bf16.mxu0 %v12367_v1  ;;  %11054 = vmatprep.subr.bf16.mxu1 %v12368_v15 }
 0xef0   :  { %11033 = vmatpush3.bf16.msra.mxu0 %v12369_v3  ;;  %11055 = vmatpush3.bf16.msra.mxu1 %v12370_v39 }
 0xef1   :  { %11034 = vmatprep.subr.bf16.mxu0 %v12371_v56  ;;  %11056 = vmatprep.subr.bf16.mxu1 %v12372_v19 }
 0xef4   :  { %11035 = vmatpush3.bf16.msra.mxu0 %v12373_v36  ;;  %11057 = vmatpush3.bf16.msra.mxu1 %v12374_v63 }
 0xef5   :  { %11036 = vmatprep.subr.bf16.mxu0 %v12375_v50  ;;  %11058 = vmatprep.subr.bf16.mxu1 %v12376_v4 }
 0xef8   :  { %11037 = vmatpush3.bf16.msra.mxu0 %v12377_v46  ;;  %11059 = vmatpush3.bf16.msra.mxu1 %v12378_v53 }
 0xef9   :  { %11038 = vmatprep.subr.bf16.mxu0 %v12379_v14  ;;  %11060 = vmatprep.subr.bf16.mxu1 %v12380_v61 }
 0xefc   :  { %11039 = vmatpush3.bf16.msra.mxu0 %v12381_v13  ;;  %11061 = vmatpush3.bf16.msra.mxu1 %v12382_v52 }
 0xfb2   :  { %v9369_v23 = vpop.f32.mrb[88].mxu0  ;;  %v9451_v24 = vpop.f32.mrb[88].mxu1 }
 0xfb3   :  { %v11080_v16 = vadd.f32 %v9369_v23, %v8637_v10  ;;  %v11082_v25 = vadd.f32 %v9451_v24, %v8645_v40  ;;  %v9371_v26 = vpop.f32.mrb[89].mxu0  ;;  %v9453_v27 = vpop.f32.mrb[89].mxu1 }
 0xfb4   :  { %v11081_v29 = vadd.f32 %v9371_v26, %v8641_v42  ;;  %v11083_v30 = vadd.f32 %v9453_v27, %v8649_v21  ;;  %v9373_v31 = vpop.f32.mrb[90].mxu0  ;;  %v9455_v32 = vpop.f32.mrb[90].mxu1 }
 0xfb5   :  { %v9458_v57 = vmax.f32 %v11080_v16, 0.0  ;;  %v9460_v60 = vmax.f32 %v11082_v25, 0.0  ;;  %v9374_v37 = vpop.f32.mrb[91].mxu0  ;;  %v9456_v54 = vpop.f32.mrb[91].mxu1 }
 0xfb6   :  { %v9459_v44 = vmax.f32 %v11081_v29, 0.0  ;;  %v9461_v58 = vmax.f32 %v11083_v30, 0.0 }
 0xfb7   :  { %v9462_v6 = vpack.c.bf16 %v9458_v57, %v9458_v57  ;;  %v9464_v33 = vpack.c.bf16 %v9460_v60, %v9460_v60 }
 0xfb8   :  { %v9463_v43 = vpack.c.bf16 %v9459_v44, %v9459_v44  ;;  %v9465_v20 = vpack.c.bf16 %v9461_v58, %v9461_v58 }
 0xfba   :  { %9761 = vmatprep.mubr.bf16.mxu0 %v9463_v43  ;;  %9801 = vmatprep.mubr.bf16.mxu1 %v9465_v20 }
 0xfbb   :  { %9762 = vmatmul.mubr.bf16.vlgmr.msra.gmra.mrb[92].mxu0 %v9462_v6  ;;  %9802 = vmatmul.mubr.bf16.vlgmr.msra.gmra.mrb[92].mxu1 %v9464_v33 }
0x108e   :  { %v11040_v34 = vpop.f32.mrb[92].mxu0  ;;  %v11062_v35 = vpop.f32.mrb[92].mxu1 }
0x108f   :  { %v11041_v0 = vpop.f32.mrb[93].mxu0  ;;  %v11063_v18 = vpop.f32.mrb[93].mxu1 }
0x1090   :  { %v11042_v47 = vadd.f32 %v11041_v0, %v11040_v34  ;;  %v11064_v45 = vadd.f32 %v11063_v18, %v11062_v35  ;;  %v11043_v48 = vpop.f32.mrb[94].mxu0  ;;  %v11065_v49 = vpop.f32.mrb[94].mxu1 }
0x1091   :  { %v11044_v51 = vpop.f32.mrb[95].mxu0  ;;  %v11066_v8 = vpop.f32.mrb[95].mxu1 }
0x1092   :  { %v9764_v22 = vadd.f32 %v11042_v47, %v10975_v17 }
0x1094   :  { %v9804_v62 = vadd.f32 %v11064_v45, %v9764_v22 }
0x1096   :  { %9809 = vst [vmem:[%s14406_s18] sm:$0xff] %v9804_v62 }
0x1097   :  { %9814 = vsyncpa [#allocation4], 1 }
0x1098   :  { %9815 = vsyncpa [#allocation6], 1 }
0x1099   :  { %9816 = vsyncpa [#allocation9], 1 }
0x109a   :  { %9817 = vsyncpa [#allocation12], 1 }
0x109b   :  { %9818 = vsyncpa [#allocation15], 1 }
0x109c   :  { %9819 = vsyncpa [#allocation18], 1 }

</bundles_post_ra>
